<compile_context>
chip_gen: v6e
topology: v6e:2x2x1
jax: 0.10.0
libtpu: 0.0.40
codegen_flags: <defaults>
</compile_context>

<pallas_src>
import jax
import jax.numpy as jnp
from jax.experimental import pallas as pl
from jax.experimental.pallas import tpu as pltpu

IN_DIM = 32 * 32 * 3   # 3072
H1 = 512
H2 = 256
OUT_DIM = 10
OUT_PAD = 128          # lane-dense fc3 output (pad 10 -> 128)
MAX_TILE_B = 512       # per-step batch tile cap (VMEM-safe on v5e/v6e/v7x)
NEG_BIG = -1e30        # baked into the padded b3 lanes (Python float, not traced)


def _mlp_kernel(x_ref, w1_ref, b1_ref, w2_ref, b2_ref, w3_ref, b3_ref, o_ref):
    # fc1 + relu (cast f32 x tile to bf16 in-kernel; f32 accumulation on the MXU)
    x = x_ref[...].astype(jnp.bfloat16)
    h1 = jnp.dot(x, w1_ref[...], preferred_element_type=jnp.float32)
    h1 = jnp.maximum(h1 + b1_ref[...], 0.0)
    # fc2 + relu
    h2 = jnp.dot(h1.astype(jnp.bfloat16), w2_ref[...],
                 preferred_element_type=jnp.float32)
    h2 = jnp.maximum(h2 + b2_ref[...], 0.0)
    # fc3 (output lanes padded to OUT_PAD; pad-lane bias is -1e30 so those lanes
    # vanish in the softmax normalizer — no in-kernel masking needed)
    logits = jnp.dot(h2.astype(jnp.bfloat16), w3_ref[...],
                     preferred_element_type=jnp.float32)
    logits = logits + b3_ref[...]
    # log_softmax over the last axis
    m = jnp.max(logits, axis=-1, keepdims=True)
    shifted = logits - m
    lse = jnp.log(jnp.sum(jnp.exp(shifted), axis=-1, keepdims=True))
    o_ref[...] = (shifted - lse).astype(o_ref.dtype)


def _round_up(x, m):
    return ((x + m - 1) // m) * m


def _pick_tile_b(batch):
    """Batch tile: as large as possible (cap 512) while keeping >=2 grid steps
    when the batch allows it (lets v7x's two TensorCores split the work)."""
    b_pad = _round_up(batch, 128)
    if b_pad <= 128:
        return 128
    return min(MAX_TILE_B, _round_up(b_pad // 2, 128))


def mlp_forward(x_nchw, params):
    """x_nchw: (B, 3, 32, 32) float32 -> (B, 10) log-probabilities (float32)."""
    B = x_nchw.shape[0]
    x_flat = x_nchw.reshape(B, IN_DIM)          # stays float32 (cast happens in-kernel)

    tile_b = _pick_tile_b(B)
    num_tiles = pl.cdiv(B, tile_b)
    B_pad = num_tiles * tile_b
    if B_pad != B:
        x_flat = jnp.pad(x_flat, ((0, B_pad - B), (0, 0)))

    w1, b1, w2, b2, w3, b3 = params
    # Pad fc3 to 128 output lanes: zero weight columns, -1e30 bias lanes.
    w3p = jnp.pad(w3, ((0, 0), (0, OUT_PAD - OUT_DIM)))
    b3p = jnp.pad(b3, ((0, 0), (0, OUT_PAD - OUT_DIM)), constant_values=NEG_BIG)

    const = lambda i: (0, 0)          # weights/biases: same block every grid step
    resident = pl.Buffered(buffer_count=1)   # block index never changes -> 1 buffer

    out_padded = pl.pallas_call(
        _mlp_kernel,
        out_shape=jax.ShapeDtypeStruct((B_pad, OUT_PAD), jnp.float32),
        grid=(num_tiles,),
        in_specs=[
            pl.BlockSpec((tile_b, IN_DIM), lambda i: (i, 0)),            # x (pipelined)
            pl.BlockSpec((IN_DIM, H1), const, pipeline_mode=resident),   # w1
            pl.BlockSpec((1, H1), const, pipeline_mode=resident),        # b1
            pl.BlockSpec((H1, H2), const, pipeline_mode=resident),       # w2
            pl.BlockSpec((1, H2), const, pipeline_mode=resident),        # b2
            pl.BlockSpec((H2, OUT_PAD), const, pipeline_mode=resident),  # w3 (padded)
            pl.BlockSpec((1, OUT_PAD), const, pipeline_mode=resident),   # b3 (padded)
        ],
        out_specs=pl.BlockSpec((tile_b, OUT_PAD), lambda i: (i, 0)),
        compiler_params=pltpu.CompilerParams(
            dimension_semantics=("parallel",),   # shard batch tiles across TCs (v7x)
            vmem_limit_bytes=32 << 20,           # ~19 MiB used at tile_b=512 (f32 x)
        ),
    )(x_flat, w1, b1, w2, b2, w3p, b3p)

    return out_padded[:B, :OUT_DIM]


def init_params(key):
    """Deterministic init mimicking torch.nn.Linear (uniform +-1/sqrt(fan_in)).
    Weights stored as (in, out) in bfloat16; biases as (1, out) float32."""
    def linear(key, fan_in, fan_out):
        kw, kb = jax.random.split(key)
        bound = 1.0 / jnp.sqrt(jnp.float32(fan_in))
        w = jax.random.uniform(kw, (fan_in, fan_out), jnp.float32, -bound, bound)
        b = jax.random.uniform(kb, (1, fan_out), jnp.float32, -bound, bound)
        return w.astype(jnp.bfloat16), b

    k1, k2, k3 = jax.random.split(key, 3)
    w1, b1 = linear(k1, IN_DIM, H1)
    w2, b2 = linear(k2, H1, H2)
    w3, b3 = linear(k3, H2, OUT_DIM)
    return (w1, b1, w2, b2, w3, b3)


def reference_forward(x_nchw, params):
    """Pure-JAX reference with the same bf16-in / f32-accumulate arithmetic."""
    w1, b1, w2, b2, w3, b3 = params
    x = x_nchw.reshape(x_nchw.shape[0], IN_DIM).astype(jnp.bfloat16)
    h = jnp.dot(x, w1, preferred_element_type=jnp.float32) + b1
    h = jnp.maximum(h, 0.0)
    h = jnp.dot(h.astype(jnp.bfloat16), w2, preferred_element_type=jnp.float32) + b2
    h = jnp.maximum(h, 0.0)
    logits = jnp.dot(h.astype(jnp.bfloat16), w3,
                     preferred_element_type=jnp.float32) + b3
    return jax.nn.log_softmax(logits, axis=1)


if __name__ == "__main__":
    key = jax.random.PRNGKey(0)
    k_params, k_x = jax.random.split(key)

    params = init_params(k_params)
    # Small batch; spatial/channel dims are fixed by the module (32*32*3 = 3072).
    x = jax.random.normal(k_x, (2, 3, 32, 32), jnp.float32)

    out = mlp_forward(x, params)
    out = jax.block_until_ready(out)

    ref = reference_forward(x, params)
    assert out.shape == (2, 10), out.shape
    assert bool(jnp.all(jnp.isfinite(out))), "non-finite output"
    assert jnp.allclose(out, ref, atol=5e-3, rtol=5e-3), "mismatch vs reference"

    print("KERNEL_OK")
</pallas_src>

<mosaic_0001>
module attributes {stable_mosaic.version = 11 : i64} {
  func.func @_mlp_kernel(%arg0: i32, %arg1: memref<128x3072xf32, #tpu.memory_space<vmem>>, %arg2: memref<3072x512xbf16, #tpu.memory_space<vmem>>, %arg3: memref<1x512xf32, #tpu.memory_space<vmem>>, %arg4: memref<512x256xbf16, #tpu.memory_space<vmem>>, %arg5: memref<1x256xf32, #tpu.memory_space<vmem>>, %arg6: memref<256x128xbf16, #tpu.memory_space<vmem>>, %arg7: memref<1x128xf32, #tpu.memory_space<vmem>>, %arg8: memref<128x128xf32, #tpu.memory_space<vmem>>) attributes {dimension_semantics = [#tpu.dimension_semantics<parallel>], iteration_bounds = array<i64: 1>, scalar_prefetch = 0 : i64, scratch_operands = 0 : i64, tpu.core_type = #tpu.core_type<tc>, window_params = [{transform_indices = @transform_0, window_bounds = array<i64: 128, 3072>}, {pipeline_mode = #tpu.pipeline_mode<synchronous>, transform_indices = @transform_1, window_bounds = array<i64: 3072, 512>}, {pipeline_mode = #tpu.pipeline_mode<synchronous>, transform_indices = @transform_2, window_bounds = array<i64: 1, 512>}, {pipeline_mode = #tpu.pipeline_mode<synchronous>, transform_indices = @transform_3, window_bounds = array<i64: 512, 256>}, {pipeline_mode = #tpu.pipeline_mode<synchronous>, transform_indices = @transform_4, window_bounds = array<i64: 1, 256>}, {pipeline_mode = #tpu.pipeline_mode<synchronous>, transform_indices = @transform_5, window_bounds = array<i64: 256, 128>}, {pipeline_mode = #tpu.pipeline_mode<synchronous>, transform_indices = @transform_6, window_bounds = array<i64: 1, 128>}, {transform_indices = @transform_7, window_bounds = array<i64: 128, 128>}]} {
    %c0 = arith.constant 0 : index
    %c0_0 = arith.constant 0 : index
    %0 = vector.load %arg1[%c0, %c0_0] : memref<128x3072xf32, #tpu.memory_space<vmem>>, vector<128x3072xf32>
    %1 = arith.truncf %0 : vector<128x3072xf32> to vector<128x3072xbf16>
    %c0_1 = arith.constant 0 : index
    %c0_2 = arith.constant 0 : index
    %2 = vector.load %arg2[%c0_1, %c0_2] : memref<3072x512xbf16, #tpu.memory_space<vmem>>, vector<3072x512xbf16>
    %cst = arith.constant dense<0.000000e+00> : vector<128x512xf32>
    %3 = tpu.matmul %1, %2, %cst {dimension_numbers = #tpu.dot_dimension_numbers<[1], [0], [0], [1], [0, 0, 1, 1], [], []>} : vector<128x3072xbf16>, vector<3072x512xbf16>, vector<128x512xf32> -> vector<128x512xf32>
    %c0_3 = arith.constant 0 : index
    %c0_4 = arith.constant 0 : index
    %4 = vector.load %arg3[%c0_3, %c0_4] : memref<1x512xf32, #tpu.memory_space<vmem>>, vector<1x512xf32>
    %5 = vector.broadcast %4 : vector<1x512xf32> to vector<128x512xf32>
    %6 = arith.addf %3, %5 : vector<128x512xf32>
    %cst_5 = arith.constant 0.000000e+00 : f32
    %7 = vector.broadcast %cst_5 : f32 to vector<128x512xf32>
    %8 = arith.maximumf %6, %7 : vector<128x512xf32>
    %9 = arith.truncf %8 : vector<128x512xf32> to vector<128x512xbf16>
    %c0_6 = arith.constant 0 : index
    %c0_7 = arith.constant 0 : index
    %10 = vector.load %arg4[%c0_6, %c0_7] : memref<512x256xbf16, #tpu.memory_space<vmem>>, vector<512x256xbf16>
    %cst_8 = arith.constant dense<0.000000e+00> : vector<128x256xf32>
    %11 = tpu.matmul %9, %10, %cst_8 {dimension_numbers = #tpu.dot_dimension_numbers<[1], [0], [0], [1], [0, 0, 1, 1], [], []>} : vector<128x512xbf16>, vector<512x256xbf16>, vector<128x256xf32> -> vector<128x256xf32>
    %c0_9 = arith.constant 0 : index
    %c0_10 = arith.constant 0 : index
    %12 = vector.load %arg5[%c0_9, %c0_10] : memref<1x256xf32, #tpu.memory_space<vmem>>, vector<1x256xf32>
    %13 = vector.broadcast %12 : vector<1x256xf32> to vector<128x256xf32>
    %14 = arith.addf %11, %13 : vector<128x256xf32>
    %cst_11 = arith.constant 0.000000e+00 : f32
    %15 = vector.broadcast %cst_11 : f32 to vector<128x256xf32>
    %16 = arith.maximumf %14, %15 : vector<128x256xf32>
    %17 = arith.truncf %16 : vector<128x256xf32> to vector<128x256xbf16>
    %c0_12 = arith.constant 0 : index
    %c0_13 = arith.constant 0 : index
    %18 = vector.load %arg6[%c0_12, %c0_13] : memref<256x128xbf16, #tpu.memory_space<vmem>>, vector<256x128xbf16>
    %cst_14 = arith.constant dense<0.000000e+00> : vector<128x128xf32>
    %19 = tpu.matmul %17, %18, %cst_14 {dimension_numbers = #tpu.dot_dimension_numbers<[1], [0], [0], [1], [0, 0, 1, 1], [], []>} : vector<128x256xbf16>, vector<256x128xbf16>, vector<128x128xf32> -> vector<128x128xf32>
    %c0_15 = arith.constant 0 : index
    %c0_16 = arith.constant 0 : index
    %20 = vector.load %arg7[%c0_15, %c0_16] : memref<1x128xf32, #tpu.memory_space<vmem>>, vector<1x128xf32>
    %21 = vector.broadcast %20 : vector<1x128xf32> to vector<128x128xf32>
    %22 = arith.addf %19, %21 : vector<128x128xf32>
    %cst_17 = arith.constant dense<0xFF800000> : vector<128xf32>
    %23 = vector.multi_reduction <maximumf>, %22, %cst_17 [1] : vector<128x128xf32> to vector<128xf32>
    %24 = vector.shape_cast %23 : vector<128xf32> to vector<128x1xf32>
    %25 = vector.broadcast %24 : vector<128x1xf32> to vector<128x128xf32>
    %26 = arith.subf %22, %25 : vector<128x128xf32>
    %27 = math.exp %26 : vector<128x128xf32>
    %cst_18 = arith.constant dense<0.000000e+00> : vector<128xf32>
    %28 = vector.multi_reduction <add>, %27, %cst_18 [1] : vector<128x128xf32> to vector<128xf32>
    %29 = vector.shape_cast %28 : vector<128xf32> to vector<128x1xf32>
    %30 = math.log %29 : vector<128x1xf32>
    %31 = vector.broadcast %30 : vector<128x1xf32> to vector<128x128xf32>
    %32 = arith.subf %26, %31 : vector<128x128xf32>
    %c0_19 = arith.constant 0 : index
    %c0_20 = arith.constant 0 : index
    %33 = vector.load %arg8[%c0_19, %c0_20] : memref<128x128xf32, #tpu.memory_space<vmem>>, vector<128x128xf32>
    tpu.vector_store %arg8[%c0_19, %c0_20], %32 {strides = array<i32>} : memref<128x128xf32, #tpu.memory_space<vmem>>, vector<128x128xf32>,
    return
  }
  func.func @transform_0(%arg0: i32) -> (i32, i32) {
    %c0_i32 = arith.constant 0 : i32
    %c0_i32_0 = arith.constant 0 : i32
    return %arg0, %c0_i32 : i32, i32
  }
  func.func @transform_1(%arg0: i32) -> (i32, i32) {
    %c0_i32 = arith.constant 0 : i32
    %c0_i32_0 = arith.constant 0 : i32
    %c0_i32_1 = arith.constant 0 : i32
    return %c0_i32, %c0_i32_0 : i32, i32
  }
  func.func @transform_2(%arg0: i32) -> (i32, i32) {
    %c0_i32 = arith.constant 0 : i32
    %c0_i32_0 = arith.constant 0 : i32
    %c0_i32_1 = arith.constant 0 : i32
    return %c0_i32, %c0_i32_0 : i32, i32
  }
  func.func @transform_3(%arg0: i32) -> (i32, i32) {
    %c0_i32 = arith.constant 0 : i32
    %c0_i32_0 = arith.constant 0 : i32
    %c0_i32_1 = arith.constant 0 : i32
    return %c0_i32, %c0_i32_0 : i32, i32
  }
  func.func @transform_4(%arg0: i32) -> (i32, i32) {
    %c0_i32 = arith.constant 0 : i32
    %c0_i32_0 = arith.constant 0 : i32
    %c0_i32_1 = arith.constant 0 : i32
    return %c0_i32, %c0_i32_0 : i32, i32
  }
  func.func @transform_5(%arg0: i32) -> (i32, i32) {
    %c0_i32 = arith.constant 0 : i32
    %c0_i32_0 = arith.constant 0 : i32
    %c0_i32_1 = arith.constant 0 : i32
    return %c0_i32, %c0_i32_0 : i32, i32
  }
  func.func @transform_6(%arg0: i32) -> (i32, i32) {
    %c0_i32 = arith.constant 0 : i32
    %c0_i32_0 = arith.constant 0 : i32
    %c0_i32_1 = arith.constant 0 : i32
    return %c0_i32, %c0_i32_0 : i32, i32
  }
  func.func @transform_7(%arg0: i32) -> (i32, i32) {
    %c0_i32 = arith.constant 0 : i32
    %c0_i32_0 = arith.constant 0 : i32
    return %arg0, %c0_i32 : i32, i32
  }
}

</mosaic_0001>

<bundles_post_ra>
// kernel: tpu_custom_call.1
= control target key start
LH: loop header
LB: loop body
LE: loop exit
PB: predicated region body
PF: predicated region fallthrough
CT: control target
= control target key end

     0   :  { %12 = vsyncpa [#allocation3], 0  ;;  %s13953_s0 = inlined_call_operand.hbm [shape: f32[128,3072], index: 0, kind: input, shape index: {}]   ;;  %s13954_s1 = inlined_call_operand.hbm [shape: bf16[3072,512], index: 1, kind: input, shape index: {}]   ;;  %s13955_s2 = inlined_call_operand.hbm [shape: f32[1,512], index: 2, kind: input, shape index: {}]   ;;  %s13956_s3 = inlined_call_operand.hbm [shape: bf16[512,256], index: 3, kind: input, shape index: {}]   ;;  %s13957_s4 = inlined_call_operand.hbm [shape: f32[1,256], index: 4, kind: input, shape index: {}]   ;;  %s13958_s5 = inlined_call_operand.hbm [shape: bf16[256,128], index: 5, kind: input, shape index: {}]   ;;  %s13959_s6 = inlined_call_operand.hbm [shape: f32[1,128], index: 6, kind: input, shape index: {}]   ;;  %s13960_s7 = inlined_call_operand.hbm [shape: f32[128,128], index: 7, kind: output, shape index: {}]  }
   0x1   :  { %13 = vsyncpa [#allocation6], 0 }
   0x2   :  { %14 = vsyncpa [#allocation9], 0 }
   0x3   :  { %15 = vsyncpa [#allocation12], 0 }
   0x4   :  { %16 = vsyncpa [#allocation4], 0  ;;  %s11673_s24 = smov [#allocation5]  }
   0x5   :  { %s34_s25 = sshll.u32 %s11673_s24, 4  ;;  %s35_s25 = int_to_ptr.vmem [resolvable:$true] %s34_s25 }
   0x6   :  { %s11511_s26 = scalar_lea.vmem %s35_s25, 98304  ;;  %p11516_p1 = scmp.lt.s32.totalorder %s35_s25, %s35_s25 }
   0x7   :  { %p11512_p0 = scmp.ne.s32.totalorder %s35_s25, %s11511_s26  ;;  %p11517_p2 = scmp.lt.s32.totalorder %s11511_s26, %s11511_s26 }
   0x9   :  { %p11518_p3 = por %p11517_p2, %p11516_p1 }
   0xb   :  { %p11519_p4 = pnand %p11518_p3, %p11512_p0 }
   0xd   :  { %11522 = shalt.err (!%p11519_p4)
}
   0xe   :  { %s11674_s27 = smov 256   ;;  %s11675_s28 = smov 16  }
   0xf   :  { %40 = dma.hbm_to_vmem [thread:$0]  %s13954_s1, 98304, %s35_s25, [#allocation6], %s11674_s27, %s11674_s27, %s11675_s28  }
  0x10   :  { %s11676_s8 = smov [#allocation8]  }
  0x11   :  { %s56_s9 = sshll.u32 %s11676_s8, 4  ;;  %s57_s9 = int_to_ptr.vmem [resolvable:$true] %s56_s9 }
  0x12   :  { %s11531_s10 = scalar_lea.vmem %s57_s9, 8192  ;;  %p11536_p6 = scmp.lt.s32.totalorder %s57_s9, %s57_s9 }
  0x13   :  { %p11532_p5 = scmp.ne.s32.totalorder %s57_s9, %s11531_s10  ;;  %p11537_p7 = scmp.lt.s32.totalorder %s11531_s10, %s11531_s10 }
  0x15   :  { %p11538_p8 = por %p11537_p7, %p11536_p6 }
  0x17   :  { %p11539_p9 = pnand %p11538_p8, %p11532_p5 }
  0x19   :  { %11542 = shalt.err (!%p11539_p9)
}
  0x1a   :  { %s11677_s11 = smov 128   ;;  %s11678_s12 = smov 8  }
  0x1b   :  { %62 = dma.hbm_to_vmem [thread:$0]  %s13956_s3, 8192, %s57_s9, [#allocation9], %s11677_s11, %s11677_s11, %s11678_s12  }
  0x1c   :  { %s11679_s1 = smov [#allocation11]  }
  0x1d   :  { %s78_s15 = sshll.u32 %s11679_s1, 4  ;;  %s79_s15 = int_to_ptr.vmem [resolvable:$true] %s78_s15 }
  0x1e   :  { %s11551_s16 = scalar_lea.vmem %s79_s15, 2048  ;;  %p11556_p11 = scmp.lt.s32.totalorder %s79_s15, %s79_s15 }
  0x1f   :  { %p11552_p10 = scmp.ne.s32.totalorder %s79_s15, %s11551_s16  ;;  %p11557_p12 = scmp.lt.s32.totalorder %s11551_s16, %s11551_s16 }
  0x21   :  { %p11558_p13 = por %p11557_p12, %p11556_p11 }
  0x23   :  { %p11559_p0 = pnand %p11558_p13, %p11552_p10 }
  0x25   :  { %11562 = shalt.err (!%p11559_p0)
}
  0x26   :  { %s11680_s17 = smov 64   ;;  %s11681_s18 = smov 4  }
  0x27   :  { %84 = dma.hbm_to_vmem [thread:$0]  %s13958_s5, 2048, %s79_s15, [#allocation12], %s11680_s17, %s11680_s17, %s11681_s18  }
  0x28   :  { %s11682_s21 = smov [#allocation2]  }
  0x29   :  { %s22_s22 = sshll.u32 %s11682_s21, 4  ;;  %s23_s22 = int_to_ptr.vmem [resolvable:$true] %s22_s22 }
  0x2a   :  { %s11571_s3 = scalar_lea.vmem %s23_s22, 49152  ;;  %p11576_p2 = scmp.lt.s32.totalorder %s23_s22, %s23_s22 }
  0x2b   :  { %p11572_p1 = scmp.ne.s32.totalorder %s23_s22, %s11571_s3  ;;  %p11577_p3 = scmp.lt.s32.totalorder %s11571_s3, %s11571_s3 }
  0x2d   :  { %p11578_p4 = por %p11577_p3, %p11576_p2 }
  0x2f   :  { %p11579_p5 = pnand %p11578_p4, %p11572_p1 }
  0x31   :  { %11582 = shalt.err (!%p11579_p5)
}
  0x32   :  { %s11683_s23 = smov 3072   ;;  %s11684_s24 = smov 192  }
  0x33   :  { %28 = dma.hbm_to_vmem [thread:$0]  %s13953_s0, 49152, %s23_s22, [#allocation3], %s11683_s23, %s11683_s23, %s11684_s24  }
  0x34   :  { %s11685_s27 = smov [#allocation7]   ;;  %s11686_s29 = smov [#allocation10]  }
  0x35   :  { %s47_s28 = sshll.u32 %s11685_s27, 4  ;;  %s69_s5 = sshll.u32 %s11686_s29, 4  ;;  %s48_s28 = int_to_ptr.vmem [resolvable:$true] %s47_s28  ;;  %s70_s5 = int_to_ptr.vmem [resolvable:$true] %s69_s5 }
  0x36   :  { %s11591_s30 = scalar_lea.vmem %s48_s28, 64  ;;  %p11596_p7 = scmp.lt.s32.totalorder %s48_s28, %s48_s28 }
  0x37   :  { %p11592_p6 = scmp.ne.s32.totalorder %s48_s28, %s11591_s30  ;;  %p11597_p8 = scmp.lt.s32.totalorder %s11591_s30, %s11591_s30 }
  0x39   :  { %p11598_p9 = por %p11597_p8, %p11596_p7 }
  0x3b   :  { %p11599_p10 = pnand %p11598_p9, %p11592_p6 }
  0x3d   :  { %11602 = shalt.err (!%p11599_p10)
}
  0x3e   :  { %50 = dma.hbm_to_vmem [thread:$0]  %s13955_s2, 64, %s48_s28, [#allocation6]  }
  0x3f   :  { %s11611_s10 = scalar_lea.vmem %s70_s5, 32  ;;  %p11616_p12 = scmp.lt.s32.totalorder %s70_s5, %s70_s5 }
  0x40   :  { %p11612_p11 = scmp.ne.s32.totalorder %s70_s5, %s11611_s10  ;;  %p11617_p13 = scmp.lt.s32.totalorder %s11611_s10, %s11611_s10 }
  0x42   :  { %p11618_p0 = por %p11617_p13, %p11616_p12 }
  0x44   :  { %p11619_p1 = pnand %p11618_p0, %p11612_p11 }
  0x46   :  { %11622 = shalt.err (!%p11619_p1)
}
  0x47   :  { %72 = dma.hbm_to_vmem [thread:$0]  %s13957_s4, 32, %s70_s5, [#allocation9]  }
  0x48   :  { %s11687_s14 = smov [#allocation13]  }
  0x49   :  { %s91_s1 = sshll.u32 %s11687_s14, 4  ;;  %s92_s1 = int_to_ptr.vmem [resolvable:$true] %s91_s1 }
  0x4a   :  { %s11631_s15 = scalar_lea.vmem %s92_s1, 16  ;;  %s11635_s16 = scalar_lea.vmem %s92_s1, 32 }
  0x4b   :  { %p11632_p2 = scmp.ne.s32.totalorder %s92_s1, %s11631_s15  ;;  %p11636_p3 = scmp.lt.s32.totalorder %s92_s1, %s92_s1 }
  0x4c   :  { %p11637_p4 = scmp.lt.s32.totalorder %s11635_s16, %s11631_s15 }
  0x4e   :  { %p11638_p5 = por %p11637_p4, %p11636_p3 }
  0x50   :  { %p11639_p6 = pnand %p11638_p5, %p11632_p2 }
  0x52   :  { %11642 = shalt.err (!%p11639_p6)
}
  0x53   :  { %94 = dma.hbm_to_vmem [thread:$0]  %s13959_s6, 16, %s92_s1, [#allocation12]  }
  0x54   :  { %11663 = dma.done.wait [#allocation3], 49152  }
  0x55   :  { %11664 = vsyncadd [#allocation3], 4294918144 }
  0x56   :  { %11665 = dma.done.wait [#allocation6], 98368  }
  0x57   :  { %11666 = vsyncadd [#allocation6], 4294868928 }
  0x58   :  { %11667 = dma.done.wait [#allocation9], 8224  }
  0x59   :  { %11668 = vsyncadd [#allocation9], 4294959072 }
  0x5a   :  { %11669 = dma.done.wait [#allocation12], 2064  }
  0x5b   :  { %11670 = vsyncadd [#allocation12], 4294965232  ;;  %v10174_v0 = vld [vmem:[#allocation5 + $0xe4] ss:$16 sps:$4 sm:$0xff]   ;;  %v10178_v2 = vld [vmem:[#allocation5 + $0xe0] ss:$16 sps:$4 sm:$0xff]  }
  0x5c   :  { %v10176_v1 = vld [vmem:[#allocation5 + $0x2e4] ss:$16 sps:$4 sm:$0xff]   ;;  %5323 = vmatprep.subr.bf16.mxu0 %v10174_v0  ;;  %v10179_v3 = vld [vmem:[#allocation5 + $0x2e0] ss:$16 sps:$4 sm:$0xff]   ;;  %v118_v46 = vld [vmem:[#allocation2 + $0x8] sm:$0xff]  ;;  %s11688_s4 = smov [#allocation14]  }
  0x5d   :  { %5436 = vmatprep.subr.bf16.mxu1 %v10176_v1  ;;  %v10180_v4 = vld [vmem:[#allocation5 + $0xc4] ss:$16 sps:$4 sm:$0xff]   ;;  %5324 = vmatpush1.bf16.msra.mxu0 %v10178_v2  ;;  %v10184_v6 = vld [vmem:[#allocation5 + $0xc0] ss:$16 sps:$4 sm:$0xff]   ;;  %v142_v47 = vld [vmem:[#allocation2 + $0xc8] sm:$0xff]  ;;  %s9214_s6 = sshll.u32 %s11688_s4, 4  ;;  %s9215_s6 = int_to_ptr.vmem [resolvable:$true] %s9214_s6 }
  0x5e   :  { %5437 = vmatpush1.bf16.msra.mxu1 %v10179_v3  ;;  %v10182_v5 = vld [vmem:[#allocation5 + $0x2c4] ss:$16 sps:$4 sm:$0xff]   ;;  %5325 = vmatprep.subr.bf16.mxu0 %v10180_v4  ;;  %v10185_v7 = vld [vmem:[#allocation5 + $0x2c0] ss:$16 sps:$4 sm:$0xff]   ;;  %v120_v48 = vld [vmem:[#allocation2 + $0x18] sm:$0xff]  ;;  %v11753_v53 = vpack.c.bf16 %v142_v47, %v118_v46  ;;  %s11643_s18 = scalar_lea.vmem %s9215_s6, 2048  ;;  %p11648_p8 = scmp.lt.s32.totalorder %s9215_s6, %s9215_s6 }
  0x5f   :  { %5438 = vmatprep.subr.bf16.mxu1 %v10182_v5  ;;  %v10186_v8 = vld [vmem:[#allocation5 + $0xa4] ss:$16 sps:$4 sm:$0xff]   ;;  %v10190_v10 = vld [vmem:[#allocation5 + $0xa0] ss:$16 sps:$4 sm:$0xff]   ;;  %v144_v49 = vld [vmem:[#allocation2 + $0xd8] sm:$0xff]  ;;  %p11644_p7 = scmp.ne.s32.totalorder %s9215_s6, %s11643_s18  ;;  %p11649_p9 = scmp.lt.s32.totalorder %s11643_s18, %s11643_s18 }
  0x60   :  { %v10188_v9 = vld [vmem:[#allocation5 + $0x2a4] ss:$16 sps:$4 sm:$0xff]   ;;  %v10191_v11 = vld [vmem:[#allocation5 + $0x2a0] ss:$16 sps:$4 sm:$0xff]   ;;  %v11755_v54 = vpack.c.bf16 %v144_v49, %v120_v48  ;;  %5355 = vmatprep.mubr.bf16.mxu0 %v11753_v53 }
  0x61   :  { %5326 = vmatpush1.bf16.msra.mxu0 %v10184_v6  ;;  %v10192_v12 = vld [vmem:[#allocation5 + $0x84] ss:$16 sps:$4 sm:$0xff]   ;;  %v10196_v14 = vld [vmem:[#allocation5 + $0x80] ss:$16 sps:$4 sm:$0xff]   ;;  %p11650_p10 = por %p11649_p9, %p11648_p8 }
  0x62   :  { %5439 = vmatpush1.bf16.msra.mxu1 %v10185_v7  ;;  %5327 = vmatprep.subr.bf16.mxu0 %v10186_v8  ;;  %v10194_v13 = vld [vmem:[#allocation5 + $0x284] ss:$16 sps:$4 sm:$0xff]   ;;  %v10197_v15 = vld [vmem:[#allocation5 + $0x280] ss:$16 sps:$4 sm:$0xff]  }
  0x63   :  { %5440 = vmatprep.subr.bf16.mxu1 %v10188_v9  ;;  %v10198_v16 = vld [vmem:[#allocation5 + $0x64] ss:$16 sps:$4 sm:$0xff]   ;;  %v10202_v18 = vld [vmem:[#allocation5 + $0x60] ss:$16 sps:$4 sm:$0xff]   ;;  %5468 = vmatprep.mubr.bf16.mxu1 %v11755_v54  ;;  %p11651_p11 = pnand %p11650_p10, %p11644_p7 }
  0x64   :  { %v10200_v17 = vld [vmem:[#allocation5 + $0x264] ss:$16 sps:$4 sm:$0xff]   ;;  %v10203_v19 = vld [vmem:[#allocation5 + $0x260] ss:$16 sps:$4 sm:$0xff]  }
  0x65   :  { %5328 = vmatpush1.bf16.msra.mxu0 %v10190_v10  ;;  %v10204_v20 = vld [vmem:[#allocation5 + $0x44] ss:$16 sps:$4 sm:$0xff]   ;;  %v10208_v22 = vld [vmem:[#allocation5 + $0x40] ss:$16 sps:$4 sm:$0xff]  }
  0x66   :  { %5441 = vmatpush1.bf16.msra.mxu1 %v10191_v11  ;;  %5329 = vmatprep.subr.bf16.mxu0 %v10192_v12  ;;  %v10206_v21 = vld [vmem:[#allocation5 + $0x244] ss:$16 sps:$4 sm:$0xff]   ;;  %v10209_v23 = vld [vmem:[#allocation5 + $0x240] ss:$16 sps:$4 sm:$0xff]  }
  0x67   :  { %5442 = vmatprep.subr.bf16.mxu1 %v10194_v13  ;;  %v10210_v24 = vld [vmem:[#allocation5 + $0x24] ss:$16 sps:$4 sm:$0xff]   ;;  %v10214_v26 = vld [vmem:[#allocation5 + $0x20] ss:$16 sps:$4 sm:$0xff]  }
  0x68   :  { %v10212_v25 = vld [vmem:[#allocation5 + $0x224] ss:$16 sps:$4 sm:$0xff]   ;;  %v10215_v27 = vld [vmem:[#allocation5 + $0x220] ss:$16 sps:$4 sm:$0xff]  }
  0x69   :  { %5330 = vmatpush1.bf16.msra.mxu0 %v10196_v14  ;;  %v10216_v28 = vld [vmem:[#allocation5 + $0x4] ss:$16 sps:$4 sm:$0xff]   ;;  %v10220_v30 = vld [vmem:[#allocation5] ss:$16 sps:$4 sm:$0xff]   ;;  %v166_v14 = vld [vmem:[#allocation2 + $0x188] sm:$0xff] }
  0x6a   :  { %5443 = vmatpush1.bf16.msra.mxu1 %v10197_v15  ;;  %5331 = vmatprep.subr.bf16.mxu0 %v10198_v16  ;;  %v10218_v29 = vld [vmem:[#allocation5 + $0x204] ss:$16 sps:$4 sm:$0xff]   ;;  %v10221_v31 = vld [vmem:[#allocation5 + $0x200] ss:$16 sps:$4 sm:$0xff]   ;;  %v190_v15 = vld [vmem:[#allocation2 + $0x248] sm:$0xff] }
  0x6b   :  { %5444 = vmatprep.subr.bf16.mxu1 %v10200_v17  ;;  %v10222_v32 = vld [vmem:[#allocation5 + $0x1e4] ss:$16 sps:$4 sm:$0xff]   ;;  %v10226_v34 = vld [vmem:[#allocation5 + $0x1e0] ss:$16 sps:$4 sm:$0xff]  }
  0x6c   :  { %v10224_v33 = vld [vmem:[#allocation5 + $0x3e4] ss:$16 sps:$4 sm:$0xff]   ;;  %v10227_v35 = vld [vmem:[#allocation5 + $0x3e0] ss:$16 sps:$4 sm:$0xff]  }
  0x6d   :  { %5332 = vmatpush1.bf16.msra.mxu0 %v10202_v18  ;;  %v10228_v36 = vld [vmem:[#allocation5 + $0x1c4] ss:$16 sps:$4 sm:$0xff]   ;;  %v10232_v38 = vld [vmem:[#allocation5 + $0x1c0] ss:$16 sps:$4 sm:$0xff]   ;;  %v168_v18 = vld [vmem:[#allocation2 + $0x198] sm:$0xff] }
  0x6e   :  { %5445 = vmatpush1.bf16.msra.mxu1 %v10203_v19  ;;  %5333 = vmatprep.subr.bf16.mxu0 %v10204_v20  ;;  %v10230_v37 = vld [vmem:[#allocation5 + $0x3c4] ss:$16 sps:$4 sm:$0xff]   ;;  %v10233_v39 = vld [vmem:[#allocation5 + $0x3c0] ss:$16 sps:$4 sm:$0xff]   ;;  %v192_v19 = vld [vmem:[#allocation2 + $0x258] sm:$0xff] }
  0x6f   :  { %5446 = vmatprep.subr.bf16.mxu1 %v10206_v21  ;;  %v10234_v40 = vld [vmem:[#allocation5 + $0x1a4] ss:$16 sps:$4 sm:$0xff]   ;;  %v10238_v42 = vld [vmem:[#allocation5 + $0x1a0] ss:$16 sps:$4 sm:$0xff]  }
  0x70   :  { %v10236_v41 = vld [vmem:[#allocation5 + $0x3a4] ss:$16 sps:$4 sm:$0xff]   ;;  %v10239_v43 = vld [vmem:[#allocation5 + $0x3a0] ss:$16 sps:$4 sm:$0xff]  }
  0x71   :  { %5334 = vmatpush1.bf16.msra.mxu0 %v10208_v22  ;;  %v10240_v44 = vld [vmem:[#allocation5 + $0x184] ss:$16 sps:$4 sm:$0xff]   ;;  %v10244_v50 = vld [vmem:[#allocation5 + $0x180] ss:$16 sps:$4 sm:$0xff]  }
  0x72   :  { %5447 = vmatpush1.bf16.msra.mxu1 %v10209_v23  ;;  %5335 = vmatprep.subr.bf16.mxu0 %v10210_v24  ;;  %v10242_v45 = vld [vmem:[#allocation5 + $0x384] ss:$16 sps:$4 sm:$0xff]   ;;  %v10245_v51 = vld [vmem:[#allocation5 + $0x380] ss:$16 sps:$4 sm:$0xff]   ;;  %v11763_v23 = vpack.c.bf16 %v190_v15, %v166_v14  ;;  %v11765_v24 = vpack.c.bf16 %v192_v19, %v168_v18  ;;  %v312_v18 = vld [vmem:[#allocation2 + $0x618] sm:$0xff] }
  0x73   :  { %5448 = vmatprep.subr.bf16.mxu1 %v10212_v25  ;;  %v10246_v52 = vld [vmem:[#allocation5 + $0x164] ss:$16 sps:$4 sm:$0xff]   ;;  %v10250_v56 = vld [vmem:[#allocation5 + $0x160] ss:$16 sps:$4 sm:$0xff]   ;;  %v336_v19 = vld [vmem:[#allocation2 + $0x6d8] sm:$0xff] }
  0x74   :  { %v10248_v55 = vld [vmem:[#allocation5 + $0x364] ss:$16 sps:$4 sm:$0xff]   ;;  %v10251_v57 = vld [vmem:[#allocation5 + $0x360] ss:$16 sps:$4 sm:$0xff]  }
  0x75   :  { %5336 = vmatpush1.bf16.msra.mxu0 %v10214_v26  ;;  %v10252_v58 = vld [vmem:[#allocation5 + $0x144] ss:$16 sps:$4 sm:$0xff]   ;;  %v10256_v60 = vld [vmem:[#allocation5 + $0x140] ss:$16 sps:$4 sm:$0xff]  }
  0x76   :  { %5449 = vmatpush1.bf16.msra.mxu1 %v10215_v27  ;;  %5337 = vmatprep.subr.bf16.mxu0 %v10216_v28  ;;  %v10254_v59 = vld [vmem:[#allocation5 + $0x344] ss:$16 sps:$4 sm:$0xff]   ;;  %v10257_v61 = vld [vmem:[#allocation5 + $0x340] ss:$16 sps:$4 sm:$0xff]  }
  0x77   :  { %5450 = vmatprep.subr.bf16.mxu1 %v10218_v29  ;;  %v10258_v62 = vld [vmem:[#allocation5 + $0x124] ss:$16 sps:$4 sm:$0xff]   ;;  %v10262_v0 = vld [vmem:[#allocation5 + $0x120] ss:$16 sps:$4 sm:$0xff]  }
  0x78   :  { %v10260_v63 = vld [vmem:[#allocation5 + $0x324] ss:$16 sps:$4 sm:$0xff]   ;;  %v10263_v1 = vld [vmem:[#allocation5 + $0x320] ss:$16 sps:$4 sm:$0xff]  }
  0x79   :  { %5338 = vmatpush1.bf16.msra.mxu0 %v10220_v30  ;;  %v10264_v2 = vld [vmem:[#allocation5 + $0x104] ss:$16 sps:$4 sm:$0xff]   ;;  %v10268_v4 = vld [vmem:[#allocation5 + $0x100] ss:$16 sps:$4 sm:$0xff]  }
  0x7a   :  { %5451 = vmatpush1.bf16.msra.mxu1 %v10221_v31  ;;  %5339 = vmatprep.subr.bf16.mxu0 %v10222_v32  ;;  %v10266_v3 = vld [vmem:[#allocation5 + $0x304] ss:$16 sps:$4 sm:$0xff]   ;;  %v10269_v5 = vld [vmem:[#allocation5 + $0x300] ss:$16 sps:$4 sm:$0xff]  }
  0x7b   :  { %5452 = vmatprep.subr.bf16.mxu1 %v10224_v33  ;;  %v117_v6 = vld [vmem:[#allocation2] sm:$0xff]  ;;  %v119_v8 = vld [vmem:[#allocation2 + $0x10] sm:$0xff] }
  0x7c   :  { %v141_v7 = vld [vmem:[#allocation2 + $0xc0] sm:$0xff]  ;;  %v143_v9 = vld [vmem:[#allocation2 + $0xd0] sm:$0xff] }
  0x7d   :  { %5340 = vmatpush2.bf16.msra.mxu0 %v10226_v34  ;;  %v10272_v10 = vld [vmem:[#allocation5 + $0x4e4] ss:$16 sps:$4 sm:$0xff]   ;;  %v10270_v12 = vld [vmem:[#allocation5 + $0x4e0] ss:$16 sps:$4 sm:$0xff]   ;;  %v11759_v16 = vpack.c.bf16 %v141_v7, %v117_v6  ;;  %v11761_v17 = vpack.c.bf16 %v143_v9, %v119_v8  ;;  %v214_v34 = vld [vmem:[#allocation2 + $0x308] sm:$0xff] }
  0x7e   :  { %5453 = vmatpush2.bf16.msra.mxu1 %v10227_v35  ;;  %5341 = vmatprep.subr.bf16.mxu0 %v10228_v36  ;;  %v10275_v11 = vld [vmem:[#allocation5 + $0x6e4] ss:$16 sps:$4 sm:$0xff]   ;;  %v10273_v13 = vld [vmem:[#allocation5 + $0x6e0] ss:$16 sps:$4 sm:$0xff]   ;;  %v238_v35 = vld [vmem:[#allocation2 + $0x3c8] sm:$0xff] }
  0x7f   :  { %5454 = vmatprep.subr.bf16.mxu1 %v10230_v37  ;;  %v10278_v20 = vld [vmem:[#allocation5 + $0x4c4] ss:$16 sps:$4 sm:$0xff]   ;;  %v10276_v22 = vld [vmem:[#allocation5 + $0x4c0] ss:$16 sps:$4 sm:$0xff]  }
  0x80   :  { %v10281_v21 = vld [vmem:[#allocation5 + $0x6c4] ss:$16 sps:$4 sm:$0xff]   ;;  %v10279_v25 = vld [vmem:[#allocation5 + $0x6c0] ss:$16 sps:$4 sm:$0xff]  }
  0x81   :  { %5342 = vmatpush2.bf16.msra.mxu0 %v10232_v38  ;;  %v165_v26 = vld [vmem:[#allocation2 + $0x180] sm:$0xff]  ;;  %v167_v28 = vld [vmem:[#allocation2 + $0x190] sm:$0xff]  ;;  %v216_v38 = vld [vmem:[#allocation2 + $0x318] sm:$0xff] }
  0x82   :  { %5455 = vmatpush2.bf16.msra.mxu1 %v10233_v39  ;;  %5343 = vmatprep.subr.bf16.mxu0 %v10234_v40  ;;  %v189_v27 = vld [vmem:[#allocation2 + $0x240] sm:$0xff]  ;;  %v191_v29 = vld [vmem:[#allocation2 + $0x250] sm:$0xff]  ;;  %v240_v39 = vld [vmem:[#allocation2 + $0x3d8] sm:$0xff] }
  0x83   :  { %5456 = vmatprep.subr.bf16.mxu1 %v10236_v41  ;;  %v10284_v30 = vld [vmem:[#allocation5 + $0x4a4] ss:$16 sps:$4 sm:$0xff]   ;;  %v10282_v32 = vld [vmem:[#allocation5 + $0x4a0] ss:$16 sps:$4 sm:$0xff]   ;;  %v11771_v36 = vpack.c.bf16 %v189_v27, %v165_v26  ;;  %v11773_v37 = vpack.c.bf16 %v191_v29, %v167_v28  ;;  %v11801_v26 = vpack.c.bf16 %v336_v19, %v312_v18 }
  0x84   :  { %v10287_v31 = vld [vmem:[#allocation5 + $0x6a4] ss:$16 sps:$4 sm:$0xff]   ;;  %v10285_v33 = vld [vmem:[#allocation5 + $0x6a0] ss:$16 sps:$4 sm:$0xff]  }
  0x85   :  { %5344 = vmatpush2.bf16.msra.mxu0 %v10238_v42  ;;  %14145 = vst [vmem:[#allocation20_spill] sm:$0xff] %v11771_v36  ;;  %14146 = vst [vmem:[#allocation21_spill] sm:$0xff] %v11773_v37  ;;  %v10290_v40 = vld [vmem:[#allocation5 + $0x484] ss:$16 sps:$4 sm:$0xff]   ;;  %v10288_v42 = vld [vmem:[#allocation5 + $0x480] ss:$16 sps:$4 sm:$0xff]  }
  0x86   :  { %5457 = vmatpush2.bf16.msra.mxu1 %v10239_v43  ;;  %5345 = vmatprep.subr.bf16.mxu0 %v10240_v44  ;;  %v10293_v41 = vld [vmem:[#allocation5 + $0x684] ss:$16 sps:$4 sm:$0xff]   ;;  %v11775_v43 = vpack.c.bf16 %v238_v35, %v214_v34  ;;  %v11777_v44 = vpack.c.bf16 %v240_v39, %v216_v38  ;;  %14156 = vst [vmem:[#allocation31_spill] sm:$0xff] %v11801_v26  ;;  %v10315_v27 = vld [vmem:[#allocation5 + $0x600] ss:$16 sps:$4 sm:$0xff]   ;;  %v358_v38 = vld [vmem:[#allocation2 + $0x788] sm:$0xff] }
  0x87   :  { %5458 = vmatprep.subr.bf16.mxu1 %v10242_v45  ;;  %v10291_v45 = vld [vmem:[#allocation5 + $0x680] ss:$16 sps:$4 sm:$0xff]   ;;  %v10308_v8 = vld [vmem:[#allocation5 + $0x424] ss:$16 sps:$4 sm:$0xff]   ;;  %v382_v39 = vld [vmem:[#allocation2 + $0x848] sm:$0xff] }
  0x88   :  { %14147 = vst [vmem:[#allocation22_spill] sm:$0xff] %v11775_v43  ;;  %14148 = vst [vmem:[#allocation23_spill] sm:$0xff] %v11777_v44  ;;  %v213_v46 = vld [vmem:[#allocation2 + $0x300] sm:$0xff]  ;;  %v215_v48 = vld [vmem:[#allocation2 + $0x310] sm:$0xff] }
  0x89   :  { %5346 = vmatpush2.bf16.msra.mxu0 %v10244_v50  ;;  %v237_v47 = vld [vmem:[#allocation2 + $0x3c0] sm:$0xff]  ;;  %v239_v49 = vld [vmem:[#allocation2 + $0x3d0] sm:$0xff] }
  0x8a   :  { %5459 = vmatpush2.bf16.msra.mxu1 %v10245_v51  ;;  %5347 = vmatprep.subr.bf16.mxu0 %v10246_v52  ;;  %v10296_v50 = vld [vmem:[#allocation5 + $0x464] ss:$16 sps:$4 sm:$0xff]   ;;  %v10294_v52 = vld [vmem:[#allocation5 + $0x460] ss:$16 sps:$4 sm:$0xff]  }
  0x8b   :  { %5460 = vmatprep.subr.bf16.mxu1 %v10248_v55  ;;  %v10299_v51 = vld [vmem:[#allocation5 + $0x664] ss:$16 sps:$4 sm:$0xff]   ;;  %v10297_v55 = vld [vmem:[#allocation5 + $0x660] ss:$16 sps:$4 sm:$0xff]  }
  0x8c   :  { %v263_v6 = vld [vmem:[#allocation2 + $0x490] sm:$0xff]  ;;  %v309_v28 = vld [vmem:[#allocation2 + $0x600] sm:$0xff] }
  0x8d   :  { %5348 = vmatpush2.bf16.msra.mxu0 %v10250_v56  ;;  %v262_v56 = vld [vmem:[#allocation2 + $0x488] sm:$0xff]  ;;  %v287_v7 = vld [vmem:[#allocation2 + $0x550] sm:$0xff]  ;;  %v333_v29 = vld [vmem:[#allocation2 + $0x6c0] sm:$0xff] }
  0x8e   :  { %5461 = vmatpush2.bf16.msra.mxu1 %v10251_v57  ;;  %5349 = vmatprep.subr.bf16.mxu0 %v10252_v58  ;;  %v286_v57 = vld [vmem:[#allocation2 + $0x548] sm:$0xff]  ;;  %v11783_v58 = vpack.c.bf16 %v237_v47, %v213_v46  ;;  %v10311_v9 = vld [vmem:[#allocation5 + $0x624] ss:$16 sps:$4 sm:$0xff]   ;;  %v11797_v15 = vpack.c.bf16 %v287_v7, %v263_v6  ;;  %v10318_v34 = vld [vmem:[#allocation5 + $0x5e0] ss:$16 sps:$4 sm:$0xff]  }
  0x8f   :  { %5462 = vmatprep.subr.bf16.mxu1 %v10254_v59  ;;  %v11785_v59 = vpack.c.bf16 %v239_v49, %v215_v48  ;;  %v10321_v35 = vld [vmem:[#allocation5 + $0x7e0] ss:$16 sps:$4 sm:$0xff]   ;;  %v10326_v46 = vld [vmem:[#allocation5 + $0x5c4] ss:$16 sps:$4 sm:$0xff]   ;;  %v11811_v49 = vpack.c.bf16 %v382_v39, %v358_v38  ;;  %v408_v6 = vld [vmem:[#allocation2 + $0x918] sm:$0xff] }
  0x90   :  { %14149 = vst [vmem:[#allocation24_spill] sm:$0xff] %v11783_v58  ;;  %14154 = vst [vmem:[#allocation29_spill] sm:$0xff] %v11797_v15  ;;  %v10329_v47 = vld [vmem:[#allocation5 + $0x7c4] ss:$16 sps:$4 sm:$0xff]   ;;  %v10324_v48 = vld [vmem:[#allocation5 + $0x5c0] ss:$16 sps:$4 sm:$0xff]  }
  0x91   :  { %5350 = vmatpush2.bf16.msra.mxu0 %v10256_v60  ;;  %14150 = vst [vmem:[#allocation25_spill] sm:$0xff] %v11785_v59  ;;  %v264_v60 = vld [vmem:[#allocation2 + $0x498] sm:$0xff]  ;;  %14159 = vst [vmem:[#allocation34_spill] sm:$0xff] %v11811_v49  ;;  %v405_v18 = vld [vmem:[#allocation2 + $0x900] sm:$0xff] }
  0x92   :  { %5463 = vmatpush2.bf16.msra.mxu1 %v10257_v61  ;;  %5351 = vmatprep.subr.bf16.mxu0 %v10258_v62  ;;  %v288_v61 = vld [vmem:[#allocation2 + $0x558] sm:$0xff]  ;;  %v10302_v62 = vld [vmem:[#allocation5 + $0x444] ss:$16 sps:$4 sm:$0xff]  }
  0x93   :  { %5464 = vmatprep.subr.bf16.mxu1 %v10260_v63  ;;  %v10305_v63 = vld [vmem:[#allocation5 + $0x644] ss:$16 sps:$4 sm:$0xff]   ;;  %v432_v7 = vld [vmem:[#allocation2 + $0x9d8] sm:$0xff] }
  0x94   :  { %v429_v19 = vld [vmem:[#allocation2 + $0x9c0] sm:$0xff] }
  0x95   :  { %5352 = vmatpush2.bf16.msra.mxu0 %v10262_v0  ;;  %v10300_v0 = vld [vmem:[#allocation5 + $0x440] ss:$16 sps:$4 sm:$0xff]   ;;  %v10350_v38 = vld [vmem:[#allocation5 + $0x544] ss:$16 sps:$4 sm:$0xff]  }
  0x96   :  { %5465 = vmatpush2.bf16.msra.mxu1 %v10263_v1  ;;  %5353 = vmatprep.subr.bf16.mxu0 %v10264_v2  ;;  %v11787_v1 = vpack.c.bf16 %v286_v57, %v262_v56  ;;  %v11789_v2 = vpack.c.bf16 %v288_v61, %v264_v60  ;;  %v359_v56 = vld [vmem:[#allocation2 + $0x790] sm:$0xff] }
  0x97   :  { %5466 = vmatprep.subr.bf16.mxu1 %v10266_v3  ;;  %v10303_v3 = vld [vmem:[#allocation5 + $0x640] ss:$16 sps:$4 sm:$0xff]   ;;  %v10332_v60 = vld [vmem:[#allocation5 + $0x5a4] ss:$16 sps:$4 sm:$0xff]  }
  0x98   :  { %14151 = vst [vmem:[#allocation26_spill] sm:$0xff] %v11787_v1  ;;  %14152 = vst [vmem:[#allocation27_spill] sm:$0xff] %v11789_v2  ;;  %v383_v57 = vld [vmem:[#allocation2 + $0x850] sm:$0xff] }
  0x99   :  { %5354 = vmatpush2.bf16.msra.mxu0 %v10268_v4  ;;  %v261_v4 = vld [vmem:[#allocation2 + $0x480] sm:$0xff] }
  0x9a   :  { %5467 = vmatpush2.bf16.msra.mxu1 %v10269_v5  ;;  %5549 = vmatprep.subr.bf16.mxu0 %v10272_v10  ;;  %v285_v5 = vld [vmem:[#allocation2 + $0x540] sm:$0xff] }
  0x9b   :  { %5662 = vmatprep.subr.bf16.mxu1 %v10275_v11  ;;  %v10306_v10 = vld [vmem:[#allocation5 + $0x420] ss:$16 sps:$4 sm:$0xff]   ;;  %v11795_v14 = vpack.c.bf16 %v285_v5, %v261_v4  ;;  %v10335_v61 = vld [vmem:[#allocation5 + $0x7a4] ss:$16 sps:$4 sm:$0xff]   ;;  %v11821_v5 = vpack.c.bf16 %v383_v57, %v359_v56 }
  0x9c   :  { %5356 = vmatmul.mubr.bf16.vlgmr.msra.gmra.mxu0 %v11759_v16  ;;  %v10309_v11 = vld [vmem:[#allocation5 + $0x620] ss:$16 sps:$4 sm:$0xff]   ;;  %v10353_v39 = vld [vmem:[#allocation5 + $0x744] ss:$16 sps:$4 sm:$0xff]  }
  0x9d   :  { %5469 = vmatmul.mubr.bf16.vlgmr.msra.gmra.mxu1 %v11761_v17  ;;  %5550 = vmatpush1.bf16.msra.mxu0 %v10270_v12  ;;  %v310_v12 = vld [vmem:[#allocation2 + $0x608] sm:$0xff]  ;;  %14153 = vst [vmem:[#allocation28_spill] sm:$0xff] %v11795_v14  ;;  %14162 = vst [vmem:[#allocation37_spill] sm:$0xff] %v11821_v5  ;;  %v10356_v56 = vld [vmem:[#allocation5 + $0x524] ss:$16 sps:$4 sm:$0xff]  }
  0x9e   :  { %5663 = vmatpush1.bf16.msra.mxu1 %v10273_v13  ;;  %5551 = vmatprep.subr.bf16.mxu0 %v10278_v20  ;;  %v334_v13 = vld [vmem:[#allocation2 + $0x6c8] sm:$0xff]  ;;  %v10314_v20 = vld [vmem:[#allocation5 + $0x404] ss:$16 sps:$4 sm:$0xff]  }
  0x9f   :  { %5664 = vmatprep.subr.bf16.mxu1 %v10281_v21  ;;  %5365 = vmatprep.mubr.bf16.mxu0 %v11763_v23  ;;  %v10317_v21 = vld [vmem:[#allocation5 + $0x604] ss:$16 sps:$4 sm:$0xff]  }
  0xa0   :  { %5478 = vmatprep.mubr.bf16.mxu1 %v11765_v24  ;;  %v10359_v57 = vld [vmem:[#allocation5 + $0x724] ss:$16 sps:$4 sm:$0xff]  }
  0xa1   :  { %5552 = vmatpush1.bf16.msra.mxu0 %v10276_v22  ;;  %v10312_v22 = vld [vmem:[#allocation5 + $0x400] ss:$16 sps:$4 sm:$0xff]  }
  0xa2   :  { %5665 = vmatpush1.bf16.msra.mxu1 %v10279_v25  ;;  %5553 = vmatprep.subr.bf16.mxu0 %v10284_v30  ;;  %v11799_v25 = vpack.c.bf16 %v334_v13, %v310_v12  ;;  %v311_v30 = vld [vmem:[#allocation2 + $0x610] sm:$0xff]  ;;  %v11825_v12 = vpack.c.bf16 %v432_v7, %v408_v6  ;;  %v124_v6 = vld [vmem:[#allocation2 + $0x38] sm:$0xff] }
  0xa3   :  { %5666 = vmatprep.subr.bf16.mxu1 %v10287_v31  ;;  %v335_v31 = vld [vmem:[#allocation2 + $0x6d0] sm:$0xff]  ;;  %v148_v7 = vld [vmem:[#allocation2 + $0xf8] sm:$0xff] }
  0xa4   :  { %5366 = vmatmul.mubr.bf16.gmra.mxu0 %v11771_v36  ;;  %14155 = vst [vmem:[#allocation30_spill] sm:$0xff] %v11799_v25  ;;  %14164 = vst [vmem:[#allocation39_spill] sm:$0xff] %v11825_v12  ;;  %v10339_v13 = vld [vmem:[#allocation5 + $0x780] ss:$16 sps:$4 sm:$0xff]  }
  0xa5   :  { %5479 = vmatmul.mubr.bf16.gmra.mxu1 %v11773_v37  ;;  %5554 = vmatpush1.bf16.msra.mxu0 %v10282_v32  ;;  %v10320_v32 = vld [vmem:[#allocation5 + $0x5e4] ss:$16 sps:$4 sm:$0xff]  }
  0xa6   :  { %5667 = vmatpush1.bf16.msra.mxu1 %v10285_v33  ;;  %5555 = vmatprep.subr.bf16.mxu0 %v10290_v40  ;;  %v10323_v33 = vld [vmem:[#allocation5 + $0x7e4] ss:$16 sps:$4 sm:$0xff]   ;;  %v11807_v40 = vpack.c.bf16 %v333_v29, %v309_v28  ;;  %v10342_v28 = vld [vmem:[#allocation5 + $0x560] ss:$16 sps:$4 sm:$0xff]  }
  0xa7   :  { %5668 = vmatprep.subr.bf16.mxu1 %v10293_v41  ;;  %5375 = vmatprep.mubr.bf16.mxu0 %v11775_v43  ;;  %v11809_v41 = vpack.c.bf16 %v335_v31, %v311_v30  ;;  %v10345_v29 = vld [vmem:[#allocation5 + $0x760] ss:$16 sps:$4 sm:$0xff]   ;;  %v454_v30 = vld [vmem:[#allocation2 + $0xa88] sm:$0xff]  ;;  %v10665_v37 = vld [vmem:[#allocation5 + $0x16c4] ss:$16 sps:$4 sm:$0xff]  }
  0xa8   :  { %5488 = vmatprep.mubr.bf16.mxu1 %v11777_v44  ;;  %14157 = vst [vmem:[#allocation32_spill] sm:$0xff] %v11807_v40  ;;  %v478_v31 = vld [vmem:[#allocation2 + $0xb48] sm:$0xff] }
  0xa9   :  { %5556 = vmatpush1.bf16.msra.mxu0 %v10288_v42  ;;  %14158 = vst [vmem:[#allocation33_spill] sm:$0xff] %v11809_v41  ;;  %v360_v42 = vld [vmem:[#allocation2 + $0x798] sm:$0xff] }
  0xaa   :  { %5669 = vmatpush1.bf16.msra.mxu1 %v10291_v45  ;;  %5557 = vmatprep.subr.bf16.mxu0 %v10296_v50  ;;  %v384_v45 = vld [vmem:[#allocation2 + $0x858] sm:$0xff] }
  0xab   :  { %5670 = vmatprep.subr.bf16.mxu1 %v10299_v51  ;;  %v11813_v50 = vpack.c.bf16 %v384_v45, %v360_v42  ;;  %v10327_v51 = vld [vmem:[#allocation5 + $0x7c0] ss:$16 sps:$4 sm:$0xff]   ;;  %v11835_v45 = vpack.c.bf16 %v478_v31, %v454_v30 }
  0xac   :  { %5376 = vmatmul.mubr.bf16.gmra.mxu0 %v11783_v58  ;;  %v10348_v42 = vld [vmem:[#allocation5 + $0x540] ss:$16 sps:$4 sm:$0xff]  }
  0xad   :  { %5489 = vmatmul.mubr.bf16.gmra.mxu1 %v11785_v59  ;;  %5558 = vmatpush1.bf16.msra.mxu0 %v10294_v52  ;;  %14160 = vst [vmem:[#allocation35_spill] sm:$0xff] %v11813_v50  ;;  %v357_v52 = vld [vmem:[#allocation2 + $0x780] sm:$0xff]  ;;  %14167 = vst [vmem:[#allocation42_spill] sm:$0xff] %v11835_v45 }
  0xae   :  { %5671 = vmatpush1.bf16.msra.mxu1 %v10297_v55  ;;  %5559 = vmatprep.subr.bf16.mxu0 %v10302_v62  ;;  %v381_v55 = vld [vmem:[#allocation2 + $0x840] sm:$0xff] }
  0xaf   :  { %5672 = vmatprep.subr.bf16.mxu1 %v10305_v63  ;;  %5385 = vmatprep.mubr.bf16.mxu0 %v11787_v1  ;;  %v10330_v62 = vld [vmem:[#allocation5 + $0x5a0] ss:$16 sps:$4 sm:$0xff]   ;;  %v11819_v4 = vpack.c.bf16 %v381_v55, %v357_v52  ;;  %v10653_v59 = vld [vmem:[#allocation5 + $0x1304] ss:$16 sps:$4 sm:$0xff]  }
  0xb0   :  { %5498 = vmatprep.mubr.bf16.mxu1 %v11789_v2  ;;  %v10333_v63 = vld [vmem:[#allocation5 + $0x7a0] ss:$16 sps:$4 sm:$0xff]  }
  0xb1   :  { %5560 = vmatpush1.bf16.msra.mxu0 %v10300_v0  ;;  %v406_v0 = vld [vmem:[#allocation2 + $0x908] sm:$0xff]  ;;  %14161 = vst [vmem:[#allocation36_spill] sm:$0xff] %v11819_v4  ;;  %v455_v52 = vld [vmem:[#allocation2 + $0xa90] sm:$0xff] }
  0xb2   :  { %5673 = vmatpush1.bf16.msra.mxu1 %v10303_v3  ;;  %5561 = vmatprep.subr.bf16.mxu0 %v10308_v8  ;;  %v430_v3 = vld [vmem:[#allocation2 + $0x9c8] sm:$0xff]  ;;  %v10338_v8 = vld [vmem:[#allocation5 + $0x584] ss:$16 sps:$4 sm:$0xff]   ;;  %v10366_v30 = vld [vmem:[#allocation5 + $0x8e0] ss:$16 sps:$4 sm:$0xff]  }
  0xb3   :  { %5674 = vmatprep.subr.bf16.mxu1 %v10311_v9  ;;  %v10341_v9 = vld [vmem:[#allocation5 + $0x784] ss:$16 sps:$4 sm:$0xff]   ;;  %v10369_v31 = vld [vmem:[#allocation5 + $0xae0] ss:$16 sps:$4 sm:$0xff]  }
  0xb4   :  { %5386 = vmatmul.mubr.bf16.gmra.mxu0 %v11795_v14  ;;  %v479_v55 = vld [vmem:[#allocation2 + $0xb50] sm:$0xff] }
  0xb5   :  { %5499 = vmatmul.mubr.bf16.gmra.mxu1 %v11797_v15  ;;  %5562 = vmatpush1.bf16.msra.mxu0 %v10306_v10  ;;  %v10336_v10 = vld [vmem:[#allocation5 + $0x580] ss:$16 sps:$4 sm:$0xff]   ;;  %v10641_v15 = vld [vmem:[#allocation5 + $0x1344] ss:$16 sps:$4 sm:$0xff]  }
  0xb6   :  { %5675 = vmatpush1.bf16.msra.mxu1 %v10309_v11  ;;  %5563 = vmatprep.subr.bf16.mxu0 %v10314_v20  ;;  %v11823_v11 = vpack.c.bf16 %v430_v3, %v406_v0  ;;  %v407_v20 = vld [vmem:[#allocation2 + $0x910] sm:$0xff]  ;;  %v11845_v3 = vpack.c.bf16 %v479_v55, %v455_v52 }
  0xb7   :  { %5676 = vmatprep.subr.bf16.mxu1 %v10317_v21  ;;  %5395 = vmatprep.mubr.bf16.mxu0 %v11799_v25  ;;  %v431_v21 = vld [vmem:[#allocation2 + $0x9d0] sm:$0xff] }
  0xb8   :  { %5508 = vmatprep.mubr.bf16.mxu1 %v11801_v26  ;;  %14163 = vst [vmem:[#allocation38_spill] sm:$0xff] %v11823_v11  ;;  %14170 = vst [vmem:[#allocation45_spill] sm:$0xff] %v11845_v3  ;;  %v10372_v52 = vld [vmem:[#allocation5 + $0x8c0] ss:$16 sps:$4 sm:$0xff]  }
  0xb9   :  { %5564 = vmatpush1.bf16.msra.mxu0 %v10312_v22  ;;  %v10344_v22 = vld [vmem:[#allocation5 + $0x564] ss:$16 sps:$4 sm:$0xff]  }
  0xba   :  { %5677 = vmatpush1.bf16.msra.mxu1 %v10315_v27  ;;  %5565 = vmatprep.subr.bf16.mxu0 %v10320_v32  ;;  %v10347_v27 = vld [vmem:[#allocation5 + $0x764] ss:$16 sps:$4 sm:$0xff]   ;;  %v11831_v32 = vpack.c.bf16 %v429_v19, %v405_v18  ;;  %v11849_v18 = vpack.c.bf16 %v148_v7, %v124_v6  ;;  %v10363_v19 = vld [vmem:[#allocation5 + $0x700] ss:$16 sps:$4 sm:$0xff]  }
  0xbb   :  { %5678 = vmatprep.subr.bf16.mxu1 %v10323_v33  ;;  %v11833_v33 = vpack.c.bf16 %v431_v21, %v407_v20  ;;  %v121_v20 = vld [vmem:[#allocation2 + $0x20] sm:$0xff] }
  0xbc   :  { %5396 = vmatmul.mubr.bf16.gmra.mxu0 %v11807_v40  ;;  %14165 = vst [vmem:[#allocation40_spill] sm:$0xff] %v11831_v32  ;;  %14172 = vst [vmem:[#allocation47_spill] sm:$0xff] %v11849_v18  ;;  %v145_v21 = vld [vmem:[#allocation2 + $0xe0] sm:$0xff] }
  0xbd   :  { %5509 = vmatmul.mubr.bf16.gmra.mxu1 %v11809_v41  ;;  %5566 = vmatpush2.bf16.msra.mxu0 %v10318_v34  ;;  %14166 = vst [vmem:[#allocation41_spill] sm:$0xff] %v11833_v33  ;;  %v456_v34 = vld [vmem:[#allocation2 + $0xa98] sm:$0xff]  ;;  %v10380_v6 = vld [vmem:[#allocation5 + $0x8a4] ss:$16 sps:$4 sm:$0xff]  }
  0xbe   :  { %5679 = vmatpush2.bf16.msra.mxu1 %v10321_v35  ;;  %5567 = vmatprep.subr.bf16.mxu0 %v10326_v46  ;;  %v480_v35 = vld [vmem:[#allocation2 + $0xb58] sm:$0xff]  ;;  %v10383_v7 = vld [vmem:[#allocation5 + $0xaa4] ss:$16 sps:$4 sm:$0xff]  }
  0xbf   :  { %5680 = vmatprep.subr.bf16.mxu1 %v10329_v47  ;;  %5405 = vmatprep.mubr.bf16.mxu0 %v11811_v49  ;;  %v11837_v46 = vpack.c.bf16 %v480_v35, %v456_v34  ;;  %v10351_v47 = vld [vmem:[#allocation5 + $0x740] ss:$16 sps:$4 sm:$0xff]   ;;  %v170_v34 = vld [vmem:[#allocation2 + $0x1a8] sm:$0xff]  ;;  %v10629_v41 = vld [vmem:[#allocation5 + $0x1384] ss:$16 sps:$4 sm:$0xff]  }
  0xc0   :  { %5518 = vmatprep.mubr.bf16.mxu1 %v11813_v50  ;;  %v194_v35 = vld [vmem:[#allocation2 + $0x268] sm:$0xff] }
  0xc1   :  { %5568 = vmatpush2.bf16.msra.mxu0 %v10324_v48  ;;  %14168 = vst [vmem:[#allocation43_spill] sm:$0xff] %v11837_v46  ;;  %v453_v48 = vld [vmem:[#allocation2 + $0xa80] sm:$0xff]  ;;  %v11859_v55 = vpack.c.bf16 %v194_v35, %v170_v34 }
  0xc2   :  { %5681 = vmatpush2.bf16.msra.mxu1 %v10327_v51  ;;  %5569 = vmatprep.subr.bf16.mxu0 %v10332_v60  ;;  %v477_v51 = vld [vmem:[#allocation2 + $0xb40] sm:$0xff] }
  0xc3   :  { %5682 = vmatprep.subr.bf16.mxu1 %v10335_v61  ;;  %v10354_v60 = vld [vmem:[#allocation5 + $0x520] ss:$16 sps:$4 sm:$0xff]   ;;  %v11843_v0 = vpack.c.bf16 %v477_v51, %v453_v48  ;;  %v10374_v48 = vld [vmem:[#allocation5 + $0x8c4] ss:$16 sps:$4 sm:$0xff]   ;;  %14175 = vst [vmem:[#allocation50_spill] sm:$0xff] %v11859_v55 }
  0xc4   :  { %5406 = vmatmul.mubr.bf16.gmra.mxu0 %v11819_v4  ;;  %v10357_v61 = vld [vmem:[#allocation5 + $0x720] ss:$16 sps:$4 sm:$0xff]   ;;  %v10377_v51 = vld [vmem:[#allocation5 + $0xac4] ss:$16 sps:$4 sm:$0xff]  }
  0xc5   :  { %5519 = vmatmul.mubr.bf16.gmra.mxu1 %v11821_v5  ;;  %5570 = vmatpush2.bf16.msra.mxu0 %v10330_v62  ;;  %v122_v62 = vld [vmem:[#allocation2 + $0x28] sm:$0xff]  ;;  %14169 = vst [vmem:[#allocation44_spill] sm:$0xff] %v11843_v0  ;;  %v10387_v35 = vld [vmem:[#allocation5 + $0xa80] ss:$16 sps:$4 sm:$0xff]   ;;  %v10617_v5 = vld [vmem:[#allocation5 + $0x13c4] ss:$16 sps:$4 sm:$0xff]  }
  0xc6   :  { %5683 = vmatpush2.bf16.msra.mxu1 %v10333_v63  ;;  %5571 = vmatprep.subr.bf16.mxu0 %v10338_v8  ;;  %v146_v63 = vld [vmem:[#allocation2 + $0xe8] sm:$0xff]  ;;  %v10362_v8 = vld [vmem:[#allocation5 + $0x504] ss:$16 sps:$4 sm:$0xff]  }
  0xc7   :  { %5684 = vmatprep.subr.bf16.mxu1 %v10341_v9  ;;  %5415 = vmatprep.mubr.bf16.mxu0 %v11823_v11  ;;  %v10365_v9 = vld [vmem:[#allocation5 + $0x704] ss:$16 sps:$4 sm:$0xff]  }
  0xc8   :  { %5528 = vmatprep.mubr.bf16.mxu1 %v11825_v12 }
  0xc9   :  { %5572 = vmatpush2.bf16.msra.mxu0 %v10336_v10  ;;  %v10360_v10 = vld [vmem:[#allocation5 + $0x500] ss:$16 sps:$4 sm:$0xff]  }
  0xca   :  { %5685 = vmatpush2.bf16.msra.mxu1 %v10339_v13  ;;  %5573 = vmatprep.subr.bf16.mxu0 %v10344_v22  ;;  %v11847_v13 = vpack.c.bf16 %v146_v63, %v122_v62  ;;  %v123_v22 = vld [vmem:[#allocation2 + $0x30] sm:$0xff] }
  0xcb   :  { %5686 = vmatprep.subr.bf16.mxu1 %v10347_v27  ;;  %v147_v27 = vld [vmem:[#allocation2 + $0xf0] sm:$0xff] }
  0xcc   :  { %5416 = vmatmul.mubr.bf16.gmra.mxu0 %v11831_v32  ;;  %14171 = vst [vmem:[#allocation46_spill] sm:$0xff] %v11847_v13  ;;  %v171_v62 = vld [vmem:[#allocation2 + $0x1b0] sm:$0xff] }
  0xcd   :  { %5529 = vmatmul.mubr.bf16.gmra.mxu1 %v11833_v33  ;;  %5574 = vmatpush2.bf16.msra.mxu0 %v10342_v28  ;;  %v10368_v28 = vld [vmem:[#allocation5 + $0x8e4] ss:$16 sps:$4 sm:$0xff]  }
  0xce   :  { %5687 = vmatpush2.bf16.msra.mxu1 %v10345_v29  ;;  %5575 = vmatprep.subr.bf16.mxu0 %v10350_v38  ;;  %v10371_v29 = vld [vmem:[#allocation5 + $0xae4] ss:$16 sps:$4 sm:$0xff]   ;;  %v11855_v38 = vpack.c.bf16 %v145_v21, %v121_v20 }
  0xcf   :  { %5688 = vmatprep.subr.bf16.mxu1 %v10353_v39  ;;  %5425 = vmatprep.mubr.bf16.mxu0 %v11835_v45  ;;  %v11857_v39 = vpack.c.bf16 %v147_v27, %v123_v22  ;;  %v195_v63 = vld [vmem:[#allocation2 + $0x270] sm:$0xff]  ;;  %v220_v22 = vld [vmem:[#allocation2 + $0x338] sm:$0xff] }
  0xd0   :  { %5538 = vmatprep.mubr.bf16.mxu1 %v11837_v46  ;;  %14173 = vst [vmem:[#allocation48_spill] sm:$0xff] %v11855_v38  ;;  %v11869_v21 = vpack.c.bf16 %v195_v63, %v171_v62  ;;  %v244_v27 = vld [vmem:[#allocation2 + $0x3f8] sm:$0xff]  ;;  %v266_v62 = vld [vmem:[#allocation2 + $0x4a8] sm:$0xff]  ;;  %v10605_v33 = vld [vmem:[#allocation5 + $0x1204] ss:$16 sps:$4 sm:$0xff]  }
  0xd1   :  { %5576 = vmatpush2.bf16.msra.mxu0 %v10348_v42  ;;  %14174 = vst [vmem:[#allocation49_spill] sm:$0xff] %v11857_v39  ;;  %v172_v42 = vld [vmem:[#allocation2 + $0x1b8] sm:$0xff]  ;;  %v11873_v34 = vpack.c.bf16 %v244_v27, %v220_v22  ;;  %v290_v63 = vld [vmem:[#allocation2 + $0x568] sm:$0xff]  ;;  %v10396_v22 = vld [vmem:[#allocation5 + $0x840] ss:$16 sps:$4 sm:$0xff]  }
  0xd2   :  { %5689 = vmatpush2.bf16.msra.mxu1 %v10351_v47  ;;  %5577 = vmatprep.subr.bf16.mxu0 %v10356_v56  ;;  %v196_v47 = vld [vmem:[#allocation2 + $0x278] sm:$0xff]  ;;  %14178 = vst [vmem:[#allocation53_spill] sm:$0xff] %v11869_v21  ;;  %v11883_v27 = vpack.c.bf16 %v290_v63, %v266_v62  ;;  %v314_v62 = vld [vmem:[#allocation2 + $0x628] sm:$0xff] }
  0xd3   :  { %5690 = vmatprep.subr.bf16.mxu1 %v10359_v57  ;;  %v11861_v56 = vpack.c.bf16 %v196_v47, %v172_v42  ;;  %v10375_v57 = vld [vmem:[#allocation5 + $0xac0] ss:$16 sps:$4 sm:$0xff]   ;;  %14180 = vst [vmem:[#allocation55_spill] sm:$0xff] %v11873_v34  ;;  %v338_v63 = vld [vmem:[#allocation2 + $0x6e8] sm:$0xff] }
  0xd4   :  { %5426 = vmatmul.mubr.bf16.gmra.mxu0 %v11843_v0  ;;  %v217_v42 = vld [vmem:[#allocation2 + $0x320] sm:$0xff]  ;;  %14183 = vst [vmem:[#allocation58_spill] sm:$0xff] %v11883_v27 }
  0xd5   :  { %5539 = vmatmul.mubr.bf16.gmra.mxu1 %v11845_v3  ;;  %5578 = vmatpush2.bf16.msra.mxu0 %v10354_v60  ;;  %14176 = vst [vmem:[#allocation51_spill] sm:$0xff] %v11861_v56  ;;  %v169_v60 = vld [vmem:[#allocation2 + $0x1a0] sm:$0xff] }
  0xd6   :  { %5691 = vmatpush2.bf16.msra.mxu1 %v10357_v61  ;;  %5579 = vmatprep.subr.bf16.mxu0 %v10362_v8  ;;  %v193_v61 = vld [vmem:[#allocation2 + $0x260] sm:$0xff] }
  0xd7   :  { %5692 = vmatprep.subr.bf16.mxu1 %v10365_v9  ;;  %5581 = vmatprep.mubr.bf16.mxu0 %v11847_v13  ;;  %v10378_v8 = vld [vmem:[#allocation5 + $0x8a0] ss:$16 sps:$4 sm:$0xff]   ;;  %v11867_v20 = vpack.c.bf16 %v193_v61, %v169_v60  ;;  %v10593_v3 = vld [vmem:[#allocation5 + $0x1244] ss:$16 sps:$4 sm:$0xff]  }
  0xd8   :  { %5694 = vmatprep.mubr.bf16.mxu1 %v11849_v18  ;;  %v10381_v9 = vld [vmem:[#allocation5 + $0xaa0] ss:$16 sps:$4 sm:$0xff]  }
  0xd9   :  { %5580 = vmatpush2.bf16.msra.mxu0 %v10360_v10  ;;  %v218_v10 = vld [vmem:[#allocation2 + $0x328] sm:$0xff]  ;;  %14177 = vst [vmem:[#allocation52_spill] sm:$0xff] %v11867_v20  ;;  %v241_v47 = vld [vmem:[#allocation2 + $0x3e0] sm:$0xff] }
  0xda   :  { %5693 = vmatpush2.bf16.msra.mxu1 %v10363_v19  ;;  %5775 = vmatprep.subr.bf16.mxu0 %v10368_v28  ;;  %v242_v19 = vld [vmem:[#allocation2 + $0x3e8] sm:$0xff]  ;;  %v10386_v28 = vld [vmem:[#allocation5 + $0x884] ss:$16 sps:$4 sm:$0xff]   ;;  %v10390_v60 = vld [vmem:[#allocation5 + $0x860] ss:$16 sps:$4 sm:$0xff]  }
  0xdb   :  { %5888 = vmatprep.subr.bf16.mxu1 %v10371_v29  ;;  %v10389_v29 = vld [vmem:[#allocation5 + $0xa84] ss:$16 sps:$4 sm:$0xff]   ;;  %v10393_v61 = vld [vmem:[#allocation5 + $0xa60] ss:$16 sps:$4 sm:$0xff]  }
  0xdc   :  { %5582 = vmatmul.mubr.bf16.vlgmr.msra.gmra.mxu0 %v11855_v38 }
  0xdd   :  { %5695 = vmatmul.mubr.bf16.vlgmr.msra.gmra.mxu1 %v11857_v39  ;;  %5776 = vmatpush1.bf16.msra.mxu0 %v10366_v30  ;;  %v10384_v30 = vld [vmem:[#allocation5 + $0x880] ss:$16 sps:$4 sm:$0xff]   ;;  %v10581_v39 = vld [vmem:[#allocation5 + $0x1284] ss:$16 sps:$4 sm:$0xff]  }
  0xde   :  { %5889 = vmatpush1.bf16.msra.mxu1 %v10369_v31  ;;  %5777 = vmatprep.subr.bf16.mxu0 %v10374_v48  ;;  %v11871_v31 = vpack.c.bf16 %v242_v19, %v218_v10  ;;  %v219_v48 = vld [vmem:[#allocation2 + $0x330] sm:$0xff] }
  0xdf   :  { %5890 = vmatprep.subr.bf16.mxu1 %v10377_v51  ;;  %5591 = vmatprep.mubr.bf16.mxu0 %v11859_v55  ;;  %v243_v51 = vld [vmem:[#allocation2 + $0x3f0] sm:$0xff] }
  0xe0   :  { %5704 = vmatprep.mubr.bf16.mxu1 %v11861_v56  ;;  %14179 = vst [vmem:[#allocation54_spill] sm:$0xff] %v11871_v31  ;;  %v10398_v10 = vld [vmem:[#allocation5 + $0x844] ss:$16 sps:$4 sm:$0xff]  }
  0xe1   :  { %5778 = vmatpush1.bf16.msra.mxu0 %v10372_v52  ;;  %v10392_v52 = vld [vmem:[#allocation5 + $0x864] ss:$16 sps:$4 sm:$0xff]  }
  0xe2   :  { %5891 = vmatpush1.bf16.msra.mxu1 %v10375_v57  ;;  %5779 = vmatprep.subr.bf16.mxu0 %v10380_v6  ;;  %v10395_v57 = vld [vmem:[#allocation5 + $0xa64] ss:$16 sps:$4 sm:$0xff]   ;;  %v11879_v6 = vpack.c.bf16 %v241_v47, %v217_v42 }
  0xe3   :  { %5892 = vmatprep.subr.bf16.mxu1 %v10383_v7  ;;  %v11881_v7 = vpack.c.bf16 %v243_v51, %v219_v48  ;;  %v10401_v19 = vld [vmem:[#allocation5 + $0xa44] ss:$16 sps:$4 sm:$0xff]  }
  0xe4   :  { %5592 = vmatmul.mubr.bf16.gmra.mxu0 %v11867_v20  ;;  %14181 = vst [vmem:[#allocation56_spill] sm:$0xff] %v11879_v6  ;;  %v265_v42 = vld [vmem:[#allocation2 + $0x4a0] sm:$0xff] }
  0xe5   :  { %5705 = vmatmul.mubr.bf16.gmra.mxu1 %v11869_v21  ;;  %5780 = vmatpush1.bf16.msra.mxu0 %v10378_v8  ;;  %14182 = vst [vmem:[#allocation57_spill] sm:$0xff] %v11881_v7  ;;  %v268_v8 = vld [vmem:[#allocation2 + $0x4b8] sm:$0xff]  ;;  %v289_v47 = vld [vmem:[#allocation2 + $0x560] sm:$0xff] }
  0xe6   :  { %5893 = vmatpush1.bf16.msra.mxu1 %v10381_v9  ;;  %5781 = vmatprep.subr.bf16.mxu0 %v10386_v28  ;;  %v292_v9 = vld [vmem:[#allocation2 + $0x578] sm:$0xff]  ;;  %v10404_v48 = vld [vmem:[#allocation5 + $0x824] ss:$16 sps:$4 sm:$0xff]  }
  0xe7   :  { %5894 = vmatprep.subr.bf16.mxu1 %v10389_v29  ;;  %5601 = vmatprep.mubr.bf16.mxu0 %v11871_v31  ;;  %v11885_v28 = vpack.c.bf16 %v292_v9, %v268_v8  ;;  %v10399_v29 = vld [vmem:[#allocation5 + $0xa40] ss:$16 sps:$4 sm:$0xff]   ;;  %v10407_v51 = vld [vmem:[#allocation5 + $0xa24] ss:$16 sps:$4 sm:$0xff]   ;;  %v11891_v8 = vpack.c.bf16 %v289_v47, %v265_v42 }
  0xe8   :  { %5714 = vmatprep.mubr.bf16.mxu1 %v11873_v34  ;;  %v10411_v42 = vld [vmem:[#allocation5 + $0xa00] ss:$16 sps:$4 sm:$0xff]  }
  0xe9   :  { %5782 = vmatpush1.bf16.msra.mxu0 %v10384_v30  ;;  %14184 = vst [vmem:[#allocation59_spill] sm:$0xff] %v11885_v28  ;;  %v267_v30 = vld [vmem:[#allocation2 + $0x4b0] sm:$0xff]  ;;  %14185 = vst [vmem:[#allocation60_spill] sm:$0xff] %v11891_v8  ;;  %v313_v47 = vld [vmem:[#allocation2 + $0x620] sm:$0xff] }
  0xea   :  { %5895 = vmatpush1.bf16.msra.mxu1 %v10387_v35  ;;  %5783 = vmatprep.subr.bf16.mxu0 %v10392_v52  ;;  %v291_v35 = vld [vmem:[#allocation2 + $0x570] sm:$0xff] }
  0xeb   :  { %5896 = vmatprep.subr.bf16.mxu1 %v10395_v57  ;;  %v10402_v52 = vld [vmem:[#allocation5 + $0x820] ss:$16 sps:$4 sm:$0xff]   ;;  %v11893_v9 = vpack.c.bf16 %v291_v35, %v267_v30  ;;  %v10416_v35 = vld [vmem:[#allocation5 + $0x9e4] ss:$16 sps:$4 sm:$0xff]  }
  0xec   :  { %5602 = vmatmul.mubr.bf16.gmra.mxu0 %v11879_v6  ;;  %v10405_v57 = vld [vmem:[#allocation5 + $0xa20] ss:$16 sps:$4 sm:$0xff]  }
  0xed   :  { %5715 = vmatmul.mubr.bf16.gmra.mxu1 %v11881_v7  ;;  %5784 = vmatpush1.bf16.msra.mxu0 %v10390_v60  ;;  %14186 = vst [vmem:[#allocation61_spill] sm:$0xff] %v11893_v9  ;;  %v316_v60 = vld [vmem:[#allocation2 + $0x638] sm:$0xff]  ;;  %v10410_v7 = vld [vmem:[#allocation5 + $0x804] ss:$16 sps:$4 sm:$0xff]   ;;  %v10555_v34 = vld [vmem:[#allocation5 + $0xf00] ss:$16 sps:$4 sm:$0xff]  }
  0xee   :  { %5897 = vmatpush1.bf16.msra.mxu1 %v10393_v61  ;;  %5785 = vmatprep.subr.bf16.mxu0 %v10398_v10  ;;  %v340_v61 = vld [vmem:[#allocation2 + $0x6f8] sm:$0xff]  ;;  %v10413_v10 = vld [vmem:[#allocation5 + $0xa04] ss:$16 sps:$4 sm:$0xff]  }
  0xef   :  { %5898 = vmatprep.subr.bf16.mxu1 %v10401_v19  ;;  %5611 = vmatprep.mubr.bf16.mxu0 %v11883_v27  ;;  %v10408_v19 = vld [vmem:[#allocation5 + $0x800] ss:$16 sps:$4 sm:$0xff]   ;;  %v11895_v27 = vpack.c.bf16 %v338_v63, %v314_v62  ;;  %v362_v63 = vld [vmem:[#allocation2 + $0x7a8] sm:$0xff] }
  0xf0   :  { %5724 = vmatprep.mubr.bf16.mxu1 %v11885_v28  ;;  %v11897_v28 = vpack.c.bf16 %v340_v61, %v316_v60  ;;  %v337_v30 = vld [vmem:[#allocation2 + $0x6e0] sm:$0xff]  ;;  %v386_v60 = vld [vmem:[#allocation2 + $0x868] sm:$0xff] }
  0xf1   :  { %5786 = vmatpush1.bf16.msra.mxu0 %v10396_v22  ;;  %14187 = vst [vmem:[#allocation62_spill] sm:$0xff] %v11895_v27  ;;  %v315_v22 = vld [vmem:[#allocation2 + $0x630] sm:$0xff]  ;;  %v11903_v61 = vpack.c.bf16 %v337_v30, %v313_v47  ;;  %v361_v30 = vld [vmem:[#allocation2 + $0x7a0] sm:$0xff] }
  0xf2   :  { %5899 = vmatpush1.bf16.msra.mxu1 %v10399_v29  ;;  %5787 = vmatprep.subr.bf16.mxu0 %v10404_v48  ;;  %14188 = vst [vmem:[#allocation63_spill] sm:$0xff] %v11897_v28  ;;  %v339_v29 = vld [vmem:[#allocation2 + $0x6f0] sm:$0xff] }
  0xf3   :  { %5900 = vmatprep.subr.bf16.mxu1 %v10407_v51  ;;  %v10419_v48 = vld [vmem:[#allocation5 + $0xbe4] ss:$16 sps:$4 sm:$0xff]   ;;  %v10414_v51 = vld [vmem:[#allocation5 + $0x9e0] ss:$16 sps:$4 sm:$0xff]   ;;  %14189 = vst [vmem:[#allocation64_spill] sm:$0xff] %v11903_v61 }
  0xf4   :  { %5612 = vmatmul.mubr.bf16.gmra.mxu0 %v11891_v8  ;;  %v10417_v62 = vld [vmem:[#allocation5 + $0xbe0] ss:$16 sps:$4 sm:$0xff]   ;;  %v10422_v8 = vld [vmem:[#allocation5 + $0x9c4] ss:$16 sps:$4 sm:$0xff]  }
  0xf5   :  { %5725 = vmatmul.mubr.bf16.gmra.mxu1 %v11893_v9  ;;  %5788 = vmatpush1.bf16.msra.mxu0 %v10402_v52  ;;  %v11905_v9 = vpack.c.bf16 %v339_v29, %v315_v22  ;;  %v364_v52 = vld [vmem:[#allocation2 + $0x7b8] sm:$0xff]  ;;  %v10423_v47 = vld [vmem:[#allocation5 + $0xbc0] ss:$16 sps:$4 sm:$0xff]   ;;  %v10428_v29 = vld [vmem:[#allocation5 + $0x9a4] ss:$16 sps:$4 sm:$0xff]  }
  0xf6   :  { %5901 = vmatpush1.bf16.msra.mxu1 %v10405_v57  ;;  %5789 = vmatprep.subr.bf16.mxu0 %v10410_v7  ;;  %v388_v57 = vld [vmem:[#allocation2 + $0x878] sm:$0xff]  ;;  %v10425_v7 = vld [vmem:[#allocation5 + $0xbc4] ss:$16 sps:$4 sm:$0xff]  }
  0xf7   :  { %5902 = vmatprep.subr.bf16.mxu1 %v10413_v10  ;;  %5621 = vmatprep.mubr.bf16.mxu0 %v11895_v27  ;;  %14190 = vst [vmem:[#allocation65_spill] sm:$0xff] %v11905_v9  ;;  %v10420_v10 = vld [vmem:[#allocation5 + $0x9c0] ss:$16 sps:$4 sm:$0xff]   ;;  %v11907_v27 = vpack.c.bf16 %v386_v60, %v362_v63  ;;  %v410_v60 = vld [vmem:[#allocation2 + $0x928] sm:$0xff] }
  0xf8   :  { %5734 = vmatprep.mubr.bf16.mxu1 %v11897_v28  ;;  %v11909_v28 = vpack.c.bf16 %v388_v57, %v364_v52  ;;  %v385_v22 = vld [vmem:[#allocation2 + $0x860] sm:$0xff]  ;;  %v434_v52 = vld [vmem:[#allocation2 + $0x9e8] sm:$0xff] }
  0xf9   :  { %5790 = vmatpush1.bf16.msra.mxu0 %v10408_v19  ;;  %14191 = vst [vmem:[#allocation66_spill] sm:$0xff] %v11907_v27  ;;  %v363_v19 = vld [vmem:[#allocation2 + $0x7b0] sm:$0xff]  ;;  %v11915_v57 = vpack.c.bf16 %v385_v22, %v361_v30  ;;  %v409_v22 = vld [vmem:[#allocation2 + $0x920] sm:$0xff] }
  0xfa   :  { %5903 = vmatpush1.bf16.msra.mxu1 %v10411_v42  ;;  %5791 = vmatprep.subr.bf16.mxu0 %v10416_v35  ;;  %14192 = vst [vmem:[#allocation67_spill] sm:$0xff] %v11909_v28  ;;  %v387_v42 = vld [vmem:[#allocation2 + $0x870] sm:$0xff] }
  0xfb   :  { %5904 = vmatprep.subr.bf16.mxu1 %v10419_v48  ;;  %v10431_v35 = vld [vmem:[#allocation5 + $0xba4] ss:$16 sps:$4 sm:$0xff]   ;;  %v10426_v48 = vld [vmem:[#allocation5 + $0x9a0] ss:$16 sps:$4 sm:$0xff]   ;;  %14193 = vst [vmem:[#allocation68_spill] sm:$0xff] %v11915_v57 }
  0xfc   :  { %5622 = vmatmul.mubr.bf16.gmra.mxu0 %v11903_v61  ;;  %v10429_v63 = vld [vmem:[#allocation5 + $0xba0] ss:$16 sps:$4 sm:$0xff]   ;;  %v10434_v61 = vld [vmem:[#allocation5 + $0x984] ss:$16 sps:$4 sm:$0xff]  }
  0xfd   :  { %5735 = vmatmul.mubr.bf16.gmra.mxu1 %v11905_v9  ;;  %5792 = vmatpush2.bf16.msra.mxu0 %v10414_v51  ;;  %v11917_v9 = vpack.c.bf16 %v387_v42, %v363_v19  ;;  %v412_v51 = vld [vmem:[#allocation2 + $0x938] sm:$0xff]  ;;  %v10435_v30 = vld [vmem:[#allocation5 + $0xb80] ss:$16 sps:$4 sm:$0xff]   ;;  %v10440_v42 = vld [vmem:[#allocation5 + $0x964] ss:$16 sps:$4 sm:$0xff]  }
  0xfe   :  { %5905 = vmatpush2.bf16.msra.mxu1 %v10417_v62  ;;  %5793 = vmatprep.subr.bf16.mxu0 %v10422_v8  ;;  %v436_v62 = vld [vmem:[#allocation2 + $0x9f8] sm:$0xff]  ;;  %v10437_v8 = vld [vmem:[#allocation5 + $0xb84] ss:$16 sps:$4 sm:$0xff]  }
  0xff   :  { %5906 = vmatprep.subr.bf16.mxu1 %v10425_v7  ;;  %5631 = vmatprep.mubr.bf16.mxu0 %v11907_v27  ;;  %14194 = vst [vmem:[#allocation69_spill] sm:$0xff] %v11917_v9  ;;  %v10432_v7 = vld [vmem:[#allocation5 + $0x980] ss:$16 sps:$4 sm:$0xff]   ;;  %v11919_v27 = vpack.c.bf16 %v434_v52, %v410_v60  ;;  %v458_v52 = vld [vmem:[#allocation2 + $0xaa8] sm:$0xff] }
 0x100   :  { %5744 = vmatprep.mubr.bf16.mxu1 %v11909_v28  ;;  %v11921_v28 = vpack.c.bf16 %v436_v62, %v412_v51  ;;  %v433_v19 = vld [vmem:[#allocation2 + $0x9e0] sm:$0xff]  ;;  %v482_v51 = vld [vmem:[#allocation2 + $0xb68] sm:$0xff] }
 0x101   :  { %5794 = vmatpush2.bf16.msra.mxu0 %v10420_v10  ;;  %14195 = vst [vmem:[#allocation70_spill] sm:$0xff] %v11919_v27  ;;  %v411_v10 = vld [vmem:[#allocation2 + $0x930] sm:$0xff]  ;;  %v11927_v62 = vpack.c.bf16 %v433_v19, %v409_v22  ;;  %v457_v19 = vld [vmem:[#allocation2 + $0xaa0] sm:$0xff] }
 0x102   :  { %5907 = vmatpush2.bf16.msra.mxu1 %v10423_v47  ;;  %5795 = vmatprep.subr.bf16.mxu0 %v10428_v29  ;;  %14196 = vst [vmem:[#allocation71_spill] sm:$0xff] %v11921_v28  ;;  %v435_v47 = vld [vmem:[#allocation2 + $0x9f0] sm:$0xff] }
 0x103   :  { %5908 = vmatprep.subr.bf16.mxu1 %v10431_v35  ;;  %v10443_v29 = vld [vmem:[#allocation5 + $0xb64] ss:$16 sps:$4 sm:$0xff]   ;;  %v10438_v35 = vld [vmem:[#allocation5 + $0x960] ss:$16 sps:$4 sm:$0xff]   ;;  %14197 = vst [vmem:[#allocation72_spill] sm:$0xff] %v11927_v62 }
 0x104   :  { %5632 = vmatmul.mubr.bf16.gmra.mxu0 %v11915_v57  ;;  %v10441_v60 = vld [vmem:[#allocation5 + $0xb60] ss:$16 sps:$4 sm:$0xff]   ;;  %v10446_v57 = vld [vmem:[#allocation5 + $0x944] ss:$16 sps:$4 sm:$0xff]  }
 0x105   :  { %5745 = vmatmul.mubr.bf16.gmra.mxu1 %v11917_v9  ;;  %5796 = vmatpush2.bf16.msra.mxu0 %v10426_v48  ;;  %v11929_v9 = vpack.c.bf16 %v435_v47, %v411_v10  ;;  %v460_v48 = vld [vmem:[#allocation2 + $0xab8] sm:$0xff]  ;;  %v10447_v22 = vld [vmem:[#allocation5 + $0xb40] ss:$16 sps:$4 sm:$0xff]   ;;  %v10452_v47 = vld [vmem:[#allocation5 + $0x924] ss:$16 sps:$4 sm:$0xff]  }
 0x106   :  { %5909 = vmatpush2.bf16.msra.mxu1 %v10429_v63  ;;  %5797 = vmatprep.subr.bf16.mxu0 %v10434_v61  ;;  %v484_v63 = vld [vmem:[#allocation2 + $0xb78] sm:$0xff]  ;;  %v10449_v61 = vld [vmem:[#allocation5 + $0xb44] ss:$16 sps:$4 sm:$0xff]  }
 0x107   :  { %5910 = vmatprep.subr.bf16.mxu1 %v10437_v8  ;;  %5641 = vmatprep.mubr.bf16.mxu0 %v11919_v27  ;;  %14198 = vst [vmem:[#allocation73_spill] sm:$0xff] %v11929_v9  ;;  %v10444_v8 = vld [vmem:[#allocation5 + $0x940] ss:$16 sps:$4 sm:$0xff]   ;;  %v11931_v27 = vpack.c.bf16 %v482_v51, %v458_v52  ;;  %v126_v51 = vld [vmem:[#allocation2 + $0x48] sm:$0xff] }
 0x108   :  { %5754 = vmatprep.mubr.bf16.mxu1 %v11921_v28  ;;  %v11933_v28 = vpack.c.bf16 %v484_v63, %v460_v48  ;;  %v481_v10 = vld [vmem:[#allocation2 + $0xb60] sm:$0xff]  ;;  %v150_v48 = vld [vmem:[#allocation2 + $0x108] sm:$0xff] }
 0x109   :  { %5798 = vmatpush2.bf16.msra.mxu0 %v10432_v7  ;;  %14199 = vst [vmem:[#allocation74_spill] sm:$0xff] %v11931_v27  ;;  %v459_v7 = vld [vmem:[#allocation2 + $0xab0] sm:$0xff]  ;;  %v11939_v63 = vpack.c.bf16 %v481_v10, %v457_v19  ;;  %v125_v10 = vld [vmem:[#allocation2 + $0x40] sm:$0xff] }
 0x10a   :  { %5911 = vmatpush2.bf16.msra.mxu1 %v10435_v30  ;;  %5799 = vmatprep.subr.bf16.mxu0 %v10440_v42  ;;  %14200 = vst [vmem:[#allocation75_spill] sm:$0xff] %v11933_v28  ;;  %v483_v30 = vld [vmem:[#allocation2 + $0xb70] sm:$0xff] }
 0x10b   :  { %5912 = vmatprep.subr.bf16.mxu1 %v10443_v29  ;;  %v10455_v42 = vld [vmem:[#allocation5 + $0xb24] ss:$16 sps:$4 sm:$0xff]   ;;  %v10450_v29 = vld [vmem:[#allocation5 + $0x920] ss:$16 sps:$4 sm:$0xff]   ;;  %14201 = vst [vmem:[#allocation76_spill] sm:$0xff] %v11939_v63 }
 0x10c   :  { %5642 = vmatmul.mubr.bf16.gmra.mxu0 %v11927_v62  ;;  %v10453_v52 = vld [vmem:[#allocation5 + $0xb20] ss:$16 sps:$4 sm:$0xff]   ;;  %v10458_v62 = vld [vmem:[#allocation5 + $0x904] ss:$16 sps:$4 sm:$0xff]  }
 0x10d   :  { %5755 = vmatmul.mubr.bf16.gmra.mxu1 %v11929_v9  ;;  %5800 = vmatpush2.bf16.msra.mxu0 %v10438_v35  ;;  %v11941_v9 = vpack.c.bf16 %v483_v30, %v459_v7  ;;  %v128_v35 = vld [vmem:[#allocation2 + $0x58] sm:$0xff]  ;;  %v10459_v19 = vld [vmem:[#allocation5 + $0xb00] ss:$16 sps:$4 sm:$0xff]   ;;  %v10464_v30 = vld [vmem:[#allocation5 + $0xce4] ss:$16 sps:$4 sm:$0xff]  }
 0x10e   :  { %5913 = vmatpush2.bf16.msra.mxu1 %v10441_v60  ;;  %5801 = vmatprep.subr.bf16.mxu0 %v10446_v57  ;;  %v152_v60 = vld [vmem:[#allocation2 + $0x118] sm:$0xff]  ;;  %v10461_v57 = vld [vmem:[#allocation5 + $0xb04] ss:$16 sps:$4 sm:$0xff]  }
 0x10f   :  { %5914 = vmatprep.subr.bf16.mxu1 %v10449_v61  ;;  %5651 = vmatprep.mubr.bf16.mxu0 %v11931_v27  ;;  %14202 = vst [vmem:[#allocation77_spill] sm:$0xff] %v11941_v9  ;;  %v10456_v61 = vld [vmem:[#allocation5 + $0x900] ss:$16 sps:$4 sm:$0xff]   ;;  %v11943_v27 = vpack.c.bf16 %v150_v48, %v126_v51  ;;  %v174_v48 = vld [vmem:[#allocation2 + $0x1c8] sm:$0xff] }
 0x110   :  { %5764 = vmatprep.mubr.bf16.mxu1 %v11933_v28  ;;  %v11945_v28 = vpack.c.bf16 %v152_v60, %v128_v35  ;;  %v149_v7 = vld [vmem:[#allocation2 + $0x100] sm:$0xff]  ;;  %v198_v35 = vld [vmem:[#allocation2 + $0x288] sm:$0xff] }
 0x111   :  { %5802 = vmatpush2.bf16.msra.mxu0 %v10444_v8  ;;  %14203 = vst [vmem:[#allocation78_spill] sm:$0xff] %v11943_v27  ;;  %v127_v8 = vld [vmem:[#allocation2 + $0x50] sm:$0xff]  ;;  %v11951_v60 = vpack.c.bf16 %v149_v7, %v125_v10  ;;  %v173_v7 = vld [vmem:[#allocation2 + $0x1c0] sm:$0xff] }
 0x112   :  { %5915 = vmatpush2.bf16.msra.mxu1 %v10447_v22  ;;  %5803 = vmatprep.subr.bf16.mxu0 %v10452_v47  ;;  %14204 = vst [vmem:[#allocation79_spill] sm:$0xff] %v11945_v28  ;;  %v151_v22 = vld [vmem:[#allocation2 + $0x110] sm:$0xff] }
 0x113   :  { %5916 = vmatprep.subr.bf16.mxu1 %v10455_v42  ;;  %v10467_v47 = vld [vmem:[#allocation5 + $0xee4] ss:$16 sps:$4 sm:$0xff]   ;;  %v10462_v42 = vld [vmem:[#allocation5 + $0xce0] ss:$16 sps:$4 sm:$0xff]   ;;  %14205 = vst [vmem:[#allocation80_spill] sm:$0xff] %v11951_v60 }
 0x114   :  { %5652 = vmatmul.mubr.bf16.gmra.mxu0 %v11939_v63  ;;  %v10465_v51 = vld [vmem:[#allocation5 + $0xee0] ss:$16 sps:$4 sm:$0xff]   ;;  %v10470_v63 = vld [vmem:[#allocation5 + $0xcc4] ss:$16 sps:$4 sm:$0xff]  }
 0x115   :  { %5765 = vmatmul.mubr.bf16.gmra.mxu1 %v11941_v9  ;;  %5804 = vmatpush2.bf16.msra.mxu0 %v10450_v29  ;;  %v11953_v9 = vpack.c.bf16 %v151_v22, %v127_v8  ;;  %v176_v29 = vld [vmem:[#allocation2 + $0x1d8] sm:$0xff]  ;;  %v10471_v10 = vld [vmem:[#allocation5 + $0xec0] ss:$16 sps:$4 sm:$0xff]   ;;  %v10476_v22 = vld [vmem:[#allocation5 + $0xca4] ss:$16 sps:$4 sm:$0xff]  }
 0x116   :  { %5917 = vmatpush2.bf16.msra.mxu1 %v10453_v52  ;;  %5805 = vmatprep.subr.bf16.mxu0 %v10458_v62  ;;  %v200_v52 = vld [vmem:[#allocation2 + $0x298] sm:$0xff]  ;;  %v10473_v62 = vld [vmem:[#allocation5 + $0xec4] ss:$16 sps:$4 sm:$0xff]  }
 0x117   :  { %5918 = vmatprep.subr.bf16.mxu1 %v10461_v57  ;;  %5807 = vmatprep.mubr.bf16.mxu0 %v11943_v27  ;;  %14206 = vst [vmem:[#allocation81_spill] sm:$0xff] %v11953_v9  ;;  %v10468_v57 = vld [vmem:[#allocation5 + $0xcc0] ss:$16 sps:$4 sm:$0xff]   ;;  %v11955_v27 = vpack.c.bf16 %v198_v35, %v174_v48  ;;  %v222_v35 = vld [vmem:[#allocation2 + $0x348] sm:$0xff] }
 0x118   :  { %5920 = vmatprep.mubr.bf16.mxu1 %v11945_v28  ;;  %v11957_v28 = vpack.c.bf16 %v200_v52, %v176_v29  ;;  %v197_v8 = vld [vmem:[#allocation2 + $0x280] sm:$0xff]  ;;  %v246_v29 = vld [vmem:[#allocation2 + $0x408] sm:$0xff] }
 0x119   :  { %5806 = vmatpush2.bf16.msra.mxu0 %v10456_v61  ;;  %14207 = vst [vmem:[#allocation82_spill] sm:$0xff] %v11955_v27  ;;  %v175_v61 = vld [vmem:[#allocation2 + $0x1d0] sm:$0xff]  ;;  %v11963_v52 = vpack.c.bf16 %v197_v8, %v173_v7  ;;  %v221_v8 = vld [vmem:[#allocation2 + $0x340] sm:$0xff] }
 0x11a   :  { %5919 = vmatpush2.bf16.msra.mxu1 %v10459_v19  ;;  %6001 = vmatprep.subr.bf16.mxu0 %v10464_v30  ;;  %14208 = vst [vmem:[#allocation83_spill] sm:$0xff] %v11957_v28  ;;  %v199_v19 = vld [vmem:[#allocation2 + $0x290] sm:$0xff] }
 0x11b   :  { %6114 = vmatprep.subr.bf16.mxu1 %v10467_v47  ;;  %v10479_v30 = vld [vmem:[#allocation5 + $0xea4] ss:$16 sps:$4 sm:$0xff]   ;;  %v10474_v47 = vld [vmem:[#allocation5 + $0xca0] ss:$16 sps:$4 sm:$0xff]   ;;  %14209 = vst [vmem:[#allocation84_spill] sm:$0xff] %v11963_v52 }
 0x11c   :  { %5808 = vmatmul.mubr.bf16.vlgmr.msra.gmra.mxu0 %v11951_v60  ;;  %v10477_v48 = vld [vmem:[#allocation5 + $0xea0] ss:$16 sps:$4 sm:$0xff]   ;;  %v10482_v60 = vld [vmem:[#allocation5 + $0xc84] ss:$16 sps:$4 sm:$0xff]  }
 0x11d   :  { %5921 = vmatmul.mubr.bf16.vlgmr.msra.gmra.mxu1 %v11953_v9  ;;  %6002 = vmatpush1.bf16.msra.mxu0 %v10462_v42  ;;  %v11965_v9 = vpack.c.bf16 %v199_v19, %v175_v61  ;;  %v224_v42 = vld [vmem:[#allocation2 + $0x358] sm:$0xff]  ;;  %v10483_v7 = vld [vmem:[#allocation5 + $0xe80] ss:$16 sps:$4 sm:$0xff]   ;;  %v10488_v19 = vld [vmem:[#allocation5 + $0xc64] ss:$16 sps:$4 sm:$0xff]  }
 0x11e   :  { %6115 = vmatpush1.bf16.msra.mxu1 %v10465_v51  ;;  %6003 = vmatprep.subr.bf16.mxu0 %v10470_v63  ;;  %v248_v51 = vld [vmem:[#allocation2 + $0x418] sm:$0xff]  ;;  %v10485_v63 = vld [vmem:[#allocation5 + $0xe84] ss:$16 sps:$4 sm:$0xff]  }
 0x11f   :  { %6116 = vmatprep.subr.bf16.mxu1 %v10473_v62  ;;  %5817 = vmatprep.mubr.bf16.mxu0 %v11955_v27  ;;  %14210 = vst [vmem:[#allocation85_spill] sm:$0xff] %v11965_v9  ;;  %v10480_v62 = vld [vmem:[#allocation5 + $0xc80] ss:$16 sps:$4 sm:$0xff]   ;;  %v11967_v27 = vpack.c.bf16 %v246_v29, %v222_v35  ;;  %v270_v29 = vld [vmem:[#allocation2 + $0x4c8] sm:$0xff] }
 0x120   :  { %5930 = vmatprep.mubr.bf16.mxu1 %v11957_v28  ;;  %v11969_v28 = vpack.c.bf16 %v248_v51, %v224_v42  ;;  %v245_v61 = vld [vmem:[#allocation2 + $0x400] sm:$0xff]  ;;  %v294_v42 = vld [vmem:[#allocation2 + $0x588] sm:$0xff] }
 0x121   :  { %6004 = vmatpush1.bf16.msra.mxu0 %v10468_v57  ;;  %14211 = vst [vmem:[#allocation86_spill] sm:$0xff] %v11967_v27  ;;  %v223_v57 = vld [vmem:[#allocation2 + $0x350] sm:$0xff]  ;;  %v11975_v51 = vpack.c.bf16 %v245_v61, %v221_v8  ;;  %v269_v61 = vld [vmem:[#allocation2 + $0x4c0] sm:$0xff] }
 0x122   :  { %6117 = vmatpush1.bf16.msra.mxu1 %v10471_v10  ;;  %6005 = vmatprep.subr.bf16.mxu0 %v10476_v22  ;;  %14212 = vst [vmem:[#allocation87_spill] sm:$0xff] %v11969_v28  ;;  %v247_v10 = vld [vmem:[#allocation2 + $0x410] sm:$0xff] }
 0x123   :  { %6118 = vmatprep.subr.bf16.mxu1 %v10479_v30  ;;  %v10491_v22 = vld [vmem:[#allocation5 + $0xe64] ss:$16 sps:$4 sm:$0xff]   ;;  %v10486_v30 = vld [vmem:[#allocation5 + $0xc60] ss:$16 sps:$4 sm:$0xff]   ;;  %14213 = vst [vmem:[#allocation88_spill] sm:$0xff] %v11975_v51 }
 0x124   :  { %5818 = vmatmul.mubr.bf16.gmra.mxu0 %v11963_v52  ;;  %v10489_v35 = vld [vmem:[#allocation5 + $0xe60] ss:$16 sps:$4 sm:$0xff]   ;;  %v10494_v52 = vld [vmem:[#allocation5 + $0xc44] ss:$16 sps:$4 sm:$0xff]  }
 0x125   :  { %5931 = vmatmul.mubr.bf16.gmra.mxu1 %v11965_v9  ;;  %6006 = vmatpush1.bf16.msra.mxu0 %v10474_v47  ;;  %v11977_v9 = vpack.c.bf16 %v247_v10, %v223_v57  ;;  %v272_v47 = vld [vmem:[#allocation2 + $0x4d8] sm:$0xff]  ;;  %v10495_v8 = vld [vmem:[#allocation5 + $0xe40] ss:$16 sps:$4 sm:$0xff]   ;;  %v10500_v10 = vld [vmem:[#allocation5 + $0xc24] ss:$16 sps:$4 sm:$0xff]  }
 0x126   :  { %6119 = vmatpush1.bf16.msra.mxu1 %v10477_v48  ;;  %6007 = vmatprep.subr.bf16.mxu0 %v10482_v60  ;;  %v296_v48 = vld [vmem:[#allocation2 + $0x598] sm:$0xff]  ;;  %v10497_v60 = vld [vmem:[#allocation5 + $0xe44] ss:$16 sps:$4 sm:$0xff]  }
 0x127   :  { %6120 = vmatprep.subr.bf16.mxu1 %v10485_v63  ;;  %5827 = vmatprep.mubr.bf16.mxu0 %v11967_v27  ;;  %14214 = vst [vmem:[#allocation89_spill] sm:$0xff] %v11977_v9  ;;  %v10492_v63 = vld [vmem:[#allocation5 + $0xc40] ss:$16 sps:$4 sm:$0xff]   ;;  %v11979_v27 = vpack.c.bf16 %v294_v42, %v270_v29  ;;  %v318_v42 = vld [vmem:[#allocation2 + $0x648] sm:$0xff] }
 0x128   :  { %5940 = vmatprep.mubr.bf16.mxu1 %v11969_v28  ;;  %v11981_v28 = vpack.c.bf16 %v296_v48, %v272_v47  ;;  %v293_v57 = vld [vmem:[#allocation2 + $0x580] sm:$0xff]  ;;  %v342_v47 = vld [vmem:[#allocation2 + $0x708] sm:$0xff] }
 0x129   :  { %6008 = vmatpush1.bf16.msra.mxu0 %v10480_v62  ;;  %14215 = vst [vmem:[#allocation90_spill] sm:$0xff] %v11979_v27  ;;  %v271_v62 = vld [vmem:[#allocation2 + $0x4d0] sm:$0xff]  ;;  %v11987_v48 = vpack.c.bf16 %v293_v57, %v269_v61  ;;  %v317_v57 = vld [vmem:[#allocation2 + $0x640] sm:$0xff] }
 0x12a   :  { %6121 = vmatpush1.bf16.msra.mxu1 %v10483_v7  ;;  %6009 = vmatprep.subr.bf16.mxu0 %v10488_v19  ;;  %14216 = vst [vmem:[#allocation91_spill] sm:$0xff] %v11981_v28  ;;  %v295_v7 = vld [vmem:[#allocation2 + $0x590] sm:$0xff] }
 0x12b   :  { %6122 = vmatprep.subr.bf16.mxu1 %v10491_v22  ;;  %v10503_v19 = vld [vmem:[#allocation5 + $0xe24] ss:$16 sps:$4 sm:$0xff]   ;;  %v10498_v22 = vld [vmem:[#allocation5 + $0xc20] ss:$16 sps:$4 sm:$0xff]   ;;  %14217 = vst [vmem:[#allocation92_spill] sm:$0xff] %v11987_v48 }
 0x12c   :  { %5828 = vmatmul.mubr.bf16.gmra.mxu0 %v11975_v51  ;;  %v10501_v29 = vld [vmem:[#allocation5 + $0xe20] ss:$16 sps:$4 sm:$0xff]   ;;  %v10506_v51 = vld [vmem:[#allocation5 + $0xc04] ss:$16 sps:$4 sm:$0xff]  }
 0x12d   :  { %5941 = vmatmul.mubr.bf16.gmra.mxu1 %v11977_v9  ;;  %6010 = vmatpush1.bf16.msra.mxu0 %v10486_v30  ;;  %v11989_v9 = vpack.c.bf16 %v295_v7, %v271_v62  ;;  %v320_v30 = vld [vmem:[#allocation2 + $0x658] sm:$0xff]  ;;  %v10507_v61 = vld [vmem:[#allocation5 + $0xe00] ss:$16 sps:$4 sm:$0xff]   ;;  %v10512_v7 = vld [vmem:[#allocation5 + $0xde4] ss:$16 sps:$4 sm:$0xff]  }
 0x12e   :  { %6123 = vmatpush1.bf16.msra.mxu1 %v10489_v35  ;;  %6011 = vmatprep.subr.bf16.mxu0 %v10494_v52  ;;  %v344_v35 = vld [vmem:[#allocation2 + $0x718] sm:$0xff]  ;;  %v10509_v52 = vld [vmem:[#allocation5 + $0xe04] ss:$16 sps:$4 sm:$0xff]  }
 0x12f   :  { %6124 = vmatprep.subr.bf16.mxu1 %v10497_v60  ;;  %5837 = vmatprep.mubr.bf16.mxu0 %v11979_v27  ;;  %14218 = vst [vmem:[#allocation93_spill] sm:$0xff] %v11989_v9  ;;  %v10504_v60 = vld [vmem:[#allocation5 + $0xc00] ss:$16 sps:$4 sm:$0xff]   ;;  %v11991_v27 = vpack.c.bf16 %v342_v47, %v318_v42  ;;  %v366_v47 = vld [vmem:[#allocation2 + $0x7c8] sm:$0xff] }
 0x130   :  { %5950 = vmatprep.mubr.bf16.mxu1 %v11981_v28  ;;  %v11993_v28 = vpack.c.bf16 %v344_v35, %v320_v30  ;;  %v341_v62 = vld [vmem:[#allocation2 + $0x700] sm:$0xff]  ;;  %v390_v30 = vld [vmem:[#allocation2 + $0x888] sm:$0xff] }
 0x131   :  { %6012 = vmatpush1.bf16.msra.mxu0 %v10492_v63  ;;  %14219 = vst [vmem:[#allocation94_spill] sm:$0xff] %v11991_v27  ;;  %v319_v63 = vld [vmem:[#allocation2 + $0x650] sm:$0xff]  ;;  %v11999_v35 = vpack.c.bf16 %v341_v62, %v317_v57  ;;  %v365_v62 = vld [vmem:[#allocation2 + $0x7c0] sm:$0xff] }
 0x132   :  { %6125 = vmatpush1.bf16.msra.mxu1 %v10495_v8  ;;  %6013 = vmatprep.subr.bf16.mxu0 %v10500_v10  ;;  %14220 = vst [vmem:[#allocation95_spill] sm:$0xff] %v11993_v28  ;;  %v343_v8 = vld [vmem:[#allocation2 + $0x710] sm:$0xff] }
 0x133   :  { %6126 = vmatprep.subr.bf16.mxu1 %v10503_v19  ;;  %v10515_v10 = vld [vmem:[#allocation5 + $0xfe4] ss:$16 sps:$4 sm:$0xff]   ;;  %v10510_v19 = vld [vmem:[#allocation5 + $0xde0] ss:$16 sps:$4 sm:$0xff]   ;;  %14221 = vst [vmem:[#allocation96_spill] sm:$0xff] %v11999_v35 }
 0x134   :  { %5838 = vmatmul.mubr.bf16.gmra.mxu0 %v11987_v48  ;;  %v10513_v42 = vld [vmem:[#allocation5 + $0xfe0] ss:$16 sps:$4 sm:$0xff]   ;;  %v10518_v48 = vld [vmem:[#allocation5 + $0xdc4] ss:$16 sps:$4 sm:$0xff]  }
 0x135   :  { %5951 = vmatmul.mubr.bf16.gmra.mxu1 %v11989_v9  ;;  %6014 = vmatpush1.bf16.msra.mxu0 %v10498_v22  ;;  %v12001_v9 = vpack.c.bf16 %v343_v8, %v319_v63  ;;  %v368_v22 = vld [vmem:[#allocation2 + $0x7d8] sm:$0xff]  ;;  %v10519_v57 = vld [vmem:[#allocation5 + $0xfc0] ss:$16 sps:$4 sm:$0xff]   ;;  %v10524_v8 = vld [vmem:[#allocation5 + $0xda4] ss:$16 sps:$4 sm:$0xff]  }
 0x136   :  { %6127 = vmatpush1.bf16.msra.mxu1 %v10501_v29  ;;  %6015 = vmatprep.subr.bf16.mxu0 %v10506_v51  ;;  %v392_v29 = vld [vmem:[#allocation2 + $0x898] sm:$0xff]  ;;  %v10521_v51 = vld [vmem:[#allocation5 + $0xfc4] ss:$16 sps:$4 sm:$0xff]  }
 0x137   :  { %6128 = vmatprep.subr.bf16.mxu1 %v10509_v52  ;;  %5847 = vmatprep.mubr.bf16.mxu0 %v11991_v27  ;;  %14222 = vst [vmem:[#allocation97_spill] sm:$0xff] %v12001_v9  ;;  %v10516_v52 = vld [vmem:[#allocation5 + $0xdc0] ss:$16 sps:$4 sm:$0xff]   ;;  %v12003_v27 = vpack.c.bf16 %v390_v30, %v366_v47  ;;  %v414_v30 = vld [vmem:[#allocation2 + $0x948] sm:$0xff] }
 0x138   :  { %5960 = vmatprep.mubr.bf16.mxu1 %v11993_v28  ;;  %v12005_v28 = vpack.c.bf16 %v392_v29, %v368_v22  ;;  %v389_v63 = vld [vmem:[#allocation2 + $0x880] sm:$0xff]  ;;  %v438_v22 = vld [vmem:[#allocation2 + $0xa08] sm:$0xff] }
 0x139   :  { %6016 = vmatpush1.bf16.msra.mxu0 %v10504_v60  ;;  %14223 = vst [vmem:[#allocation98_spill] sm:$0xff] %v12003_v27  ;;  %v367_v60 = vld [vmem:[#allocation2 + $0x7d0] sm:$0xff]  ;;  %v12011_v29 = vpack.c.bf16 %v389_v63, %v365_v62  ;;  %v413_v63 = vld [vmem:[#allocation2 + $0x940] sm:$0xff] }
 0x13a   :  { %6129 = vmatpush1.bf16.msra.mxu1 %v10507_v61  ;;  %6017 = vmatprep.subr.bf16.mxu0 %v10512_v7  ;;  %14224 = vst [vmem:[#allocation99_spill] sm:$0xff] %v12005_v28  ;;  %v391_v61 = vld [vmem:[#allocation2 + $0x890] sm:$0xff] }
 0x13b   :  { %6130 = vmatprep.subr.bf16.mxu1 %v10515_v10  ;;  %v10527_v7 = vld [vmem:[#allocation5 + $0xfa4] ss:$16 sps:$4 sm:$0xff]   ;;  %v10522_v10 = vld [vmem:[#allocation5 + $0xda0] ss:$16 sps:$4 sm:$0xff]   ;;  %14225 = vst [vmem:[#allocation100_spill] sm:$0xff] %v12011_v29 }
 0x13c   :  { %5848 = vmatmul.mubr.bf16.gmra.mxu0 %v11999_v35  ;;  %v10525_v47 = vld [vmem:[#allocation5 + $0xfa0] ss:$16 sps:$4 sm:$0xff]   ;;  %v10530_v35 = vld [vmem:[#allocation5 + $0xd84] ss:$16 sps:$4 sm:$0xff]  }
 0x13d   :  { %5961 = vmatmul.mubr.bf16.gmra.mxu1 %v12001_v9  ;;  %6018 = vmatpush2.bf16.msra.mxu0 %v10510_v19  ;;  %v12013_v9 = vpack.c.bf16 %v391_v61, %v367_v60  ;;  %v416_v19 = vld [vmem:[#allocation2 + $0x958] sm:$0xff]  ;;  %v10531_v62 = vld [vmem:[#allocation5 + $0xf80] ss:$16 sps:$4 sm:$0xff]   ;;  %v10536_v61 = vld [vmem:[#allocation5 + $0xd64] ss:$16 sps:$4 sm:$0xff]  }
 0x13e   :  { %6131 = vmatpush2.bf16.msra.mxu1 %v10513_v42  ;;  %6019 = vmatprep.subr.bf16.mxu0 %v10518_v48  ;;  %v440_v42 = vld [vmem:[#allocation2 + $0xa18] sm:$0xff]  ;;  %v10533_v48 = vld [vmem:[#allocation5 + $0xf84] ss:$16 sps:$4 sm:$0xff]  }
 0x13f   :  { %6132 = vmatprep.subr.bf16.mxu1 %v10521_v51  ;;  %5857 = vmatprep.mubr.bf16.mxu0 %v12003_v27  ;;  %14226 = vst [vmem:[#allocation101_spill] sm:$0xff] %v12013_v9  ;;  %v10528_v51 = vld [vmem:[#allocation5 + $0xd80] ss:$16 sps:$4 sm:$0xff]   ;;  %v12015_v27 = vpack.c.bf16 %v438_v22, %v414_v30  ;;  %v486_v22 = vld [vmem:[#allocation2 + $0xb88] sm:$0xff] }
 0x140   :  { %5970 = vmatprep.mubr.bf16.mxu1 %v12005_v28  ;;  %v12017_v28 = vpack.c.bf16 %v440_v42, %v416_v19  ;;  %v437_v60 = vld [vmem:[#allocation2 + $0xa00] sm:$0xff]  ;;  %v464_v19 = vld [vmem:[#allocation2 + $0xad8] sm:$0xff] }
 0x141   :  { %6020 = vmatpush2.bf16.msra.mxu0 %v10516_v52  ;;  %14227 = vst [vmem:[#allocation102_spill] sm:$0xff] %v12015_v27  ;;  %v415_v52 = vld [vmem:[#allocation2 + $0x950] sm:$0xff]  ;;  %v12023_v42 = vpack.c.bf16 %v437_v60, %v413_v63  ;;  %v461_v60 = vld [vmem:[#allocation2 + $0xac0] sm:$0xff] }
 0x142   :  { %6133 = vmatpush2.bf16.msra.mxu1 %v10519_v57  ;;  %6021 = vmatprep.subr.bf16.mxu0 %v10524_v8  ;;  %14228 = vst [vmem:[#allocation103_spill] sm:$0xff] %v12017_v28  ;;  %v439_v57 = vld [vmem:[#allocation2 + $0xa10] sm:$0xff] }
 0x143   :  { %6134 = vmatprep.subr.bf16.mxu1 %v10527_v7  ;;  %v10539_v8 = vld [vmem:[#allocation5 + $0xf64] ss:$16 sps:$4 sm:$0xff]   ;;  %v462_v7 = vld [vmem:[#allocation2 + $0xac8] sm:$0xff]  ;;  %v10534_v30 = vld [vmem:[#allocation5 + $0xd60] ss:$16 sps:$4 sm:$0xff]   ;;  %14229 = vst [vmem:[#allocation104_spill] sm:$0xff] %v12023_v42 }
 0x144   :  { %5858 = vmatmul.mubr.bf16.gmra.mxu0 %v12011_v29  ;;  %v10540_v29 = vld [vmem:[#allocation5 + $0xd40] ss:$16 sps:$4 sm:$0xff]   ;;  %v12027_v6 = vpack.c.bf16 %v486_v22, %v462_v7  ;;  %v130_v7 = vld [vmem:[#allocation2 + $0x68] sm:$0xff] }
 0x145   :  { %5971 = vmatmul.mubr.bf16.gmra.mxu1 %v12013_v9  ;;  %6022 = vmatpush2.bf16.msra.mxu0 %v10522_v10  ;;  %v12025_v9 = vpack.c.bf16 %v439_v57, %v415_v52  ;;  %v488_v10 = vld [vmem:[#allocation2 + $0xb98] sm:$0xff]  ;;  %v10543_v63 = vld [vmem:[#allocation5 + $0xf40] ss:$16 sps:$4 sm:$0xff]   ;;  %v10548_v57 = vld [vmem:[#allocation5 + $0xd24] ss:$16 sps:$4 sm:$0xff]  }
 0x146   :  { %6135 = vmatpush2.bf16.msra.mxu1 %v10525_v47  ;;  %6023 = vmatprep.subr.bf16.mxu0 %v10530_v35  ;;  %v10537_v47 = vld [vmem:[#allocation5 + $0xf60] ss:$16 sps:$4 sm:$0xff]   ;;  %v10542_v35 = vld [vmem:[#allocation5 + $0xd44] ss:$16 sps:$4 sm:$0xff]   ;;  %14231 = vst [vmem:[#allocation106_spill] sm:$0xff] %v12027_v6 }
 0x147   :  { %6136 = vmatprep.subr.bf16.mxu1 %v10533_v48  ;;  %5867 = vmatprep.mubr.bf16.mxu0 %v12015_v27  ;;  %14230 = vst [vmem:[#allocation105_spill] sm:$0xff] %v12025_v9  ;;  %v10545_v48 = vld [vmem:[#allocation5 + $0xf44] ss:$16 sps:$4 sm:$0xff]   ;;  %v12029_v27 = vpack.c.bf16 %v488_v10, %v464_v19  ;;  %v10546_v22 = vld [vmem:[#allocation5 + $0xd20] ss:$16 sps:$4 sm:$0xff]   ;;  %v154_v19 = vld [vmem:[#allocation2 + $0x128] sm:$0xff] }
 0x148   :  { %5980 = vmatprep.mubr.bf16.mxu1 %v12017_v28  ;;  %v485_v52 = vld [vmem:[#allocation2 + $0xb80] sm:$0xff]  ;;  %v132_v10 = vld [vmem:[#allocation2 + $0x78] sm:$0xff] }
 0x149   :  { %6024 = vmatpush2.bf16.msra.mxu0 %v10528_v51  ;;  %14232 = vst [vmem:[#allocation107_spill] sm:$0xff] %v12029_v27  ;;  %v463_v51 = vld [vmem:[#allocation2 + $0xad0] sm:$0xff] }
 0x14a   :  { %6137 = vmatpush2.bf16.msra.mxu1 %v10531_v62  ;;  %6025 = vmatprep.subr.bf16.mxu0 %v10536_v61  ;;  %v487_v62 = vld [vmem:[#allocation2 + $0xb90] sm:$0xff]  ;;  %v1463_v61 = vlaneseq }
 0x14b   :  { %6138 = vmatprep.subr.bf16.mxu1 %v10539_v8  ;;  %v10551_v8 = vld [vmem:[#allocation5 + $0xf24] ss:$16 sps:$4 sm:$0xff]  }
 0x14c   :  { %5868 = vmatmul.mubr.bf16.gmra.mxu0 %v12023_v42  ;;  %v12037_v42 = vpack.c.bf16 %v487_v62, %v463_v51  ;;  %v12039_v28 = vshrl.u32 %v1463_v61, 7  ;;  %v131_v51 = vld [vmem:[#allocation2 + $0x70] sm:$0xff] }
 0x14d   :  { %5981 = vmatmul.mubr.bf16.gmra.mxu1 %v12025_v9  ;;  %6026 = vmatpush2.bf16.msra.mxu0 %v10534_v30  ;;  %v12035_v9 = vpack.c.bf16 %v485_v52, %v461_v60  ;;  %v156_v30 = vld [vmem:[#allocation2 + $0x138] sm:$0xff]  ;;  %v1461_v60 = vld [vmem:[#allocation7] sm:$0xf]  ;;  %v155_v62 = vld [vmem:[#allocation2 + $0x130] sm:$0xff] }
 0x14e   :  { %6139 = vmatpush2.bf16.msra.mxu1 %v10537_v47  ;;  %6027 = vmatprep.subr.bf16.mxu0 %v10542_v35  ;;  %14234 = vst [vmem:[#allocation109_spill] sm:$0xff] %v12037_v42  ;;  %v10549_v47 = vld [vmem:[#allocation5 + $0xf20] ss:$16 sps:$4 sm:$0xff]   ;;  %14235 = vst [vmem:[#allocation110_spill] sm:$0xff] %v12039_v28  ;;  %v10554_v35 = vld [vmem:[#allocation5 + $0xd04] ss:$16 sps:$4 sm:$0xff]   ;;  %v12043_v31 = vpack.c.bf16 %v156_v30, %v132_v10 }
 0x14f   :  { %6140 = vmatprep.subr.bf16.mxu1 %v10545_v48  ;;  %5877 = vmatprep.mubr.bf16.mxu0 %v12027_v6  ;;  %14233 = vst [vmem:[#allocation108_spill] sm:$0xff] %v12035_v9  ;;  %v10557_v48 = vld [vmem:[#allocation5 + $0xf04] ss:$16 sps:$4 sm:$0xff]   ;;  %v10552_v6 = vld [vmem:[#allocation5 + $0xd00] ss:$16 sps:$4 sm:$0xff]   ;;  %v202_v10 = vld [vmem:[#allocation2 + $0x2a8] sm:$0xff] }
 0x150   :  { %5990 = vmatprep.mubr.bf16.mxu1 %v12029_v27  ;;  %v12041_v27 = vpack.c.bf16 %v154_v19, %v130_v7  ;;  %14237 = vst [vmem:[#allocation112_spill] sm:$0xff] %v12043_v31  ;;  %v10563_v61 = vld [vmem:[#allocation5 + $0x12e4] ss:$16 sps:$4 sm:$0xff]   ;;  %v10558_v7 = vld [vmem:[#allocation5 + $0x10e0] ss:$16 sps:$4 sm:$0xff]   ;;  %v14019_v19 = vsub.s32 1, %v12039_v28 }
 0x151   :  { %6028 = vmatpush2.bf16.msra.mxu0 %v10540_v29  ;;  %v129_v29 = vld [vmem:[#allocation2 + $0x60] sm:$0xff]  ;;  %v180_v30 = vld [vmem:[#allocation2 + $0x1f8] sm:$0xff] }
 0x152   :  { %6141 = vmatpush2.bf16.msra.mxu1 %v10543_v63  ;;  %6029 = vmatprep.subr.bf16.mxu0 %v10548_v57  ;;  %14236 = vst [vmem:[#allocation111_spill] sm:$0xff] %v12041_v27  ;;  %v153_v63 = vld [vmem:[#allocation2 + $0x120] sm:$0xff]  ;;  %v204_v52 = vld [vmem:[#allocation2 + $0x2b8] sm:$0xff] }
 0x153   :  { %6142 = vmatprep.subr.bf16.mxu1 %v10551_v8  ;;  %v10560_v57 = vld [vmem:[#allocation5 + $0x10e4] ss:$16 sps:$4 sm:$0xff]   ;;  %v178_v8 = vld [vmem:[#allocation2 + $0x1e8] sm:$0xff] }
 0x154   :  { %5878 = vmatmul.mubr.bf16.gmra.mxu0 %v12035_v9  ;;  %v12061_v9 = vrot.slane %v1461_v60, %v14019_v19  ;;  %v203_v19 = vld [vmem:[#allocation2 + $0x2b0] sm:$0xff] }
 0x155   :  { %5991 = vmatmul.mubr.bf16.gmra.mxu1 %v12037_v42  ;;  %6030 = vmatpush2.bf16.msra.mxu0 %v10546_v22  ;;  %v12051_v22 = vpack.c.bf16 %v153_v63, %v129_v29  ;;  %v10561_v42 = vld [vmem:[#allocation5 + $0x12e0] ss:$16 sps:$4 sm:$0xff]   ;;  %v12063_v63 = vpack.c.bf16 %v202_v10, %v178_v8 }
 0x156   :  { %6143 = vmatpush2.bf16.msra.mxu1 %v10549_v47  ;;  %6031 = vmatprep.subr.bf16.mxu0 %v10554_v35  ;;  %v12053_v47 = vpack.c.bf16 %v155_v62, %v131_v51  ;;  %v14240_v35 = vsub.s32 0, %v12039_v28  ;;  %v10564_v29 = vld [vmem:[#allocation5 + $0x10c0] ss:$16 sps:$4 sm:$0xff]   ;;  %v12065_v51 = vpack.c.bf16 %v204_v52, %v180_v30  ;;  %v10572_v28 = vld [vmem:[#allocation5 + $0x10a4] ss:$16 sps:$4 sm:$0xff]   ;;  %v226_v30 = vld [vmem:[#allocation2 + $0x368] sm:$0xff] }
 0x157   :  { %6144 = vmatprep.subr.bf16.mxu1 %v10557_v48  ;;  %6033 = vmatprep.mubr.bf16.mxu0 %v12041_v27  ;;  %14238 = vst [vmem:[#allocation113_spill] sm:$0xff] %v12051_v22  ;;  %v10569_v27 = vld [vmem:[#allocation5 + $0x12c4] ss:$16 sps:$4 sm:$0xff]   ;;  %14241 = vst [vmem:[#allocation115_spill] sm:$0xff] %v12063_v63  ;;  %v10567_v62 = vld [vmem:[#allocation5 + $0x12c0] ss:$16 sps:$4 sm:$0xff]  }
 0x158   :  { %6146 = vmatprep.mubr.bf16.mxu1 %v12043_v31  ;;  %14239 = vst [vmem:[#allocation114_spill] sm:$0xff] %v12053_v47  ;;  %v12057_v48 = vrot.slane %v1461_v60, %v14240_v35  ;;  %v10566_v31 = vld [vmem:[#allocation5 + $0x10c4] ss:$16 sps:$4 sm:$0xff]   ;;  %14242 = vst [vmem:[#allocation116_spill] sm:$0xff] %v12065_v51 }
 0x159   :  { %6032 = vmatpush2.bf16.msra.mxu0 %v10552_v6  ;;  %v179_v60 = vld [vmem:[#allocation2 + $0x1f0] sm:$0xff] }
 0x15a   :  { %6145 = vmatpush2.bf16.msra.mxu1 %v10555_v34  ;;  %6227 = vmatprep.subr.bf16.mxu0 %v10560_v57  ;;  %v177_v57 = vld [vmem:[#allocation2 + $0x1e0] sm:$0xff]  ;;  %v12077_v55 = vpack.c.bf16 %v203_v19, %v179_v60 }
 0x15b   :  { %6340 = vmatprep.subr.bf16.mxu1 %v10563_v61  ;;  %v201_v61 = vld [vmem:[#allocation2 + $0x2a0] sm:$0xff] }
 0x15c   :  { %v5357_v6 = vpop.f32.mrf.mxu0  ;;  %6034 = vmatmul.mubr.bf16.vlgmr.msra.gmra.mxu0 %v12051_v22  ;;  %v10575_v52 = vld [vmem:[#allocation5 + $0x12a4] ss:$16 sps:$4 sm:$0xff]   ;;  %v12075_v56 = vpack.c.bf16 %v201_v61, %v177_v57  ;;  %14244 = vst [vmem:[#allocation118_spill] sm:$0xff] %v12077_v55  ;;  %v10576_v19 = vld [vmem:[#allocation5 + $0x1080] ss:$16 sps:$4 sm:$0xff]  }
 0x15d   :  { %v5470_v34 = vpop.f32.mrf.mxu1  ;;  %6147 = vmatmul.mubr.bf16.vlgmr.msra.gmra.mxu1 %v12053_v47  ;;  %v5358_v35 = vadd.f32 %v5357_v6, %v12057_v48  ;;  %6228 = vmatpush1.bf16.msra.mxu0 %v10558_v7  ;;  %v10570_v6 = vld [vmem:[#allocation5 + $0x10a0] ss:$16 sps:$4 sm:$0xff]   ;;  %v250_v7 = vld [vmem:[#allocation2 + $0x428] sm:$0xff] }
 0x15e   :  { %6341 = vmatpush1.bf16.msra.mxu1 %v10561_v42  ;;  %v5359_v8 = vpop.f32.mrf.mxu0  ;;  %6229 = vmatprep.subr.bf16.mxu0 %v10566_v31  ;;  %v228_v42 = vld [vmem:[#allocation2 + $0x378] sm:$0xff]  ;;  %14243 = vst [vmem:[#allocation117_spill] sm:$0xff] %v12075_v56  ;;  %v12085_v61 = vpack.c.bf16 %v250_v7, %v226_v30  ;;  %v251_v30 = vld [vmem:[#allocation2 + $0x430] sm:$0xff] }
 0x15f   :  { %v5472_v10 = vpop.f32.mrf.mxu1  ;;  %6342 = vmatprep.subr.bf16.mxu1 %v10569_v27  ;;  %v12070_v21 = vadd.f32 %v5470_v34, %v5358_v35  ;;  %v5360_v47 = vadd.f32 %v5359_v8, %v12061_v9  ;;  %6043 = vmatprep.mubr.bf16.mxu0 %v12063_v63  ;;  %v252_v31 = vld [vmem:[#allocation2 + $0x438] sm:$0xff]  ;;  %v10573_v35 = vld [vmem:[#allocation5 + $0x12a0] ss:$16 sps:$4 sm:$0xff]   ;;  %v10584_v7 = vld [vmem:[#allocation5 + $0x1064] ss:$16 sps:$4 sm:$0xff]  }
 0x160   :  { %6156 = vmatprep.mubr.bf16.mxu1 %v12065_v51  ;;  %v5361_v22 = vpop.f32.mrf.mxu0  ;;  %v10578_v51 = vld [vmem:[#allocation5 + $0x1084] ss:$16 sps:$4 sm:$0xff]   ;;  %14245 = vst [vmem:[#allocation119_spill] sm:$0xff] %v12085_v61 }
 0x161   :  { %v5474_v20 = vpop.f32.mrf.mxu1  ;;  %v12079_v27 = vadd.f32 %v5472_v10, %v5360_v47  ;;  %v5362_v34 = vadd.f32 %v5361_v22, %v12057_v48  ;;  %6230 = vmatpush1.bf16.msra.mxu0 %v10564_v29  ;;  %v12087_v47 = vpack.c.bf16 %v252_v31, %v228_v42  ;;  %v10579_v29 = vld [vmem:[#allocation5 + $0x1280] ss:$16 sps:$4 sm:$0xff]  }
 0x162   :  { %6343 = vmatpush1.bf16.msra.mxu1 %v10567_v62  ;;  %v5363_v8 = vpop.f32.mrf.mxu0  ;;  %6231 = vmatprep.subr.bf16.mxu0 %v10572_v28  ;;  %v225_v28 = vld [vmem:[#allocation2 + $0x360] sm:$0xff] }
 0x163   :  { %v5476_v63 = vpop.f32.mrf.mxu1  ;;  %6344 = vmatprep.subr.bf16.mxu1 %v10575_v52  ;;  %v12082_v38 = vadd.f32 %v5474_v20, %v5362_v34  ;;  %v5364_v57 = vadd.f32 %v5363_v8, %v12061_v9  ;;  %14246 = vst [vmem:[#allocation120_spill] sm:$0xff] %v12087_v47  ;;  %v249_v62 = vld [vmem:[#allocation2 + $0x420] sm:$0xff]  ;;  %v227_v52 = vld [vmem:[#allocation2 + $0x370] sm:$0xff]  ;;  %v274_v8 = vld [vmem:[#allocation2 + $0x4e8] sm:$0xff] }
 0x164   :  { %v5367_v60 = vpop.f32.mrf.mxu0  ;;  %6044 = vmatmul.mubr.bf16.gmra.mxu0 %v12075_v56  ;;  %v10587_v34 = vld [vmem:[#allocation5 + $0x1264] ss:$16 sps:$4 sm:$0xff]   ;;  %v12099_v18 = vpack.c.bf16 %v249_v62, %v225_v28  ;;  %v12101_v13 = vpack.c.bf16 %v251_v30, %v227_v52  ;;  %v10588_v62 = vld [vmem:[#allocation5 + $0x1040] ss:$16 sps:$4 sm:$0xff]  }
 0x165   :  { %v5480_v22 = vpop.f32.mrf.mxu1  ;;  %6157 = vmatmul.mubr.bf16.gmra.mxu1 %v12077_v55  ;;  %v12091_v10 = vadd.f32 %v5476_v63, %v5364_v57  ;;  %v5368_v20 = vadd.f32 %v5367_v60, %v12057_v48  ;;  %6232 = vmatpush1.bf16.msra.mxu0 %v10570_v6  ;;  %v10582_v63 = vld [vmem:[#allocation5 + $0x1060] ss:$16 sps:$4 sm:$0xff]   ;;  %v298_v6 = vld [vmem:[#allocation2 + $0x5a8] sm:$0xff] }
 0x166   :  { %6345 = vmatpush1.bf16.msra.mxu1 %v10573_v35  ;;  %v5369_v42 = vpop.f32.mrf.mxu0  ;;  %6233 = vmatprep.subr.bf16.mxu0 %v10578_v51  ;;  %v276_v35 = vld [vmem:[#allocation2 + $0x4f8] sm:$0xff]  ;;  %14247 = vst [vmem:[#allocation121_spill] sm:$0xff] %v12099_v18  ;;  %14248 = vst [vmem:[#allocation122_spill] sm:$0xff] %v12101_v13  ;;  %v12109_v52 = vpack.c.bf16 %v298_v6, %v274_v8  ;;  %v299_v8 = vld [vmem:[#allocation2 + $0x5b0] sm:$0xff] }
 0x167   :  { %v5482_v31 = vpop.f32.mrf.mxu1  ;;  %6346 = vmatprep.subr.bf16.mxu1 %v10581_v39  ;;  %v12094_v56 = vadd.f32 %v5480_v22, %v5368_v20  ;;  %v5370_v55 = vadd.f32 %v5369_v42, %v12061_v9  ;;  %6053 = vmatprep.mubr.bf16.mxu0 %v12085_v61  ;;  %v300_v39 = vld [vmem:[#allocation2 + $0x5b8] sm:$0xff]  ;;  %v10585_v20 = vld [vmem:[#allocation5 + $0x1260] ss:$16 sps:$4 sm:$0xff]   ;;  %v10596_v6 = vld [vmem:[#allocation5 + $0x1024] ss:$16 sps:$4 sm:$0xff]  }
 0x168   :  { %6166 = vmatprep.mubr.bf16.mxu1 %v12087_v47  ;;  %v5371_v57 = vpop.f32.mrf.mxu0  ;;  %v10590_v47 = vld [vmem:[#allocation5 + $0x1044] ss:$16 sps:$4 sm:$0xff]   ;;  %14249 = vst [vmem:[#allocation123_spill] sm:$0xff] %v12109_v52 }
 0x169   :  { %v5484_v60 = vpop.f32.mrf.mxu1  ;;  %v12103_v51 = vadd.f32 %v5482_v31, %v5370_v55  ;;  %v5372_v22 = vadd.f32 %v5371_v57, %v12057_v48  ;;  %6234 = vmatpush1.bf16.msra.mxu0 %v10576_v19  ;;  %v12111_v55 = vpack.c.bf16 %v300_v39, %v276_v35  ;;  %v10591_v19 = vld [vmem:[#allocation5 + $0x1240] ss:$16 sps:$4 sm:$0xff]  }
 0x16a   :  { %6347 = vmatpush1.bf16.msra.mxu1 %v10579_v29  ;;  %v5373_v42 = vpop.f32.mrf.mxu0  ;;  %6235 = vmatprep.subr.bf16.mxu0 %v10584_v7  ;;  %v273_v29 = vld [vmem:[#allocation2 + $0x4e0] sm:$0xff] }
 0x16b   :  { %v5486_v61 = vpop.f32.mrf.mxu1  ;;  %6348 = vmatprep.subr.bf16.mxu1 %v10587_v34  ;;  %v12106_v0 = vadd.f32 %v5484_v60, %v5372_v22  ;;  %v5374_v28 = vadd.f32 %v5373_v42, %v12061_v9  ;;  %14250 = vst [vmem:[#allocation124_spill] sm:$0xff] %v12111_v55  ;;  %v297_v7 = vld [vmem:[#allocation2 + $0x5a0] sm:$0xff]  ;;  %v275_v60 = vld [vmem:[#allocation2 + $0x4f0] sm:$0xff]  ;;  %v322_v42 = vld [vmem:[#allocation2 + $0x668] sm:$0xff] }
 0x16c   :  { %v5377_v30 = vpop.f32.mrf.mxu0  ;;  %6054 = vmatmul.mubr.bf16.gmra.mxu0 %v12099_v18  ;;  %v10599_v22 = vld [vmem:[#allocation5 + $0x1224] ss:$16 sps:$4 sm:$0xff]   ;;  %v12123_v46 = vpack.c.bf16 %v297_v7, %v273_v29  ;;  %v12125_v45 = vpack.c.bf16 %v299_v8, %v275_v60  ;;  %v10600_v7 = vld [vmem:[#allocation5 + $0x1000] ss:$16 sps:$4 sm:$0xff]  }
 0x16d   :  { %v5490_v31 = vpop.f32.mrf.mxu1  ;;  %6167 = vmatmul.mubr.bf16.gmra.mxu1 %v12101_v13  ;;  %v12115_v34 = vadd.f32 %v5486_v61, %v5374_v28  ;;  %v5378_v57 = vadd.f32 %v5377_v30, %v12057_v48  ;;  %6236 = vmatpush1.bf16.msra.mxu0 %v10582_v63  ;;  %v10594_v61 = vld [vmem:[#allocation5 + $0x1020] ss:$16 sps:$4 sm:$0xff]   ;;  %v346_v63 = vld [vmem:[#allocation2 + $0x728] sm:$0xff] }
 0x16e   :  { %6349 = vmatpush1.bf16.msra.mxu1 %v10585_v20  ;;  %v5379_v35 = vpop.f32.mrf.mxu0  ;;  %6237 = vmatprep.subr.bf16.mxu0 %v10590_v47  ;;  %v324_v20 = vld [vmem:[#allocation2 + $0x678] sm:$0xff]  ;;  %14251 = vst [vmem:[#allocation125_spill] sm:$0xff] %v12123_v46  ;;  %14252 = vst [vmem:[#allocation126_spill] sm:$0xff] %v12125_v45  ;;  %v12133_v60 = vpack.c.bf16 %v346_v63, %v322_v42  ;;  %v347_v42 = vld [vmem:[#allocation2 + $0x730] sm:$0xff] }
 0x16f   :  { %v5492_v39 = vpop.f32.mrf.mxu1  ;;  %6350 = vmatprep.subr.bf16.mxu1 %v10593_v3  ;;  %v12118_v18 = vadd.f32 %v5490_v31, %v5378_v57  ;;  %v5380_v13 = vadd.f32 %v5379_v35, %v12061_v9  ;;  %6063 = vmatprep.mubr.bf16.mxu0 %v12109_v52  ;;  %v348_v3 = vld [vmem:[#allocation2 + $0x738] sm:$0xff]  ;;  %v10597_v57 = vld [vmem:[#allocation5 + $0x1220] ss:$16 sps:$4 sm:$0xff]   ;;  %v10608_v63 = vld [vmem:[#allocation5 + $0x11e4] ss:$16 sps:$4 sm:$0xff]  }
 0x170   :  { %6176 = vmatprep.mubr.bf16.mxu1 %v12111_v55  ;;  %v5381_v28 = vpop.f32.mrf.mxu0  ;;  %v10602_v55 = vld [vmem:[#allocation5 + $0x1004] ss:$16 sps:$4 sm:$0xff]   ;;  %14253 = vst [vmem:[#allocation127_spill] sm:$0xff] %v12133_v60 }
 0x171   :  { %v5494_v30 = vpop.f32.mrf.mxu1  ;;  %v12127_v47 = vadd.f32 %v5492_v39, %v5380_v13  ;;  %v5382_v31 = vadd.f32 %v5381_v28, %v12057_v48  ;;  %6238 = vmatpush1.bf16.msra.mxu0 %v10588_v62  ;;  %v12135_v13 = vpack.c.bf16 %v348_v3, %v324_v20  ;;  %v10603_v62 = vld [vmem:[#allocation5 + $0x1200] ss:$16 sps:$4 sm:$0xff]  }
 0x172   :  { %6351 = vmatpush1.bf16.msra.mxu1 %v10591_v19  ;;  %v5383_v35 = vpop.f32.mrf.mxu0  ;;  %6239 = vmatprep.subr.bf16.mxu0 %v10596_v6  ;;  %v321_v19 = vld [vmem:[#allocation2 + $0x660] sm:$0xff] }
 0x173   :  { %v5496_v52 = vpop.f32.mrf.mxu1  ;;  %6352 = vmatprep.subr.bf16.mxu1 %v10599_v22  ;;  %v12130_v32 = vadd.f32 %v5494_v30, %v5382_v31  ;;  %v5384_v29 = vadd.f32 %v5383_v35, %v12061_v9  ;;  %14254 = vst [vmem:[#allocation128_spill] sm:$0xff] %v12135_v13  ;;  %v345_v6 = vld [vmem:[#allocation2 + $0x720] sm:$0xff]  ;;  %v323_v30 = vld [vmem:[#allocation2 + $0x670] sm:$0xff]  ;;  %v370_v35 = vld [vmem:[#allocation2 + $0x7e8] sm:$0xff] }
 0x174   :  { %v5387_v8 = vpop.f32.mrf.mxu0  ;;  %6064 = vmatmul.mubr.bf16.gmra.mxu0 %v12123_v46  ;;  %v10611_v31 = vld [vmem:[#allocation5 + $0x13e4] ss:$16 sps:$4 sm:$0xff]   ;;  %v12147_v12 = vpack.c.bf16 %v345_v6, %v321_v19  ;;  %v12149_v11 = vpack.c.bf16 %v347_v42, %v323_v30  ;;  %v10612_v6 = vld [vmem:[#allocation5 + $0x11c0] ss:$16 sps:$4 sm:$0xff]  }
 0x175   :  { %v5500_v39 = vpop.f32.mrf.mxu1  ;;  %6177 = vmatmul.mubr.bf16.gmra.mxu1 %v12125_v45  ;;  %v12139_v22 = vadd.f32 %v5496_v52, %v5384_v29  ;;  %v5388_v28 = vadd.f32 %v5387_v8, %v12057_v48  ;;  %6240 = vmatpush1.bf16.msra.mxu0 %v10594_v61  ;;  %v10606_v52 = vld [vmem:[#allocation5 + $0x11e0] ss:$16 sps:$4 sm:$0xff]   ;;  %v394_v61 = vld [vmem:[#allocation2 + $0x8a8] sm:$0xff] }
 0x176   :  { %6353 = vmatpush1.bf16.msra.mxu1 %v10597_v57  ;;  %v5389_v20 = vpop.f32.mrf.mxu0  ;;  %6241 = vmatprep.subr.bf16.mxu0 %v10602_v55  ;;  %v372_v57 = vld [vmem:[#allocation2 + $0x7f8] sm:$0xff]  ;;  %14255 = vst [vmem:[#allocation129_spill] sm:$0xff] %v12147_v12  ;;  %14256 = vst [vmem:[#allocation130_spill] sm:$0xff] %v12149_v11  ;;  %v12157_v30 = vpack.c.bf16 %v394_v61, %v370_v35  ;;  %v395_v35 = vld [vmem:[#allocation2 + $0x8b0] sm:$0xff] }
 0x177   :  { %v5502_v3 = vpop.f32.mrf.mxu1  ;;  %6354 = vmatprep.subr.bf16.mxu1 %v10605_v33  ;;  %v12142_v46 = vadd.f32 %v5500_v39, %v5388_v28  ;;  %v5390_v45 = vadd.f32 %v5389_v20, %v12061_v9  ;;  %6073 = vmatprep.mubr.bf16.mxu0 %v12133_v60  ;;  %v396_v33 = vld [vmem:[#allocation2 + $0x8b8] sm:$0xff]  ;;  %v10609_v28 = vld [vmem:[#allocation5 + $0x13e0] ss:$16 sps:$4 sm:$0xff]   ;;  %v10620_v61 = vld [vmem:[#allocation5 + $0x11a4] ss:$16 sps:$4 sm:$0xff]  }
 0x178   :  { %6186 = vmatprep.mubr.bf16.mxu1 %v12135_v13  ;;  %v5391_v29 = vpop.f32.mrf.mxu0  ;;  %v10614_v13 = vld [vmem:[#allocation5 + $0x11c4] ss:$16 sps:$4 sm:$0xff]   ;;  %14257 = vst [vmem:[#allocation131_spill] sm:$0xff] %v12157_v30 }
 0x179   :  { %v5504_v8 = vpop.f32.mrf.mxu1  ;;  %v12151_v55 = vadd.f32 %v5502_v3, %v5390_v45  ;;  %v5392_v39 = vadd.f32 %v5391_v29, %v12057_v48  ;;  %6242 = vmatpush1.bf16.msra.mxu0 %v10600_v7  ;;  %v12159_v45 = vpack.c.bf16 %v396_v33, %v372_v57  ;;  %v10615_v7 = vld [vmem:[#allocation5 + $0x13c0] ss:$16 sps:$4 sm:$0xff]  }
 0x17a   :  { %6355 = vmatpush1.bf16.msra.mxu1 %v10603_v62  ;;  %v5393_v20 = vpop.f32.mrf.mxu0  ;;  %6243 = vmatprep.subr.bf16.mxu0 %v10608_v63  ;;  %v369_v62 = vld [vmem:[#allocation2 + $0x7e0] sm:$0xff] }
 0x17b   :  { %v5506_v60 = vpop.f32.mrf.mxu1  ;;  %6356 = vmatprep.subr.bf16.mxu1 %v10611_v31  ;;  %v12154_v4 = vadd.f32 %v5504_v8, %v5392_v39  ;;  %v5394_v19 = vadd.f32 %v5393_v20, %v12061_v9  ;;  %14258 = vst [vmem:[#allocation132_spill] sm:$0xff] %v12159_v45  ;;  %v393_v63 = vld [vmem:[#allocation2 + $0x8a0] sm:$0xff]  ;;  %v371_v8 = vld [vmem:[#allocation2 + $0x7f0] sm:$0xff]  ;;  %v418_v20 = vld [vmem:[#allocation2 + $0x968] sm:$0xff] }
 0x17c   :  { %v5397_v42 = vpop.f32.mrf.mxu0  ;;  %6074 = vmatmul.mubr.bf16.gmra.mxu0 %v12147_v12  ;;  %v10623_v39 = vld [vmem:[#allocation5 + $0x13a4] ss:$16 sps:$4 sm:$0xff]   ;;  %v12171_v50 = vpack.c.bf16 %v393_v63, %v369_v62  ;;  %v12173_v49 = vpack.c.bf16 %v395_v35, %v371_v8  ;;  %v10624_v63 = vld [vmem:[#allocation5 + $0x1180] ss:$16 sps:$4 sm:$0xff]  }
 0x17d   :  { %v5510_v3 = vpop.f32.mrf.mxu1  ;;  %6187 = vmatmul.mubr.bf16.gmra.mxu1 %v12149_v11  ;;  %v12163_v31 = vadd.f32 %v5506_v60, %v5394_v19  ;;  %v5398_v29 = vadd.f32 %v5397_v42, %v12057_v48  ;;  %6244 = vmatpush2.bf16.msra.mxu0 %v10606_v52  ;;  %v10618_v60 = vld [vmem:[#allocation5 + $0x11a0] ss:$16 sps:$4 sm:$0xff]   ;;  %v442_v52 = vld [vmem:[#allocation2 + $0xa28] sm:$0xff] }
 0x17e   :  { %6357 = vmatpush2.bf16.msra.mxu1 %v10609_v28  ;;  %v5399_v57 = vpop.f32.mrf.mxu0  ;;  %6245 = vmatprep.subr.bf16.mxu0 %v10614_v13  ;;  %v420_v28 = vld [vmem:[#allocation2 + $0x978] sm:$0xff]  ;;  %14259 = vst [vmem:[#allocation133_spill] sm:$0xff] %v12171_v50  ;;  %14260 = vst [vmem:[#allocation134_spill] sm:$0xff] %v12173_v49  ;;  %v12181_v8 = vpack.c.bf16 %v442_v52, %v418_v20  ;;  %v443_v20 = vld [vmem:[#allocation2 + $0xa30] sm:$0xff] }
 0x17f   :  { %v5512_v33 = vpop.f32.mrf.mxu1  ;;  %6358 = vmatprep.subr.bf16.mxu1 %v10617_v5  ;;  %v12166_v12 = vadd.f32 %v5510_v3, %v5398_v29  ;;  %v5400_v11 = vadd.f32 %v5399_v57, %v12061_v9  ;;  %6083 = vmatprep.mubr.bf16.mxu0 %v12157_v30  ;;  %v444_v5 = vld [vmem:[#allocation2 + $0xa38] sm:$0xff]  ;;  %v10621_v29 = vld [vmem:[#allocation5 + $0x13a0] ss:$16 sps:$4 sm:$0xff]   ;;  %v10632_v52 = vld [vmem:[#allocation5 + $0x1164] ss:$16 sps:$4 sm:$0xff]  }
 0x180   :  { %6196 = vmatprep.mubr.bf16.mxu1 %v12159_v45  ;;  %v5401_v19 = vpop.f32.mrf.mxu0  ;;  %v10626_v45 = vld [vmem:[#allocation5 + $0x1184] ss:$16 sps:$4 sm:$0xff]   ;;  %14261 = vst [vmem:[#allocation135_spill] sm:$0xff] %v12181_v8 }
 0x181   :  { %v5514_v42 = vpop.f32.mrf.mxu1  ;;  %v12175_v13 = vadd.f32 %v5512_v33, %v5400_v11  ;;  %v5402_v3 = vadd.f32 %v5401_v19, %v12057_v48  ;;  %6246 = vmatpush2.bf16.msra.mxu0 %v10612_v6  ;;  %v12183_v11 = vpack.c.bf16 %v444_v5, %v420_v28  ;;  %v10627_v6 = vld [vmem:[#allocation5 + $0x1380] ss:$16 sps:$4 sm:$0xff]  }
 0x182   :  { %6359 = vmatpush2.bf16.msra.mxu1 %v10615_v7  ;;  %v5403_v57 = vpop.f32.mrf.mxu0  ;;  %6247 = vmatprep.subr.bf16.mxu0 %v10620_v61  ;;  %v417_v7 = vld [vmem:[#allocation2 + $0x960] sm:$0xff] }
 0x183   :  { %v5516_v30 = vpop.f32.mrf.mxu1  ;;  %6360 = vmatprep.subr.bf16.mxu1 %v10623_v39  ;;  %v12178_v40 = vadd.f32 %v5514_v42, %v5402_v3  ;;  %v5404_v62 = vadd.f32 %v5403_v57, %v12061_v9  ;;  %14262 = vst [vmem:[#allocation136_spill] sm:$0xff] %v12183_v11  ;;  %v441_v61 = vld [vmem:[#allocation2 + $0xa20] sm:$0xff]  ;;  %v419_v42 = vld [vmem:[#allocation2 + $0x970] sm:$0xff]  ;;  %v466_v57 = vld [vmem:[#allocation2 + $0xae8] sm:$0xff] }
 0x184   :  { %v5407_v35 = vpop.f32.mrf.mxu0  ;;  %6084 = vmatmul.mubr.bf16.gmra.mxu0 %v12171_v50  ;;  %v10635_v3 = vld [vmem:[#allocation5 + $0x1364] ss:$16 sps:$4 sm:$0xff]   ;;  %v12195_v26 = vpack.c.bf16 %v441_v61, %v417_v7  ;;  %v12197_v25 = vpack.c.bf16 %v443_v20, %v419_v42  ;;  %v10636_v61 = vld [vmem:[#allocation5 + $0x1140] ss:$16 sps:$4 sm:$0xff]  }
 0x185   :  { %v5520_v33 = vpop.f32.mrf.mxu1  ;;  %6197 = vmatmul.mubr.bf16.gmra.mxu1 %v12173_v49  ;;  %v12187_v39 = vadd.f32 %v5516_v30, %v5404_v62  ;;  %v5408_v19 = vadd.f32 %v5407_v35, %v12057_v48  ;;  %6248 = vmatpush2.bf16.msra.mxu0 %v10618_v60  ;;  %v10630_v30 = vld [vmem:[#allocation5 + $0x1160] ss:$16 sps:$4 sm:$0xff]   ;;  %v490_v60 = vld [vmem:[#allocation2 + $0xba8] sm:$0xff] }
 0x186   :  { %6361 = vmatpush2.bf16.msra.mxu1 %v10621_v29  ;;  %v5409_v28 = vpop.f32.mrf.mxu0  ;;  %6249 = vmatprep.subr.bf16.mxu0 %v10626_v45  ;;  %v468_v29 = vld [vmem:[#allocation2 + $0xaf8] sm:$0xff]  ;;  %14263 = vst [vmem:[#allocation137_spill] sm:$0xff] %v12195_v26  ;;  %14264 = vst [vmem:[#allocation138_spill] sm:$0xff] %v12197_v25  ;;  %v12205_v42 = vpack.c.bf16 %v490_v60, %v466_v57  ;;  %v491_v57 = vld [vmem:[#allocation2 + $0xbb0] sm:$0xff] }
 0x187   :  { %v5522_v5 = vpop.f32.mrf.mxu1  ;;  %6362 = vmatprep.subr.bf16.mxu1 %v10629_v41  ;;  %v12190_v50 = vadd.f32 %v5520_v33, %v5408_v19  ;;  %v5410_v49 = vadd.f32 %v5409_v28, %v12061_v9  ;;  %6093 = vmatprep.mubr.bf16.mxu0 %v12181_v8  ;;  %v492_v41 = vld [vmem:[#allocation2 + $0xbb8] sm:$0xff]  ;;  %v10633_v19 = vld [vmem:[#allocation5 + $0x1360] ss:$16 sps:$4 sm:$0xff]   ;;  %v10644_v60 = vld [vmem:[#allocation5 + $0x1124] ss:$16 sps:$4 sm:$0xff]  }
 0x188   :  { %6206 = vmatprep.mubr.bf16.mxu1 %v12183_v11  ;;  %v5411_v62 = vpop.f32.mrf.mxu0  ;;  %v10638_v11 = vld [vmem:[#allocation5 + $0x1144] ss:$16 sps:$4 sm:$0xff]   ;;  %14265 = vst [vmem:[#allocation139_spill] sm:$0xff] %v12205_v42 }
 0x189   :  { %v5524_v35 = vpop.f32.mrf.mxu1  ;;  %v12199_v45 = vadd.f32 %v5522_v5, %v5410_v49  ;;  %v5412_v33 = vadd.f32 %v5411_v62, %v12057_v48  ;;  %6250 = vmatpush2.bf16.msra.mxu0 %v10624_v63  ;;  %v12207_v49 = vpack.c.bf16 %v492_v41, %v468_v29  ;;  %v10639_v63 = vld [vmem:[#allocation5 + $0x1340] ss:$16 sps:$4 sm:$0xff]  }
 0x18a   :  { %6363 = vmatpush2.bf16.msra.mxu1 %v10627_v6  ;;  %v5413_v28 = vpop.f32.mrf.mxu0  ;;  %6251 = vmatprep.subr.bf16.mxu0 %v10632_v52  ;;  %v465_v6 = vld [vmem:[#allocation2 + $0xae0] sm:$0xff] }
 0x18b   :  { %v5526_v8 = vpop.f32.mrf.mxu1  ;;  %6364 = vmatprep.subr.bf16.mxu1 %v10635_v3  ;;  %v12202_v14 = vadd.f32 %v5524_v35, %v5412_v33  ;;  %v5414_v7 = vadd.f32 %v5413_v28, %v12061_v9  ;;  %14266 = vst [vmem:[#allocation140_spill] sm:$0xff] %v12207_v49  ;;  %v489_v52 = vld [vmem:[#allocation2 + $0xba0] sm:$0xff]  ;;  %v467_v35 = vld [vmem:[#allocation2 + $0xaf0] sm:$0xff]  ;;  %v134_v28 = vld [vmem:[#allocation2 + $0x88] sm:$0xff] }
 0x18c   :  { %v5417_v20 = vpop.f32.mrf.mxu0  ;;  %6094 = vmatmul.mubr.bf16.gmra.mxu0 %v12195_v26  ;;  %v10647_v33 = vld [vmem:[#allocation5 + $0x1324] ss:$16 sps:$4 sm:$0xff]   ;;  %v12219_v2 = vpack.c.bf16 %v489_v52, %v465_v6  ;;  %v12221_v1 = vpack.c.bf16 %v491_v57, %v467_v35  ;;  %v10648_v52 = vld [vmem:[#allocation5 + $0x1100] ss:$16 sps:$4 sm:$0xff]  }
 0x18d   :  { %v5530_v5 = vpop.f32.mrf.mxu1  ;;  %6207 = vmatmul.mubr.bf16.gmra.mxu1 %v12197_v25  ;;  %v12211_v3 = vadd.f32 %v5526_v8, %v5414_v7  ;;  %v5418_v62 = vadd.f32 %v5417_v20, %v12057_v48  ;;  %6252 = vmatpush2.bf16.msra.mxu0 %v10630_v30  ;;  %v10642_v8 = vld [vmem:[#allocation5 + $0x1120] ss:$16 sps:$4 sm:$0xff]   ;;  %v158_v30 = vld [vmem:[#allocation2 + $0x148] sm:$0xff] }
 0x18e   :  { %6365 = vmatpush2.bf16.msra.mxu1 %v10633_v19  ;;  %v5419_v29 = vpop.f32.mrf.mxu0  ;;  %6253 = vmatprep.subr.bf16.mxu0 %v10638_v11  ;;  %v136_v19 = vld [vmem:[#allocation2 + $0x98] sm:$0xff]  ;;  %14267 = vst [vmem:[#allocation141_spill] sm:$0xff] %v12219_v2  ;;  %14268 = vst [vmem:[#allocation142_spill] sm:$0xff] %v12221_v1  ;;  %v12229_v35 = vpack.c.bf16 %v158_v30, %v134_v28  ;;  %v159_v28 = vld [vmem:[#allocation2 + $0x150] sm:$0xff] }
 0x18f   :  { %v5532_v41 = vpop.f32.mrf.mxu1  ;;  %6366 = vmatprep.subr.bf16.mxu1 %v10641_v15  ;;  %v12214_v26 = vadd.f32 %v5530_v5, %v5418_v62  ;;  %v5420_v25 = vadd.f32 %v5419_v29, %v12061_v9  ;;  %6103 = vmatprep.mubr.bf16.mxu0 %v12205_v42  ;;  %v160_v15 = vld [vmem:[#allocation2 + $0x158] sm:$0xff]  ;;  %v10645_v62 = vld [vmem:[#allocation5 + $0x1320] ss:$16 sps:$4 sm:$0xff]   ;;  %v10656_v30 = vld [vmem:[#allocation5 + $0x14e4] ss:$16 sps:$4 sm:$0xff]  }
 0x190   :  { %6216 = vmatprep.mubr.bf16.mxu1 %v12207_v49  ;;  %v5421_v7 = vpop.f32.mrf.mxu0  ;;  %v10650_v49 = vld [vmem:[#allocation5 + $0x1104] ss:$16 sps:$4 sm:$0xff]   ;;  %14269 = vst [vmem:[#allocation143_spill] sm:$0xff] %v12229_v35 }
 0x191   :  { %v5534_v20 = vpop.f32.mrf.mxu1  ;;  %v12223_v11 = vadd.f32 %v5532_v41, %v5420_v25  ;;  %v5422_v5 = vadd.f32 %v5421_v7, %v12057_v48  ;;  %6254 = vmatpush2.bf16.msra.mxu0 %v10636_v61  ;;  %v12231_v25 = vpack.c.bf16 %v160_v15, %v136_v19  ;;  %v10651_v61 = vld [vmem:[#allocation5 + $0x1300] ss:$16 sps:$4 sm:$0xff]  }
 0x192   :  { %6367 = vmatpush2.bf16.msra.mxu1 %v10639_v63  ;;  %v5423_v29 = vpop.f32.mrf.mxu0  ;;  %6255 = vmatprep.subr.bf16.mxu0 %v10644_v60  ;;  %v133_v63 = vld [vmem:[#allocation2 + $0x80] sm:$0xff] }
 0x193   :  { %v5536_v42 = vpop.f32.mrf.mxu1  ;;  %6368 = vmatprep.subr.bf16.mxu1 %v10647_v33  ;;  %v12226_v58 = vadd.f32 %v5534_v20, %v5422_v5  ;;  %v5424_v6 = vadd.f32 %v5423_v29, %v12061_v9  ;;  %14270 = vst [vmem:[#allocation144_spill] sm:$0xff] %v12231_v25  ;;  %v157_v60 = vld [vmem:[#allocation2 + $0x140] sm:$0xff]  ;;  %v135_v20 = vld [vmem:[#allocation2 + $0x90] sm:$0xff]  ;;  %v182_v29 = vld [vmem:[#allocation2 + $0x208] sm:$0xff] }
 0x194   :  { %v5427_v57 = vpop.f32.mrf.mxu0  ;;  %6104 = vmatmul.mubr.bf16.gmra.mxu0 %v12219_v2  ;;  %v10659_v5 = vld [vmem:[#allocation5 + $0x16e4] ss:$16 sps:$4 sm:$0xff]   ;;  %v12243_v44 = vpack.c.bf16 %v157_v60, %v133_v63  ;;  %v12245_v43 = vpack.c.bf16 %v159_v28, %v135_v20  ;;  %v10660_v60 = vld [vmem:[#allocation5 + $0x14c0] ss:$16 sps:$4 sm:$0xff]  }
 0x195   :  { %v5540_v41 = vpop.f32.mrf.mxu1  ;;  %6217 = vmatmul.mubr.bf16.gmra.mxu1 %v12221_v1  ;;  %v12235_v33 = vadd.f32 %v5536_v42, %v5424_v6  ;;  %v5428_v7 = vadd.f32 %v5427_v57, %v12057_v48  ;;  %6256 = vmatpush2.bf16.msra.mxu0 %v10642_v8  ;;  %v10654_v42 = vld [vmem:[#allocation5 + $0x14e0] ss:$16 sps:$4 sm:$0xff]   ;;  %v206_v8 = vld [vmem:[#allocation2 + $0x2c8] sm:$0xff] }
 0x196   :  { %6369 = vmatpush2.bf16.msra.mxu1 %v10645_v62  ;;  %v5429_v19 = vpop.f32.mrf.mxu0  ;;  %6257 = vmatprep.subr.bf16.mxu0 %v10650_v49  ;;  %v184_v62 = vld [vmem:[#allocation2 + $0x218] sm:$0xff]  ;;  %14271 = vst [vmem:[#allocation145_spill] sm:$0xff] %v12243_v44  ;;  %14272 = vst [vmem:[#allocation146_spill] sm:$0xff] %v12245_v43  ;;  %v12253_v20 = vpack.c.bf16 %v206_v8, %v182_v29  ;;  %v207_v29 = vld [vmem:[#allocation2 + $0x2d0] sm:$0xff] }
 0x197   :  { %v5542_v15 = vpop.f32.mrf.mxu1  ;;  %6370 = vmatprep.subr.bf16.mxu1 %v10653_v59  ;;  %v12238_v2 = vadd.f32 %v5540_v41, %v5428_v7  ;;  %v5430_v1 = vadd.f32 %v5429_v19, %v12061_v9  ;;  %6259 = vmatprep.mubr.bf16.mxu0 %v12229_v35  ;;  %v208_v59 = vld [vmem:[#allocation2 + $0x2d8] sm:$0xff]  ;;  %v10657_v7 = vld [vmem:[#allocation5 + $0x16e0] ss:$16 sps:$4 sm:$0xff]   ;;  %v10668_v8 = vld [vmem:[#allocation5 + $0x14a4] ss:$16 sps:$4 sm:$0xff]  }
 0x198   :  { %6372 = vmatprep.mubr.bf16.mxu1 %v12231_v25  ;;  %v5431_v6 = vpop.f32.mrf.mxu0  ;;  %v10662_v25 = vld [vmem:[#allocation5 + $0x14c4] ss:$16 sps:$4 sm:$0xff]   ;;  %14273 = vst [vmem:[#allocation147_spill] sm:$0xff] %v12253_v20 }
 0x199   :  { %v5544_v57 = vpop.f32.mrf.mxu1  ;;  %v12247_v49 = vadd.f32 %v5542_v15, %v5430_v1  ;;  %v5432_v41 = vadd.f32 %v5431_v6, %v12057_v48  ;;  %6258 = vmatpush2.bf16.msra.mxu0 %v10648_v52  ;;  %v12255_v1 = vpack.c.bf16 %v208_v59, %v184_v62  ;;  %v10663_v52 = vld [vmem:[#allocation5 + $0x16c0] ss:$16 sps:$4 sm:$0xff]   ;;  %v230_v59 = vld [vmem:[#allocation2 + $0x388] sm:$0xff] }
 0x19a   :  { %6371 = vmatpush2.bf16.msra.mxu1 %v10651_v61  ;;  %v5433_v19 = vpop.f32.mrf.mxu0  ;;  %6453 = vmatprep.subr.bf16.mxu0 %v10656_v30  ;;  %v181_v61 = vld [vmem:[#allocation2 + $0x200] sm:$0xff] }
 0x19b   :  { %v5546_v35 = vpop.f32.mrf.mxu1  ;;  %6566 = vmatprep.subr.bf16.mxu1 %v10659_v5  ;;  %v12250_v36 = vadd.f32 %v5544_v57, %v5432_v41  ;;  %v5434_v63 = vadd.f32 %v5433_v19, %v12061_v9  ;;  %14274 = vst [vmem:[#allocation148_spill] sm:$0xff] %v12255_v1  ;;  %v205_v30 = vld [vmem:[#allocation2 + $0x2c0] sm:$0xff]  ;;  %v183_v9 = vld [vmem:[#allocation2 + $0x210] sm:$0xff] }
 0x19c   :  { %v5583_v28 = vpop.f32.mrf.mxu0  ;;  %6260 = vmatmul.mubr.bf16.vlgmr.msra.gmra.mxu0 %v12243_v44  ;;  %v10671_v57 = vld [vmem:[#allocation5 + $0x16a4] ss:$16 sps:$4 sm:$0xff]  }
 0x19d   :  { %v5696_v48 = vpop.f32.mrf.mxu1  ;;  %6373 = vmatmul.mubr.bf16.vlgmr.msra.gmra.mxu1 %v12245_v43  ;;  %v12259_v15 = vadd.f32 %v5546_v35, %v5434_v63  ;;  %v5584_v5 = vadd.f32 %v5583_v28, %v12070_v21  ;;  %6454 = vmatpush1.bf16.msra.mxu0 %v10654_v42  ;;  %v10666_v21 = vld [vmem:[#allocation5 + $0x14a0] ss:$16 sps:$4 sm:$0xff]   ;;  %v254_v35 = vld [vmem:[#allocation2 + $0x448] sm:$0xff]  ;;  %v232_v42 = vld [vmem:[#allocation2 + $0x398] sm:$0xff]  ;;  %v12267_v28 = vpack.c.bf16 %v205_v30, %v181_v61 }
 0x19e   :  { %6567 = vmatpush1.bf16.msra.mxu1 %v10657_v7  ;;  %v5585_v62 = vpop.f32.mrf.mxu0  ;;  %6455 = vmatprep.subr.bf16.mxu0 %v10662_v25  ;;  %v12269_v43 = vpack.c.bf16 %v207_v29, %v183_v9  ;;  %v10672_v30 = vld [vmem:[#allocation5 + $0x1480] ss:$16 sps:$4 sm:$0xff]   ;;  %v12277_v9 = vpack.c.bf16 %v254_v35, %v230_v59  ;;  %v10680_v35 = vld [vmem:[#allocation5 + $0x1464] ss:$16 sps:$4 sm:$0xff]  }
 0x19f   :  { %v5698_v6 = vpop.f32.mrf.mxu1  ;;  %6568 = vmatprep.subr.bf16.mxu1 %v10665_v37  ;;  %v12262_v41 = vadd.f32 %v5696_v48, %v5584_v5  ;;  %v5586_v19 = vadd.f32 %v5585_v62, %v12079_v27  ;;  %6269 = vmatprep.mubr.bf16.mxu0 %v12253_v20  ;;  %14275 = vst [vmem:[#allocation149_spill] sm:$0xff] %v12267_v28  ;;  %v256_v37 = vld [vmem:[#allocation2 + $0x458] sm:$0xff]  ;;  %v10669_v27 = vld [vmem:[#allocation5 + $0x16a0] ss:$16 sps:$4 sm:$0xff]   ;;  %v10677_v20 = vld [vmem:[#allocation5 + $0x1684] ss:$16 sps:$4 sm:$0xff]  }
 0x1a0   :  { %6382 = vmatprep.mubr.bf16.mxu1 %v12255_v1  ;;  %v5587_v7 = vpop.f32.mrf.mxu0  ;;  %14276 = vst [vmem:[#allocation150_spill] sm:$0xff] %v12269_v43  ;;  %v10674_v1 = vld [vmem:[#allocation5 + $0x1484] ss:$16 sps:$4 sm:$0xff]   ;;  %14277 = vst [vmem:[#allocation151_spill] sm:$0xff] %v12277_v9  ;;  %v12279_v29 = vpack.c.bf16 %v256_v37, %v232_v42  ;;  %v278_v37 = vld [vmem:[#allocation2 + $0x508] sm:$0xff] }
 0x1a1   :  { %v5700_v63 = vpop.f32.mrf.mxu1  ;;  %v12271_v25 = vadd.f32 %v5698_v6, %v5586_v19  ;;  %v5588_v48 = vadd.f32 %v5587_v7, %v12082_v38  ;;  %6456 = vmatpush1.bf16.msra.mxu0 %v10660_v60  ;;  %v10675_v60 = vld [vmem:[#allocation5 + $0x1680] ss:$16 sps:$4 sm:$0xff]  }
 0x1a2   :  { %6569 = vmatpush1.bf16.msra.mxu1 %v10663_v52  ;;  %v5589_v5 = vpop.f32.mrf.mxu0  ;;  %6457 = vmatprep.subr.bf16.mxu0 %v10668_v8  ;;  %14278 = vst [vmem:[#allocation152_spill] sm:$0xff] %v12279_v29  ;;  %v229_v52 = vld [vmem:[#allocation2 + $0x380] sm:$0xff]  ;;  %v255_v59 = vld [vmem:[#allocation2 + $0x450] sm:$0xff] }
 0x1a3   :  { %v5702_v62 = vpop.f32.mrf.mxu1  ;;  %6570 = vmatprep.subr.bf16.mxu1 %v10671_v57  ;;  %v12274_v44 = vadd.f32 %v5700_v63, %v5588_v48  ;;  %v5590_v61 = vadd.f32 %v5589_v5, %v12091_v10  ;;  %v253_v8 = vld [vmem:[#allocation2 + $0x440] sm:$0xff]  ;;  %v231_v10 = vld [vmem:[#allocation2 + $0x390] sm:$0xff] }
 0x1a4   :  { %v5593_v6 = vpop.f32.mrf.mxu0  ;;  %6270 = vmatmul.mubr.bf16.gmra.mxu0 %v12267_v28  ;;  %v10683_v63 = vld [vmem:[#allocation5 + $0x1664] ss:$16 sps:$4 sm:$0xff]  }
 0x1a5   :  { %v5706_v38 = vpop.f32.mrf.mxu1  ;;  %6383 = vmatmul.mubr.bf16.gmra.mxu1 %v12269_v43  ;;  %v12283_v57 = vadd.f32 %v5702_v62, %v5590_v61  ;;  %v5594_v19 = vadd.f32 %v5593_v6, %v12094_v56  ;;  %6458 = vmatpush1.bf16.msra.mxu0 %v10666_v21  ;;  %v10678_v56 = vld [vmem:[#allocation5 + $0x1460] ss:$16 sps:$4 sm:$0xff]   ;;  %v302_v21 = vld [vmem:[#allocation2 + $0x5c8] sm:$0xff]  ;;  %v12291_v6 = vpack.c.bf16 %v253_v8, %v229_v52 }
 0x1a6   :  { %6571 = vmatpush1.bf16.msra.mxu1 %v10669_v27  ;;  %v5595_v42 = vpop.f32.mrf.mxu0  ;;  %6459 = vmatprep.subr.bf16.mxu0 %v10674_v1  ;;  %v280_v27 = vld [vmem:[#allocation2 + $0x518] sm:$0xff]  ;;  %v12293_v43 = vpack.c.bf16 %v255_v59, %v231_v10  ;;  %v10684_v8 = vld [vmem:[#allocation5 + $0x1440] ss:$16 sps:$4 sm:$0xff]   ;;  %v12301_v10 = vpack.c.bf16 %v302_v21, %v278_v37  ;;  %v10692_v21 = vld [vmem:[#allocation5 + $0x1424] ss:$16 sps:$4 sm:$0xff]  }
 0x1a7   :  { %v5708_v7 = vpop.f32.mrf.mxu1  ;;  %6572 = vmatprep.subr.bf16.mxu1 %v10677_v20  ;;  %v12286_v48 = vadd.f32 %v5706_v38, %v5594_v19  ;;  %v5596_v5 = vadd.f32 %v5595_v42, %v12103_v51  ;;  %6279 = vmatprep.mubr.bf16.mxu0 %v12277_v9  ;;  %14279 = vst [vmem:[#allocation153_spill] sm:$0xff] %v12291_v6  ;;  %v304_v20 = vld [vmem:[#allocation2 + $0x5d8] sm:$0xff]  ;;  %v10681_v51 = vld [vmem:[#allocation5 + $0x1660] ss:$16 sps:$4 sm:$0xff]   ;;  %v10689_v9 = vld [vmem:[#allocation5 + $0x1644] ss:$16 sps:$4 sm:$0xff]  }
 0x1a8   :  { %6392 = vmatprep.mubr.bf16.mxu1 %v12279_v29  ;;  %v5597_v62 = vpop.f32.mrf.mxu0  ;;  %14280 = vst [vmem:[#allocation154_spill] sm:$0xff] %v12293_v43  ;;  %v10686_v29 = vld [vmem:[#allocation5 + $0x1444] ss:$16 sps:$4 sm:$0xff]   ;;  %14281 = vst [vmem:[#allocation155_spill] sm:$0xff] %v12301_v10  ;;  %v12303_v59 = vpack.c.bf16 %v304_v20, %v280_v27  ;;  %v326_v20 = vld [vmem:[#allocation2 + $0x688] sm:$0xff] }
 0x1a9   :  { %v5710_v61 = vpop.f32.mrf.mxu1  ;;  %v12295_v1 = vadd.f32 %v5708_v7, %v5596_v5  ;;  %v5598_v38 = vadd.f32 %v5597_v62, %v12106_v0  ;;  %6460 = vmatpush1.bf16.msra.mxu0 %v10672_v30  ;;  %v10687_v30 = vld [vmem:[#allocation5 + $0x1640] ss:$16 sps:$4 sm:$0xff]  }
 0x1aa   :  { %6573 = vmatpush1.bf16.msra.mxu1 %v10675_v60  ;;  %v5599_v19 = vpop.f32.mrf.mxu0  ;;  %6461 = vmatprep.subr.bf16.mxu0 %v10680_v35  ;;  %14282 = vst [vmem:[#allocation156_spill] sm:$0xff] %v12303_v59  ;;  %v277_v60 = vld [vmem:[#allocation2 + $0x500] sm:$0xff]  ;;  %v303_v37 = vld [vmem:[#allocation2 + $0x5d0] sm:$0xff] }
 0x1ab   :  { %v5712_v42 = vpop.f32.mrf.mxu1  ;;  %6574 = vmatprep.subr.bf16.mxu1 %v10683_v63  ;;  %v12298_v28 = vadd.f32 %v5710_v61, %v5598_v38  ;;  %v5600_v52 = vadd.f32 %v5599_v19, %v12115_v34  ;;  %v301_v35 = vld [vmem:[#allocation2 + $0x5c0] sm:$0xff]  ;;  %v279_v34 = vld [vmem:[#allocation2 + $0x510] sm:$0xff] }
 0x1ac   :  { %v5603_v7 = vpop.f32.mrf.mxu0  ;;  %6280 = vmatmul.mubr.bf16.gmra.mxu0 %v12291_v6  ;;  %v10695_v61 = vld [vmem:[#allocation5 + $0x1624] ss:$16 sps:$4 sm:$0xff]  }
 0x1ad   :  { %v5716_v0 = vpop.f32.mrf.mxu1  ;;  %6393 = vmatmul.mubr.bf16.gmra.mxu1 %v12293_v43  ;;  %v12307_v63 = vadd.f32 %v5712_v42, %v5600_v52  ;;  %v5604_v5 = vadd.f32 %v5603_v7, %v12118_v18  ;;  %6462 = vmatpush1.bf16.msra.mxu0 %v10678_v56  ;;  %v10690_v18 = vld [vmem:[#allocation5 + $0x1420] ss:$16 sps:$4 sm:$0xff]   ;;  %v350_v56 = vld [vmem:[#allocation2 + $0x748] sm:$0xff]  ;;  %v12315_v7 = vpack.c.bf16 %v301_v35, %v277_v60 }
 0x1ae   :  { %6575 = vmatpush1.bf16.msra.mxu1 %v10681_v51  ;;  %v5605_v27 = vpop.f32.mrf.mxu0  ;;  %6463 = vmatprep.subr.bf16.mxu0 %v10686_v29  ;;  %v328_v51 = vld [vmem:[#allocation2 + $0x698] sm:$0xff]  ;;  %v12317_v43 = vpack.c.bf16 %v303_v37, %v279_v34  ;;  %v10696_v35 = vld [vmem:[#allocation5 + $0x1400] ss:$16 sps:$4 sm:$0xff]   ;;  %v12325_v34 = vpack.c.bf16 %v350_v56, %v326_v20  ;;  %v10704_v56 = vld [vmem:[#allocation5 + $0x15e4] ss:$16 sps:$4 sm:$0xff]  }
 0x1af   :  { %v5718_v62 = vpop.f32.mrf.mxu1  ;;  %6576 = vmatprep.subr.bf16.mxu1 %v10689_v9  ;;  %v12310_v38 = vadd.f32 %v5716_v0, %v5604_v5  ;;  %v5606_v19 = vadd.f32 %v5605_v27, %v12127_v47  ;;  %6289 = vmatprep.mubr.bf16.mxu0 %v12301_v10  ;;  %14283 = vst [vmem:[#allocation157_spill] sm:$0xff] %v12315_v7  ;;  %v352_v9 = vld [vmem:[#allocation2 + $0x758] sm:$0xff]  ;;  %v10693_v47 = vld [vmem:[#allocation5 + $0x1620] ss:$16 sps:$4 sm:$0xff]   ;;  %v10701_v10 = vld [vmem:[#allocation5 + $0x1604] ss:$16 sps:$4 sm:$0xff]  }
 0x1b0   :  { %6402 = vmatprep.mubr.bf16.mxu1 %v12303_v59  ;;  %v5607_v42 = vpop.f32.mrf.mxu0  ;;  %14284 = vst [vmem:[#allocation158_spill] sm:$0xff] %v12317_v43  ;;  %v10698_v59 = vld [vmem:[#allocation5 + $0x1404] ss:$16 sps:$4 sm:$0xff]   ;;  %14285 = vst [vmem:[#allocation159_spill] sm:$0xff] %v12325_v34  ;;  %v12327_v37 = vpack.c.bf16 %v352_v9, %v328_v51  ;;  %v374_v9 = vld [vmem:[#allocation2 + $0x808] sm:$0xff] }
 0x1b1   :  { %v5720_v52 = vpop.f32.mrf.mxu1  ;;  %v12319_v29 = vadd.f32 %v5718_v62, %v5606_v19  ;;  %v5608_v0 = vadd.f32 %v5607_v42, %v12130_v32  ;;  %6464 = vmatpush1.bf16.msra.mxu0 %v10684_v8  ;;  %v10699_v8 = vld [vmem:[#allocation5 + $0x1600] ss:$16 sps:$4 sm:$0xff]  }
 0x1b2   :  { %6577 = vmatpush1.bf16.msra.mxu1 %v10687_v30  ;;  %v5609_v5 = vpop.f32.mrf.mxu0  ;;  %6465 = vmatprep.subr.bf16.mxu0 %v10692_v21  ;;  %14286 = vst [vmem:[#allocation160_spill] sm:$0xff] %v12327_v37  ;;  %v325_v30 = vld [vmem:[#allocation2 + $0x680] sm:$0xff]  ;;  %v351_v20 = vld [vmem:[#allocation2 + $0x750] sm:$0xff] }
 0x1b3   :  { %v5722_v27 = vpop.f32.mrf.mxu1  ;;  %6578 = vmatprep.subr.bf16.mxu1 %v10695_v61  ;;  %v12322_v6 = vadd.f32 %v5720_v52, %v5608_v0  ;;  %v5610_v60 = vadd.f32 %v5609_v5, %v12139_v22  ;;  %v349_v21 = vld [vmem:[#allocation2 + $0x740] sm:$0xff]  ;;  %v327_v22 = vld [vmem:[#allocation2 + $0x690] sm:$0xff] }
 0x1b4   :  { %v5613_v62 = vpop.f32.mrf.mxu0  ;;  %6290 = vmatmul.mubr.bf16.gmra.mxu0 %v12315_v7  ;;  %v10707_v52 = vld [vmem:[#allocation5 + $0x17e4] ss:$16 sps:$4 sm:$0xff]  }
 0x1b5   :  { %v5726_v32 = vpop.f32.mrf.mxu1  ;;  %6403 = vmatmul.mubr.bf16.gmra.mxu1 %v12317_v43  ;;  %v12331_v61 = vadd.f32 %v5722_v27, %v5610_v60  ;;  %v5614_v19 = vadd.f32 %v5613_v62, %v12142_v46  ;;  %6466 = vmatpush1.bf16.msra.mxu0 %v10690_v18  ;;  %v10702_v46 = vld [vmem:[#allocation5 + $0x15e0] ss:$16 sps:$4 sm:$0xff]   ;;  %v398_v18 = vld [vmem:[#allocation2 + $0x8c8] sm:$0xff]  ;;  %v12339_v62 = vpack.c.bf16 %v349_v21, %v325_v30 }
 0x1b6   :  { %6579 = vmatpush1.bf16.msra.mxu1 %v10693_v47  ;;  %v5615_v51 = vpop.f32.mrf.mxu0  ;;  %6467 = vmatprep.subr.bf16.mxu0 %v10698_v59  ;;  %v376_v47 = vld [vmem:[#allocation2 + $0x818] sm:$0xff]  ;;  %v12341_v43 = vpack.c.bf16 %v351_v20, %v327_v22  ;;  %v10708_v21 = vld [vmem:[#allocation5 + $0x15c0] ss:$16 sps:$4 sm:$0xff]   ;;  %v12349_v22 = vpack.c.bf16 %v398_v18, %v374_v9  ;;  %v10716_v18 = vld [vmem:[#allocation5 + $0x15a4] ss:$16 sps:$4 sm:$0xff]  }
 0x1b7   :  { %v5728_v42 = vpop.f32.mrf.mxu1  ;;  %6580 = vmatprep.subr.bf16.mxu1 %v10701_v10  ;;  %v12334_v0 = vadd.f32 %v5726_v32, %v5614_v19  ;;  %v5616_v5 = vadd.f32 %v5615_v51, %v12151_v55  ;;  %6299 = vmatprep.mubr.bf16.mxu0 %v12325_v34  ;;  %14287 = vst [vmem:[#allocation161_spill] sm:$0xff] %v12339_v62  ;;  %v400_v10 = vld [vmem:[#allocation2 + $0x8d8] sm:$0xff]  ;;  %v10705_v55 = vld [vmem:[#allocation5 + $0x17e0] ss:$16 sps:$4 sm:$0xff]   ;;  %v10713_v34 = vld [vmem:[#allocation5 + $0x17c4] ss:$16 sps:$4 sm:$0xff]  }
 0x1b8   :  { %6412 = vmatprep.mubr.bf16.mxu1 %v12327_v37  ;;  %v5617_v27 = vpop.f32.mrf.mxu0  ;;  %14288 = vst [vmem:[#allocation162_spill] sm:$0xff] %v12341_v43  ;;  %v10710_v37 = vld [vmem:[#allocation5 + $0x15c4] ss:$16 sps:$4 sm:$0xff]   ;;  %14289 = vst [vmem:[#allocation163_spill] sm:$0xff] %v12349_v22  ;;  %v12351_v20 = vpack.c.bf16 %v400_v10, %v376_v47  ;;  %v422_v10 = vld [vmem:[#allocation2 + $0x988] sm:$0xff] }
 0x1b9   :  { %v5730_v60 = vpop.f32.mrf.mxu1  ;;  %v12343_v59 = vadd.f32 %v5728_v42, %v5616_v5  ;;  %v5618_v32 = vadd.f32 %v5617_v27, %v12154_v4  ;;  %6468 = vmatpush1.bf16.msra.mxu0 %v10696_v35  ;;  %v10711_v35 = vld [vmem:[#allocation5 + $0x17c0] ss:$16 sps:$4 sm:$0xff]  }
 0x1ba   :  { %6581 = vmatpush1.bf16.msra.mxu1 %v10699_v8  ;;  %v5619_v19 = vpop.f32.mrf.mxu0  ;;  %6469 = vmatprep.subr.bf16.mxu0 %v10704_v56  ;;  %14290 = vst [vmem:[#allocation164_spill] sm:$0xff] %v12351_v20  ;;  %v373_v8 = vld [vmem:[#allocation2 + $0x800] sm:$0xff]  ;;  %v399_v9 = vld [vmem:[#allocation2 + $0x8d0] sm:$0xff] }
 0x1bb   :  { %v5732_v51 = vpop.f32.mrf.mxu1  ;;  %6582 = vmatprep.subr.bf16.mxu1 %v10707_v52  ;;  %v12346_v7 = vadd.f32 %v5730_v60, %v5618_v32  ;;  %v5620_v30 = vadd.f32 %v5619_v19, %v12163_v31  ;;  %v397_v56 = vld [vmem:[#allocation2 + $0x8c0] sm:$0xff]  ;;  %v375_v31 = vld [vmem:[#allocation2 + $0x810] sm:$0xff] }
 0x1bc   :  { %v5623_v42 = vpop.f32.mrf.mxu0  ;;  %6300 = vmatmul.mubr.bf16.gmra.mxu0 %v12339_v62  ;;  %v10719_v60 = vld [vmem:[#allocation5 + $0x17a4] ss:$16 sps:$4 sm:$0xff]  }
 0x1bd   :  { %v5736_v4 = vpop.f32.mrf.mxu1  ;;  %6413 = vmatmul.mubr.bf16.gmra.mxu1 %v12341_v43  ;;  %v12355_v52 = vadd.f32 %v5732_v51, %v5620_v30  ;;  %v5624_v5 = vadd.f32 %v5623_v42, %v12166_v12  ;;  %6470 = vmatpush2.bf16.msra.mxu0 %v10702_v46  ;;  %v10714_v12 = vld [vmem:[#allocation5 + $0x15a0] ss:$16 sps:$4 sm:$0xff]   ;;  %v446_v46 = vld [vmem:[#allocation2 + $0xa48] sm:$0xff]  ;;  %v12363_v42 = vpack.c.bf16 %v397_v56, %v373_v8 }
 0x1be   :  { %6583 = vmatpush2.bf16.msra.mxu1 %v10705_v55  ;;  %v5625_v47 = vpop.f32.mrf.mxu0  ;;  %6471 = vmatprep.subr.bf16.mxu0 %v10710_v37  ;;  %v424_v55 = vld [vmem:[#allocation2 + $0x998] sm:$0xff]  ;;  %v12365_v43 = vpack.c.bf16 %v399_v9, %v375_v31  ;;  %v10720_v56 = vld [vmem:[#allocation5 + $0x1580] ss:$16 sps:$4 sm:$0xff]   ;;  %v12373_v31 = vpack.c.bf16 %v446_v46, %v422_v10  ;;  %v10728_v46 = vld [vmem:[#allocation5 + $0x1564] ss:$16 sps:$4 sm:$0xff]  }
 0x1bf   :  { %v5738_v27 = vpop.f32.mrf.mxu1  ;;  %6584 = vmatprep.subr.bf16.mxu1 %v10713_v34  ;;  %v12358_v32 = vadd.f32 %v5736_v4, %v5624_v5  ;;  %v5626_v19 = vadd.f32 %v5625_v47, %v12175_v13  ;;  %6309 = vmatprep.mubr.bf16.mxu0 %v12349_v22  ;;  %14291 = vst [vmem:[#allocation165_spill] sm:$0xff] %v12363_v42  ;;  %v448_v34 = vld [vmem:[#allocation2 + $0xa58] sm:$0xff]  ;;  %v10717_v13 = vld [vmem:[#allocation5 + $0x17a0] ss:$16 sps:$4 sm:$0xff]   ;;  %v10725_v22 = vld [vmem:[#allocation5 + $0x1784] ss:$16 sps:$4 sm:$0xff]  }
 0x1c0   :  { %6422 = vmatprep.mubr.bf16.mxu1 %v12351_v20  ;;  %v5627_v51 = vpop.f32.mrf.mxu0  ;;  %14292 = vst [vmem:[#allocation166_spill] sm:$0xff] %v12365_v43  ;;  %v10722_v20 = vld [vmem:[#allocation5 + $0x1584] ss:$16 sps:$4 sm:$0xff]   ;;  %14293 = vst [vmem:[#allocation167_spill] sm:$0xff] %v12373_v31  ;;  %v12375_v9 = vpack.c.bf16 %v448_v34, %v424_v55  ;;  %v470_v34 = vld [vmem:[#allocation2 + $0xb08] sm:$0xff] }
 0x1c1   :  { %v5740_v30 = vpop.f32.mrf.mxu1  ;;  %v12367_v37 = vadd.f32 %v5738_v27, %v5626_v19  ;;  %v5628_v4 = vadd.f32 %v5627_v51, %v12178_v40  ;;  %6472 = vmatpush2.bf16.msra.mxu0 %v10708_v21  ;;  %v10723_v21 = vld [vmem:[#allocation5 + $0x1780] ss:$16 sps:$4 sm:$0xff]  }
 0x1c2   :  { %6585 = vmatpush2.bf16.msra.mxu1 %v10711_v35  ;;  %v5629_v5 = vpop.f32.mrf.mxu0  ;;  %6473 = vmatprep.subr.bf16.mxu0 %v10716_v18  ;;  %14294 = vst [vmem:[#allocation168_spill] sm:$0xff] %v12375_v9  ;;  %v421_v35 = vld [vmem:[#allocation2 + $0x980] sm:$0xff]  ;;  %v447_v10 = vld [vmem:[#allocation2 + $0xa50] sm:$0xff] }
 0x1c3   :  { %v5742_v47 = vpop.f32.mrf.mxu1  ;;  %6586 = vmatprep.subr.bf16.mxu1 %v10719_v60  ;;  %v12370_v62 = vadd.f32 %v5740_v30, %v5628_v4  ;;  %v5630_v8 = vadd.f32 %v5629_v5, %v12187_v39  ;;  %v445_v18 = vld [vmem:[#allocation2 + $0xa40] sm:$0xff]  ;;  %v423_v39 = vld [vmem:[#allocation2 + $0x990] sm:$0xff] }
 0x1c4   :  { %v5633_v27 = vpop.f32.mrf.mxu0  ;;  %6310 = vmatmul.mubr.bf16.gmra.mxu0 %v12363_v42  ;;  %v10731_v30 = vld [vmem:[#allocation5 + $0x1764] ss:$16 sps:$4 sm:$0xff]  }
 0x1c5   :  { %v5746_v40 = vpop.f32.mrf.mxu1  ;;  %6423 = vmatmul.mubr.bf16.gmra.mxu1 %v12365_v43  ;;  %v12379_v60 = vadd.f32 %v5742_v47, %v5630_v8  ;;  %v5634_v19 = vadd.f32 %v5633_v27, %v12190_v50  ;;  %6474 = vmatpush2.bf16.msra.mxu0 %v10714_v12  ;;  %v10726_v50 = vld [vmem:[#allocation5 + $0x1560] ss:$16 sps:$4 sm:$0xff]   ;;  %v494_v12 = vld [vmem:[#allocation2 + $0xbc8] sm:$0xff]  ;;  %v12387_v27 = vpack.c.bf16 %v445_v18, %v421_v35 }
 0x1c6   :  { %6587 = vmatpush2.bf16.msra.mxu1 %v10717_v13  ;;  %v5635_v55 = vpop.f32.mrf.mxu0  ;;  %6475 = vmatprep.subr.bf16.mxu0 %v10722_v20  ;;  %v472_v13 = vld [vmem:[#allocation2 + $0xb18] sm:$0xff]  ;;  %v12389_v43 = vpack.c.bf16 %v447_v10, %v423_v39  ;;  %v10732_v18 = vld [vmem:[#allocation5 + $0x1540] ss:$16 sps:$4 sm:$0xff]   ;;  %v12397_v39 = vpack.c.bf16 %v494_v12, %v470_v34  ;;  %v10740_v12 = vld [vmem:[#allocation5 + $0x1524] ss:$16 sps:$4 sm:$0xff]  }
 0x1c7   :  { %v5748_v51 = vpop.f32.mrf.mxu1  ;;  %6588 = vmatprep.subr.bf16.mxu1 %v10725_v22  ;;  %v12382_v4 = vadd.f32 %v5746_v40, %v5634_v19  ;;  %v5636_v5 = vadd.f32 %v5635_v55, %v12199_v45  ;;  %6319 = vmatprep.mubr.bf16.mxu0 %v12373_v31  ;;  %14295 = vst [vmem:[#allocation169_spill] sm:$0xff] %v12387_v27  ;;  %v496_v22 = vld [vmem:[#allocation2 + $0xbd8] sm:$0xff]  ;;  %v10729_v45 = vld [vmem:[#allocation5 + $0x1760] ss:$16 sps:$4 sm:$0xff]   ;;  %v10737_v31 = vld [vmem:[#allocation5 + $0x1744] ss:$16 sps:$4 sm:$0xff]  }
 0x1c8   :  { %6432 = vmatprep.mubr.bf16.mxu1 %v12375_v9  ;;  %v5637_v47 = vpop.f32.mrf.mxu0  ;;  %14296 = vst [vmem:[#allocation170_spill] sm:$0xff] %v12389_v43  ;;  %v10734_v9 = vld [vmem:[#allocation5 + $0x1544] ss:$16 sps:$4 sm:$0xff]   ;;  %14297 = vst [vmem:[#allocation171_spill] sm:$0xff] %v12397_v39  ;;  %v12399_v10 = vpack.c.bf16 %v496_v22, %v472_v13  ;;  %v138_v22 = vld [vmem:[#allocation2 + $0xa8] sm:$0xff] }
 0x1c9   :  { %v5750_v8 = vpop.f32.mrf.mxu1  ;;  %v12391_v20 = vadd.f32 %v5748_v51, %v5636_v5  ;;  %v5638_v40 = vadd.f32 %v5637_v47, %v12202_v14  ;;  %6476 = vmatpush2.bf16.msra.mxu0 %v10720_v56  ;;  %v10735_v56 = vld [vmem:[#allocation5 + $0x1740] ss:$16 sps:$4 sm:$0xff]  }
 0x1ca   :  { %6589 = vmatpush2.bf16.msra.mxu1 %v10723_v21  ;;  %v5639_v19 = vpop.f32.mrf.mxu0  ;;  %6477 = vmatprep.subr.bf16.mxu0 %v10728_v46  ;;  %14298 = vst [vmem:[#allocation172_spill] sm:$0xff] %v12399_v10  ;;  %v469_v21 = vld [vmem:[#allocation2 + $0xb00] sm:$0xff]  ;;  %v495_v34 = vld [vmem:[#allocation2 + $0xbd0] sm:$0xff] }
 0x1cb   :  { %v5752_v55 = vpop.f32.mrf.mxu1  ;;  %6590 = vmatprep.subr.bf16.mxu1 %v10731_v30  ;;  %v12394_v42 = vadd.f32 %v5750_v8, %v5638_v40  ;;  %v5640_v35 = vadd.f32 %v5639_v19, %v12211_v3  ;;  %v493_v46 = vld [vmem:[#allocation2 + $0xbc0] sm:$0xff]  ;;  %v471_v3 = vld [vmem:[#allocation2 + $0xb10] sm:$0xff] }
 0x1cc   :  { %v5643_v51 = vpop.f32.mrf.mxu0  ;;  %6320 = vmatmul.mubr.bf16.gmra.mxu0 %v12387_v27  ;;  %v10743_v8 = vld [vmem:[#allocation5 + $0x1724] ss:$16 sps:$4 sm:$0xff]  }
 0x1cd   :  { %v5756_v14 = vpop.f32.mrf.mxu1  ;;  %6433 = vmatmul.mubr.bf16.gmra.mxu1 %v12389_v43  ;;  %v12403_v30 = vadd.f32 %v5752_v55, %v5640_v35  ;;  %v5644_v5 = vadd.f32 %v5643_v51, %v12214_v26  ;;  %6478 = vmatpush2.bf16.msra.mxu0 %v10726_v50  ;;  %v10738_v26 = vld [vmem:[#allocation5 + $0x1520] ss:$16 sps:$4 sm:$0xff]   ;;  %v162_v50 = vld [vmem:[#allocation2 + $0x168] sm:$0xff]  ;;  %v12411_v51 = vpack.c.bf16 %v493_v46, %v469_v21 }
 0x1ce   :  { %6591 = vmatpush2.bf16.msra.mxu1 %v10729_v45  ;;  %v5645_v13 = vpop.f32.mrf.mxu0  ;;  %6479 = vmatprep.subr.bf16.mxu0 %v10734_v9  ;;  %v140_v45 = vld [vmem:[#allocation2 + $0xb8] sm:$0xff]  ;;  %v12413_v43 = vpack.c.bf16 %v495_v34, %v471_v3  ;;  %v10744_v46 = vld [vmem:[#allocation5 + $0x1500] ss:$16 sps:$4 sm:$0xff]   ;;  %v12421_v3 = vpack.c.bf16 %v162_v50, %v138_v22 }
 0x1cf   :  { %v5758_v47 = vpop.f32.mrf.mxu1  ;;  %6592 = vmatprep.subr.bf16.mxu1 %v10737_v31  ;;  %v12406_v40 = vadd.f32 %v5756_v14, %v5644_v5  ;;  %v5646_v19 = vadd.f32 %v5645_v13, %v12223_v11  ;;  %6329 = vmatprep.mubr.bf16.mxu0 %v12397_v39  ;;  %14299 = vst [vmem:[#allocation173_spill] sm:$0xff] %v12411_v51  ;;  %v164_v31 = vld [vmem:[#allocation2 + $0x178] sm:$0xff]  ;;  %v10741_v11 = vld [vmem:[#allocation5 + $0x1720] ss:$16 sps:$4 sm:$0xff]   ;;  %v10749_v39 = vld [vmem:[#allocation5 + $0x1704] ss:$16 sps:$4 sm:$0xff]  }
 0x1d0   :  { %6442 = vmatprep.mubr.bf16.mxu1 %v12399_v10  ;;  %v5647_v55 = vpop.f32.mrf.mxu0  ;;  %14300 = vst [vmem:[#allocation174_spill] sm:$0xff] %v12413_v43  ;;  %v10746_v10 = vld [vmem:[#allocation5 + $0x1504] ss:$16 sps:$4 sm:$0xff]   ;;  %14301 = vst [vmem:[#allocation175_spill] sm:$0xff] %v12421_v3  ;;  %v12423_v34 = vpack.c.bf16 %v164_v31, %v140_v45  ;;  %v10752_v50 = vld [vmem:[#allocation5 + $0xec] ss:$16 sps:$4 sm:$0xff]  }
 0x1d1   :  { %v5760_v35 = vpop.f32.mrf.mxu1  ;;  %v12415_v9 = vadd.f32 %v5758_v47, %v5646_v19  ;;  %v5648_v14 = vadd.f32 %v5647_v55, %v12226_v58  ;;  %6480 = vmatpush2.bf16.msra.mxu0 %v10732_v18  ;;  %v10747_v18 = vld [vmem:[#allocation5 + $0x1700] ss:$16 sps:$4 sm:$0xff]   ;;  %v186_v31 = vld [vmem:[#allocation2 + $0x228] sm:$0xff] }
 0x1d2   :  { %6593 = vmatpush2.bf16.msra.mxu1 %v10735_v56  ;;  %v5649_v5 = vpop.f32.mrf.mxu0  ;;  %6481 = vmatprep.subr.bf16.mxu0 %v10740_v12  ;;  %14302 = vst [vmem:[#allocation176_spill] sm:$0xff] %v12423_v34  ;;  %v137_v56 = vld [vmem:[#allocation2 + $0xa0] sm:$0xff]  ;;  %v163_v22 = vld [vmem:[#allocation2 + $0x170] sm:$0xff] }
 0x1d3   :  { %v5762_v13 = vpop.f32.mrf.mxu1  ;;  %6594 = vmatprep.subr.bf16.mxu1 %v10743_v8  ;;  %v12418_v27 = vadd.f32 %v5760_v35, %v5648_v14  ;;  %v5650_v21 = vadd.f32 %v5649_v5, %v12235_v33  ;;  %v161_v12 = vld [vmem:[#allocation2 + $0x160] sm:$0xff]  ;;  %v139_v33 = vld [vmem:[#allocation2 + $0xb0] sm:$0xff]  ;;  %v10755_v35 = vld [vmem:[#allocation5 + $0x2ec] ss:$16 sps:$4 sm:$0xff]  }
 0x1d4   :  { %v5653_v47 = vpop.f32.mrf.mxu0  ;;  %6330 = vmatmul.mubr.bf16.gmra.mxu0 %v12411_v51 }
 0x1d5   :  { %v5766_v58 = vpop.f32.mrf.mxu1  ;;  %6443 = vmatmul.mubr.bf16.gmra.mxu1 %v12413_v43  ;;  %v12427_v8 = vadd.f32 %v5762_v13, %v5650_v21  ;;  %v5654_v19 = vadd.f32 %v5653_v47, %v12238_v2  ;;  %6482 = vmatpush2.bf16.msra.mxu0 %v10738_v26  ;;  %v10750_v2 = vld [vmem:[#allocation5 + $0xe8] ss:$16 sps:$4 sm:$0xff]   ;;  %v12435_v47 = vpack.c.bf16 %v161_v12, %v137_v56 }
 0x1d6   :  { %6595 = vmatpush2.bf16.msra.mxu1 %v10741_v11  ;;  %v5655_v45 = vpop.f32.mrf.mxu0  ;;  %6483 = vmatprep.subr.bf16.mxu0 %v10746_v10  ;;  %v210_v26 = vld [vmem:[#allocation2 + $0x2e8] sm:$0xff]  ;;  %v188_v11 = vld [vmem:[#allocation2 + $0x238] sm:$0xff]  ;;  %v12437_v43 = vpack.c.bf16 %v163_v22, %v139_v33 }
 0x1d7   :  { %v5768_v55 = vpop.f32.mrf.mxu1  ;;  %6596 = vmatprep.subr.bf16.mxu1 %v10749_v39  ;;  %v12430_v14 = vadd.f32 %v5766_v58, %v5654_v19  ;;  %v5656_v5 = vadd.f32 %v5655_v45, %v12247_v49  ;;  %6485 = vmatprep.mubr.bf16.mxu0 %v12421_v3  ;;  %14303 = vst [vmem:[#allocation177_spill] sm:$0xff] %v12435_v47  ;;  %v212_v39 = vld [vmem:[#allocation2 + $0x2f8] sm:$0xff] }
 0x1d8   :  { %6598 = vmatprep.mubr.bf16.mxu1 %v12423_v34  ;;  %v5657_v13 = vpop.f32.mrf.mxu0  ;;  %14304 = vst [vmem:[#allocation178_spill] sm:$0xff] %v12437_v43  ;;  %v10753_v49 = vld [vmem:[#allocation5 + $0x2e8] ss:$16 sps:$4 sm:$0xff]   ;;  %v10758_v34 = vld [vmem:[#allocation5 + $0xcc] ss:$16 sps:$4 sm:$0xff]   ;;  %v12445_v33 = vpack.c.bf16 %v210_v26, %v186_v31  ;;  %v12447_v22 = vpack.c.bf16 %v212_v39, %v188_v11  ;;  %v211_v31 = vld [vmem:[#allocation2 + $0x2f0] sm:$0xff] }
 0x1d9   :  { %v5770_v21 = vpop.f32.mrf.mxu1  ;;  %v12439_v10 = vadd.f32 %v5768_v55, %v5656_v5  ;;  %v5658_v58 = vadd.f32 %v5657_v13, %v12250_v36  ;;  %6484 = vmatpush2.bf16.msra.mxu0 %v10744_v46  ;;  %v10761_v3 = vld [vmem:[#allocation5 + $0x2cc] ss:$16 sps:$4 sm:$0xff]   ;;  %v10756_v12 = vld [vmem:[#allocation5 + $0xc8] ss:$16 sps:$4 sm:$0xff]  }
 0x1da   :  { %6597 = vmatpush2.bf16.msra.mxu1 %v10747_v18  ;;  %v5659_v19 = vpop.f32.mrf.mxu0  ;;  %6679 = vmatprep.subr.bf16.mxu0 %v10752_v50  ;;  %14305 = vst [vmem:[#allocation179_spill] sm:$0xff] %v12445_v33  ;;  %14306 = vst [vmem:[#allocation180_spill] sm:$0xff] %v12447_v22  ;;  %v10759_v46 = vld [vmem:[#allocation5 + $0x2c8] ss:$16 sps:$4 sm:$0xff]   ;;  %v185_v18 = vld [vmem:[#allocation2 + $0x220] sm:$0xff] }
 0x1db   :  { %v5772_v45 = vpop.f32.mrf.mxu1  ;;  %6792 = vmatprep.subr.bf16.mxu1 %v10755_v35  ;;  %v12442_v51 = vadd.f32 %v5770_v21, %v5658_v58  ;;  %v5660_v56 = vadd.f32 %v5659_v19, %v12259_v15  ;;  %v209_v50 = vld [vmem:[#allocation2 + $0x2e0] sm:$0xff]  ;;  %v187_v15 = vld [vmem:[#allocation2 + $0x230] sm:$0xff]  ;;  %v10764_v26 = vld [vmem:[#allocation5 + $0xac] ss:$16 sps:$4 sm:$0xff]  }
 0x1dc   :  { %v5809_v55 = vpop.f32.mrf.mxu0  ;;  %6486 = vmatmul.mubr.bf16.vlgmr.msra.gmra.mxu0 %v12435_v47  ;;  %v10767_v21 = vld [vmem:[#allocation5 + $0x2ac] ss:$16 sps:$4 sm:$0xff]  }
 0x1dd   :  { %v5922_v36 = vpop.f32.mrf.mxu1  ;;  %6599 = vmatmul.mubr.bf16.vlgmr.msra.gmra.mxu1 %v12437_v43  ;;  %v12451_v35 = vadd.f32 %v5772_v45, %v5660_v56  ;;  %v5810_v5 = vadd.f32 %v5809_v55, %v12262_v41  ;;  %6680 = vmatpush1.bf16.msra.mxu0 %v10750_v2  ;;  %v234_v39 = vld [vmem:[#allocation2 + $0x3a8] sm:$0xff]  ;;  %v12459_v55 = vpack.c.bf16 %v209_v50, %v185_v18 }
 0x1de   :  { %6793 = vmatpush1.bf16.msra.mxu1 %v10753_v49  ;;  %v5811_v11 = vpop.f32.mrf.mxu0  ;;  %6681 = vmatprep.subr.bf16.mxu0 %v10758_v34  ;;  %v10762_v41 = vld [vmem:[#allocation5 + $0xa8] ss:$16 sps:$4 sm:$0xff]   ;;  %v12461_v43 = vpack.c.bf16 %v211_v31, %v187_v15 }
 0x1df   :  { %v5924_v13 = vpop.f32.mrf.mxu1  ;;  %6794 = vmatprep.subr.bf16.mxu1 %v10761_v3  ;;  %v12454_v58 = vadd.f32 %v5922_v36, %v5810_v5  ;;  %v5812_v19 = vadd.f32 %v5811_v11, %v12271_v25  ;;  %6495 = vmatprep.mubr.bf16.mxu0 %v12445_v33  ;;  %v258_v2 = vld [vmem:[#allocation2 + $0x468] sm:$0xff]  ;;  %v236_v49 = vld [vmem:[#allocation2 + $0x3b8] sm:$0xff]  ;;  %14307 = vst [vmem:[#allocation181_spill] sm:$0xff] %v12459_v55 }
 0x1e0   :  { %6608 = vmatprep.mubr.bf16.mxu1 %v12447_v22  ;;  %v5813_v45 = vpop.f32.mrf.mxu0  ;;  %14308 = vst [vmem:[#allocation182_spill] sm:$0xff] %v12461_v43  ;;  %v260_v3 = vld [vmem:[#allocation2 + $0x478] sm:$0xff]  ;;  %v12469_v15 = vpack.c.bf16 %v258_v2, %v234_v39  ;;  %v259_v39 = vld [vmem:[#allocation2 + $0x470] sm:$0xff] }
 0x1e1   :  { %v5926_v56 = vpop.f32.mrf.mxu1  ;;  %v12463_v34 = vadd.f32 %v5924_v13, %v5812_v19  ;;  %v5814_v36 = vadd.f32 %v5813_v45, %v12274_v44  ;;  %6682 = vmatpush1.bf16.msra.mxu0 %v10756_v12  ;;  %v10765_v25 = vld [vmem:[#allocation5 + $0x2a8] ss:$16 sps:$4 sm:$0xff]   ;;  %v10770_v22 = vld [vmem:[#allocation5 + $0x8c] ss:$16 sps:$4 sm:$0xff]   ;;  %v12471_v31 = vpack.c.bf16 %v260_v3, %v236_v49 }
 0x1e2   :  { %6795 = vmatpush1.bf16.msra.mxu1 %v10759_v46  ;;  %v5815_v5 = vpop.f32.mrf.mxu0  ;;  %6683 = vmatprep.subr.bf16.mxu0 %v10764_v26  ;;  %v10773_v33 = vld [vmem:[#allocation5 + $0x28c] ss:$16 sps:$4 sm:$0xff]   ;;  %v10768_v50 = vld [vmem:[#allocation5 + $0x88] ss:$16 sps:$4 sm:$0xff]   ;;  %14309 = vst [vmem:[#allocation183_spill] sm:$0xff] %v12469_v15  ;;  %v233_v46 = vld [vmem:[#allocation2 + $0x3a0] sm:$0xff] }
 0x1e3   :  { %v5928_v11 = vpop.f32.mrf.mxu1  ;;  %6796 = vmatprep.subr.bf16.mxu1 %v10767_v21  ;;  %v12466_v47 = vadd.f32 %v5926_v56, %v5814_v36  ;;  %v5816_v18 = vadd.f32 %v5815_v5, %v12283_v57  ;;  %14310 = vst [vmem:[#allocation184_spill] sm:$0xff] %v12471_v31  ;;  %v10771_v12 = vld [vmem:[#allocation5 + $0x288] ss:$16 sps:$4 sm:$0xff]   ;;  %v257_v26 = vld [vmem:[#allocation2 + $0x460] sm:$0xff]  ;;  %v235_v57 = vld [vmem:[#allocation2 + $0x3b0] sm:$0xff] }
 0x1e4   :  { %v5819_v13 = vpop.f32.mrf.mxu0  ;;  %6496 = vmatmul.mubr.bf16.gmra.mxu0 %v12459_v55  ;;  %v10776_v2 = vld [vmem:[#allocation5 + $0x6c] ss:$16 sps:$4 sm:$0xff]  }
 0x1e5   :  { %v5932_v44 = vpop.f32.mrf.mxu1  ;;  %6609 = vmatmul.mubr.bf16.gmra.mxu1 %v12461_v43  ;;  %v12475_v21 = vadd.f32 %v5928_v11, %v5816_v18  ;;  %v5820_v19 = vadd.f32 %v5819_v13, %v12286_v48  ;;  %6684 = vmatpush1.bf16.msra.mxu0 %v10762_v41  ;;  %v10779_v56 = vld [vmem:[#allocation5 + $0x26c] ss:$16 sps:$4 sm:$0xff]   ;;  %v10774_v48 = vld [vmem:[#allocation5 + $0x68] ss:$16 sps:$4 sm:$0xff]   ;;  %v12483_v13 = vpack.c.bf16 %v257_v26, %v233_v46 }
 0x1e6   :  { %6797 = vmatpush1.bf16.msra.mxu1 %v10765_v25  ;;  %v5821_v49 = vpop.f32.mrf.mxu0  ;;  %6685 = vmatprep.subr.bf16.mxu0 %v10770_v22  ;;  %v282_v3 = vld [vmem:[#allocation2 + $0x528] sm:$0xff]  ;;  %v284_v25 = vld [vmem:[#allocation2 + $0x538] sm:$0xff]  ;;  %v12485_v43 = vpack.c.bf16 %v259_v39, %v235_v57 }
 0x1e7   :  { %v5934_v45 = vpop.f32.mrf.mxu1  ;;  %6798 = vmatprep.subr.bf16.mxu1 %v10773_v33  ;;  %v12478_v36 = vadd.f32 %v5932_v44, %v5820_v19  ;;  %v5822_v5 = vadd.f32 %v5821_v49, %v12295_v1  ;;  %6505 = vmatprep.mubr.bf16.mxu0 %v12469_v15  ;;  %v306_v41 = vld [vmem:[#allocation2 + $0x5e8] sm:$0xff]  ;;  %14311 = vst [vmem:[#allocation185_spill] sm:$0xff] %v12483_v13  ;;  %v308_v33 = vld [vmem:[#allocation2 + $0x5f8] sm:$0xff] }
 0x1e8   :  { %6618 = vmatprep.mubr.bf16.mxu1 %v12471_v31  ;;  %v5823_v11 = vpop.f32.mrf.mxu0  ;;  %14312 = vst [vmem:[#allocation186_spill] sm:$0xff] %v12485_v43  ;;  %v10777_v1 = vld [vmem:[#allocation5 + $0x268] ss:$16 sps:$4 sm:$0xff]   ;;  %v10782_v31 = vld [vmem:[#allocation5 + $0x4c] ss:$16 sps:$4 sm:$0xff]   ;;  %v12493_v57 = vpack.c.bf16 %v306_v41, %v282_v3  ;;  %v12495_v39 = vpack.c.bf16 %v308_v33, %v284_v25  ;;  %v307_v3 = vld [vmem:[#allocation2 + $0x5f0] sm:$0xff] }
 0x1e9   :  { %v5936_v18 = vpop.f32.mrf.mxu1  ;;  %v12487_v22 = vadd.f32 %v5934_v45, %v5822_v5  ;;  %v5824_v44 = vadd.f32 %v5823_v11, %v12298_v28  ;;  %6686 = vmatpush1.bf16.msra.mxu0 %v10768_v50  ;;  %v10785_v15 = vld [vmem:[#allocation5 + $0x24c] ss:$16 sps:$4 sm:$0xff]   ;;  %v10780_v26 = vld [vmem:[#allocation5 + $0x48] ss:$16 sps:$4 sm:$0xff]  }
 0x1ea   :  { %6799 = vmatpush1.bf16.msra.mxu1 %v10771_v12  ;;  %v5825_v19 = vpop.f32.mrf.mxu0  ;;  %6687 = vmatprep.subr.bf16.mxu0 %v10776_v2  ;;  %14313 = vst [vmem:[#allocation187_spill] sm:$0xff] %v12493_v57  ;;  %14314 = vst [vmem:[#allocation188_spill] sm:$0xff] %v12495_v39  ;;  %v10783_v50 = vld [vmem:[#allocation5 + $0x248] ss:$16 sps:$4 sm:$0xff]   ;;  %v281_v12 = vld [vmem:[#allocation2 + $0x520] sm:$0xff] }
 0x1eb   :  { %v5938_v49 = vpop.f32.mrf.mxu1  ;;  %6800 = vmatprep.subr.bf16.mxu1 %v10779_v56  ;;  %v12490_v55 = vadd.f32 %v5936_v18, %v5824_v44  ;;  %v5826_v46 = vadd.f32 %v5825_v19, %v12307_v63  ;;  %v305_v2 = vld [vmem:[#allocation2 + $0x5e0] sm:$0xff]  ;;  %v283_v63 = vld [vmem:[#allocation2 + $0x530] sm:$0xff]  ;;  %v10788_v41 = vld [vmem:[#allocation5 + $0x2c] ss:$16 sps:$4 sm:$0xff]  }
 0x1ec   :  { %v5829_v45 = vpop.f32.mrf.mxu0  ;;  %6506 = vmatmul.mubr.bf16.gmra.mxu0 %v12483_v13  ;;  %v10791_v18 = vld [vmem:[#allocation5 + $0x22c] ss:$16 sps:$4 sm:$0xff]  }
 0x1ed   :  { %v5942_v28 = vpop.f32.mrf.mxu1  ;;  %6619 = vmatmul.mubr.bf16.gmra.mxu1 %v12485_v43  ;;  %v12499_v56 = vadd.f32 %v5938_v49, %v5826_v46  ;;  %v5830_v5 = vadd.f32 %v5829_v45, %v12310_v38  ;;  %6688 = vmatpush1.bf16.msra.mxu0 %v10774_v48  ;;  %v330_v33 = vld [vmem:[#allocation2 + $0x6a8] sm:$0xff]  ;;  %v12507_v45 = vpack.c.bf16 %v305_v2, %v281_v12 }
 0x1ee   :  { %6801 = vmatpush1.bf16.msra.mxu1 %v10777_v1  ;;  %v5831_v25 = vpop.f32.mrf.mxu0  ;;  %6689 = vmatprep.subr.bf16.mxu0 %v10782_v31  ;;  %v10786_v38 = vld [vmem:[#allocation5 + $0x28] ss:$16 sps:$4 sm:$0xff]   ;;  %v12509_v43 = vpack.c.bf16 %v307_v3, %v283_v63 }
 0x1ef   :  { %v5944_v11 = vpop.f32.mrf.mxu1  ;;  %6802 = vmatprep.subr.bf16.mxu1 %v10785_v15  ;;  %v12502_v44 = vadd.f32 %v5942_v28, %v5830_v5  ;;  %v5832_v19 = vadd.f32 %v5831_v25, %v12319_v29  ;;  %6515 = vmatprep.mubr.bf16.mxu0 %v12493_v57  ;;  %v354_v48 = vld [vmem:[#allocation2 + $0x768] sm:$0xff]  ;;  %v332_v1 = vld [vmem:[#allocation2 + $0x6b8] sm:$0xff]  ;;  %14315 = vst [vmem:[#allocation189_spill] sm:$0xff] %v12507_v45 }
 0x1f0   :  { %6628 = vmatprep.mubr.bf16.mxu1 %v12495_v39  ;;  %v5833_v49 = vpop.f32.mrf.mxu0  ;;  %14316 = vst [vmem:[#allocation190_spill] sm:$0xff] %v12509_v43  ;;  %v356_v15 = vld [vmem:[#allocation2 + $0x778] sm:$0xff]  ;;  %v12517_v63 = vpack.c.bf16 %v354_v48, %v330_v33  ;;  %v355_v33 = vld [vmem:[#allocation2 + $0x770] sm:$0xff] }
 0x1f1   :  { %v5946_v46 = vpop.f32.mrf.mxu1  ;;  %v12511_v31 = vadd.f32 %v5944_v11, %v5832_v19  ;;  %v5834_v28 = vadd.f32 %v5833_v49, %v12322_v6  ;;  %6690 = vmatpush1.bf16.msra.mxu0 %v10780_v26  ;;  %v10789_v29 = vld [vmem:[#allocation5 + $0x228] ss:$16 sps:$4 sm:$0xff]   ;;  %v10794_v39 = vld [vmem:[#allocation5 + $0xc] ss:$16 sps:$4 sm:$0xff]   ;;  %v12519_v3 = vpack.c.bf16 %v356_v15, %v332_v1 }
 0x1f2   :  { %6803 = vmatpush1.bf16.msra.mxu1 %v10783_v50  ;;  %v5835_v5 = vpop.f32.mrf.mxu0  ;;  %6691 = vmatprep.subr.bf16.mxu0 %v10788_v41  ;;  %v10797_v57 = vld [vmem:[#allocation5 + $0x20c] ss:$16 sps:$4 sm:$0xff]   ;;  %v10792_v2 = vld [vmem:[#allocation5 + $0x8] ss:$16 sps:$4 sm:$0xff]   ;;  %14317 = vst [vmem:[#allocation191_spill] sm:$0xff] %v12517_v63  ;;  %v329_v50 = vld [vmem:[#allocation2 + $0x6a0] sm:$0xff] }
 0x1f3   :  { %v5948_v25 = vpop.f32.mrf.mxu1  ;;  %6804 = vmatprep.subr.bf16.mxu1 %v10791_v18  ;;  %v12514_v13 = vadd.f32 %v5946_v46, %v5834_v28  ;;  %v5836_v12 = vadd.f32 %v5835_v5, %v12331_v61  ;;  %14318 = vst [vmem:[#allocation192_spill] sm:$0xff] %v12519_v3  ;;  %v10795_v26 = vld [vmem:[#allocation5 + $0x208] ss:$16 sps:$4 sm:$0xff]   ;;  %v353_v41 = vld [vmem:[#allocation2 + $0x760] sm:$0xff]  ;;  %v331_v61 = vld [vmem:[#allocation2 + $0x6b0] sm:$0xff] }
 0x1f4   :  { %v5839_v11 = vpop.f32.mrf.mxu0  ;;  %6516 = vmatmul.mubr.bf16.gmra.mxu0 %v12507_v45  ;;  %v10800_v48 = vld [vmem:[#allocation5 + $0x1ec] ss:$16 sps:$4 sm:$0xff]  }
 0x1f5   :  { %v5952_v6 = vpop.f32.mrf.mxu1  ;;  %6629 = vmatmul.mubr.bf16.gmra.mxu1 %v12509_v43  ;;  %v12523_v18 = vadd.f32 %v5948_v25, %v5836_v12  ;;  %v5840_v19 = vadd.f32 %v5839_v11, %v12334_v0  ;;  %6692 = vmatpush1.bf16.msra.mxu0 %v10786_v38  ;;  %v10803_v46 = vld [vmem:[#allocation5 + $0x3ec] ss:$16 sps:$4 sm:$0xff]   ;;  %v10798_v0 = vld [vmem:[#allocation5 + $0x1e8] ss:$16 sps:$4 sm:$0xff]   ;;  %v12531_v11 = vpack.c.bf16 %v353_v41, %v329_v50 }
 0x1f6   :  { %6805 = vmatpush1.bf16.msra.mxu1 %v10789_v29  ;;  %v5841_v1 = vpop.f32.mrf.mxu0  ;;  %6693 = vmatprep.subr.bf16.mxu0 %v10794_v39  ;;  %v378_v15 = vld [vmem:[#allocation2 + $0x828] sm:$0xff]  ;;  %v380_v29 = vld [vmem:[#allocation2 + $0x838] sm:$0xff]  ;;  %v12533_v43 = vpack.c.bf16 %v355_v33, %v331_v61 }
 0x1f7   :  { %v5954_v49 = vpop.f32.mrf.mxu1  ;;  %6806 = vmatprep.subr.bf16.mxu1 %v10797_v57  ;;  %v12526_v28 = vadd.f32 %v5952_v6, %v5840_v19  ;;  %v5842_v5 = vadd.f32 %v5841_v1, %v12343_v59  ;;  %6525 = vmatprep.mubr.bf16.mxu0 %v12517_v63  ;;  %v402_v38 = vld [vmem:[#allocation2 + $0x8e8] sm:$0xff]  ;;  %14319 = vst [vmem:[#allocation193_spill] sm:$0xff] %v12531_v11  ;;  %v404_v57 = vld [vmem:[#allocation2 + $0x8f8] sm:$0xff] }
 0x1f8   :  { %6638 = vmatprep.mubr.bf16.mxu1 %v12519_v3  ;;  %v5843_v25 = vpop.f32.mrf.mxu0  ;;  %14320 = vst [vmem:[#allocation194_spill] sm:$0xff] %v12533_v43  ;;  %v10801_v59 = vld [vmem:[#allocation5 + $0x3e8] ss:$16 sps:$4 sm:$0xff]   ;;  %v10806_v3 = vld [vmem:[#allocation5 + $0x1cc] ss:$16 sps:$4 sm:$0xff]   ;;  %v12541_v61 = vpack.c.bf16 %v402_v38, %v378_v15  ;;  %v12543_v33 = vpack.c.bf16 %v404_v57, %v380_v29  ;;  %v403_v15 = vld [vmem:[#allocation2 + $0x8f0] sm:$0xff] }
 0x1f9   :  { %v5956_v12 = vpop.f32.mrf.mxu1  ;;  %v12535_v39 = vadd.f32 %v5954_v49, %v5842_v5  ;;  %v5844_v6 = vadd.f32 %v5843_v25, %v12346_v7  ;;  %6694 = vmatpush1.bf16.msra.mxu0 %v10792_v2  ;;  %v10809_v63 = vld [vmem:[#allocation5 + $0x3cc] ss:$16 sps:$4 sm:$0xff]   ;;  %v10804_v41 = vld [vmem:[#allocation5 + $0x1c8] ss:$16 sps:$4 sm:$0xff]  }
 0x1fa   :  { %6807 = vmatpush1.bf16.msra.mxu1 %v10795_v26  ;;  %v5845_v19 = vpop.f32.mrf.mxu0  ;;  %6695 = vmatprep.subr.bf16.mxu0 %v10800_v48  ;;  %14321 = vst [vmem:[#allocation195_spill] sm:$0xff] %v12541_v61  ;;  %14322 = vst [vmem:[#allocation196_spill] sm:$0xff] %v12543_v33  ;;  %v10807_v2 = vld [vmem:[#allocation5 + $0x3c8] ss:$16 sps:$4 sm:$0xff]   ;;  %v377_v26 = vld [vmem:[#allocation2 + $0x820] sm:$0xff] }
 0x1fb   :  { %v5958_v1 = vpop.f32.mrf.mxu1  ;;  %6808 = vmatprep.subr.bf16.mxu1 %v10803_v46  ;;  %v12538_v45 = vadd.f32 %v5956_v12, %v5844_v6  ;;  %v5846_v50 = vadd.f32 %v5845_v19, %v12355_v52  ;;  %v401_v48 = vld [vmem:[#allocation2 + $0x8e0] sm:$0xff]  ;;  %v379_v52 = vld [vmem:[#allocation2 + $0x830] sm:$0xff]  ;;  %v10812_v38 = vld [vmem:[#allocation5 + $0x1ac] ss:$16 sps:$4 sm:$0xff]  }
 0x1fc   :  { %v5849_v49 = vpop.f32.mrf.mxu0  ;;  %6526 = vmatmul.mubr.bf16.gmra.mxu0 %v12531_v11  ;;  %v10815_v12 = vld [vmem:[#allocation5 + $0x3ac] ss:$16 sps:$4 sm:$0xff]  }
 0x1fd   :  { %v5962_v7 = vpop.f32.mrf.mxu1  ;;  %6639 = vmatmul.mubr.bf16.gmra.mxu1 %v12533_v43  ;;  %v12547_v46 = vadd.f32 %v5958_v1, %v5846_v50  ;;  %v5850_v5 = vadd.f32 %v5849_v49, %v12358_v32  ;;  %6696 = vmatpush2.bf16.msra.mxu0 %v10798_v0  ;;  %v426_v57 = vld [vmem:[#allocation2 + $0x9a8] sm:$0xff]  ;;  %v12555_v49 = vpack.c.bf16 %v401_v48, %v377_v26 }
 0x1fe   :  { %6809 = vmatpush2.bf16.msra.mxu1 %v10801_v59  ;;  %v5851_v29 = vpop.f32.mrf.mxu0  ;;  %6697 = vmatprep.subr.bf16.mxu0 %v10806_v3  ;;  %v10810_v32 = vld [vmem:[#allocation5 + $0x1a8] ss:$16 sps:$4 sm:$0xff]   ;;  %v12557_v43 = vpack.c.bf16 %v403_v15, %v379_v52 }
 0x1ff   :  { %v5964_v25 = vpop.f32.mrf.mxu1  ;;  %6810 = vmatprep.subr.bf16.mxu1 %v10809_v63  ;;  %v12550_v6 = vadd.f32 %v5962_v7, %v5850_v5  ;;  %v5852_v19 = vadd.f32 %v5851_v29, %v12367_v37  ;;  %6535 = vmatprep.mubr.bf16.mxu0 %v12541_v61  ;;  %v450_v0 = vld [vmem:[#allocation2 + $0xa68] sm:$0xff]  ;;  %v428_v59 = vld [vmem:[#allocation2 + $0x9b8] sm:$0xff]  ;;  %14323 = vst [vmem:[#allocation197_spill] sm:$0xff] %v12555_v49 }
 0x200   :  { %6648 = vmatprep.mubr.bf16.mxu1 %v12543_v33  ;;  %v5853_v1 = vpop.f32.mrf.mxu0  ;;  %14324 = vst [vmem:[#allocation198_spill] sm:$0xff] %v12557_v43  ;;  %v452_v63 = vld [vmem:[#allocation2 + $0xa78] sm:$0xff]  ;;  %v12565_v15 = vpack.c.bf16 %v450_v0, %v426_v57 }
 0x201   :  { %v5966_v50 = vpop.f32.mrf.mxu1  ;;  %v12559_v3 = vadd.f32 %v5964_v25, %v5852_v19  ;;  %v5854_v7 = vadd.f32 %v5853_v1, %v12370_v62  ;;  %6698 = vmatpush2.bf16.msra.mxu0 %v10804_v41  ;;  %v10813_v37 = vld [vmem:[#allocation5 + $0x3a8] ss:$16 sps:$4 sm:$0xff]   ;;  %v10818_v33 = vld [vmem:[#allocation5 + $0x18c] ss:$16 sps:$4 sm:$0xff]   ;;  %v12567_v25 = vpack.c.bf16 %v452_v63, %v428_v59  ;;  %v425_v62 = vld [vmem:[#allocation2 + $0x9a0] sm:$0xff] }
 0x202   :  { %6811 = vmatpush2.bf16.msra.mxu1 %v10807_v2  ;;  %v5855_v5 = vpop.f32.mrf.mxu0  ;;  %6699 = vmatprep.subr.bf16.mxu0 %v10812_v38  ;;  %v10821_v61 = vld [vmem:[#allocation5 + $0x38c] ss:$16 sps:$4 sm:$0xff]   ;;  %v10816_v48 = vld [vmem:[#allocation5 + $0x188] ss:$16 sps:$4 sm:$0xff]   ;;  %14325 = vst [vmem:[#allocation199_spill] sm:$0xff] %v12565_v15  ;;  %v449_v41 = vld [vmem:[#allocation2 + $0xa60] sm:$0xff] }
 0x203   :  { %v5968_v29 = vpop.f32.mrf.mxu1  ;;  %6812 = vmatprep.subr.bf16.mxu1 %v10815_v12  ;;  %v12562_v11 = vadd.f32 %v5966_v50, %v5854_v7  ;;  %v5856_v26 = vadd.f32 %v5855_v5, %v12379_v60  ;;  %v10819_v52 = vld [vmem:[#allocation5 + $0x388] ss:$16 sps:$4 sm:$0xff]   ;;  %14326 = vst [vmem:[#allocation200_spill] sm:$0xff] %v12567_v25  ;;  %v427_v2 = vld [vmem:[#allocation2 + $0x9b0] sm:$0xff]  ;;  %v10824_v57 = vld [vmem:[#allocation5 + $0x16c] ss:$16 sps:$4 sm:$0xff]  }
 0x204   :  { %v5859_v19 = vpop.f32.mrf.mxu0  ;;  %6536 = vmatmul.mubr.bf16.gmra.mxu0 %v12555_v49  ;;  %v451_v38 = vld [vmem:[#allocation2 + $0xa70] sm:$0xff]  ;;  %v10827_v50 = vld [vmem:[#allocation5 + $0x36c] ss:$16 sps:$4 sm:$0xff]  }
 0x205   :  { %v5972_v1 = vpop.f32.mrf.mxu1  ;;  %6649 = vmatmul.mubr.bf16.gmra.mxu1 %v12557_v43  ;;  %v12571_v12 = vadd.f32 %v5968_v29, %v5856_v26  ;;  %v5860_v60 = vadd.f32 %v5859_v19, %v12382_v4  ;;  %6700 = vmatpush2.bf16.msra.mxu0 %v10810_v32  ;;  %v474_v63 = vld [vmem:[#allocation2 + $0xb28] sm:$0xff]  ;;  %v476_v4 = vld [vmem:[#allocation2 + $0xb38] sm:$0xff]  ;;  %v12579_v19 = vpack.c.bf16 %v449_v41, %v425_v62 }
 0x206   :  { %6813 = vmatpush2.bf16.msra.mxu1 %v10813_v37  ;;  %v5861_v0 = vpop.f32.mrf.mxu0  ;;  %6701 = vmatprep.subr.bf16.mxu0 %v10818_v33  ;;  %v10822_v29 = vld [vmem:[#allocation5 + $0x168] ss:$16 sps:$4 sm:$0xff]   ;;  %v12581_v43 = vpack.c.bf16 %v451_v38, %v427_v2 }
 0x207   :  { %v5974_v59 = vpop.f32.mrf.mxu1  ;;  %6814 = vmatprep.subr.bf16.mxu1 %v10821_v61  ;;  %v12574_v7 = vadd.f32 %v5972_v1, %v5860_v60  ;;  %v5862_v5 = vadd.f32 %v5861_v0, %v12391_v20  ;;  %6545 = vmatprep.mubr.bf16.mxu0 %v12565_v15  ;;  %v498_v26 = vld [vmem:[#allocation2 + $0xbe8] sm:$0xff]  ;;  %v500_v61 = vld [vmem:[#allocation2 + $0xbf8] sm:$0xff] }
 0x208   :  { %6658 = vmatprep.mubr.bf16.mxu1 %v12567_v25  ;;  %v5863_v32 = vpop.f32.mrf.mxu0  ;;  %v10825_v20 = vld [vmem:[#allocation5 + $0x368] ss:$16 sps:$4 sm:$0xff]   ;;  %v10830_v25 = vld [vmem:[#allocation5 + $0x14c] ss:$16 sps:$4 sm:$0xff]   ;;  %v12589_v38 = vpack.c.bf16 %v498_v26, %v474_v63 }
 0x209   :  { %v5976_v37 = vpop.f32.mrf.mxu1  ;;  %v12583_v33 = vadd.f32 %v5974_v59, %v5862_v5  ;;  %v5864_v1 = vadd.f32 %v5863_v32, %v12394_v42  ;;  %6702 = vmatpush2.bf16.msra.mxu0 %v10816_v48  ;;  %v10833_v15 = vld [vmem:[#allocation5 + $0x34c] ss:$16 sps:$4 sm:$0xff]   ;;  %v10828_v41 = vld [vmem:[#allocation5 + $0x148] ss:$16 sps:$4 sm:$0xff]   ;;  %v12591_v59 = vpack.c.bf16 %v500_v61, %v476_v4  ;;  %v473_v42 = vld [vmem:[#allocation2 + $0xb20] sm:$0xff] }
 0x20a   :  { %6815 = vmatpush2.bf16.msra.mxu1 %v10819_v52  ;;  %v5865_v60 = vpop.f32.mrf.mxu0  ;;  %6703 = vmatprep.subr.bf16.mxu0 %v10824_v57  ;;  %v10831_v2 = vld [vmem:[#allocation5 + $0x348] ss:$16 sps:$4 sm:$0xff]   ;;  %v497_v48 = vld [vmem:[#allocation2 + $0xbe0] sm:$0xff]  ;;  %v475_v57 = vld [vmem:[#allocation2 + $0xb30] sm:$0xff] }
 0x20b   :  { %v5978_v0 = vpop.f32.mrf.mxu1  ;;  %6816 = vmatprep.subr.bf16.mxu1 %v10827_v50  ;;  %v12586_v49 = vadd.f32 %v5976_v37, %v5864_v1  ;;  %v5866_v62 = vadd.f32 %v5865_v60, %v12403_v30  ;;  %v499_v30 = vld [vmem:[#allocation2 + $0xbf0] sm:$0xff]  ;;  %v10836_v4 = vld [vmem:[#allocation5 + $0x12c] ss:$16 sps:$4 sm:$0xff]  }
 0x20c   :  { %v5869_v52 = vpop.f32.mrf.mxu0  ;;  %6546 = vmatmul.mubr.bf16.gmra.mxu0 %v12579_v19  ;;  %v10839_v37 = vld [vmem:[#allocation5 + $0x32c] ss:$16 sps:$4 sm:$0xff]  }
 0x20d   :  { %v5982_v5 = vpop.f32.mrf.mxu1  ;;  %6659 = vmatmul.mubr.bf16.gmra.mxu1 %v12581_v43  ;;  %v12595_v50 = vadd.f32 %v5978_v0, %v5866_v62  ;;  %v5870_v32 = vadd.f32 %v5869_v52, %v12406_v40  ;;  %6704 = vmatpush2.bf16.msra.mxu0 %v10822_v29  ;;  %v12603_v40 = vpack.c.bf16 %v497_v48, %v473_v42 }
 0x20e   :  { %6817 = vmatpush2.bf16.msra.mxu1 %v10825_v20  ;;  %v5871_v63 = vpop.f32.mrf.mxu0  ;;  %6705 = vmatprep.subr.bf16.mxu0 %v10830_v25  ;;  %v12605_v29 = vpack.c.bf16 %v499_v30, %v475_v57  ;;  %v10834_v20 = vld [vmem:[#allocation5 + $0x128] ss:$16 sps:$4 sm:$0xff]  }
 0x20f   :  { %v5984_v26 = vpop.f32.mrf.mxu1  ;;  %6818 = vmatprep.subr.bf16.mxu1 %v10833_v15  ;;  %v12598_v61 = vadd.f32 %v5982_v5, %v5870_v32  ;;  %v5872_v1 = vadd.f32 %v5871_v63, %v12415_v9  ;;  %6555 = vmatprep.mubr.bf16.mxu0 %v12589_v38  ;;  %v10837_v25 = vld [vmem:[#allocation5 + $0x328] ss:$16 sps:$4 sm:$0xff]   ;;  %v10842_v5 = vld [vmem:[#allocation5 + $0x10c] ss:$16 sps:$4 sm:$0xff]  }
 0x210   :  { %6668 = vmatprep.mubr.bf16.mxu1 %v12591_v59  ;;  %v5873_v60 = vpop.f32.mrf.mxu0  ;;  %v10845_v32 = vld [vmem:[#allocation5 + $0x30c] ss:$16 sps:$4 sm:$0xff]   ;;  %v10843_v30 = vld [vmem:[#allocation5 + $0x308] ss:$16 sps:$4 sm:$0xff]  }
 0x211   :  { %v5986_v0 = vpop.f32.mrf.mxu1  ;;  %v12607_v62 = vadd.f32 %v5984_v26, %v5872_v1  ;;  %v5874_v15 = vadd.f32 %v5873_v60, %v12418_v27  ;;  %6706 = vmatpush2.bf16.msra.mxu0 %v10828_v41  ;;  %v10840_v27 = vld [vmem:[#allocation5 + $0x108] ss:$16 sps:$4 sm:$0xff]  }
 0x212   :  { %6819 = vmatpush2.bf16.msra.mxu1 %v10831_v2  ;;  %v5875_v52 = vpop.f32.mrf.mxu0  ;;  %6707 = vmatprep.subr.bf16.mxu0 %v10836_v4 }
 0x213   :  { %v5988_v9 = vpop.f32.mrf.mxu1  ;;  %6820 = vmatprep.subr.bf16.mxu1 %v10839_v37  ;;  %v12610_v63 = vadd.f32 %v5986_v0, %v5874_v15  ;;  %v5876_v42 = vadd.f32 %v5875_v52, %v12427_v8  ;;  %v10848_v37 = vld [vmem:[#allocation5 + $0x4ec] ss:$16 sps:$4 sm:$0xff]   ;;  %v10849_v52 = vld [vmem:[#allocation5 + $0x6e8] ss:$16 sps:$4 sm:$0xff]  }
 0x214   :  { %v5879_v48 = vpop.f32.mrf.mxu0  ;;  %6556 = vmatmul.mubr.bf16.gmra.mxu0 %v12603_v40  ;;  %v10851_v8 = vld [vmem:[#allocation5 + $0x6ec] ss:$16 sps:$4 sm:$0xff]  }
 0x215   :  { %v5992_v57 = vpop.f32.mrf.mxu1  ;;  %6669 = vmatmul.mubr.bf16.gmra.mxu1 %v12605_v29  ;;  %v12615_v41 = vadd.f32 %v5988_v9, %v5876_v42  ;;  %v5880_v2 = vadd.f32 %v5879_v48, %v12430_v14  ;;  %6708 = vmatpush2.bf16.msra.mxu0 %v10834_v20  ;;  %v10846_v14 = vld [vmem:[#allocation5 + $0x4e8] ss:$16 sps:$4 sm:$0xff]  }
 0x216   :  { %6821 = vmatpush2.bf16.msra.mxu1 %v10837_v25  ;;  %v5881_v26 = vpop.f32.mrf.mxu0  ;;  %6709 = vmatprep.subr.bf16.mxu0 %v10842_v5 }
 0x217   :  { %v5994_v4 = vpop.f32.mrf.mxu1  ;;  %6822 = vmatprep.subr.bf16.mxu1 %v10845_v32  ;;  %v12618_v1 = vadd.f32 %v5992_v57, %v5880_v2  ;;  %v5882_v60 = vadd.f32 %v5881_v26, %v12439_v10  ;;  %6711 = vmatprep.mubr.bf16.mxu0 %v11753_v53  ;;  %v10854_v32 = vld [vmem:[#allocation5 + $0x4cc] ss:$16 sps:$4 sm:$0xff]   ;;  %v10855_v2 = vld [vmem:[#allocation5 + $0x6c8] ss:$16 sps:$4 sm:$0xff]  }
 0x218   :  { %6824 = vmatprep.mubr.bf16.mxu1 %v11755_v54  ;;  %v5883_v0 = vpop.f32.mrf.mxu0  ;;  %v10857_v10 = vld [vmem:[#allocation5 + $0x6cc] ss:$16 sps:$4 sm:$0xff]  }
 0x219   :  { %v5996_v15 = vpop.f32.mrf.mxu1  ;;  %v12623_v20 = vadd.f32 %v5994_v4, %v5882_v60  ;;  %v5884_v25 = vadd.f32 %v5883_v0, %v12442_v51  ;;  %6710 = vmatpush2.bf16.msra.mxu0 %v10840_v27  ;;  %v10852_v51 = vld [vmem:[#allocation5 + $0x4c8] ss:$16 sps:$4 sm:$0xff]   ;;  %v10860_v4 = vld [vmem:[#allocation5 + $0x4ac] ss:$16 sps:$4 sm:$0xff]  }
 0x21a   :  { %6823 = vmatpush2.bf16.msra.mxu1 %v10843_v30  ;;  %v5885_v9 = vpop.f32.mrf.mxu0  ;;  %6905 = vmatprep.subr.bf16.mxu0 %v10848_v37 }
 0x21b   :  { %v5998_v5 = vpop.f32.mrf.mxu1  ;;  %7018 = vmatprep.subr.bf16.mxu1 %v10851_v8  ;;  %v12626_v42 = vadd.f32 %v5996_v15, %v5884_v25  ;;  %v5886_v53 = vadd.f32 %v5885_v9, %v12451_v35  ;;  %v10863_v35 = vld [vmem:[#allocation5 + $0x6ac] ss:$16 sps:$4 sm:$0xff]   ;;  %v10861_v15 = vld [vmem:[#allocation5 + $0x6a8] ss:$16 sps:$4 sm:$0xff]  }
 0x21c   :  { %v6035_v54 = vpop.f32.mrf.mxu0  ;;  %6712 = vmatmul.mubr.bf16.vlgmr.msra.gmra.mxu0 %v11759_v16 }
 0x21d   :  { %v6148_v48 = vpop.f32.mrf.mxu1  ;;  %6825 = vmatmul.mubr.bf16.vlgmr.msra.gmra.mxu1 %v11761_v17  ;;  %v12631_v57 = vadd.f32 %v5998_v5, %v5886_v53  ;;  %v6036_v27 = vadd.f32 %v6035_v54, %v12454_v58  ;;  %6906 = vmatpush1.bf16.msra.mxu0 %v10846_v14  ;;  %v10858_v58 = vld [vmem:[#allocation5 + $0x4a8] ss:$16 sps:$4 sm:$0xff]  }
 0x21e   :  { %7019 = vmatpush1.bf16.msra.mxu1 %v10849_v52  ;;  %v6037_v30 = vpop.f32.mrf.mxu0  ;;  %6907 = vmatprep.subr.bf16.mxu0 %v10854_v32  ;;  %v10866_v52 = vld [vmem:[#allocation5 + $0x48c] ss:$16 sps:$4 sm:$0xff]  }
 0x21f   :  { %v6150_v26 = vpop.f32.mrf.mxu1  ;;  %7020 = vmatprep.subr.bf16.mxu1 %v10857_v10  ;;  %v12634_v37 = vadd.f32 %v6148_v48, %v6036_v27  ;;  %v6038_v16 = vadd.f32 %v6037_v30, %v12463_v34  ;;  %6721 = vmatprep.mubr.bf16.mxu0 %v11763_v23  ;;  %v10869_v34 = vld [vmem:[#allocation5 + $0x68c] ss:$16 sps:$4 sm:$0xff]   ;;  %v14328_v10 = vld [vmem:[#allocation21_spill] sm:$0xff]  ;;  %v10867_v48 = vld [vmem:[#allocation5 + $0x688] ss:$16 sps:$4 sm:$0xff]  }
 0x220   :  { %6834 = vmatprep.mubr.bf16.mxu1 %v11765_v24  ;;  %v6039_v17 = vpop.f32.mrf.mxu0  ;;  %v14327_v32 = vld [vmem:[#allocation20_spill] sm:$0xff] }
 0x221   :  { %v6152_v8 = vpop.f32.mrf.mxu1  ;;  %v12639_v60 = vadd.f32 %v6150_v26, %v6038_v16  ;;  %v6040_v0 = vadd.f32 %v6039_v17, %v12466_v47  ;;  %6908 = vmatpush1.bf16.msra.mxu0 %v10852_v51  ;;  %v10864_v47 = vld [vmem:[#allocation5 + $0x488] ss:$16 sps:$4 sm:$0xff]  }
 0x222   :  { %7021 = vmatpush1.bf16.msra.mxu1 %v10855_v2  ;;  %v6041_v14 = vpop.f32.mrf.mxu0  ;;  %6909 = vmatprep.subr.bf16.mxu0 %v10860_v4  ;;  %v10872_v2 = vld [vmem:[#allocation5 + $0x46c] ss:$16 sps:$4 sm:$0xff]  }
 0x223   :  { %v6154_v25 = vpop.f32.mrf.mxu1  ;;  %7022 = vmatprep.subr.bf16.mxu1 %v10863_v35  ;;  %v12642_v9 = vadd.f32 %v6152_v8, %v6040_v0  ;;  %v6042_v23 = vadd.f32 %v6041_v14, %v12475_v21  ;;  %v10875_v21 = vld [vmem:[#allocation5 + $0x66c] ss:$16 sps:$4 sm:$0xff]   ;;  %v14330_v35 = vld [vmem:[#allocation23_spill] sm:$0xff]  ;;  %v10873_v0 = vld [vmem:[#allocation5 + $0x668] ss:$16 sps:$4 sm:$0xff]  }
 0x224   :  { %v6045_v24 = vpop.f32.mrf.mxu0  ;;  %6722 = vmatmul.mubr.bf16.gmra.mxu0 %v14327_v32  ;;  %v14329_v4 = vld [vmem:[#allocation22_spill] sm:$0xff]  ;;  %v14332_v32 = vld [vmem:[#allocation25_spill] sm:$0xff] }
 0x225   :  { %v6158_v5 = vpop.f32.mrf.mxu1  ;;  %6835 = vmatmul.mubr.bf16.gmra.mxu1 %v14328_v10  ;;  %v12647_v53 = vadd.f32 %v6154_v25, %v6042_v23  ;;  %v6046_v54 = vadd.f32 %v6045_v24, %v12478_v36  ;;  %6910 = vmatpush1.bf16.msra.mxu0 %v10858_v58  ;;  %v10870_v36 = vld [vmem:[#allocation5 + $0x468] ss:$16 sps:$4 sm:$0xff]   ;;  %v10878_v25 = vld [vmem:[#allocation5 + $0x44c] ss:$16 sps:$4 sm:$0xff]  }
 0x226   :  { %7023 = vmatpush1.bf16.msra.mxu1 %v10861_v15  ;;  %v6047_v51 = vpop.f32.mrf.mxu0  ;;  %6911 = vmatprep.subr.bf16.mxu0 %v10866_v52 }
 0x227   :  { %v6160_v27 = vpop.f32.mrf.mxu1  ;;  %7024 = vmatprep.subr.bf16.mxu1 %v10869_v34  ;;  %v12650_v30 = vadd.f32 %v6158_v5, %v6046_v54  ;;  %v6048_v26 = vadd.f32 %v6047_v51, %v12487_v22  ;;  %6731 = vmatprep.mubr.bf16.mxu0 %v14329_v4  ;;  %v10881_v22 = vld [vmem:[#allocation5 + $0x64c] ss:$16 sps:$4 sm:$0xff]   ;;  %v10879_v54 = vld [vmem:[#allocation5 + $0x648] ss:$16 sps:$4 sm:$0xff]   ;;  %v14334_v4 = vld [vmem:[#allocation27_spill] sm:$0xff] }
 0x228   :  { %6844 = vmatprep.mubr.bf16.mxu1 %v14330_v35  ;;  %v6049_v16 = vpop.f32.mrf.mxu0  ;;  %v14331_v5 = vld [vmem:[#allocation24_spill] sm:$0xff] }
 0x229   :  { %v6162_v17 = vpop.f32.mrf.mxu1  ;;  %v12655_v8 = vadd.f32 %v6160_v27, %v6048_v26  ;;  %v6050_v58 = vadd.f32 %v6049_v16, %v12490_v55  ;;  %6912 = vmatpush1.bf16.msra.mxu0 %v10864_v47  ;;  %v10876_v55 = vld [vmem:[#allocation5 + $0x448] ss:$16 sps:$4 sm:$0xff]   ;;  %v10884_v27 = vld [vmem:[#allocation5 + $0x42c] ss:$16 sps:$4 sm:$0xff]  }
 0x22a   :  { %7025 = vmatpush1.bf16.msra.mxu1 %v10867_v48  ;;  %v6051_v15 = vpop.f32.mrf.mxu0  ;;  %6913 = vmatprep.subr.bf16.mxu0 %v10872_v2  ;;  %v14333_v26 = vld [vmem:[#allocation26_spill] sm:$0xff] }
 0x22b   :  { %v6164_v14 = vpop.f32.mrf.mxu1  ;;  %7026 = vmatprep.subr.bf16.mxu1 %v10875_v21  ;;  %v12658_v52 = vadd.f32 %v6162_v17, %v6050_v58  ;;  %v6052_v34 = vadd.f32 %v6051_v15, %v12499_v56  ;;  %v10887_v56 = vld [vmem:[#allocation5 + $0x62c] ss:$16 sps:$4 sm:$0xff]   ;;  %v10885_v58 = vld [vmem:[#allocation5 + $0x628] ss:$16 sps:$4 sm:$0xff]  }
 0x22c   :  { %v6055_v23 = vpop.f32.mrf.mxu0  ;;  %6732 = vmatmul.mubr.bf16.gmra.mxu0 %v14331_v5  ;;  %v14336_v5 = vld [vmem:[#allocation29_spill] sm:$0xff] }
 0x22d   :  { %v6168_v24 = vpop.f32.mrf.mxu1  ;;  %6845 = vmatmul.mubr.bf16.gmra.mxu1 %v14332_v32  ;;  %v12663_v10 = vadd.f32 %v6164_v14, %v6052_v34  ;;  %v6056_v47 = vadd.f32 %v6055_v23, %v12502_v44  ;;  %6914 = vmatpush1.bf16.msra.mxu0 %v10870_v36  ;;  %v10882_v44 = vld [vmem:[#allocation5 + $0x428] ss:$16 sps:$4 sm:$0xff]   ;;  %v10890_v14 = vld [vmem:[#allocation5 + $0x40c] ss:$16 sps:$4 sm:$0xff]  }
 0x22e   :  { %7027 = vmatpush1.bf16.msra.mxu1 %v10873_v0  ;;  %v6057_v48 = vpop.f32.mrf.mxu0  ;;  %6915 = vmatprep.subr.bf16.mxu0 %v10878_v25 }
 0x22f   :  { %v6170_v51 = vpop.f32.mrf.mxu1  ;;  %7028 = vmatprep.subr.bf16.mxu1 %v10881_v22  ;;  %v12666_v2 = vadd.f32 %v6168_v24, %v6056_v47  ;;  %v6058_v21 = vadd.f32 %v6057_v48, %v12511_v31  ;;  %6741 = vmatprep.mubr.bf16.mxu0 %v14333_v26  ;;  %v10893_v31 = vld [vmem:[#allocation5 + $0x60c] ss:$16 sps:$4 sm:$0xff]   ;;  %v10891_v47 = vld [vmem:[#allocation5 + $0x608] ss:$16 sps:$4 sm:$0xff]   ;;  %v14338_v26 = vld [vmem:[#allocation31_spill] sm:$0xff] }
 0x230   :  { %6854 = vmatprep.mubr.bf16.mxu1 %v14334_v4  ;;  %v6059_v35 = vpop.f32.mrf.mxu0  ;;  %v14335_v24 = vld [vmem:[#allocation28_spill] sm:$0xff] }
 0x231   :  { %v6172_v16 = vpop.f32.mrf.mxu1  ;;  %v12671_v17 = vadd.f32 %v6170_v51, %v6058_v21  ;;  %v6060_v36 = vadd.f32 %v6059_v35, %v12514_v13  ;;  %6916 = vmatpush1.bf16.msra.mxu0 %v10876_v55  ;;  %v10888_v13 = vld [vmem:[#allocation5 + $0x408] ss:$16 sps:$4 sm:$0xff]   ;;  %v10896_v51 = vld [vmem:[#allocation5 + $0x5ec] ss:$16 sps:$4 sm:$0xff]  }
 0x232   :  { %7029 = vmatpush1.bf16.msra.mxu1 %v10879_v54  ;;  %v6061_v0 = vpop.f32.mrf.mxu0  ;;  %6917 = vmatprep.subr.bf16.mxu0 %v10884_v27  ;;  %v14337_v21 = vld [vmem:[#allocation30_spill] sm:$0xff] }
 0x233   :  { %v6174_v15 = vpop.f32.mrf.mxu1  ;;  %7030 = vmatprep.subr.bf16.mxu1 %v10887_v56  ;;  %v12674_v25 = vadd.f32 %v6172_v16, %v6060_v36  ;;  %v6062_v22 = vadd.f32 %v6061_v0, %v12523_v18  ;;  %v10899_v18 = vld [vmem:[#allocation5 + $0x7ec] ss:$16 sps:$4 sm:$0xff]   ;;  %v10897_v36 = vld [vmem:[#allocation5 + $0x7e8] ss:$16 sps:$4 sm:$0xff]  }
 0x234   :  { %v6065_v34 = vpop.f32.mrf.mxu0  ;;  %6742 = vmatmul.mubr.bf16.gmra.mxu0 %v14335_v24  ;;  %v14340_v24 = vld [vmem:[#allocation33_spill] sm:$0xff] }
 0x235   :  { %v6178_v23 = vpop.f32.mrf.mxu1  ;;  %6855 = vmatmul.mubr.bf16.gmra.mxu1 %v14336_v5  ;;  %v12679_v32 = vadd.f32 %v6174_v15, %v6062_v22  ;;  %v6066_v55 = vadd.f32 %v6065_v34, %v12526_v28  ;;  %6918 = vmatpush1.bf16.msra.mxu0 %v10882_v44  ;;  %v10894_v28 = vld [vmem:[#allocation5 + $0x5e8] ss:$16 sps:$4 sm:$0xff]   ;;  %v10902_v15 = vld [vmem:[#allocation5 + $0x5cc] ss:$16 sps:$4 sm:$0xff]  }
 0x236   :  { %7031 = vmatpush1.bf16.msra.mxu1 %v10885_v58  ;;  %v6067_v54 = vpop.f32.mrf.mxu0  ;;  %6919 = vmatprep.subr.bf16.mxu0 %v10890_v14 }
 0x237   :  { %v6180_v48 = vpop.f32.mrf.mxu1  ;;  %7032 = vmatprep.subr.bf16.mxu1 %v10893_v31  ;;  %v12682_v27 = vadd.f32 %v6178_v23, %v6066_v55  ;;  %v6068_v56 = vadd.f32 %v6067_v54, %v12535_v39  ;;  %6751 = vmatprep.mubr.bf16.mxu0 %v14337_v21  ;;  %v10905_v39 = vld [vmem:[#allocation5 + $0x7cc] ss:$16 sps:$4 sm:$0xff]   ;;  %v10903_v55 = vld [vmem:[#allocation5 + $0x7c8] ss:$16 sps:$4 sm:$0xff]   ;;  %v14342_v21 = vld [vmem:[#allocation35_spill] sm:$0xff] }
 0x238   :  { %6864 = vmatprep.mubr.bf16.mxu1 %v14338_v26  ;;  %v6069_v4 = vpop.f32.mrf.mxu0  ;;  %v14339_v23 = vld [vmem:[#allocation32_spill] sm:$0xff] }
 0x239   :  { %v6182_v35 = vpop.f32.mrf.mxu1  ;;  %v12687_v16 = vadd.f32 %v6180_v48, %v6068_v56  ;;  %v6070_v44 = vadd.f32 %v6069_v4, %v12538_v45  ;;  %6920 = vmatpush1.bf16.msra.mxu0 %v10888_v13  ;;  %v10900_v45 = vld [vmem:[#allocation5 + $0x5c8] ss:$16 sps:$4 sm:$0xff]   ;;  %v10908_v48 = vld [vmem:[#allocation5 + $0x5ac] ss:$16 sps:$4 sm:$0xff]  }
 0x23a   :  { %7033 = vmatpush1.bf16.msra.mxu1 %v10891_v47  ;;  %v6071_v58 = vpop.f32.mrf.mxu0  ;;  %6921 = vmatprep.subr.bf16.mxu0 %v10896_v51  ;;  %v14341_v56 = vld [vmem:[#allocation34_spill] sm:$0xff] }
 0x23b   :  { %v6184_v0 = vpop.f32.mrf.mxu1  ;;  %7034 = vmatprep.subr.bf16.mxu1 %v10899_v18  ;;  %v12690_v14 = vadd.f32 %v6182_v35, %v6070_v44  ;;  %v6072_v31 = vadd.f32 %v6071_v58, %v12547_v46  ;;  %v10911_v46 = vld [vmem:[#allocation5 + $0x7ac] ss:$16 sps:$4 sm:$0xff]   ;;  %v10909_v44 = vld [vmem:[#allocation5 + $0x7a8] ss:$16 sps:$4 sm:$0xff]  }
 0x23c   :  { %v6075_v22 = vpop.f32.mrf.mxu0  ;;  %6752 = vmatmul.mubr.bf16.gmra.mxu0 %v14339_v23  ;;  %v14344_v23 = vld [vmem:[#allocation37_spill] sm:$0xff] }
 0x23d   :  { %v6188_v34 = vpop.f32.mrf.mxu1  ;;  %6865 = vmatmul.mubr.bf16.gmra.mxu1 %v14340_v24  ;;  %v12695_v5 = vadd.f32 %v6184_v0, %v6072_v31  ;;  %v6076_v13 = vadd.f32 %v6075_v22, %v12550_v6  ;;  %6922 = vmatpush2.bf16.msra.mxu0 %v10894_v28  ;;  %v10906_v6 = vld [vmem:[#allocation5 + $0x5a8] ss:$16 sps:$4 sm:$0xff]   ;;  %v10914_v0 = vld [vmem:[#allocation5 + $0x58c] ss:$16 sps:$4 sm:$0xff]  }
 0x23e   :  { %7035 = vmatpush2.bf16.msra.mxu1 %v10897_v36  ;;  %v6077_v47 = vpop.f32.mrf.mxu0  ;;  %6923 = vmatprep.subr.bf16.mxu0 %v10902_v15 }
 0x23f   :  { %v6190_v54 = vpop.f32.mrf.mxu1  ;;  %7036 = vmatprep.subr.bf16.mxu1 %v10905_v39  ;;  %v12698_v51 = vadd.f32 %v6188_v34, %v6076_v13  ;;  %v6078_v18 = vadd.f32 %v6077_v47, %v12559_v3  ;;  %6761 = vmatprep.mubr.bf16.mxu0 %v14341_v56  ;;  %v10917_v3 = vld [vmem:[#allocation5 + $0x78c] ss:$16 sps:$4 sm:$0xff]   ;;  %v10915_v13 = vld [vmem:[#allocation5 + $0x788] ss:$16 sps:$4 sm:$0xff]   ;;  %v14346_v56 = vld [vmem:[#allocation39_spill] sm:$0xff] }
 0x240   :  { %6874 = vmatprep.mubr.bf16.mxu1 %v14342_v21  ;;  %v6079_v26 = vpop.f32.mrf.mxu0  ;;  %v14343_v34 = vld [vmem:[#allocation36_spill] sm:$0xff] }
 0x241   :  { %v6192_v4 = vpop.f32.mrf.mxu1  ;;  %v12703_v35 = vadd.f32 %v6190_v54, %v6078_v18  ;;  %v6080_v28 = vadd.f32 %v6079_v26, %v12562_v11  ;;  %6924 = vmatpush2.bf16.msra.mxu0 %v10900_v45  ;;  %v10912_v11 = vld [vmem:[#allocation5 + $0x588] ss:$16 sps:$4 sm:$0xff]   ;;  %v10920_v54 = vld [vmem:[#allocation5 + $0x56c] ss:$16 sps:$4 sm:$0xff]  }
 0x242   :  { %7037 = vmatpush2.bf16.msra.mxu1 %v10903_v55  ;;  %v6081_v36 = vpop.f32.mrf.mxu0  ;;  %6925 = vmatprep.subr.bf16.mxu0 %v10908_v48  ;;  %v14345_v18 = vld [vmem:[#allocation38_spill] sm:$0xff] }
 0x243   :  { %v6194_v58 = vpop.f32.mrf.mxu1  ;;  %7038 = vmatprep.subr.bf16.mxu1 %v10911_v46  ;;  %v12706_v15 = vadd.f32 %v6192_v4, %v6080_v28  ;;  %v6082_v39 = vadd.f32 %v6081_v36, %v12571_v12  ;;  %v10923_v12 = vld [vmem:[#allocation5 + $0x76c] ss:$16 sps:$4 sm:$0xff]   ;;  %v10921_v28 = vld [vmem:[#allocation5 + $0x768] ss:$16 sps:$4 sm:$0xff]  }
 0x244   :  { %v6085_v31 = vpop.f32.mrf.mxu0  ;;  %6762 = vmatmul.mubr.bf16.gmra.mxu0 %v14343_v34  ;;  %v14348_v34 = vld [vmem:[#allocation41_spill] sm:$0xff] }
 0x245   :  { %v6198_v22 = vpop.f32.mrf.mxu1  ;;  %6875 = vmatmul.mubr.bf16.gmra.mxu1 %v14344_v23  ;;  %v12711_v24 = vadd.f32 %v6194_v58, %v6082_v39  ;;  %v6086_v45 = vadd.f32 %v6085_v31, %v12574_v7  ;;  %6926 = vmatpush2.bf16.msra.mxu0 %v10906_v6  ;;  %v10918_v7 = vld [vmem:[#allocation5 + $0x568] ss:$16 sps:$4 sm:$0xff]   ;;  %v10926_v58 = vld [vmem:[#allocation5 + $0x54c] ss:$16 sps:$4 sm:$0xff]  }
 0x246   :  { %7039 = vmatpush2.bf16.msra.mxu1 %v10909_v44  ;;  %v6087_v55 = vpop.f32.mrf.mxu0  ;;  %6927 = vmatprep.subr.bf16.mxu0 %v10914_v0 }
 0x247   :  { %v6200_v47 = vpop.f32.mrf.mxu1  ;;  %7040 = vmatprep.subr.bf16.mxu1 %v10917_v3  ;;  %v12714_v48 = vadd.f32 %v6198_v22, %v6086_v45  ;;  %v6088_v46 = vadd.f32 %v6087_v55, %v12583_v33  ;;  %6771 = vmatprep.mubr.bf16.mxu0 %v14345_v18  ;;  %v10929_v33 = vld [vmem:[#allocation5 + $0x74c] ss:$16 sps:$4 sm:$0xff]   ;;  %v10927_v45 = vld [vmem:[#allocation5 + $0x748] ss:$16 sps:$4 sm:$0xff]   ;;  %v14350_v18 = vld [vmem:[#allocation43_spill] sm:$0xff] }
 0x248   :  { %6884 = vmatprep.mubr.bf16.mxu1 %v14346_v56  ;;  %v6089_v21 = vpop.f32.mrf.mxu0  ;;  %v14347_v22 = vld [vmem:[#allocation40_spill] sm:$0xff] }
 0x249   :  { %v6202_v26 = vpop.f32.mrf.mxu1  ;;  %v12719_v4 = vadd.f32 %v6200_v47, %v6088_v46  ;;  %v6090_v6 = vadd.f32 %v6089_v21, %v12586_v49  ;;  %6928 = vmatpush2.bf16.msra.mxu0 %v10912_v11  ;;  %v10924_v49 = vld [vmem:[#allocation5 + $0x548] ss:$16 sps:$4 sm:$0xff]   ;;  %v10932_v47 = vld [vmem:[#allocation5 + $0x52c] ss:$16 sps:$4 sm:$0xff]  }
 0x24a   :  { %7041 = vmatpush2.bf16.msra.mxu1 %v10915_v13  ;;  %v6091_v44 = vpop.f32.mrf.mxu0  ;;  %6929 = vmatprep.subr.bf16.mxu0 %v10920_v54  ;;  %v14349_v46 = vld [vmem:[#allocation42_spill] sm:$0xff] }
 0x24b   :  { %v6204_v36 = vpop.f32.mrf.mxu1  ;;  %7042 = vmatprep.subr.bf16.mxu1 %v10923_v12  ;;  %v12722_v0 = vadd.f32 %v6202_v26, %v6090_v6  ;;  %v6092_v3 = vadd.f32 %v6091_v44, %v12595_v50  ;;  %v10935_v50 = vld [vmem:[#allocation5 + $0x72c] ss:$16 sps:$4 sm:$0xff]   ;;  %v10933_v6 = vld [vmem:[#allocation5 + $0x728] ss:$16 sps:$4 sm:$0xff]  }
 0x24c   :  { %v6095_v39 = vpop.f32.mrf.mxu0  ;;  %6772 = vmatmul.mubr.bf16.gmra.mxu0 %v14347_v22  ;;  %v14352_v22 = vld [vmem:[#allocation45_spill] sm:$0xff] }
 0x24d   :  { %v6208_v31 = vpop.f32.mrf.mxu1  ;;  %6885 = vmatmul.mubr.bf16.gmra.mxu1 %v14348_v34  ;;  %v12727_v23 = vadd.f32 %v6204_v36, %v6092_v3  ;;  %v6096_v11 = vadd.f32 %v6095_v39, %v12598_v61  ;;  %6930 = vmatpush2.bf16.msra.mxu0 %v10918_v7  ;;  %v10930_v61 = vld [vmem:[#allocation5 + $0x528] ss:$16 sps:$4 sm:$0xff]   ;;  %v10938_v36 = vld [vmem:[#allocation5 + $0x50c] ss:$16 sps:$4 sm:$0xff]  }
 0x24e   :  { %7043 = vmatpush2.bf16.msra.mxu1 %v10921_v28  ;;  %v6097_v13 = vpop.f32.mrf.mxu0  ;;  %6931 = vmatprep.subr.bf16.mxu0 %v10926_v58 }
 0x24f   :  { %v6210_v55 = vpop.f32.mrf.mxu1  ;;  %7044 = vmatprep.subr.bf16.mxu1 %v10929_v33  ;;  %v12730_v54 = vadd.f32 %v6208_v31, %v6096_v11  ;;  %v6098_v12 = vadd.f32 %v6097_v13, %v12607_v62  ;;  %6781 = vmatprep.mubr.bf16.mxu0 %v14349_v46  ;;  %v10941_v62 = vld [vmem:[#allocation5 + $0x70c] ss:$16 sps:$4 sm:$0xff]   ;;  %v10939_v11 = vld [vmem:[#allocation5 + $0x708] ss:$16 sps:$4 sm:$0xff]   ;;  %v14354_v46 = vld [vmem:[#allocation47_spill] sm:$0xff] }
 0x250   :  { %6894 = vmatprep.mubr.bf16.mxu1 %v14350_v18  ;;  %v6099_v56 = vpop.f32.mrf.mxu0  ;;  %v14351_v31 = vld [vmem:[#allocation44_spill] sm:$0xff] }
 0x251   :  { %v6212_v21 = vpop.f32.mrf.mxu1  ;;  %v12735_v26 = vadd.f32 %v6210_v55, %v6098_v12  ;;  %v6100_v7 = vadd.f32 %v6099_v56, %v12610_v63  ;;  %6932 = vmatpush2.bf16.msra.mxu0 %v10924_v49  ;;  %v10936_v63 = vld [vmem:[#allocation5 + $0x508] ss:$16 sps:$4 sm:$0xff]   ;;  %v10944_v55 = vld [vmem:[#allocation5 + $0x8ec] ss:$16 sps:$4 sm:$0xff]  }
 0x252   :  { %7045 = vmatpush2.bf16.msra.mxu1 %v10927_v45  ;;  %v6101_v28 = vpop.f32.mrf.mxu0  ;;  %6933 = vmatprep.subr.bf16.mxu0 %v10932_v47  ;;  %v14353_v12 = vld [vmem:[#allocation46_spill] sm:$0xff] }
 0x253   :  { %v6214_v44 = vpop.f32.mrf.mxu1  ;;  %7046 = vmatprep.subr.bf16.mxu1 %v10935_v50  ;;  %v12738_v58 = vadd.f32 %v6212_v21, %v6100_v7  ;;  %v6102_v33 = vadd.f32 %v6101_v28, %v12615_v41  ;;  %v10947_v41 = vld [vmem:[#allocation5 + $0xaec] ss:$16 sps:$4 sm:$0xff]   ;;  %v10945_v7 = vld [vmem:[#allocation5 + $0xae8] ss:$16 sps:$4 sm:$0xff]  }
 0x254   :  { %v6105_v3 = vpop.f32.mrf.mxu0  ;;  %6782 = vmatmul.mubr.bf16.gmra.mxu0 %v14351_v31  ;;  %v14356_v31 = vld [vmem:[#allocation49_spill] sm:$0xff] }
 0x255   :  { %v6218_v39 = vpop.f32.mrf.mxu1  ;;  %6895 = vmatmul.mubr.bf16.gmra.mxu1 %v14352_v22  ;;  %v12743_v34 = vadd.f32 %v6214_v44, %v6102_v33  ;;  %v6106_v49 = vadd.f32 %v6105_v3, %v12618_v1  ;;  %6934 = vmatpush2.bf16.msra.mxu0 %v10930_v61  ;;  %v10942_v1 = vld [vmem:[#allocation5 + $0x8e8] ss:$16 sps:$4 sm:$0xff]   ;;  %v10950_v44 = vld [vmem:[#allocation5 + $0x8cc] ss:$16 sps:$4 sm:$0xff]  }
 0x256   :  { %7047 = vmatpush2.bf16.msra.mxu1 %v10933_v6  ;;  %v6107_v45 = vpop.f32.mrf.mxu0  ;;  %6935 = vmatprep.subr.bf16.mxu0 %v10938_v36 }
 0x257   :  { %v6220_v13 = vpop.f32.mrf.mxu1  ;;  %7048 = vmatprep.subr.bf16.mxu1 %v10941_v62  ;;  %v12746_v47 = vadd.f32 %v6218_v39, %v6106_v49  ;;  %v6108_v50 = vadd.f32 %v6107_v45, %v12623_v20  ;;  %6937 = vmatprep.mubr.bf16.mxu0 %v14353_v12  ;;  %v10953_v20 = vld [vmem:[#allocation5 + $0xacc] ss:$16 sps:$4 sm:$0xff]   ;;  %v10951_v49 = vld [vmem:[#allocation5 + $0xac8] ss:$16 sps:$4 sm:$0xff]   ;;  %v14358_v12 = vld [vmem:[#allocation51_spill] sm:$0xff] }
 0x258   :  { %7050 = vmatprep.mubr.bf16.mxu1 %v14354_v46  ;;  %v6109_v18 = vpop.f32.mrf.mxu0  ;;  %v14355_v39 = vld [vmem:[#allocation48_spill] sm:$0xff] }
 0x259   :  { %v6222_v56 = vpop.f32.mrf.mxu1  ;;  %v12751_v21 = vadd.f32 %v6220_v13, %v6108_v50  ;;  %v6110_v61 = vadd.f32 %v6109_v18, %v12626_v42  ;;  %6936 = vmatpush2.bf16.msra.mxu0 %v10936_v63  ;;  %v10948_v42 = vld [vmem:[#allocation5 + $0x8c8] ss:$16 sps:$4 sm:$0xff]   ;;  %v10956_v13 = vld [vmem:[#allocation5 + $0x8ac] ss:$16 sps:$4 sm:$0xff]  }
 0x25a   :  { %7049 = vmatpush2.bf16.msra.mxu1 %v10939_v11  ;;  %v6111_v6 = vpop.f32.mrf.mxu0  ;;  %7131 = vmatprep.subr.bf16.mxu0 %v10944_v55  ;;  %v14357_v50 = vld [vmem:[#allocation50_spill] sm:$0xff] }
 0x25b   :  { %v6224_v28 = vpop.f32.mrf.mxu1  ;;  %7244 = vmatprep.subr.bf16.mxu1 %v10947_v41  ;;  %v12754_v36 = vadd.f32 %v6222_v56, %v6110_v61  ;;  %v6112_v62 = vadd.f32 %v6111_v6, %v12631_v57  ;;  %v10959_v57 = vld [vmem:[#allocation5 + $0xaac] ss:$16 sps:$4 sm:$0xff]   ;;  %v10957_v61 = vld [vmem:[#allocation5 + $0xaa8] ss:$16 sps:$4 sm:$0xff]  }
 0x25c   :  { %v6261_v33 = vpop.f32.mrf.mxu0  ;;  %6938 = vmatmul.mubr.bf16.vlgmr.msra.gmra.mxu0 %v14355_v39  ;;  %v14360_v39 = vld [vmem:[#allocation53_spill] sm:$0xff] }
 0x25d   :  { %v6374_v3 = vpop.f32.mrf.mxu1  ;;  %7051 = vmatmul.mubr.bf16.vlgmr.msra.gmra.mxu1 %v14356_v31  ;;  %v12759_v22 = vadd.f32 %v6224_v28, %v6112_v62  ;;  %v6262_v63 = vadd.f32 %v6261_v33, %v12634_v37  ;;  %7132 = vmatpush1.bf16.msra.mxu0 %v10942_v1  ;;  %v10954_v37 = vld [vmem:[#allocation5 + $0x8a8] ss:$16 sps:$4 sm:$0xff]   ;;  %v10962_v28 = vld [vmem:[#allocation5 + $0x88c] ss:$16 sps:$4 sm:$0xff]  }
 0x25e   :  { %7245 = vmatpush1.bf16.msra.mxu1 %v10945_v7  ;;  %v6263_v11 = vpop.f32.mrf.mxu0  ;;  %7133 = vmatprep.subr.bf16.mxu0 %v10950_v44 }
 0x25f   :  { %v6376_v45 = vpop.f32.mrf.mxu1  ;;  %7246 = vmatprep.subr.bf16.mxu1 %v10953_v20  ;;  %v12762_v55 = vadd.f32 %v6374_v3, %v6262_v63  ;;  %v6264_v41 = vadd.f32 %v6263_v11, %v12639_v60  ;;  %6947 = vmatprep.mubr.bf16.mxu0 %v14357_v50  ;;  %v10965_v60 = vld [vmem:[#allocation5 + $0xa8c] ss:$16 sps:$4 sm:$0xff]   ;;  %v10963_v63 = vld [vmem:[#allocation5 + $0xa88] ss:$16 sps:$4 sm:$0xff]   ;;  %v14362_v50 = vld [vmem:[#allocation55_spill] sm:$0xff] }
 0x260   :  { %7060 = vmatprep.mubr.bf16.mxu1 %v14358_v12  ;;  %v6265_v46 = vpop.f32.mrf.mxu0  ;;  %v14359_v3 = vld [vmem:[#allocation52_spill] sm:$0xff] }
 0x261   :  { %v6378_v18 = vpop.f32.mrf.mxu1  ;;  %v12767_v56 = vadd.f32 %v6376_v45, %v6264_v41  ;;  %v6266_v1 = vadd.f32 %v6265_v46, %v12642_v9  ;;  %7134 = vmatpush1.bf16.msra.mxu0 %v10948_v42  ;;  %v10960_v9 = vld [vmem:[#allocation5 + $0x888] ss:$16 sps:$4 sm:$0xff]   ;;  %v10968_v45 = vld [vmem:[#allocation5 + $0x86c] ss:$16 sps:$4 sm:$0xff]  }
 0x262   :  { %7247 = vmatpush1.bf16.msra.mxu1 %v10951_v49  ;;  %v6267_v7 = vpop.f32.mrf.mxu0  ;;  %7135 = vmatprep.subr.bf16.mxu0 %v10956_v13  ;;  %v14361_v41 = vld [vmem:[#allocation54_spill] sm:$0xff] }
 0x263   :  { %v6380_v6 = vpop.f32.mrf.mxu1  ;;  %7248 = vmatprep.subr.bf16.mxu1 %v10959_v57  ;;  %v12770_v44 = vadd.f32 %v6378_v18, %v6266_v1  ;;  %v6268_v20 = vadd.f32 %v6267_v7, %v12647_v53  ;;  %v10971_v53 = vld [vmem:[#allocation5 + $0xa6c] ss:$16 sps:$4 sm:$0xff]   ;;  %v10969_v1 = vld [vmem:[#allocation5 + $0xa68] ss:$16 sps:$4 sm:$0xff]  }
 0x264   :  { %v6271_v62 = vpop.f32.mrf.mxu0  ;;  %6948 = vmatmul.mubr.bf16.gmra.mxu0 %v14359_v3  ;;  %v14364_v3 = vld [vmem:[#allocation57_spill] sm:$0xff] }
 0x265   :  { %v6384_v33 = vpop.f32.mrf.mxu1  ;;  %7061 = vmatmul.mubr.bf16.gmra.mxu1 %v14360_v39  ;;  %v12775_v31 = vadd.f32 %v6380_v6, %v6268_v20  ;;  %v6272_v42 = vadd.f32 %v6271_v62, %v12650_v30  ;;  %7136 = vmatpush1.bf16.msra.mxu0 %v10954_v37  ;;  %v10966_v30 = vld [vmem:[#allocation5 + $0x868] ss:$16 sps:$4 sm:$0xff]   ;;  %v10974_v6 = vld [vmem:[#allocation5 + $0x84c] ss:$16 sps:$4 sm:$0xff]  }
 0x266   :  { %7249 = vmatpush1.bf16.msra.mxu1 %v10957_v61  ;;  %v6273_v49 = vpop.f32.mrf.mxu0  ;;  %7137 = vmatprep.subr.bf16.mxu0 %v10962_v28 }
 0x267   :  { %v6386_v11 = vpop.f32.mrf.mxu1  ;;  %7250 = vmatprep.subr.bf16.mxu1 %v10965_v60  ;;  %v12778_v13 = vadd.f32 %v6384_v33, %v6272_v42  ;;  %v6274_v57 = vadd.f32 %v6273_v49, %v12655_v8  ;;  %6957 = vmatprep.mubr.bf16.mxu0 %v14361_v41  ;;  %v10977_v8 = vld [vmem:[#allocation5 + $0xa4c] ss:$16 sps:$4 sm:$0xff]   ;;  %v10975_v42 = vld [vmem:[#allocation5 + $0xa48] ss:$16 sps:$4 sm:$0xff]   ;;  %v14366_v41 = vld [vmem:[#allocation59_spill] sm:$0xff] }
 0x268   :  { %7070 = vmatprep.mubr.bf16.mxu1 %v14362_v50  ;;  %v6275_v12 = vpop.f32.mrf.mxu0  ;;  %v14363_v33 = vld [vmem:[#allocation56_spill] sm:$0xff] }
 0x269   :  { %v6388_v46 = vpop.f32.mrf.mxu1  ;;  %v12783_v18 = vadd.f32 %v6386_v11, %v6274_v57  ;;  %v6276_v37 = vadd.f32 %v6275_v12, %v12658_v52  ;;  %7138 = vmatpush1.bf16.msra.mxu0 %v10960_v9  ;;  %v10972_v52 = vld [vmem:[#allocation5 + $0x848] ss:$16 sps:$4 sm:$0xff]   ;;  %v10980_v11 = vld [vmem:[#allocation5 + $0x82c] ss:$16 sps:$4 sm:$0xff]  }
 0x26a   :  { %7251 = vmatpush1.bf16.msra.mxu1 %v10963_v63  ;;  %v6277_v61 = vpop.f32.mrf.mxu0  ;;  %7139 = vmatprep.subr.bf16.mxu0 %v10968_v45  ;;  %v14365_v57 = vld [vmem:[#allocation58_spill] sm:$0xff] }
 0x26b   :  { %v6390_v7 = vpop.f32.mrf.mxu1  ;;  %7252 = vmatprep.subr.bf16.mxu1 %v10971_v53  ;;  %v12786_v28 = vadd.f32 %v6388_v46, %v6276_v37  ;;  %v6278_v60 = vadd.f32 %v6277_v61, %v12663_v10  ;;  %v10983_v10 = vld [vmem:[#allocation5 + $0xa2c] ss:$16 sps:$4 sm:$0xff]   ;;  %v10981_v37 = vld [vmem:[#allocation5 + $0xa28] ss:$16 sps:$4 sm:$0xff]  }
 0x26c   :  { %v6281_v20 = vpop.f32.mrf.mxu0  ;;  %6958 = vmatmul.mubr.bf16.gmra.mxu0 %v14363_v33  ;;  %v14368_v33 = vld [vmem:[#allocation61_spill] sm:$0xff] }
 0x26d   :  { %v6394_v62 = vpop.f32.mrf.mxu1  ;;  %7071 = vmatmul.mubr.bf16.gmra.mxu1 %v14364_v3  ;;  %v12791_v39 = vadd.f32 %v6390_v7, %v6278_v60  ;;  %v6282_v9 = vadd.f32 %v6281_v20, %v12666_v2  ;;  %7140 = vmatpush1.bf16.msra.mxu0 %v10966_v30  ;;  %v10978_v2 = vld [vmem:[#allocation5 + $0x828] ss:$16 sps:$4 sm:$0xff]   ;;  %v10986_v7 = vld [vmem:[#allocation5 + $0x80c] ss:$16 sps:$4 sm:$0xff]  }
 0x26e   :  { %7253 = vmatpush1.bf16.msra.mxu1 %v10969_v1  ;;  %v6283_v63 = vpop.f32.mrf.mxu0  ;;  %7141 = vmatprep.subr.bf16.mxu0 %v10974_v6 }
 0x26f   :  { %v6396_v49 = vpop.f32.mrf.mxu1  ;;  %7254 = vmatprep.subr.bf16.mxu1 %v10977_v8  ;;  %v12794_v45 = vadd.f32 %v6394_v62, %v6282_v9  ;;  %v6284_v53 = vadd.f32 %v6283_v63, %v12671_v17  ;;  %6967 = vmatprep.mubr.bf16.mxu0 %v14365_v57  ;;  %v10989_v17 = vld [vmem:[#allocation5 + $0xa0c] ss:$16 sps:$4 sm:$0xff]   ;;  %v10987_v9 = vld [vmem:[#allocation5 + $0xa08] ss:$16 sps:$4 sm:$0xff]   ;;  %v14370_v57 = vld [vmem:[#allocation63_spill] sm:$0xff] }
 0x270   :  { %7080 = vmatprep.mubr.bf16.mxu1 %v14366_v41  ;;  %v6285_v50 = vpop.f32.mrf.mxu0  ;;  %v14367_v62 = vld [vmem:[#allocation60_spill] sm:$0xff] }
 0x271   :  { %v6398_v12 = vpop.f32.mrf.mxu1  ;;  %v12799_v46 = vadd.f32 %v6396_v49, %v6284_v53  ;;  %v6286_v30 = vadd.f32 %v6285_v50, %v12674_v25  ;;  %7142 = vmatpush1.bf16.msra.mxu0 %v10972_v52  ;;  %v10984_v25 = vld [vmem:[#allocation5 + $0x808] ss:$16 sps:$4 sm:$0xff]   ;;  %v10992_v49 = vld [vmem:[#allocation5 + $0x9ec] ss:$16 sps:$4 sm:$0xff]  }
 0x272   :  { %7255 = vmatpush1.bf16.msra.mxu1 %v10975_v42  ;;  %v6287_v1 = vpop.f32.mrf.mxu0  ;;  %7143 = vmatprep.subr.bf16.mxu0 %v10980_v11  ;;  %v14369_v53 = vld [vmem:[#allocation62_spill] sm:$0xff] }
 0x273   :  { %v6400_v61 = vpop.f32.mrf.mxu1  ;;  %7256 = vmatprep.subr.bf16.mxu1 %v10983_v10  ;;  %v12802_v6 = vadd.f32 %v6398_v12, %v6286_v30  ;;  %v6288_v8 = vadd.f32 %v6287_v1, %v12679_v32  ;;  %v10995_v32 = vld [vmem:[#allocation5 + $0xbec] ss:$16 sps:$4 sm:$0xff]   ;;  %v10993_v30 = vld [vmem:[#allocation5 + $0xbe8] ss:$16 sps:$4 sm:$0xff]  }
 0x274   :  { %v6291_v60 = vpop.f32.mrf.mxu0  ;;  %6968 = vmatmul.mubr.bf16.gmra.mxu0 %v14367_v62  ;;  %v14372_v62 = vld [vmem:[#allocation65_spill] sm:$0xff] }
 0x275   :  { %v6404_v20 = vpop.f32.mrf.mxu1  ;;  %7081 = vmatmul.mubr.bf16.gmra.mxu1 %v14368_v33  ;;  %v12807_v3 = vadd.f32 %v6400_v61, %v6288_v8  ;;  %v6292_v52 = vadd.f32 %v6291_v60, %v12682_v27  ;;  %7144 = vmatpush1.bf16.msra.mxu0 %v10978_v2  ;;  %v10990_v27 = vld [vmem:[#allocation5 + $0x9e8] ss:$16 sps:$4 sm:$0xff]   ;;  %v10998_v61 = vld [vmem:[#allocation5 + $0x9cc] ss:$16 sps:$4 sm:$0xff]  }
 0x276   :  { %7257 = vmatpush1.bf16.msra.mxu1 %v10981_v37  ;;  %v6293_v42 = vpop.f32.mrf.mxu0  ;;  %7145 = vmatprep.subr.bf16.mxu0 %v10986_v7 }
 0x277   :  { %v6406_v63 = vpop.f32.mrf.mxu1  ;;  %7258 = vmatprep.subr.bf16.mxu1 %v10989_v17  ;;  %v12810_v11 = vadd.f32 %v6404_v20, %v6292_v52  ;;  %v6294_v10 = vadd.f32 %v6293_v42, %v12687_v16  ;;  %6977 = vmatprep.mubr.bf16.mxu0 %v14369_v53  ;;  %v11001_v16 = vld [vmem:[#allocation5 + $0xbcc] ss:$16 sps:$4 sm:$0xff]   ;;  %v10999_v52 = vld [vmem:[#allocation5 + $0xbc8] ss:$16 sps:$4 sm:$0xff]   ;;  %v14374_v53 = vld [vmem:[#allocation67_spill] sm:$0xff] }
 0x278   :  { %7090 = vmatprep.mubr.bf16.mxu1 %v14370_v57  ;;  %v6295_v41 = vpop.f32.mrf.mxu0  ;;  %v14371_v20 = vld [vmem:[#allocation64_spill] sm:$0xff] }
 0x279   :  { %v6408_v50 = vpop.f32.mrf.mxu1  ;;  %v12815_v12 = vadd.f32 %v6406_v63, %v6294_v10  ;;  %v6296_v2 = vadd.f32 %v6295_v41, %v12690_v14  ;;  %7146 = vmatpush1.bf16.msra.mxu0 %v10984_v25  ;;  %v10996_v14 = vld [vmem:[#allocation5 + $0x9c8] ss:$16 sps:$4 sm:$0xff]   ;;  %v11004_v63 = vld [vmem:[#allocation5 + $0x9ac] ss:$16 sps:$4 sm:$0xff]  }
 0x27a   :  { %7259 = vmatpush1.bf16.msra.mxu1 %v10987_v9  ;;  %v6297_v37 = vpop.f32.mrf.mxu0  ;;  %7147 = vmatprep.subr.bf16.mxu0 %v10992_v49  ;;  %v14373_v10 = vld [vmem:[#allocation66_spill] sm:$0xff] }
 0x27b   :  { %v6410_v1 = vpop.f32.mrf.mxu1  ;;  %7260 = vmatprep.subr.bf16.mxu1 %v10995_v32  ;;  %v12818_v7 = vadd.f32 %v6408_v50, %v6296_v2  ;;  %v6298_v17 = vadd.f32 %v6297_v37, %v12695_v5  ;;  %v11007_v5 = vld [vmem:[#allocation5 + $0xbac] ss:$16 sps:$4 sm:$0xff]   ;;  %v11005_v2 = vld [vmem:[#allocation5 + $0xba8] ss:$16 sps:$4 sm:$0xff]  }
 0x27c   :  { %v6301_v8 = vpop.f32.mrf.mxu0  ;;  %6978 = vmatmul.mubr.bf16.gmra.mxu0 %v14371_v20  ;;  %v14376_v20 = vld [vmem:[#allocation69_spill] sm:$0xff] }
 0x27d   :  { %v6414_v60 = vpop.f32.mrf.mxu1  ;;  %7091 = vmatmul.mubr.bf16.gmra.mxu1 %v14372_v62  ;;  %v12823_v33 = vadd.f32 %v6410_v1, %v6298_v17  ;;  %v6302_v25 = vadd.f32 %v6301_v8, %v12698_v51  ;;  %7148 = vmatpush2.bf16.msra.mxu0 %v10990_v27  ;;  %v11002_v51 = vld [vmem:[#allocation5 + $0x9a8] ss:$16 sps:$4 sm:$0xff]   ;;  %v11010_v1 = vld [vmem:[#allocation5 + $0x98c] ss:$16 sps:$4 sm:$0xff]  }
 0x27e   :  { %7261 = vmatpush2.bf16.msra.mxu1 %v10993_v30  ;;  %v6303_v9 = vpop.f32.mrf.mxu0  ;;  %7149 = vmatprep.subr.bf16.mxu0 %v10998_v61 }
 0x27f   :  { %v6416_v42 = vpop.f32.mrf.mxu1  ;;  %7262 = vmatprep.subr.bf16.mxu1 %v11001_v16  ;;  %v12826_v49 = vadd.f32 %v6414_v60, %v6302_v25  ;;  %v6304_v32 = vadd.f32 %v6303_v9, %v12703_v35  ;;  %6987 = vmatprep.mubr.bf16.mxu0 %v14373_v10  ;;  %v11013_v35 = vld [vmem:[#allocation5 + $0xb8c] ss:$16 sps:$4 sm:$0xff]   ;;  %v11011_v25 = vld [vmem:[#allocation5 + $0xb88] ss:$16 sps:$4 sm:$0xff]   ;;  %v14378_v10 = vld [vmem:[#allocation71_spill] sm:$0xff] }
 0x280   :  { %7100 = vmatprep.mubr.bf16.mxu1 %v14374_v53  ;;  %v6305_v57 = vpop.f32.mrf.mxu0  ;;  %v14375_v60 = vld [vmem:[#allocation68_spill] sm:$0xff] }
 0x281   :  { %v6418_v41 = vpop.f32.mrf.mxu1  ;;  %v12831_v50 = vadd.f32 %v6416_v42, %v6304_v32  ;;  %v6306_v27 = vadd.f32 %v6305_v57, %v12706_v15  ;;  %7150 = vmatpush2.bf16.msra.mxu0 %v10996_v14  ;;  %v11008_v15 = vld [vmem:[#allocation5 + $0x988] ss:$16 sps:$4 sm:$0xff]   ;;  %v11016_v42 = vld [vmem:[#allocation5 + $0x96c] ss:$16 sps:$4 sm:$0xff]  }
 0x282   :  { %7263 = vmatpush2.bf16.msra.mxu1 %v10999_v52  ;;  %v6307_v30 = vpop.f32.mrf.mxu0  ;;  %7151 = vmatprep.subr.bf16.mxu0 %v11004_v63  ;;  %v14377_v32 = vld [vmem:[#allocation70_spill] sm:$0xff] }
 0x283   :  { %v6420_v37 = vpop.f32.mrf.mxu1  ;;  %7264 = vmatprep.subr.bf16.mxu1 %v11007_v5  ;;  %v12834_v61 = vadd.f32 %v6418_v41, %v6306_v27  ;;  %v6308_v16 = vadd.f32 %v6307_v30, %v12711_v24  ;;  %v11019_v24 = vld [vmem:[#allocation5 + $0xb6c] ss:$16 sps:$4 sm:$0xff]   ;;  %v11017_v27 = vld [vmem:[#allocation5 + $0xb68] ss:$16 sps:$4 sm:$0xff]  }
 0x284   :  { %v6311_v17 = vpop.f32.mrf.mxu0  ;;  %6988 = vmatmul.mubr.bf16.gmra.mxu0 %v14375_v60  ;;  %v14380_v60 = vld [vmem:[#allocation73_spill] sm:$0xff] }
 0x285   :  { %v6424_v8 = vpop.f32.mrf.mxu1  ;;  %7101 = vmatmul.mubr.bf16.gmra.mxu1 %v14376_v20  ;;  %v12839_v62 = vadd.f32 %v6420_v37, %v6308_v16  ;;  %v6312_v14 = vadd.f32 %v6311_v17, %v12714_v48  ;;  %7152 = vmatpush2.bf16.msra.mxu0 %v11002_v51  ;;  %v11014_v48 = vld [vmem:[#allocation5 + $0x968] ss:$16 sps:$4 sm:$0xff]   ;;  %v11022_v37 = vld [vmem:[#allocation5 + $0x94c] ss:$16 sps:$4 sm:$0xff]  }
 0x286   :  { %7265 = vmatpush2.bf16.msra.mxu1 %v11005_v2  ;;  %v6313_v52 = vpop.f32.mrf.mxu0  ;;  %7153 = vmatprep.subr.bf16.mxu0 %v11010_v1 }
 0x287   :  { %v6426_v9 = vpop.f32.mrf.mxu1  ;;  %7266 = vmatprep.subr.bf16.mxu1 %v11013_v35  ;;  %v12842_v63 = vadd.f32 %v6424_v8, %v6312_v14  ;;  %v6314_v5 = vadd.f32 %v6313_v52, %v12719_v4  ;;  %6997 = vmatprep.mubr.bf16.mxu0 %v14377_v32  ;;  %v11025_v4 = vld [vmem:[#allocation5 + $0xb4c] ss:$16 sps:$4 sm:$0xff]   ;;  %v11023_v14 = vld [vmem:[#allocation5 + $0xb48] ss:$16 sps:$4 sm:$0xff]   ;;  %v14382_v32 = vld [vmem:[#allocation75_spill] sm:$0xff] }
 0x288   :  { %7110 = vmatprep.mubr.bf16.mxu1 %v14378_v10  ;;  %v6315_v53 = vpop.f32.mrf.mxu0  ;;  %v14379_v8 = vld [vmem:[#allocation72_spill] sm:$0xff] }
 0x289   :  { %v6428_v57 = vpop.f32.mrf.mxu1  ;;  %v12847_v41 = vadd.f32 %v6426_v9, %v6314_v5  ;;  %v6316_v51 = vadd.f32 %v6315_v53, %v12722_v0  ;;  %7154 = vmatpush2.bf16.msra.mxu0 %v11008_v15  ;;  %v11020_v0 = vld [vmem:[#allocation5 + $0x948] ss:$16 sps:$4 sm:$0xff]   ;;  %v11028_v9 = vld [vmem:[#allocation5 + $0x92c] ss:$16 sps:$4 sm:$0xff]  }
 0x28a   :  { %7267 = vmatpush2.bf16.msra.mxu1 %v11011_v25  ;;  %v6317_v2 = vpop.f32.mrf.mxu0  ;;  %7155 = vmatprep.subr.bf16.mxu0 %v11016_v42  ;;  %v14381_v5 = vld [vmem:[#allocation74_spill] sm:$0xff] }
 0x28b   :  { %v6430_v30 = vpop.f32.mrf.mxu1  ;;  %7268 = vmatprep.subr.bf16.mxu1 %v11019_v24  ;;  %v12850_v1 = vadd.f32 %v6428_v57, %v6316_v51  ;;  %v6318_v35 = vadd.f32 %v6317_v2, %v12727_v23  ;;  %v11031_v23 = vld [vmem:[#allocation5 + $0xb2c] ss:$16 sps:$4 sm:$0xff]   ;;  %v11029_v51 = vld [vmem:[#allocation5 + $0xb28] ss:$16 sps:$4 sm:$0xff]  }
 0x28c   :  { %v6321_v16 = vpop.f32.mrf.mxu0  ;;  %6998 = vmatmul.mubr.bf16.gmra.mxu0 %v14379_v8  ;;  %v14384_v8 = vld [vmem:[#allocation77_spill] sm:$0xff] }
 0x28d   :  { %v6434_v17 = vpop.f32.mrf.mxu1  ;;  %7111 = vmatmul.mubr.bf16.gmra.mxu1 %v14380_v60  ;;  %v12855_v20 = vadd.f32 %v6430_v30, %v6318_v35  ;;  %v6322_v15 = vadd.f32 %v6321_v16, %v12730_v54  ;;  %7156 = vmatpush2.bf16.msra.mxu0 %v11014_v48  ;;  %v11026_v54 = vld [vmem:[#allocation5 + $0x928] ss:$16 sps:$4 sm:$0xff]   ;;  %v11034_v30 = vld [vmem:[#allocation5 + $0x90c] ss:$16 sps:$4 sm:$0xff]  }
 0x28e   :  { %7269 = vmatpush2.bf16.msra.mxu1 %v11017_v27  ;;  %v6323_v25 = vpop.f32.mrf.mxu0  ;;  %7157 = vmatprep.subr.bf16.mxu0 %v11022_v37 }
 0x28f   :  { %v6436_v52 = vpop.f32.mrf.mxu1  ;;  %7270 = vmatprep.subr.bf16.mxu1 %v11025_v4  ;;  %v12858_v42 = vadd.f32 %v6434_v17, %v6322_v15  ;;  %v6324_v24 = vadd.f32 %v6323_v25, %v12735_v26  ;;  %7007 = vmatprep.mubr.bf16.mxu0 %v14381_v5  ;;  %v11037_v26 = vld [vmem:[#allocation5 + $0xb0c] ss:$16 sps:$4 sm:$0xff]   ;;  %v11035_v15 = vld [vmem:[#allocation5 + $0xb08] ss:$16 sps:$4 sm:$0xff]   ;;  %v14386_v5 = vld [vmem:[#allocation79_spill] sm:$0xff] }
 0x290   :  { %7120 = vmatprep.mubr.bf16.mxu1 %v14382_v32  ;;  %v6325_v10 = vpop.f32.mrf.mxu0  ;;  %v14383_v17 = vld [vmem:[#allocation76_spill] sm:$0xff] }
 0x291   :  { %v6438_v53 = vpop.f32.mrf.mxu1  ;;  %v12863_v57 = vadd.f32 %v6436_v52, %v6324_v24  ;;  %v6326_v48 = vadd.f32 %v6325_v10, %v12738_v58  ;;  %7158 = vmatpush2.bf16.msra.mxu0 %v11020_v0  ;;  %v11032_v58 = vld [vmem:[#allocation5 + $0x908] ss:$16 sps:$4 sm:$0xff]   ;;  %v11040_v52 = vld [vmem:[#allocation5 + $0xcec] ss:$16 sps:$4 sm:$0xff]  }
 0x292   :  { %7271 = vmatpush2.bf16.msra.mxu1 %v11023_v14  ;;  %v6327_v27 = vpop.f32.mrf.mxu0  ;;  %7159 = vmatprep.subr.bf16.mxu0 %v11028_v9  ;;  %v14385_v24 = vld [vmem:[#allocation78_spill] sm:$0xff] }
 0x293   :  { %v6440_v2 = vpop.f32.mrf.mxu1  ;;  %7272 = vmatprep.subr.bf16.mxu1 %v11031_v23  ;;  %v12866_v37 = vadd.f32 %v6438_v53, %v6326_v48  ;;  %v6328_v4 = vadd.f32 %v6327_v27, %v12743_v34  ;;  %v11043_v34 = vld [vmem:[#allocation5 + $0xeec] ss:$16 sps:$4 sm:$0xff]   ;;  %v11041_v48 = vld [vmem:[#allocation5 + $0xee8] ss:$16 sps:$4 sm:$0xff]  }
 0x294   :  { %v6331_v35 = vpop.f32.mrf.mxu0  ;;  %7008 = vmatmul.mubr.bf16.gmra.mxu0 %v14383_v17  ;;  %v14388_v17 = vld [vmem:[#allocation81_spill] sm:$0xff] }
 0x295   :  { %v6444_v16 = vpop.f32.mrf.mxu1  ;;  %7121 = vmatmul.mubr.bf16.gmra.mxu1 %v14384_v8  ;;  %v12871_v60 = vadd.f32 %v6440_v2, %v6328_v4  ;;  %v6332_v0 = vadd.f32 %v6331_v35, %v12746_v47  ;;  %7160 = vmatpush2.bf16.msra.mxu0 %v11026_v54  ;;  %v11038_v47 = vld [vmem:[#allocation5 + $0xce8] ss:$16 sps:$4 sm:$0xff]   ;;  %v11046_v2 = vld [vmem:[#allocation5 + $0xccc] ss:$16 sps:$4 sm:$0xff]  }
 0x296   :  { %7273 = vmatpush2.bf16.msra.mxu1 %v11029_v51  ;;  %v6333_v14 = vpop.f32.mrf.mxu0  ;;  %7161 = vmatprep.subr.bf16.mxu0 %v11034_v30 }
 0x297   :  { %v6446_v25 = vpop.f32.mrf.mxu1  ;;  %7274 = vmatprep.subr.bf16.mxu1 %v11037_v26  ;;  %v12874_v9 = vadd.f32 %v6444_v16, %v6332_v0  ;;  %v6334_v23 = vadd.f32 %v6333_v14, %v12751_v21  ;;  %7163 = vmatprep.mubr.bf16.mxu0 %v14385_v24  ;;  %v11049_v21 = vld [vmem:[#allocation5 + $0xecc] ss:$16 sps:$4 sm:$0xff]   ;;  %v11047_v0 = vld [vmem:[#allocation5 + $0xec8] ss:$16 sps:$4 sm:$0xff]   ;;  %v14390_v24 = vld [vmem:[#allocation83_spill] sm:$0xff] }
 0x298   :  { %7276 = vmatprep.mubr.bf16.mxu1 %v14386_v5  ;;  %v6335_v32 = vpop.f32.mrf.mxu0  ;;  %v14387_v16 = vld [vmem:[#allocation80_spill] sm:$0xff] }
 0x299   :  { %v6448_v10 = vpop.f32.mrf.mxu1  ;;  %v12879_v53 = vadd.f32 %v6446_v25, %v6334_v23  ;;  %v6336_v54 = vadd.f32 %v6335_v32, %v12754_v36  ;;  %7162 = vmatpush2.bf16.msra.mxu0 %v11032_v58  ;;  %v11044_v36 = vld [vmem:[#allocation5 + $0xcc8] ss:$16 sps:$4 sm:$0xff]   ;;  %v11052_v25 = vld [vmem:[#allocation5 + $0xcac] ss:$16 sps:$4 sm:$0xff]  }
 0x29a   :  { %7275 = vmatpush2.bf16.msra.mxu1 %v11035_v15  ;;  %v6337_v51 = vpop.f32.mrf.mxu0  ;;  %7357 = vmatprep.subr.bf16.mxu0 %v11040_v52  ;;  %v14389_v23 = vld [vmem:[#allocation82_spill] sm:$0xff] }
 0x29b   :  { %v6450_v27 = vpop.f32.mrf.mxu1  ;;  %7470 = vmatprep.subr.bf16.mxu1 %v11043_v34  ;;  %v12882_v30 = vadd.f32 %v6448_v10, %v6336_v54  ;;  %v6338_v26 = vadd.f32 %v6337_v51, %v12759_v22  ;;  %v11055_v22 = vld [vmem:[#allocation5 + $0xeac] ss:$16 sps:$4 sm:$0xff]   ;;  %v11050_v10 = vld [vmem:[#allocation5 + $0xca8] ss:$16 sps:$4 sm:$0xff]  }
 0x29c   :  { %v6487_v4 = vpop.f32.mrf.mxu0  ;;  %7164 = vmatmul.mubr.bf16.vlgmr.msra.gmra.mxu0 %v14387_v16  ;;  %v11053_v54 = vld [vmem:[#allocation5 + $0xea8] ss:$16 sps:$4 sm:$0xff]   ;;  %v14392_v16 = vld [vmem:[#allocation85_spill] sm:$0xff] }
 0x29d   :  { %v6600_v35 = vpop.f32.mrf.mxu1  ;;  %7277 = vmatmul.mubr.bf16.vlgmr.msra.gmra.mxu1 %v14388_v17  ;;  %v12887_v8 = vadd.f32 %v6450_v27, %v6338_v26  ;;  %v6488_v58 = vadd.f32 %v6487_v4, %v12762_v55  ;;  %7358 = vmatpush1.bf16.msra.mxu0 %v11038_v47  ;;  %v11058_v27 = vld [vmem:[#allocation5 + $0xc8c] ss:$16 sps:$4 sm:$0xff]   ;;  %v11056_v17 = vld [vmem:[#allocation5 + $0xc88] ss:$16 sps:$4 sm:$0xff]  }
 0x29e   :  { %7471 = vmatpush1.bf16.msra.mxu1 %v11041_v48  ;;  %v6489_v15 = vpop.f32.mrf.mxu0  ;;  %7359 = vmatprep.subr.bf16.mxu0 %v11046_v2  ;;  %v11061_v2 = vld [vmem:[#allocation5 + $0xe8c] ss:$16 sps:$4 sm:$0xff]  }
 0x29f   :  { %v6602_v14 = vpop.f32.mrf.mxu1  ;;  %7472 = vmatprep.subr.bf16.mxu1 %v11049_v21  ;;  %v6601_v52 = vadd.f32 %v6600_v35, %v6488_v58  ;;  %v6490_v34 = vadd.f32 %v6489_v15, %v12767_v56  ;;  %7173 = vmatprep.mubr.bf16.mxu0 %v14389_v23  ;;  %v14391_v35 = vld [vmem:[#allocation84_spill] sm:$0xff] }
 0x2a0   :  { %7286 = vmatprep.mubr.bf16.mxu1 %v14390_v24  ;;  %v6491_v5 = vpop.f32.mrf.mxu0  ;;  %v11059_v15 = vld [vmem:[#allocation5 + $0xe88] ss:$16 sps:$4 sm:$0xff]  }
 0x2a1   :  { %v6604_v32 = vpop.f32.mrf.mxu1  ;;  %v6603_v55 = vadd.f32 %v6602_v14, %v6490_v34  ;;  %v6492_v47 = vadd.f32 %v6491_v5, %v12770_v44  ;;  %7360 = vmatpush1.bf16.msra.mxu0 %v11044_v36  ;;  %v8035_v44 = vmax.f32 %v6601_v52, 0.0  ;;  %v11067_v34 = vld [vmem:[#allocation5 + $0xe6c] ss:$16 sps:$4 sm:$0xff]  }
 0x2a2   :  { %7473 = vmatpush1.bf16.msra.mxu1 %v11047_v0  ;;  %v6493_v48 = vpop.f32.mrf.mxu0  ;;  %7361 = vmatprep.subr.bf16.mxu0 %v11052_v25 }
 0x2a3   :  { %v6606_v51 = vpop.f32.mrf.mxu1  ;;  %7474 = vmatprep.subr.bf16.mxu1 %v11055_v22  ;;  %v6605_v56 = vadd.f32 %v6604_v32, %v6492_v47  ;;  %v6494_v21 = vadd.f32 %v6493_v48, %v12775_v31  ;;  %v8036_v14 = vmax.f32 %v6603_v55, 0.0  ;;  %v11064_v31 = vld [vmem:[#allocation5 + $0xc6c] ss:$16 sps:$4 sm:$0xff]   ;;  %v14394_v47 = vld [vmem:[#allocation87_spill] sm:$0xff] }
 0x2a4   :  { %v6497_v26 = vpop.f32.mrf.mxu0  ;;  %7174 = vmatmul.mubr.bf16.gmra.mxu0 %v14391_v35  ;;  %v14393_v32 = vld [vmem:[#allocation86_spill] sm:$0xff] }
 0x2a5   :  { %v6610_v4 = vpop.f32.mrf.mxu1  ;;  %7287 = vmatmul.mubr.bf16.gmra.mxu1 %v14392_v16  ;;  %v8039_v36 = vmax.f32 %v6605_v56, 0.0  ;;  %v6607_v58 = vadd.f32 %v6606_v51, %v6494_v21  ;;  %v6498_v0 = vadd.f32 %v6497_v26, %v12778_v13  ;;  %7362 = vmatpush1.bf16.msra.mxu0 %v11050_v10  ;;  %v11065_v51 = vld [vmem:[#allocation5 + $0xe68] ss:$16 sps:$4 sm:$0xff]   ;;  %v11073_v21 = vld [vmem:[#allocation5 + $0xe4c] ss:$16 sps:$4 sm:$0xff]  }
 0x2a6   :  { %7475 = vmatpush1.bf16.msra.mxu1 %v11053_v54  ;;  %v6499_v25 = vpop.f32.mrf.mxu0  ;;  %7363 = vmatprep.subr.bf16.mxu0 %v11058_v27  ;;  %v11062_v54 = vld [vmem:[#allocation5 + $0xc68] ss:$16 sps:$4 sm:$0xff]  }
 0x2a7   :  { %v6612_v22 = vpop.f32.mrf.mxu1  ;;  %7476 = vmatprep.subr.bf16.mxu1 %v11061_v2  ;;  %v12898_v23 = vpack.c.bf16 %v8039_v36, %v8035_v44  ;;  %v8040_v24 = vmax.f32 %v6607_v58, 0.0  ;;  %v6611_v5 = vadd.f32 %v6610_v4, %v6498_v0  ;;  %v6500_v52 = vadd.f32 %v6499_v25, %v12783_v18  ;;  %7183 = vmatprep.mubr.bf16.mxu0 %v14393_v32  ;;  %v11070_v18 = vld [vmem:[#allocation5 + $0xc4c] ss:$16 sps:$4 sm:$0xff]   ;;  %v14396_v36 = vld [vmem:[#allocation89_spill] sm:$0xff] }
 0x2a8   :  { %7296 = vmatprep.mubr.bf16.mxu1 %v14394_v47  ;;  %v6501_v13 = vpop.f32.mrf.mxu0  ;;  %v14395_v44 = vld [vmem:[#allocation88_spill] sm:$0xff]  ;;  %v14397_v47 = vld [vmem:[#allocation90_spill] sm:$0xff] }
 0x2a9   :  { %v6614_v10 = vpop.f32.mrf.mxu1  ;;  %v6613_v55 = vadd.f32 %v6612_v22, %v6500_v52  ;;  %v6502_v48 = vadd.f32 %v6501_v13, %v12786_v28  ;;  %7364 = vmatpush1.bf16.msra.mxu0 %v11056_v17  ;;  %v12904_v27 = vpack.c.bf16 %v8040_v24, %v8036_v14  ;;  %v11068_v28 = vld [vmem:[#allocation5 + $0xc48] ss:$16 sps:$4 sm:$0xff]   ;;  %v8043_v17 = vmax.f32 %v6611_v5, 0.0  ;;  %v14398_v13 = vld [vmem:[#allocation91_spill] sm:$0xff] }
 0x2aa   :  { %7477 = vmatpush1.bf16.msra.mxu1 %v11059_v15  ;;  %v6503_v2 = vpop.f32.mrf.mxu0  ;;  %7365 = vmatprep.subr.bf16.mxu0 %v11064_v31  ;;  %v11071_v14 = vld [vmem:[#allocation5 + $0xe48] ss:$16 sps:$4 sm:$0xff]  }
 0x2ab   :  { %v6616_v56 = vpop.f32.mrf.mxu1  ;;  %7478 = vmatprep.subr.bf16.mxu1 %v11067_v34  ;;  %v6615_v26 = vadd.f32 %v6614_v10, %v6502_v48  ;;  %v6504_v4 = vadd.f32 %v6503_v2, %v12791_v39  ;;  %v8044_v25 = vmax.f32 %v6613_v55, 0.0  ;;  %v11076_v39 = vld [vmem:[#allocation5 + $0xc2c] ss:$16 sps:$4 sm:$0xff]  }
 0x2ac   :  { %v6507_v35 = vpop.f32.mrf.mxu0  ;;  %7184 = vmatmul.mubr.bf16.gmra.mxu0 %v14395_v44  ;;  %v11079_v34 = vld [vmem:[#allocation5 + $0xe2c] ss:$16 sps:$4 sm:$0xff]  }
 0x2ad   :  { %v6620_v16 = vpop.f32.mrf.mxu1  ;;  %7297 = vmatmul.mubr.bf16.gmra.mxu1 %v14396_v36  ;;  %v8047_v58 = vmax.f32 %v6615_v26, 0.0  ;;  %v6617_v0 = vadd.f32 %v6616_v56, %v6504_v4  ;;  %v6508_v15 = vadd.f32 %v6507_v35, %v12794_v45  ;;  %7366 = vmatpush1.bf16.msra.mxu0 %v11062_v54  ;;  %v11074_v54 = vld [vmem:[#allocation5 + $0xc28] ss:$16 sps:$4 sm:$0xff]   ;;  %v14400_v36 = vld [vmem:[#allocation93_spill] sm:$0xff] }
 0x2ae   :  { %7479 = vmatpush1.bf16.msra.mxu1 %v11065_v51  ;;  %v6509_v22 = vpop.f32.mrf.mxu0  ;;  %7367 = vmatprep.subr.bf16.mxu0 %v11070_v18  ;;  %v11077_v51 = vld [vmem:[#allocation5 + $0xe28] ss:$16 sps:$4 sm:$0xff]  }
 0x2af   :  { %v6622_v31 = vpop.f32.mrf.mxu1  ;;  %7480 = vmatprep.subr.bf16.mxu1 %v11073_v21  ;;  %v12910_v24 = vpack.c.bf16 %v8047_v58, %v8043_v17  ;;  %v8048_v52 = vmax.f32 %v6617_v0, 0.0  ;;  %v6621_v32 = vadd.f32 %v6620_v16, %v6508_v15  ;;  %v6510_v5 = vadd.f32 %v6509_v22, %v12799_v46  ;;  %7193 = vmatprep.mubr.bf16.mxu0 %v14397_v47  ;;  %v11082_v46 = vld [vmem:[#allocation5 + $0xc0c] ss:$16 sps:$4 sm:$0xff]   ;;  %v11083_v15 = vld [vmem:[#allocation5 + $0xe08] ss:$16 sps:$4 sm:$0xff]   ;;  %v14402_v47 = vld [vmem:[#allocation95_spill] sm:$0xff] }
 0x2b0   :  { %7306 = vmatprep.mubr.bf16.mxu1 %v14398_v13  ;;  %v6511_v45 = vpop.f32.mrf.mxu0  ;;  %v11085_v21 = vld [vmem:[#allocation5 + $0xe0c] ss:$16 sps:$4 sm:$0xff]  }
 0x2b1   :  { %v6624_v10 = vpop.f32.mrf.mxu1  ;;  %v6623_v55 = vadd.f32 %v6622_v31, %v6510_v5  ;;  %v6512_v48 = vadd.f32 %v6511_v45, %v12802_v6  ;;  %7368 = vmatpush1.bf16.msra.mxu0 %v11068_v28  ;;  %v12916_v2 = vpack.c.bf16 %v8048_v52, %v8044_v25  ;;  %v14399_v44 = vld [vmem:[#allocation92_spill] sm:$0xff]  ;;  %v8051_v28 = vmax.f32 %v6621_v32, 0.0  ;;  %v14401_v5 = vld [vmem:[#allocation94_spill] sm:$0xff] }
 0x2b2   :  { %7481 = vmatpush1.bf16.msra.mxu1 %v11071_v14  ;;  %v6513_v56 = vpop.f32.mrf.mxu0  ;;  %7369 = vmatprep.subr.bf16.mxu0 %v11076_v39  ;;  %v11080_v6 = vld [vmem:[#allocation5 + $0xc08] ss:$16 sps:$4 sm:$0xff]   ;;  %v11091_v31 = vld [vmem:[#allocation5 + $0xfec] ss:$16 sps:$4 sm:$0xff]  }
 0x2b3   :  { %v6626_v18 = vpop.f32.mrf.mxu1  ;;  %7482 = vmatprep.subr.bf16.mxu1 %v11079_v34  ;;  %v6625_v26 = vadd.f32 %v6624_v10, %v6512_v48  ;;  %v6514_v4 = vadd.f32 %v6513_v56, %v12807_v3  ;;  %v8052_v14 = vmax.f32 %v6623_v55, 0.0  ;;  %v11088_v3 = vld [vmem:[#allocation5 + $0xdec] ss:$16 sps:$4 sm:$0xff]   ;;  %v11086_v45 = vld [vmem:[#allocation5 + $0xde8] ss:$16 sps:$4 sm:$0xff]  }
 0x2b4   :  { %v6517_v35 = vpop.f32.mrf.mxu0  ;;  %7194 = vmatmul.mubr.bf16.gmra.mxu0 %v14399_v44  ;;  %v11089_v55 = vld [vmem:[#allocation5 + $0xfe8] ss:$16 sps:$4 sm:$0xff]  }
 0x2b5   :  { %v6630_v16 = vpop.f32.mrf.mxu1  ;;  %7307 = vmatmul.mubr.bf16.gmra.mxu1 %v14400_v36  ;;  %v8055_v17 = vmax.f32 %v6625_v26, 0.0  ;;  %v6627_v58 = vadd.f32 %v6626_v18, %v6514_v4  ;;  %v6518_v0 = vadd.f32 %v6517_v35, %v12810_v11  ;;  %7370 = vmatpush1.bf16.msra.mxu0 %v11074_v54  ;;  %v11097_v18 = vld [vmem:[#allocation5 + $0xfcc] ss:$16 sps:$4 sm:$0xff]  }
 0x2b6   :  { %7483 = vmatpush1.bf16.msra.mxu1 %v11077_v51  ;;  %v6519_v25 = vpop.f32.mrf.mxu0  ;;  %7371 = vmatprep.subr.bf16.mxu0 %v11082_v46  ;;  %v14403_v35 = vld [vmem:[#allocation96_spill] sm:$0xff] }
 0x2b7   :  { %v6632_v22 = vpop.f32.mrf.mxu1  ;;  %7484 = vmatprep.subr.bf16.mxu1 %v11085_v21  ;;  %v12922_v39 = vpack.c.bf16 %v8055_v17, %v8051_v28  ;;  %v8056_v34 = vmax.f32 %v6627_v58, 0.0  ;;  %v6631_v52 = vadd.f32 %v6630_v16, %v6518_v0  ;;  %v6520_v32 = vadd.f32 %v6519_v25, %v12815_v12  ;;  %7203 = vmatprep.mubr.bf16.mxu0 %v14401_v5  ;;  %v11094_v12 = vld [vmem:[#allocation5 + $0xdcc] ss:$16 sps:$4 sm:$0xff]   ;;  %v14404_v16 = vld [vmem:[#allocation97_spill] sm:$0xff]  ;;  %v11095_v17 = vld [vmem:[#allocation5 + $0xfc8] ss:$16 sps:$4 sm:$0xff]  }
 0x2b8   :  { %7316 = vmatprep.mubr.bf16.mxu1 %v14402_v47  ;;  %v6521_v11 = vpop.f32.mrf.mxu0  ;;  %v11098_v5 = vld [vmem:[#allocation5 + $0xda8] ss:$16 sps:$4 sm:$0xff]  }
 0x2b9   :  { %v6634_v13 = vpop.f32.mrf.mxu1  ;;  %v6633_v10 = vadd.f32 %v6632_v22, %v6520_v32  ;;  %v6522_v54 = vadd.f32 %v6521_v11, %v12818_v7  ;;  %7372 = vmatpush1.bf16.msra.mxu0 %v11080_v6  ;;  %v12928_v48 = vpack.c.bf16 %v8056_v34, %v8052_v14  ;;  %v11092_v7 = vld [vmem:[#allocation5 + $0xdc8] ss:$16 sps:$4 sm:$0xff]   ;;  %v8059_v44 = vmax.f32 %v6631_v52, 0.0  ;;  %v11103_v14 = vld [vmem:[#allocation5 + $0xfac] ss:$16 sps:$4 sm:$0xff]   ;;  %v14407_v52 = vld [vmem:[#allocation99_spill] sm:$0xff] }
 0x2ba   :  { %7485 = vmatpush1.bf16.msra.mxu1 %v11083_v15  ;;  %v6523_v51 = vpop.f32.mrf.mxu0  ;;  %7373 = vmatprep.subr.bf16.mxu0 %v11088_v3  ;;  %v14406_v34 = vld [vmem:[#allocation98_spill] sm:$0xff] }
 0x2bb   :  { %v6636_v56 = vpop.f32.mrf.mxu1  ;;  %7486 = vmatprep.subr.bf16.mxu1 %v11091_v31  ;;  %v6635_v46 = vadd.f32 %v6634_v13, %v6522_v54  ;;  %v6524_v21 = vadd.f32 %v6523_v51, %v12823_v33  ;;  %v8060_v58 = vmax.f32 %v6633_v10, 0.0  ;;  %v11100_v33 = vld [vmem:[#allocation5 + $0xdac] ss:$16 sps:$4 sm:$0xff]   ;;  %v11101_v13 = vld [vmem:[#allocation5 + $0xfa8] ss:$16 sps:$4 sm:$0xff]  }
 0x2bc   :  { %v6527_v26 = vpop.f32.mrf.mxu0  ;;  %7204 = vmatmul.mubr.bf16.gmra.mxu0 %v14403_v35 }
 0x2bd   :  { %v6640_v4 = vpop.f32.mrf.mxu1  ;;  %7317 = vmatmul.mubr.bf16.gmra.mxu1 %v14404_v16  ;;  %v8063_v36 = vmax.f32 %v6635_v46, 0.0  ;;  %v6637_v6 = vadd.f32 %v6636_v56, %v6524_v21  ;;  %v6528_v28 = vadd.f32 %v6527_v26, %v12826_v49  ;;  %7374 = vmatpush2.bf16.msra.mxu0 %v11086_v45  ;;  %v14408_v46 = vld [vmem:[#allocation100_spill] sm:$0xff]  ;;  %v14409_v21 = vld [vmem:[#allocation101_spill] sm:$0xff] }
 0x2be   :  { %7487 = vmatpush2.bf16.msra.mxu1 %v11089_v55  ;;  %v6529_v0 = vpop.f32.mrf.mxu0  ;;  %7375 = vmatprep.subr.bf16.mxu0 %v11094_v12  ;;  %v11109_v55 = vld [vmem:[#allocation5 + $0xf8c] ss:$16 sps:$4 sm:$0xff]  }
 0x2bf   :  { %v6642_v15 = vpop.f32.mrf.mxu1  ;;  %7488 = vmatprep.subr.bf16.mxu1 %v11097_v18  ;;  %v12934_v25 = vpack.c.bf16 %v8063_v36, %v8059_v44  ;;  %v8064_v22 = vmax.f32 %v6637_v6, 0.0  ;;  %v6641_v3 = vadd.f32 %v6640_v4, %v6528_v28  ;;  %v6530_v31 = vadd.f32 %v6529_v0, %v12831_v50  ;;  %7213 = vmatprep.mubr.bf16.mxu0 %v14406_v34  ;;  %v11106_v50 = vld [vmem:[#allocation5 + $0xd8c] ss:$16 sps:$4 sm:$0xff]  }
 0x2c0   :  { %7326 = vmatprep.mubr.bf16.mxu1 %v14407_v52  ;;  %v6531_v49 = vpop.f32.mrf.mxu0  ;;  %v11115_v28 = vld [vmem:[#allocation5 + $0xf6c] ss:$16 sps:$4 sm:$0xff]   ;;  %v11113_v52 = vld [vmem:[#allocation5 + $0xf68] ss:$16 sps:$4 sm:$0xff]  }
 0x2c1   :  { %14405 = vst [vmem:[#allocation20_spill] sm:$0xff] %v12934_v25  ;;  %v6644_v32 = vpop.f32.mrf.mxu1  ;;  %v6643_v47 = vadd.f32 %v6642_v15, %v6530_v31  ;;  %v6532_v11 = vadd.f32 %v6531_v49, %v12834_v61  ;;  %7376 = vmatpush2.bf16.msra.mxu0 %v11092_v7  ;;  %v12940_v45 = vpack.c.bf16 %v8064_v22, %v8060_v58  ;;  %v11104_v61 = vld [vmem:[#allocation5 + $0xd88] ss:$16 sps:$4 sm:$0xff]   ;;  %v8067_v26 = vmax.f32 %v6641_v3, 0.0 }
 0x2c2   :  { %7489 = vmatpush2.bf16.msra.mxu1 %v11095_v17  ;;  %v6533_v10 = vpop.f32.mrf.mxu0  ;;  %7377 = vmatprep.subr.bf16.mxu0 %v11100_v33  ;;  %v11107_v7 = vld [vmem:[#allocation5 + $0xf88] ss:$16 sps:$4 sm:$0xff]  }
 0x2c3   :  { %v6646_v54 = vpop.f32.mrf.mxu1  ;;  %7490 = vmatprep.subr.bf16.mxu1 %v11103_v14  ;;  %v6645_v51 = vadd.f32 %v6644_v32, %v6532_v11  ;;  %v6534_v56 = vadd.f32 %v6533_v10, %v12839_v62  ;;  %v8068_v44 = vmax.f32 %v6643_v47, 0.0  ;;  %v11112_v62 = vld [vmem:[#allocation5 + $0xd6c] ss:$16 sps:$4 sm:$0xff]   ;;  %v14412_v14 = vld [vmem:[#allocation103_spill] sm:$0xff]  ;;  %v11110_v3 = vld [vmem:[#allocation5 + $0xd68] ss:$16 sps:$4 sm:$0xff]  }
 0x2c4   :  { %v6537_v12 = vpop.f32.mrf.mxu0  ;;  %7214 = vmatmul.mubr.bf16.gmra.mxu0 %v14408_v46  ;;  %v14411_v33 = vld [vmem:[#allocation102_spill] sm:$0xff] }
 0x2c5   :  { %v6650_v18 = vpop.f32.mrf.mxu1  ;;  %7327 = vmatmul.mubr.bf16.gmra.mxu1 %v14409_v21  ;;  %v8071_v4 = vmax.f32 %v6645_v51, 0.0  ;;  %v6647_v35 = vadd.f32 %v6646_v54, %v6534_v56  ;;  %v6538_v16 = vadd.f32 %v6537_v12, %v12842_v63  ;;  %7378 = vmatpush2.bf16.msra.mxu0 %v11098_v5  ;;  %v11121_v47 = vld [vmem:[#allocation5 + $0xf4c] ss:$16 sps:$4 sm:$0xff]   ;;  %v11119_v46 = vld [vmem:[#allocation5 + $0xf48] ss:$16 sps:$4 sm:$0xff]  }
 0x2c6   :  { %7491 = vmatpush2.bf16.msra.mxu1 %v11101_v13  ;;  %v6539_v36 = vpop.f32.mrf.mxu0  ;;  %7379 = vmatprep.subr.bf16.mxu0 %v11106_v50  ;;  %v14414_v50 = vld [vmem:[#allocation104_spill] sm:$0xff] }
 0x2c7   :  { %v6652_v6 = vpop.f32.mrf.mxu1  ;;  %7492 = vmatprep.subr.bf16.mxu1 %v11109_v55  ;;  %v12946_v17 = vpack.c.bf16 %v8071_v4, %v8067_v26  ;;  %v8072_v58 = vmax.f32 %v6647_v35, 0.0  ;;  %v6651_v0 = vadd.f32 %v6650_v18, %v6538_v16  ;;  %v6540_v15 = vadd.f32 %v6539_v36, %v12847_v41  ;;  %7223 = vmatprep.mubr.bf16.mxu0 %v14411_v33  ;;  %v11118_v41 = vld [vmem:[#allocation5 + $0xd4c] ss:$16 sps:$4 sm:$0xff]   ;;  %v14415_v55 = vld [vmem:[#allocation105_spill] sm:$0xff] }
 0x2c8   :  { %7336 = vmatprep.mubr.bf16.mxu1 %v14412_v14  ;;  %v6541_v63 = vpop.f32.mrf.mxu0  ;;  %v11127_v4 = vld [vmem:[#allocation5 + $0xf2c] ss:$16 sps:$4 sm:$0xff]  }
 0x2c9   :  { %14410 = vst [vmem:[#allocation21_spill] sm:$0xff] %v12946_v17  ;;  %v6654_v22 = vpop.f32.mrf.mxu1  ;;  %v6653_v31 = vadd.f32 %v6652_v6, %v6540_v15  ;;  %v6542_v34 = vadd.f32 %v6541_v63, %v12850_v1  ;;  %7380 = vmatpush2.bf16.msra.mxu0 %v11104_v61  ;;  %v12952_v49 = vpack.c.bf16 %v8072_v58, %v8068_v44  ;;  %v11116_v1 = vld [vmem:[#allocation5 + $0xd48] ss:$16 sps:$4 sm:$0xff]   ;;  %v8075_v51 = vmax.f32 %v6651_v0, 0.0  ;;  %v14418_v6 = vld [vmem:[#allocation107_spill] sm:$0xff] }
 0x2ca   :  { %7493 = vmatpush2.bf16.msra.mxu1 %v11107_v7  ;;  %v6543_v32 = vpop.f32.mrf.mxu0  ;;  %7381 = vmatprep.subr.bf16.mxu0 %v11112_v62  ;;  %v14417_v36 = vld [vmem:[#allocation106_spill] sm:$0xff]  ;;  %v14459_v17 = vld [vmem:[#allocation143_spill] sm:$0xff] }
 0x2cb   :  { %14413 = vst [vmem:[#allocation22_spill] sm:$0xff] %v12952_v49  ;;  %v6656_v5 = vpop.f32.mrf.mxu1  ;;  %7494 = vmatprep.subr.bf16.mxu1 %v11115_v28  ;;  %v6655_v11 = vadd.f32 %v6654_v22, %v6542_v34  ;;  %v6544_v13 = vadd.f32 %v6543_v32, %v12855_v20  ;;  %v8076_v21 = vmax.f32 %v6653_v31, 0.0  ;;  %v11124_v20 = vld [vmem:[#allocation5 + $0xd2c] ss:$16 sps:$4 sm:$0xff]   ;;  %v11122_v28 = vld [vmem:[#allocation5 + $0xd28] ss:$16 sps:$4 sm:$0xff]  }
 0x2cc   :  { %v6547_v10 = vpop.f32.mrf.mxu0  ;;  %7224 = vmatmul.mubr.bf16.gmra.mxu0 %v14414_v50  ;;  %v11125_v15 = vld [vmem:[#allocation5 + $0xf28] ss:$16 sps:$4 sm:$0xff]   ;;  %v11133_v22 = vld [vmem:[#allocation5 + $0xf0c] ss:$16 sps:$4 sm:$0xff]  }
 0x2cd   :  { %v6660_v54 = vpop.f32.mrf.mxu1  ;;  %7337 = vmatmul.mubr.bf16.gmra.mxu1 %v14415_v55  ;;  %v8079_v56 = vmax.f32 %v6655_v11, 0.0  ;;  %v6657_v12 = vadd.f32 %v6656_v5, %v6544_v13  ;;  %v6548_v18 = vadd.f32 %v6547_v10, %v12858_v42  ;;  %7382 = vmatpush2.bf16.msra.mxu0 %v11110_v3  ;;  %v14420_v32 = vld [vmem:[#allocation108_spill] sm:$0xff]  ;;  %v14421_v5 = vld [vmem:[#allocation109_spill] sm:$0xff] }
 0x2ce   :  { %7495 = vmatpush2.bf16.msra.mxu1 %v11113_v52  ;;  %v6549_v61 = vpop.f32.mrf.mxu0  ;;  %7383 = vmatprep.subr.bf16.mxu0 %v11118_v41  ;;  %v14422_v41 = vld [vmem:[#allocation110_spill] sm:$0xff] }
 0x2cf   :  { %v6662_v26 = vpop.f32.mrf.mxu1  ;;  %7496 = vmatprep.subr.bf16.mxu1 %v11121_v47  ;;  %v12958_v35 = vpack.c.bf16 %v8079_v56, %v8075_v51  ;;  %v8080_v16 = vmax.f32 %v6657_v12, 0.0  ;;  %v6661_v7 = vadd.f32 %v6660_v54, %v6548_v18  ;;  %v6550_v44 = vadd.f32 %v6549_v61, %v12863_v57  ;;  %7233 = vmatprep.mubr.bf16.mxu0 %v14417_v36  ;;  %v11130_v57 = vld [vmem:[#allocation5 + $0xd0c] ss:$16 sps:$4 sm:$0xff]   ;;  %v11131_v55 = vld [vmem:[#allocation5 + $0xf08] ss:$16 sps:$4 sm:$0xff]  }
 0x2d0   :  { %7346 = vmatprep.mubr.bf16.mxu1 %v14418_v6  ;;  %v6551_v42 = vpop.f32.mrf.mxu0  ;;  %v1473_v47 = vsub.s32 2, %v14422_v41  ;;  %v1477_v11 = vsub.s32 3, %v14422_v41  ;;  %v11136_v56 = vld [vmem:[#allocation5 + $0x10ec] ss:$16 sps:$4 sm:$0xff]   ;;  %v11137_v36 = vld [vmem:[#allocation5 + $0x12e8] ss:$16 sps:$4 sm:$0xff]  }
 0x2d1   :  { %14416 = vst [vmem:[#allocation23_spill] sm:$0xff] %v12958_v35  ;;  %v6664_v62 = vpop.f32.mrf.mxu1  ;;  %v6663_v58 = vadd.f32 %v6662_v26, %v6550_v44  ;;  %v6552_v0 = vadd.f32 %v6551_v42, %v12866_v37  ;;  %7384 = vmatpush2.bf16.msra.mxu0 %v11116_v1  ;;  %v12964_v33 = vpack.c.bf16 %v8080_v16, %v8076_v21  ;;  %v11128_v37 = vld [vmem:[#allocation5 + $0xd08] ss:$16 sps:$4 sm:$0xff]   ;;  %v8083_v13 = vmax.f32 %v6661_v7, 0.0  ;;  %v11139_v12 = vld [vmem:[#allocation5 + $0x12ec] ss:$16 sps:$4 sm:$0xff]  }
 0x2d2   :  { %7497 = vmatpush2.bf16.msra.mxu1 %v11119_v46  ;;  %v6553_v14 = vpop.f32.mrf.mxu0  ;;  %7385 = vmatprep.subr.bf16.mxu0 %v11124_v20  ;;  %v14424_v26 = vld [vmem:[#allocation111_spill] sm:$0xff]  ;;  %v14425_v20 = vld [vmem:[#allocation112_spill] sm:$0xff] }
 0x2d3   :  { %14419 = vst [vmem:[#allocation24_spill] sm:$0xff] %v12964_v33  ;;  %v6666_v63 = vpop.f32.mrf.mxu1  ;;  %7498 = vmatprep.subr.bf16.mxu1 %v11127_v4  ;;  %v6665_v3 = vadd.f32 %v6664_v62, %v6552_v0  ;;  %v6554_v31 = vadd.f32 %v6553_v14, %v12871_v60  ;;  %v8084_v60 = vmax.f32 %v6663_v58, 0.0  ;;  %v11502_v7 = vld [vmem:[#allocation7] sm:$0xf]  ;;  %v11142_v62 = vld [vmem:[#allocation5 + $0x10cc] ss:$16 sps:$4 sm:$0xff]  }
 0x2d4   :  { %v6557_v34 = vpop.f32.mrf.mxu0  ;;  %7234 = vmatmul.mubr.bf16.gmra.mxu0 %v14420_v32  ;;  %v12977_v44 = vrot.slane %v11502_v7, %v1473_v47  ;;  %v11145_v0 = vld [vmem:[#allocation5 + $0x12cc] ss:$16 sps:$4 sm:$0xff]  }
 0x2d5   :  { %v6670_v52 = vpop.f32.mrf.mxu1  ;;  %7347 = vmatmul.mubr.bf16.gmra.mxu1 %v14421_v5  ;;  %v8087_v10 = vmax.f32 %v6665_v3, 0.0  ;;  %v6667_v54 = vadd.f32 %v6666_v63, %v6554_v31  ;;  %v6558_v50 = vadd.f32 %v6557_v34, %v12874_v9  ;;  %7386 = vmatpush2.bf16.msra.mxu0 %v11122_v28  ;;  %v11134_v9 = vld [vmem:[#allocation5 + $0x10e8] ss:$16 sps:$4 sm:$0xff]   ;;  %v12983_v63 = vrot.slane %v11502_v7, %v1477_v11  ;;  %v11157_v7 = vld [vmem:[#allocation5 + $0x128c] ss:$16 sps:$4 sm:$0xff]  }
 0x2d6   :  { %7499 = vmatpush2.bf16.msra.mxu1 %v11125_v15  ;;  %v6559_v1 = vpop.f32.mrf.mxu0  ;;  %7387 = vmatprep.subr.bf16.mxu0 %v11130_v57  ;;  %v11140_v57 = vld [vmem:[#allocation5 + $0x10c8] ss:$16 sps:$4 sm:$0xff]  }
 0x2d7   :  { %v6672_v51 = vpop.f32.mrf.mxu1  ;;  %7500 = vmatprep.subr.bf16.mxu1 %v11133_v22  ;;  %v12972_v18 = vpack.c.bf16 %v8087_v10, %v8083_v13  ;;  %v8088_v46 = vmax.f32 %v6667_v54, 0.0  ;;  %v6671_v21 = vadd.f32 %v6670_v52, %v6558_v50  ;;  %v6560_v61 = vadd.f32 %v6559_v1, %v12879_v53  ;;  %7389 = vmatprep.mubr.bf16.mxu0 %v14424_v26  ;;  %v11143_v22 = vld [vmem:[#allocation5 + $0x12c8] ss:$16 sps:$4 sm:$0xff]   ;;  %v11148_v52 = vld [vmem:[#allocation5 + $0x10ac] ss:$16 sps:$4 sm:$0xff]   ;;  %v14430_v1 = vld [vmem:[#allocation115_spill] sm:$0xff] }
 0x2d8   :  { %7502 = vmatprep.mubr.bf16.mxu1 %v14425_v20  ;;  %v6561_v4 = vpop.f32.mrf.mxu0  ;;  %v14428_v34 = vld [vmem:[#allocation114_spill] sm:$0xff] }
 0x2d9   :  { %14423 = vst [vmem:[#allocation25_spill] sm:$0xff] %v12972_v18  ;;  %v6674_v16 = vpop.f32.mrf.mxu1  ;;  %v6673_v6 = vadd.f32 %v6672_v51, %v6560_v61  ;;  %v6562_v42 = vadd.f32 %v6561_v4, %v12882_v30  ;;  %7388 = vmatpush2.bf16.msra.mxu0 %v11128_v37  ;;  %v12980_v28 = vpack.c.bf16 %v8088_v46, %v8084_v60  ;;  %v14427_v30 = vld [vmem:[#allocation113_spill] sm:$0xff]  ;;  %v8091_v32 = vmax.f32 %v6671_v21, 0.0  ;;  %v11151_v10 = vld [vmem:[#allocation5 + $0x12ac] ss:$16 sps:$4 sm:$0xff]   ;;  %v14455_v18 = vld [vmem:[#allocation139_spill] sm:$0xff] }
 0x2da   :  { %7501 = vmatpush2.bf16.msra.mxu1 %v11131_v55  ;;  %v6563_v53 = vpop.f32.mrf.mxu0  ;;  %7583 = vmatprep.subr.bf16.mxu0 %v11136_v56  ;;  %v14431_v51 = vld [vmem:[#allocation116_spill] sm:$0xff] }
 0x2db   :  { %14426 = vst [vmem:[#allocation26_spill] sm:$0xff] %v12980_v28  ;;  %v6676_v58 = vpop.f32.mrf.mxu1  ;;  %7696 = vmatprep.subr.bf16.mxu1 %v11139_v12  ;;  %v6675_v15 = vadd.f32 %v6674_v16, %v6562_v42  ;;  %v6564_v14 = vadd.f32 %v6563_v53, %v12887_v8  ;;  %v8092_v13 = vmax.f32 %v6673_v6, 0.0  ;;  %v11146_v56 = vld [vmem:[#allocation5 + $0x10a8] ss:$16 sps:$4 sm:$0xff]   ;;  %v11154_v61 = vld [vmem:[#allocation5 + $0x108c] ss:$16 sps:$4 sm:$0xff]  }
 0x2dc   :  { %v6713_v3 = vpop.f32.mrf.mxu0  ;;  %7390 = vmatmul.mubr.bf16.vlgmr.msra.gmra.mxu0 %v14427_v30  ;;  %v11149_v12 = vld [vmem:[#allocation5 + $0x12a8] ss:$16 sps:$4 sm:$0xff]   ;;  %v11163_v30 = vld [vmem:[#allocation5 + $0x126c] ss:$16 sps:$4 sm:$0xff]  }
 0x2dd   :  { %v6826_v31 = vpop.f32.mrf.mxu1  ;;  %7503 = vmatmul.mubr.bf16.vlgmr.msra.gmra.mxu1 %v14428_v34  ;;  %v8095_v5 = vmax.f32 %v6675_v15, 0.0  ;;  %v6677_v37 = vadd.f32 %v6676_v58, %v6564_v14  ;;  %v6714_v47 = vadd.f32 %v6713_v3, %v12977_v44  ;;  %7584 = vmatpush1.bf16.msra.mxu0 %v11134_v9  ;;  %v11152_v42 = vld [vmem:[#allocation5 + $0x1088] ss:$16 sps:$4 sm:$0xff]   ;;  %v11160_v14 = vld [vmem:[#allocation5 + $0x106c] ss:$16 sps:$4 sm:$0xff]  }
 0x2de   :  { %7697 = vmatpush1.bf16.msra.mxu1 %v11137_v36  ;;  %v6715_v8 = vpop.f32.mrf.mxu0  ;;  %7585 = vmatprep.subr.bf16.mxu0 %v11142_v62  ;;  %v11155_v62 = vld [vmem:[#allocation5 + $0x1288] ss:$16 sps:$4 sm:$0xff]  }
 0x2df   :  { %v6828_v11 = vpop.f32.mrf.mxu1  ;;  %7698 = vmatprep.subr.bf16.mxu1 %v11145_v0  ;;  %v12988_v54 = vpack.c.bf16 %v8095_v5, %v8091_v32  ;;  %v8096_v50 = vmax.f32 %v6677_v37, 0.0  ;;  %v12990_v55 = vadd.f32 %v6826_v31, %v6714_v47  ;;  %v6716_v60 = vadd.f32 %v6715_v8, %v12983_v63  ;;  %7399 = vmatprep.mubr.bf16.mxu0 %v14430_v1  ;;  %v14433_v0 = vld [vmem:[#allocation117_spill] sm:$0xff]  ;;  %v14434_v15 = vld [vmem:[#allocation118_spill] sm:$0xff]  ;;  %v14435_v32 = vld [vmem:[#allocation119_spill] sm:$0xff] }
 0x2e0   :  { %7512 = vmatprep.mubr.bf16.mxu1 %v14431_v51  ;;  %v6717_v46 = vpop.f32.mrf.mxu0  ;;  %v14436_v5 = vld [vmem:[#allocation120_spill] sm:$0xff] }
 0x2e1   :  { %14429 = vst [vmem:[#allocation27_spill] sm:$0xff] %v12988_v54  ;;  %v6830_v21 = vpop.f32.mrf.mxu1  ;;  %v12995_v26 = vadd.f32 %v6828_v11, %v6716_v60  ;;  %v6718_v20 = vadd.f32 %v6717_v46, %v12977_v44  ;;  %7586 = vmatpush1.bf16.msra.mxu0 %v11140_v57  ;;  %v12998_v9 = vpack.c.bf16 %v8096_v50, %v8092_v13  ;;  %v11158_v37 = vld [vmem:[#allocation5 + $0x1068] ss:$16 sps:$4 sm:$0xff]   ;;  %v11166_v11 = vld [vmem:[#allocation5 + $0x104c] ss:$16 sps:$4 sm:$0xff]  }
 0x2e2   :  { %7699 = vmatpush1.bf16.msra.mxu1 %v11143_v22  ;;  %v6719_v4 = vpop.f32.mrf.mxu0  ;;  %7587 = vmatprep.subr.bf16.mxu0 %v11148_v52  ;;  %v11161_v47 = vld [vmem:[#allocation5 + $0x1268] ss:$16 sps:$4 sm:$0xff]   ;;  %v11169_v51 = vld [vmem:[#allocation5 + $0x124c] ss:$16 sps:$4 sm:$0xff]  }
 0x2e3   :  { %14432 = vst [vmem:[#allocation28_spill] sm:$0xff] %v12998_v9  ;;  %v6832_v16 = vpop.f32.mrf.mxu1  ;;  %7700 = vmatprep.subr.bf16.mxu1 %v11151_v10  ;;  %v13000_v36 = vadd.f32 %v6830_v21, %v6718_v20  ;;  %v6720_v6 = vadd.f32 %v6719_v4, %v12983_v63  ;;  %v11164_v46 = vld [vmem:[#allocation5 + $0x1048] ss:$16 sps:$4 sm:$0xff]   ;;  %v14437_v4 = vld [vmem:[#allocation121_spill] sm:$0xff] }
 0x2e4   :  { %v6723_v53 = vpop.f32.mrf.mxu0  ;;  %7400 = vmatmul.mubr.bf16.gmra.mxu0 %v14433_v0  ;;  %v11167_v21 = vld [vmem:[#allocation5 + $0x1248] ss:$16 sps:$4 sm:$0xff]  }
 0x2e5   :  { %v6836_v58 = vpop.f32.mrf.mxu1  ;;  %7513 = vmatmul.mubr.bf16.gmra.mxu1 %v14434_v15  ;;  %v13005_v57 = vadd.f32 %v6832_v16, %v6720_v6  ;;  %v6724_v22 = vadd.f32 %v6723_v53, %v12977_v44  ;;  %7588 = vmatpush1.bf16.msra.mxu0 %v11146_v56  ;;  %v14438_v16 = vld [vmem:[#allocation122_spill] sm:$0xff] }
 0x2e6   :  { %7701 = vmatpush1.bf16.msra.mxu1 %v11149_v12  ;;  %v6725_v3 = vpop.f32.mrf.mxu0  ;;  %7589 = vmatprep.subr.bf16.mxu0 %v11154_v61 }
 0x2e7   :  { %v6838_v31 = vpop.f32.mrf.mxu1  ;;  %7702 = vmatprep.subr.bf16.mxu1 %v11157_v7  ;;  %v13008_v34 = vadd.f32 %v6836_v58, %v6724_v22  ;;  %v6726_v52 = vadd.f32 %v6725_v3, %v12983_v63  ;;  %7409 = vmatprep.mubr.bf16.mxu0 %v14435_v32  ;;  %v11172_v7 = vld [vmem:[#allocation5 + $0x102c] ss:$16 sps:$4 sm:$0xff]   ;;  %v11170_v3 = vld [vmem:[#allocation5 + $0x1028] ss:$16 sps:$4 sm:$0xff]  }
 0x2e8   :  { %7522 = vmatprep.mubr.bf16.mxu1 %v14436_v5  ;;  %v6727_v13 = vpop.f32.mrf.mxu0  ;;  %v11175_v58 = vld [vmem:[#allocation5 + $0x122c] ss:$16 sps:$4 sm:$0xff]  }
 0x2e9   :  { %v6840_v8 = vpop.f32.mrf.mxu1  ;;  %v13013_v10 = vadd.f32 %v6838_v31, %v6726_v52  ;;  %v6728_v50 = vadd.f32 %v6727_v13, %v12977_v44  ;;  %7590 = vmatpush1.bf16.msra.mxu0 %v11152_v42  ;;  %v14440_v22 = vld [vmem:[#allocation124_spill] sm:$0xff] }
 0x2ea   :  { %7703 = vmatpush1.bf16.msra.mxu1 %v11155_v62  ;;  %v6729_v60 = vpop.f32.mrf.mxu0  ;;  %7591 = vmatprep.subr.bf16.mxu0 %v11160_v14  ;;  %v14439_v14 = vld [vmem:[#allocation123_spill] sm:$0xff]  ;;  %v11173_v31 = vld [vmem:[#allocation5 + $0x1228] ss:$16 sps:$4 sm:$0xff]   ;;  %v11178_v32 = vld [vmem:[#allocation5 + $0x100c] ss:$16 sps:$4 sm:$0xff]  }
 0x2eb   :  { %v6842_v1 = vpop.f32.mrf.mxu1  ;;  %7704 = vmatprep.subr.bf16.mxu1 %v11163_v30  ;;  %v13016_v56 = vadd.f32 %v6840_v8, %v6728_v50  ;;  %v6730_v12 = vadd.f32 %v6729_v60, %v12983_v63  ;;  %v11181_v8 = vld [vmem:[#allocation5 + $0x120c] ss:$16 sps:$4 sm:$0xff]   ;;  %v11176_v60 = vld [vmem:[#allocation5 + $0x1008] ss:$16 sps:$4 sm:$0xff]  }
 0x2ec   :  { %v6733_v61 = vpop.f32.mrf.mxu0  ;;  %7410 = vmatmul.mubr.bf16.gmra.mxu0 %v14437_v4  ;;  %v11184_v4 = vld [vmem:[#allocation5 + $0x11ec] ss:$16 sps:$4 sm:$0xff]  }
 0x2ed   :  { %v6846_v20 = vpop.f32.mrf.mxu1  ;;  %7523 = vmatmul.mubr.bf16.gmra.mxu1 %v14438_v16  ;;  %v13021_v6 = vadd.f32 %v6842_v1, %v6730_v12  ;;  %v6734_v42 = vadd.f32 %v6733_v61, %v12977_v44  ;;  %7592 = vmatpush1.bf16.msra.mxu0 %v11158_v37  ;;  %v11179_v1 = vld [vmem:[#allocation5 + $0x1208] ss:$16 sps:$4 sm:$0xff]   ;;  %v14441_v61 = vld [vmem:[#allocation125_spill] sm:$0xff] }
 0x2ee   :  { %7705 = vmatpush1.bf16.msra.mxu1 %v11161_v47  ;;  %v6735_v62 = vpop.f32.mrf.mxu0  ;;  %7593 = vmatprep.subr.bf16.mxu0 %v11166_v11 }
 0x2ef   :  { %v6848_v53 = vpop.f32.mrf.mxu1  ;;  %7706 = vmatprep.subr.bf16.mxu1 %v11169_v51  ;;  %v13024_v0 = vadd.f32 %v6846_v20, %v6734_v42  ;;  %v6736_v15 = vadd.f32 %v6735_v62, %v12983_v63  ;;  %7419 = vmatprep.mubr.bf16.mxu0 %v14439_v14  ;;  %v14442_v20 = vld [vmem:[#allocation126_spill] sm:$0xff] }
 0x2f0   :  { %7532 = vmatprep.mubr.bf16.mxu1 %v14440_v22  ;;  %v6737_v30 = vpop.f32.mrf.mxu0  ;;  %v11187_v42 = vld [vmem:[#allocation5 + $0x13ec] ss:$16 sps:$4 sm:$0xff]   ;;  %v11182_v14 = vld [vmem:[#allocation5 + $0x11e8] ss:$16 sps:$4 sm:$0xff]  }
 0x2f1   :  { %v6850_v52 = vpop.f32.mrf.mxu1  ;;  %v13029_v5 = vadd.f32 %v6848_v53, %v6736_v15  ;;  %v6738_v37 = vadd.f32 %v6737_v30, %v12977_v44  ;;  %7594 = vmatpush1.bf16.msra.mxu0 %v11164_v46  ;;  %v14444_v15 = vld [vmem:[#allocation128_spill] sm:$0xff] }
 0x2f2   :  { %7707 = vmatpush1.bf16.msra.mxu1 %v11167_v21  ;;  %v6739_v47 = vpop.f32.mrf.mxu0  ;;  %7595 = vmatprep.subr.bf16.mxu0 %v11172_v7  ;;  %v11185_v22 = vld [vmem:[#allocation5 + $0x13e8] ss:$16 sps:$4 sm:$0xff]  }
 0x2f3   :  { %v6852_v13 = vpop.f32.mrf.mxu1  ;;  %7708 = vmatprep.subr.bf16.mxu1 %v11175_v58  ;;  %v13032_v11 = vadd.f32 %v6850_v52, %v6738_v37  ;;  %v6740_v50 = vadd.f32 %v6739_v47, %v12983_v63  ;;  %v14443_v58 = vld [vmem:[#allocation127_spill] sm:$0xff]  ;;  %v11190_v37 = vld [vmem:[#allocation5 + $0x11cc] ss:$16 sps:$4 sm:$0xff]  }
 0x2f4   :  { %v6743_v51 = vpop.f32.mrf.mxu0  ;;  %7420 = vmatmul.mubr.bf16.gmra.mxu0 %v14441_v61 }
 0x2f5   :  { %v6856_v12 = vpop.f32.mrf.mxu1  ;;  %7533 = vmatmul.mubr.bf16.gmra.mxu1 %v14442_v20  ;;  %v13037_v46 = vadd.f32 %v6852_v13, %v6740_v50  ;;  %v6744_v21 = vadd.f32 %v6743_v51, %v12977_v44  ;;  %7596 = vmatpush1.bf16.msra.mxu0 %v11170_v3  ;;  %v11193_v13 = vld [vmem:[#allocation5 + $0x13cc] ss:$16 sps:$4 sm:$0xff]   ;;  %v11188_v51 = vld [vmem:[#allocation5 + $0x11c8] ss:$16 sps:$4 sm:$0xff]  }
 0x2f6   :  { %7709 = vmatpush1.bf16.msra.mxu1 %v11173_v31  ;;  %v6745_v16 = vpop.f32.mrf.mxu0  ;;  %7597 = vmatprep.subr.bf16.mxu0 %v11178_v32 }
 0x2f7   :  { %v6858_v7 = vpop.f32.mrf.mxu1  ;;  %7710 = vmatprep.subr.bf16.mxu1 %v11181_v8  ;;  %v13040_v62 = vadd.f32 %v6856_v12, %v6744_v21  ;;  %v6746_v53 = vadd.f32 %v6745_v16, %v12983_v63  ;;  %7429 = vmatprep.mubr.bf16.mxu0 %v14443_v58  ;;  %v11191_v12 = vld [vmem:[#allocation5 + $0x13c8] ss:$16 sps:$4 sm:$0xff]   ;;  %v14445_v21 = vld [vmem:[#allocation129_spill] sm:$0xff] }
 0x2f8   :  { %7542 = vmatprep.mubr.bf16.mxu1 %v14444_v15  ;;  %v6747_v30 = vpop.f32.mrf.mxu0  ;;  %v14446_v16 = vld [vmem:[#allocation130_spill] sm:$0xff] }
 0x2f9   :  { %v6860_v52 = vpop.f32.mrf.mxu1  ;;  %v13045_v3 = vadd.f32 %v6858_v7, %v6746_v53  ;;  %v6748_v31 = vadd.f32 %v6747_v30, %v12977_v44  ;;  %7598 = vmatpush1.bf16.msra.mxu0 %v11176_v60  ;;  %v11196_v7 = vld [vmem:[#allocation5 + $0x11ac] ss:$16 sps:$4 sm:$0xff]   ;;  %v14447_v30 = vld [vmem:[#allocation131_spill] sm:$0xff] }
 0x2fa   :  { %7711 = vmatpush1.bf16.msra.mxu1 %v11179_v1  ;;  %v6749_v32 = vpop.f32.mrf.mxu0  ;;  %7599 = vmatprep.subr.bf16.mxu0 %v11184_v4  ;;  %v11199_v53 = vld [vmem:[#allocation5 + $0x13ac] ss:$16 sps:$4 sm:$0xff]  }
 0x2fb   :  { %v6862_v47 = vpop.f32.mrf.mxu1  ;;  %7712 = vmatprep.subr.bf16.mxu1 %v11187_v42  ;;  %v13048_v8 = vadd.f32 %v6860_v52, %v6748_v31  ;;  %v6750_v50 = vadd.f32 %v6749_v32, %v12983_v63  ;;  %v14448_v52 = vld [vmem:[#allocation132_spill] sm:$0xff] }
 0x2fc   :  { %v6753_v61 = vpop.f32.mrf.mxu0  ;;  %7430 = vmatmul.mubr.bf16.gmra.mxu0 %v14445_v21 }
 0x2fd   :  { %v6866_v20 = vpop.f32.mrf.mxu1  ;;  %7543 = vmatmul.mubr.bf16.gmra.mxu1 %v14446_v16  ;;  %v13053_v60 = vadd.f32 %v6862_v47, %v6750_v50  ;;  %v6754_v1 = vadd.f32 %v6753_v61, %v12977_v44  ;;  %7600 = vmatpush2.bf16.msra.mxu0 %v11182_v14  ;;  %v11202_v61 = vld [vmem:[#allocation5 + $0x118c] ss:$16 sps:$4 sm:$0xff]  }
 0x2fe   :  { %7713 = vmatpush2.bf16.msra.mxu1 %v11185_v22  ;;  %v6755_v4 = vpop.f32.mrf.mxu0  ;;  %7601 = vmatprep.subr.bf16.mxu0 %v11190_v37  ;;  %v11194_v22 = vld [vmem:[#allocation5 + $0x11a8] ss:$16 sps:$4 sm:$0xff]  }
 0x2ff   :  { %v6868_v42 = vpop.f32.mrf.mxu1  ;;  %7714 = vmatprep.subr.bf16.mxu1 %v11193_v13  ;;  %v13056_v58 = vadd.f32 %v6866_v20, %v6754_v1  ;;  %v6756_v15 = vadd.f32 %v6755_v4, %v12983_v63  ;;  %7439 = vmatprep.mubr.bf16.mxu0 %v14447_v30  ;;  %v11197_v37 = vld [vmem:[#allocation5 + $0x13a8] ss:$16 sps:$4 sm:$0xff]   ;;  %v11205_v20 = vld [vmem:[#allocation5 + $0x138c] ss:$16 sps:$4 sm:$0xff]  }
 0x300   :  { %7552 = vmatprep.mubr.bf16.mxu1 %v14448_v52  ;;  %v6757_v31 = vpop.f32.mrf.mxu0 }
 0x301   :  { %v6870_v32 = vpop.f32.mrf.mxu1  ;;  %v13061_v47 = vadd.f32 %v6868_v42, %v6756_v15  ;;  %v6758_v14 = vadd.f32 %v6757_v31, %v12977_v44  ;;  %7602 = vmatpush2.bf16.msra.mxu0 %v11188_v51  ;;  %v14449_v42 = vld [vmem:[#allocation133_spill] sm:$0xff]  ;;  %v14450_v15 = vld [vmem:[#allocation134_spill] sm:$0xff] }
 0x302   :  { %7715 = vmatpush2.bf16.msra.mxu1 %v11191_v12  ;;  %v6759_v13 = vpop.f32.mrf.mxu0  ;;  %7603 = vmatprep.subr.bf16.mxu0 %v11196_v7  ;;  %v11200_v7 = vld [vmem:[#allocation5 + $0x1188] ss:$16 sps:$4 sm:$0xff]   ;;  %v11208_v31 = vld [vmem:[#allocation5 + $0x116c] ss:$16 sps:$4 sm:$0xff]  }
 0x303   :  { %v6872_v50 = vpop.f32.mrf.mxu1  ;;  %7716 = vmatprep.subr.bf16.mxu1 %v11199_v53  ;;  %v13064_v21 = vadd.f32 %v6870_v32, %v6758_v14  ;;  %v6760_v16 = vadd.f32 %v6759_v13, %v12983_v63  ;;  %v11203_v53 = vld [vmem:[#allocation5 + $0x1388] ss:$16 sps:$4 sm:$0xff]   ;;  %v11211_v32 = vld [vmem:[#allocation5 + $0x136c] ss:$16 sps:$4 sm:$0xff]  }
 0x304   :  { %v6763_v1 = vpop.f32.mrf.mxu0  ;;  %7440 = vmatmul.mubr.bf16.gmra.mxu0 %v14449_v42  ;;  %v14451_v42 = vld [vmem:[#allocation135_spill] sm:$0xff] }
 0x305   :  { %v6876_v4 = vpop.f32.mrf.mxu1  ;;  %7553 = vmatmul.mubr.bf16.gmra.mxu1 %v14450_v15  ;;  %v13069_v51 = vadd.f32 %v6872_v50, %v6760_v16  ;;  %v6764_v12 = vadd.f32 %v6763_v1, %v12977_v44  ;;  %7604 = vmatpush2.bf16.msra.mxu0 %v11194_v22  ;;  %v14452_v50 = vld [vmem:[#allocation136_spill] sm:$0xff] }
 0x306   :  { %7717 = vmatpush2.bf16.msra.mxu1 %v11197_v37  ;;  %v6765_v30 = vpop.f32.mrf.mxu0  ;;  %7605 = vmatprep.subr.bf16.mxu0 %v11202_v61  ;;  %v11206_v61 = vld [vmem:[#allocation5 + $0x1168] ss:$16 sps:$4 sm:$0xff]  }
 0x307   :  { %v6878_v52 = vpop.f32.mrf.mxu1  ;;  %7718 = vmatprep.subr.bf16.mxu1 %v11205_v20  ;;  %v13072_v14 = vadd.f32 %v6876_v4, %v6764_v12  ;;  %v6766_v13 = vadd.f32 %v6765_v30, %v12983_v63  ;;  %7449 = vmatprep.mubr.bf16.mxu0 %v14451_v42  ;;  %v11209_v20 = vld [vmem:[#allocation5 + $0x1368] ss:$16 sps:$4 sm:$0xff]   ;;  %v11214_v4 = vld [vmem:[#allocation5 + $0x114c] ss:$16 sps:$4 sm:$0xff]  }
 0x308   :  { %7562 = vmatprep.mubr.bf16.mxu1 %v14452_v50  ;;  %v6767_v16 = vpop.f32.mrf.mxu0  ;;  %v11217_v12 = vld [vmem:[#allocation5 + $0x134c] ss:$16 sps:$4 sm:$0xff]  }
 0x309   :  { %v6880_v1 = vpop.f32.mrf.mxu1  ;;  %v13077_v22 = vadd.f32 %v6878_v52, %v6766_v13  ;;  %v6768_v37 = vadd.f32 %v6767_v16, %v12977_v44  ;;  %7606 = vmatpush2.bf16.msra.mxu0 %v11200_v7  ;;  %v14453_v52 = vld [vmem:[#allocation137_spill] sm:$0xff]  ;;  %v14454_v13 = vld [vmem:[#allocation138_spill] sm:$0xff] }
 0x30a   :  { %7719 = vmatpush2.bf16.msra.mxu1 %v11203_v53  ;;  %v6769_v15 = vpop.f32.mrf.mxu0  ;;  %7607 = vmatprep.subr.bf16.mxu0 %v11208_v31  ;;  %v11212_v31 = vld [vmem:[#allocation5 + $0x1148] ss:$16 sps:$4 sm:$0xff]  }
 0x30b   :  { %v6882_v41 = vpop.f32.mrf.mxu1  ;;  %7720 = vmatprep.subr.bf16.mxu1 %v11211_v32  ;;  %v13080_v30 = vadd.f32 %v6880_v1, %v6768_v37  ;;  %v6770_v42 = vadd.f32 %v6769_v15, %v12983_v63  ;;  %v11215_v32 = vld [vmem:[#allocation5 + $0x1348] ss:$16 sps:$4 sm:$0xff]   ;;  %v11220_v1 = vld [vmem:[#allocation5 + $0x112c] ss:$16 sps:$4 sm:$0xff]  }
 0x30c   :  { %v6773_v50 = vpop.f32.mrf.mxu0  ;;  %7450 = vmatmul.mubr.bf16.gmra.mxu0 %v14453_v52  ;;  %v11223_v37 = vld [vmem:[#allocation5 + $0x132c] ss:$16 sps:$4 sm:$0xff]  }
 0x30d   :  { %v6886_v54 = vpop.f32.mrf.mxu1  ;;  %7563 = vmatmul.mubr.bf16.gmra.mxu1 %v14454_v13  ;;  %v13085_v7 = vadd.f32 %v6882_v41, %v6770_v42  ;;  %v6774_v53 = vadd.f32 %v6773_v50, %v12977_v44  ;;  %7608 = vmatpush2.bf16.msra.mxu0 %v11206_v61  ;;  %v14456_v41 = vld [vmem:[#allocation140_spill] sm:$0xff] }
 0x30e   :  { %7721 = vmatpush2.bf16.msra.mxu1 %v11209_v20  ;;  %v6775_v16 = vpop.f32.mrf.mxu0  ;;  %7609 = vmatprep.subr.bf16.mxu0 %v11214_v4  ;;  %v11218_v4 = vld [vmem:[#allocation5 + $0x1128] ss:$16 sps:$4 sm:$0xff]  }
 0x30f   :  { %v6888_v9 = vpop.f32.mrf.mxu1  ;;  %7722 = vmatprep.subr.bf16.mxu1 %v11217_v12  ;;  %v13088_v15 = vadd.f32 %v6886_v54, %v6774_v53  ;;  %v6776_v52 = vadd.f32 %v6775_v16, %v12983_v63  ;;  %7459 = vmatprep.mubr.bf16.mxu0 %v14455_v18  ;;  %v11221_v12 = vld [vmem:[#allocation5 + $0x1328] ss:$16 sps:$4 sm:$0xff]   ;;  %v11226_v54 = vld [vmem:[#allocation5 + $0x110c] ss:$16 sps:$4 sm:$0xff]  }
 0x310   :  { %7572 = vmatprep.mubr.bf16.mxu1 %v14456_v41  ;;  %v6777_v42 = vpop.f32.mrf.mxu0  ;;  %v11229_v53 = vld [vmem:[#allocation5 + $0x130c] ss:$16 sps:$4 sm:$0xff]  }
 0x311   :  { %v6890_v50 = vpop.f32.mrf.mxu1  ;;  %v13093_v61 = vadd.f32 %v6888_v9, %v6776_v52  ;;  %v6778_v20 = vadd.f32 %v6777_v42, %v12977_v44  ;;  %7610 = vmatpush2.bf16.msra.mxu0 %v11212_v31  ;;  %v14457_v9 = vld [vmem:[#allocation141_spill] sm:$0xff]  ;;  %v14458_v52 = vld [vmem:[#allocation142_spill] sm:$0xff] }
 0x312   :  { %7723 = vmatpush2.bf16.msra.mxu1 %v11215_v32  ;;  %v6779_v13 = vpop.f32.mrf.mxu0  ;;  %7611 = vmatprep.subr.bf16.mxu0 %v11220_v1  ;;  %v11224_v1 = vld [vmem:[#allocation5 + $0x1108] ss:$16 sps:$4 sm:$0xff]  }
 0x313   :  { %v6892_v28 = vpop.f32.mrf.mxu1  ;;  %7724 = vmatprep.subr.bf16.mxu1 %v11223_v37  ;;  %v13096_v16 = vadd.f32 %v6890_v50, %v6778_v20  ;;  %v6780_v18 = vadd.f32 %v6779_v13, %v12983_v63  ;;  %v11227_v37 = vld [vmem:[#allocation5 + $0x1308] ss:$16 sps:$4 sm:$0xff]   ;;  %v11232_v50 = vld [vmem:[#allocation5 + $0x14ec] ss:$16 sps:$4 sm:$0xff]  }
 0x314   :  { %v6783_v41 = vpop.f32.mrf.mxu0  ;;  %7460 = vmatmul.mubr.bf16.gmra.mxu0 %v14457_v9  ;;  %v11235_v20 = vld [vmem:[#allocation5 + $0x16ec] ss:$16 sps:$4 sm:$0xff]  }
 0x315   :  { %v6896_v35 = vpop.f32.mrf.mxu1  ;;  %7573 = vmatmul.mubr.bf16.gmra.mxu1 %v14458_v52  ;;  %v13101_v31 = vadd.f32 %v6892_v28, %v6780_v18  ;;  %v6784_v32 = vadd.f32 %v6783_v41, %v12977_v44  ;;  %7612 = vmatpush2.bf16.msra.mxu0 %v11218_v4  ;;  %v14460_v28 = vld [vmem:[#allocation144_spill] sm:$0xff] }
 0x316   :  { %7725 = vmatpush2.bf16.msra.mxu1 %v11221_v12  ;;  %v6785_v42 = vpop.f32.mrf.mxu0  ;;  %7613 = vmatprep.subr.bf16.mxu0 %v11226_v54  ;;  %v11230_v54 = vld [vmem:[#allocation5 + $0x14e8] ss:$16 sps:$4 sm:$0xff]  }
 0x317   :  { %v6898_v33 = vpop.f32.mrf.mxu1  ;;  %7726 = vmatprep.subr.bf16.mxu1 %v11229_v53  ;;  %v13104_v13 = vadd.f32 %v6896_v35, %v6784_v32  ;;  %v6786_v9 = vadd.f32 %v6785_v42, %v12983_v63  ;;  %7615 = vmatprep.mubr.bf16.mxu0 %v14459_v17  ;;  %v11233_v53 = vld [vmem:[#allocation5 + $0x16e8] ss:$16 sps:$4 sm:$0xff]   ;;  %v11238_v35 = vld [vmem:[#allocation5 + $0x14cc] ss:$16 sps:$4 sm:$0xff]  }
 0x318   :  { %7728 = vmatprep.mubr.bf16.mxu1 %v14460_v28  ;;  %v6787_v18 = vpop.f32.mrf.mxu0  ;;  %v11241_v32 = vld [vmem:[#allocation5 + $0x16cc] ss:$16 sps:$4 sm:$0xff]  }
 0x319   :  { %v6900_v41 = vpop.f32.mrf.mxu1  ;;  %v13109_v4 = vadd.f32 %v6898_v33, %v6786_v9  ;;  %v6788_v12 = vadd.f32 %v6787_v18, %v12977_v44  ;;  %7614 = vmatpush2.bf16.msra.mxu0 %v11224_v1  ;;  %v14461_v33 = vld [vmem:[#allocation145_spill] sm:$0xff]  ;;  %v14462_v9 = vld [vmem:[#allocation146_spill] sm:$0xff] }
 0x31a   :  { %7727 = vmatpush2.bf16.msra.mxu1 %v11227_v37  ;;  %v6789_v52 = vpop.f32.mrf.mxu0  ;;  %7809 = vmatprep.subr.bf16.mxu0 %v11232_v50  ;;  %v11236_v37 = vld [vmem:[#allocation5 + $0x14c8] ss:$16 sps:$4 sm:$0xff]  }
 0x31b   :  { %v6902_v49 = vpop.f32.mrf.mxu1  ;;  %7922 = vmatprep.subr.bf16.mxu1 %v11235_v20  ;;  %v13112_v42 = vadd.f32 %v6900_v41, %v6788_v12  ;;  %v6790_v17 = vadd.f32 %v6789_v52, %v12983_v63  ;;  %v11239_v50 = vld [vmem:[#allocation5 + $0x16c8] ss:$16 sps:$4 sm:$0xff]   ;;  %v11244_v41 = vld [vmem:[#allocation5 + $0x14ac] ss:$16 sps:$4 sm:$0xff]  }
 0x31c   :  { %v6939_v28 = vpop.f32.mrf.mxu0  ;;  %7616 = vmatmul.mubr.bf16.vlgmr.msra.gmra.mxu0 %v14461_v33  ;;  %v11247_v63 = vld [vmem:[#allocation5 + $0x16ac] ss:$16 sps:$4 sm:$0xff]   ;;  %v14463_v33 = vld [vmem:[#allocation147_spill] sm:$0xff] }
 0x31d   :  { %v7052_v25 = vpop.f32.mrf.mxu1  ;;  %7729 = vmatmul.mubr.bf16.vlgmr.msra.gmra.mxu1 %v14462_v9  ;;  %v13117_v44 = vadd.f32 %v6902_v49, %v6790_v17  ;;  %v6940_v1 = vadd.f32 %v6939_v28, %v12990_v55  ;;  %7810 = vmatpush1.bf16.msra.mxu0 %v11230_v54  ;;  %v14464_v49 = vld [vmem:[#allocation148_spill] sm:$0xff] }
 0x31e   :  { %7923 = vmatpush1.bf16.msra.mxu1 %v11233_v53  ;;  %v6941_v20 = vpop.f32.mrf.mxu0  ;;  %7811 = vmatprep.subr.bf16.mxu0 %v11238_v35  ;;  %v11242_v35 = vld [vmem:[#allocation5 + $0x14a8] ss:$16 sps:$4 sm:$0xff]  }
 0x31f   :  { %v7054_v18 = vpop.f32.mrf.mxu1  ;;  %7924 = vmatprep.subr.bf16.mxu1 %v11241_v32  ;;  %v13120_v12 = vadd.f32 %v7052_v25, %v6940_v1  ;;  %v6942_v52 = vadd.f32 %v6941_v20, %v12995_v26  ;;  %7625 = vmatprep.mubr.bf16.mxu0 %v14463_v33  ;;  %v11245_v32 = vld [vmem:[#allocation5 + $0x16a8] ss:$16 sps:$4 sm:$0xff]   ;;  %v11250_v25 = vld [vmem:[#allocation5 + $0x148c] ss:$16 sps:$4 sm:$0xff]  }
 0x320   :  { %7738 = vmatprep.mubr.bf16.mxu1 %v14464_v49  ;;  %v6943_v17 = vpop.f32.mrf.mxu0  ;;  %v11253_v26 = vld [vmem:[#allocation5 + $0x168c] ss:$16 sps:$4 sm:$0xff]  }
 0x321   :  { %v7056_v55 = vpop.f32.mrf.mxu1  ;;  %v13125_v54 = vadd.f32 %v7054_v18, %v6942_v52  ;;  %v6944_v53 = vadd.f32 %v6943_v17, %v13000_v36  ;;  %7812 = vmatpush1.bf16.msra.mxu0 %v11236_v37  ;;  %v14465_v18 = vld [vmem:[#allocation149_spill] sm:$0xff]  ;;  %v14466_v52 = vld [vmem:[#allocation150_spill] sm:$0xff] }
 0x322   :  { %7925 = vmatpush1.bf16.msra.mxu1 %v11239_v50  ;;  %v6945_v28 = vpop.f32.mrf.mxu0  ;;  %7813 = vmatprep.subr.bf16.mxu0 %v11244_v41  ;;  %v11248_v50 = vld [vmem:[#allocation5 + $0x1488] ss:$16 sps:$4 sm:$0xff]  }
 0x323   :  { %v7058_v9 = vpop.f32.mrf.mxu1  ;;  %7926 = vmatprep.subr.bf16.mxu1 %v11247_v63  ;;  %v13128_v1 = vadd.f32 %v7056_v55, %v6944_v53  ;;  %v6946_v20 = vadd.f32 %v6945_v28, %v13005_v57  ;;  %v11251_v41 = vld [vmem:[#allocation5 + $0x1688] ss:$16 sps:$4 sm:$0xff]   ;;  %v11256_v55 = vld [vmem:[#allocation5 + $0x146c] ss:$16 sps:$4 sm:$0xff]  }
 0x324   :  { %v6949_v33 = vpop.f32.mrf.mxu0  ;;  %7626 = vmatmul.mubr.bf16.gmra.mxu0 %v14465_v18  ;;  %v11259_v57 = vld [vmem:[#allocation5 + $0x166c] ss:$16 sps:$4 sm:$0xff]   ;;  %v14467_v18 = vld [vmem:[#allocation151_spill] sm:$0xff] }
 0x325   :  { %v7062_v49 = vpop.f32.mrf.mxu1  ;;  %7739 = vmatmul.mubr.bf16.gmra.mxu1 %v14466_v52  ;;  %v13133_v36 = vadd.f32 %v7058_v9, %v6946_v20  ;;  %v6950_v37 = vadd.f32 %v6949_v33, %v13008_v34  ;;  %7814 = vmatpush1.bf16.msra.mxu0 %v11242_v35  ;;  %v14468_v9 = vld [vmem:[#allocation152_spill] sm:$0xff] }
 0x326   :  { %7927 = vmatpush1.bf16.msra.mxu1 %v11245_v32  ;;  %v6951_v63 = vpop.f32.mrf.mxu0  ;;  %7815 = vmatprep.subr.bf16.mxu0 %v11250_v25  ;;  %v11254_v25 = vld [vmem:[#allocation5 + $0x1468] ss:$16 sps:$4 sm:$0xff]  }
 0x327   :  { %v7064_v17 = vpop.f32.mrf.mxu1  ;;  %7928 = vmatprep.subr.bf16.mxu1 %v11253_v26  ;;  %v13136_v53 = vadd.f32 %v7062_v49, %v6950_v37  ;;  %v6952_v28 = vadd.f32 %v6951_v63, %v13013_v10  ;;  %7635 = vmatprep.mubr.bf16.mxu0 %v14467_v18  ;;  %v11257_v26 = vld [vmem:[#allocation5 + $0x1668] ss:$16 sps:$4 sm:$0xff]   ;;  %v11262_v49 = vld [vmem:[#allocation5 + $0x144c] ss:$16 sps:$4 sm:$0xff]  }
 0x328   :  { %7748 = vmatprep.mubr.bf16.mxu1 %v14468_v9  ;;  %v6953_v20 = vpop.f32.mrf.mxu0  ;;  %v11265_v10 = vld [vmem:[#allocation5 + $0x164c] ss:$16 sps:$4 sm:$0xff]  }
 0x329   :  { %v7066_v34 = vpop.f32.mrf.mxu1  ;;  %v13141_v35 = vadd.f32 %v7064_v17, %v6952_v28  ;;  %v6954_v32 = vadd.f32 %v6953_v20, %v13016_v56  ;;  %7816 = vmatpush1.bf16.msra.mxu0 %v11248_v50  ;;  %v14469_v17 = vld [vmem:[#allocation153_spill] sm:$0xff]  ;;  %v14470_v28 = vld [vmem:[#allocation154_spill] sm:$0xff] }
 0x32a   :  { %7929 = vmatpush1.bf16.msra.mxu1 %v11251_v41  ;;  %v6955_v33 = vpop.f32.mrf.mxu0  ;;  %7817 = vmatprep.subr.bf16.mxu0 %v11256_v55  ;;  %v11260_v41 = vld [vmem:[#allocation5 + $0x1448] ss:$16 sps:$4 sm:$0xff]  }
 0x32b   :  { %v7068_v52 = vpop.f32.mrf.mxu1  ;;  %7930 = vmatprep.subr.bf16.mxu1 %v11259_v57  ;;  %v13144_v37 = vadd.f32 %v7066_v34, %v6954_v32  ;;  %v6956_v63 = vadd.f32 %v6955_v33, %v13021_v6  ;;  %v11263_v55 = vld [vmem:[#allocation5 + $0x1648] ss:$16 sps:$4 sm:$0xff]   ;;  %v11268_v34 = vld [vmem:[#allocation5 + $0x142c] ss:$16 sps:$4 sm:$0xff]  }
 0x32c   :  { %v6959_v18 = vpop.f32.mrf.mxu0  ;;  %7636 = vmatmul.mubr.bf16.gmra.mxu0 %v14469_v17  ;;  %v11271_v6 = vld [vmem:[#allocation5 + $0x162c] ss:$16 sps:$4 sm:$0xff]   ;;  %v14471_v17 = vld [vmem:[#allocation155_spill] sm:$0xff] }
 0x32d   :  { %v7072_v9 = vpop.f32.mrf.mxu1  ;;  %7749 = vmatmul.mubr.bf16.gmra.mxu1 %v14470_v28  ;;  %v13149_v56 = vadd.f32 %v7068_v52, %v6956_v63  ;;  %v6960_v50 = vadd.f32 %v6959_v18, %v13024_v0  ;;  %7818 = vmatpush1.bf16.msra.mxu0 %v11254_v25  ;;  %v14472_v52 = vld [vmem:[#allocation156_spill] sm:$0xff] }
 0x32e   :  { %7931 = vmatpush1.bf16.msra.mxu1 %v11257_v26  ;;  %v6961_v57 = vpop.f32.mrf.mxu0  ;;  %7819 = vmatprep.subr.bf16.mxu0 %v11262_v49  ;;  %v11266_v49 = vld [vmem:[#allocation5 + $0x1428] ss:$16 sps:$4 sm:$0xff]  }
 0x32f   :  { %v7074_v20 = vpop.f32.mrf.mxu1  ;;  %7932 = vmatprep.subr.bf16.mxu1 %v11265_v10  ;;  %v13152_v32 = vadd.f32 %v7072_v9, %v6960_v50  ;;  %v6962_v33 = vadd.f32 %v6961_v57, %v13029_v5  ;;  %7645 = vmatprep.mubr.bf16.mxu0 %v14471_v17  ;;  %v11269_v10 = vld [vmem:[#allocation5 + $0x1628] ss:$16 sps:$4 sm:$0xff]   ;;  %v11274_v9 = vld [vmem:[#allocation5 + $0x140c] ss:$16 sps:$4 sm:$0xff]  }
 0x330   :  { %7758 = vmatprep.mubr.bf16.mxu1 %v14472_v52  ;;  %v6963_v63 = vpop.f32.mrf.mxu0  ;;  %v11277_v5 = vld [vmem:[#allocation5 + $0x160c] ss:$16 sps:$4 sm:$0xff]  }
 0x331   :  { %v7076_v0 = vpop.f32.mrf.mxu1  ;;  %v13157_v25 = vadd.f32 %v7074_v20, %v6962_v33  ;;  %v6964_v26 = vadd.f32 %v6963_v63, %v13032_v11  ;;  %7820 = vmatpush1.bf16.msra.mxu0 %v11260_v41  ;;  %v14473_v20 = vld [vmem:[#allocation157_spill] sm:$0xff]  ;;  %v14474_v33 = vld [vmem:[#allocation158_spill] sm:$0xff] }
 0x332   :  { %7933 = vmatpush1.bf16.msra.mxu1 %v11263_v55  ;;  %v6965_v18 = vpop.f32.mrf.mxu0  ;;  %7821 = vmatprep.subr.bf16.mxu0 %v11268_v34  ;;  %v11272_v55 = vld [vmem:[#allocation5 + $0x1408] ss:$16 sps:$4 sm:$0xff]  }
 0x333   :  { %v7078_v28 = vpop.f32.mrf.mxu1  ;;  %7934 = vmatprep.subr.bf16.mxu1 %v11271_v6  ;;  %v13160_v50 = vadd.f32 %v7076_v0, %v6964_v26  ;;  %v6966_v57 = vadd.f32 %v6965_v18, %v13037_v46  ;;  %v11275_v34 = vld [vmem:[#allocation5 + $0x1608] ss:$16 sps:$4 sm:$0xff]   ;;  %v11280_v0 = vld [vmem:[#allocation5 + $0x15ec] ss:$16 sps:$4 sm:$0xff]  }
 0x334   :  { %v6969_v17 = vpop.f32.mrf.mxu0  ;;  %7646 = vmatmul.mubr.bf16.gmra.mxu0 %v14473_v20  ;;  %v11283_v46 = vld [vmem:[#allocation5 + $0x17ec] ss:$16 sps:$4 sm:$0xff]   ;;  %v14475_v20 = vld [vmem:[#allocation159_spill] sm:$0xff] }
 0x335   :  { %v7082_v52 = vpop.f32.mrf.mxu1  ;;  %7759 = vmatmul.mubr.bf16.gmra.mxu1 %v14474_v33  ;;  %v13165_v11 = vadd.f32 %v7078_v28, %v6966_v57  ;;  %v6970_v41 = vadd.f32 %v6969_v17, %v13040_v62  ;;  %7822 = vmatpush1.bf16.msra.mxu0 %v11266_v49  ;;  %v14476_v28 = vld [vmem:[#allocation160_spill] sm:$0xff] }
 0x336   :  { %7935 = vmatpush1.bf16.msra.mxu1 %v11269_v10  ;;  %v6971_v6 = vpop.f32.mrf.mxu0  ;;  %7823 = vmatprep.subr.bf16.mxu0 %v11274_v9  ;;  %v11278_v9 = vld [vmem:[#allocation5 + $0x15e8] ss:$16 sps:$4 sm:$0xff]  }
 0x337   :  { %v7084_v63 = vpop.f32.mrf.mxu1  ;;  %7936 = vmatprep.subr.bf16.mxu1 %v11277_v5  ;;  %v13168_v26 = vadd.f32 %v7082_v52, %v6970_v41  ;;  %v6972_v18 = vadd.f32 %v6971_v6, %v13045_v3  ;;  %7655 = vmatprep.mubr.bf16.mxu0 %v14475_v20  ;;  %v11281_v5 = vld [vmem:[#allocation5 + $0x17e8] ss:$16 sps:$4 sm:$0xff]   ;;  %v11286_v52 = vld [vmem:[#allocation5 + $0x15cc] ss:$16 sps:$4 sm:$0xff]  }
 0x338   :  { %7768 = vmatprep.mubr.bf16.mxu1 %v14476_v28  ;;  %v6973_v57 = vpop.f32.mrf.mxu0  ;;  %v11289_v3 = vld [vmem:[#allocation5 + $0x17cc] ss:$16 sps:$4 sm:$0xff]  }
 0x339   :  { %v7086_v62 = vpop.f32.mrf.mxu1  ;;  %v13173_v49 = vadd.f32 %v7084_v63, %v6972_v18  ;;  %v6974_v10 = vadd.f32 %v6973_v57, %v13048_v8  ;;  %7824 = vmatpush1.bf16.msra.mxu0 %v11272_v55  ;;  %v14477_v63 = vld [vmem:[#allocation161_spill] sm:$0xff]  ;;  %v14478_v18 = vld [vmem:[#allocation162_spill] sm:$0xff] }
 0x33a   :  { %7937 = vmatpush1.bf16.msra.mxu1 %v11275_v34  ;;  %v6975_v17 = vpop.f32.mrf.mxu0  ;;  %7825 = vmatprep.subr.bf16.mxu0 %v11280_v0  ;;  %v11284_v34 = vld [vmem:[#allocation5 + $0x15c8] ss:$16 sps:$4 sm:$0xff]  }
 0x33b   :  { %v7088_v33 = vpop.f32.mrf.mxu1  ;;  %7938 = vmatprep.subr.bf16.mxu1 %v11283_v46  ;;  %v13176_v41 = vadd.f32 %v7086_v62, %v6974_v10  ;;  %v6976_v6 = vadd.f32 %v6975_v17, %v13053_v60  ;;  %v11287_v0 = vld [vmem:[#allocation5 + $0x17c8] ss:$16 sps:$4 sm:$0xff]   ;;  %v11292_v62 = vld [vmem:[#allocation5 + $0x15ac] ss:$16 sps:$4 sm:$0xff]  }
 0x33c   :  { %v6979_v20 = vpop.f32.mrf.mxu0  ;;  %7656 = vmatmul.mubr.bf16.gmra.mxu0 %v14477_v63  ;;  %v11295_v60 = vld [vmem:[#allocation5 + $0x17ac] ss:$16 sps:$4 sm:$0xff]   ;;  %v14479_v63 = vld [vmem:[#allocation163_spill] sm:$0xff] }
 0x33d   :  { %v7092_v28 = vpop.f32.mrf.mxu1  ;;  %7769 = vmatmul.mubr.bf16.gmra.mxu1 %v14478_v18  ;;  %v13181_v8 = vadd.f32 %v7088_v33, %v6976_v6  ;;  %v6980_v55 = vadd.f32 %v6979_v20, %v13056_v58  ;;  %7826 = vmatpush2.bf16.msra.mxu0 %v11278_v9  ;;  %v14480_v33 = vld [vmem:[#allocation164_spill] sm:$0xff] }
 0x33e   :  { %7939 = vmatpush2.bf16.msra.mxu1 %v11281_v5  ;;  %v6981_v46 = vpop.f32.mrf.mxu0  ;;  %7827 = vmatprep.subr.bf16.mxu0 %v11286_v52  ;;  %v11290_v52 = vld [vmem:[#allocation5 + $0x15a8] ss:$16 sps:$4 sm:$0xff]  }
 0x33f   :  { %v7094_v57 = vpop.f32.mrf.mxu1  ;;  %7940 = vmatprep.subr.bf16.mxu1 %v11289_v3  ;;  %v13184_v10 = vadd.f32 %v7092_v28, %v6980_v55  ;;  %v6982_v17 = vadd.f32 %v6981_v46, %v13061_v47  ;;  %7665 = vmatprep.mubr.bf16.mxu0 %v14479_v63  ;;  %v11293_v3 = vld [vmem:[#allocation5 + $0x17a8] ss:$16 sps:$4 sm:$0xff]   ;;  %v11298_v28 = vld [vmem:[#allocation5 + $0x158c] ss:$16 sps:$4 sm:$0xff]  }
 0x340   :  { %7778 = vmatprep.mubr.bf16.mxu1 %v14480_v33  ;;  %v6983_v6 = vpop.f32.mrf.mxu0  ;;  %v11301_v47 = vld [vmem:[#allocation5 + $0x178c] ss:$16 sps:$4 sm:$0xff]  }
 0x341   :  { %v7096_v58 = vpop.f32.mrf.mxu1  ;;  %v13189_v9 = vadd.f32 %v7094_v57, %v6982_v17  ;;  %v6984_v5 = vadd.f32 %v6983_v6, %v13064_v21  ;;  %7828 = vmatpush2.bf16.msra.mxu0 %v11284_v34  ;;  %v14481_v57 = vld [vmem:[#allocation165_spill] sm:$0xff]  ;;  %v14482_v17 = vld [vmem:[#allocation166_spill] sm:$0xff] }
 0x342   :  { %7941 = vmatpush2.bf16.msra.mxu1 %v11287_v0  ;;  %v6985_v20 = vpop.f32.mrf.mxu0  ;;  %7829 = vmatprep.subr.bf16.mxu0 %v11292_v62  ;;  %v11296_v0 = vld [vmem:[#allocation5 + $0x1588] ss:$16 sps:$4 sm:$0xff]  }
 0x343   :  { %v7098_v18 = vpop.f32.mrf.mxu1  ;;  %7942 = vmatprep.subr.bf16.mxu1 %v11295_v60  ;;  %v13192_v55 = vadd.f32 %v7096_v58, %v6984_v5  ;;  %v6986_v46 = vadd.f32 %v6985_v20, %v13069_v51  ;;  %v11299_v62 = vld [vmem:[#allocation5 + $0x1788] ss:$16 sps:$4 sm:$0xff]   ;;  %v11304_v58 = vld [vmem:[#allocation5 + $0x156c] ss:$16 sps:$4 sm:$0xff]  }
 0x344   :  { %v6989_v63 = vpop.f32.mrf.mxu0  ;;  %7666 = vmatmul.mubr.bf16.gmra.mxu0 %v14481_v57  ;;  %v11307_v51 = vld [vmem:[#allocation5 + $0x176c] ss:$16 sps:$4 sm:$0xff]   ;;  %v14483_v57 = vld [vmem:[#allocation167_spill] sm:$0xff] }
 0x345   :  { %v7102_v33 = vpop.f32.mrf.mxu1  ;;  %7779 = vmatmul.mubr.bf16.gmra.mxu1 %v14482_v17  ;;  %v13197_v21 = vadd.f32 %v7098_v18, %v6986_v46  ;;  %v6990_v34 = vadd.f32 %v6989_v63, %v13072_v14  ;;  %7830 = vmatpush2.bf16.msra.mxu0 %v11290_v52  ;;  %v14484_v18 = vld [vmem:[#allocation168_spill] sm:$0xff] }
 0x346   :  { %7943 = vmatpush2.bf16.msra.mxu1 %v11293_v3  ;;  %v6991_v60 = vpop.f32.mrf.mxu0  ;;  %7831 = vmatprep.subr.bf16.mxu0 %v11298_v28  ;;  %v11302_v28 = vld [vmem:[#allocation5 + $0x1568] ss:$16 sps:$4 sm:$0xff]  }
 0x347   :  { %v7104_v6 = vpop.f32.mrf.mxu1  ;;  %7944 = vmatprep.subr.bf16.mxu1 %v11301_v47  ;;  %v13200_v5 = vadd.f32 %v7102_v33, %v6990_v34  ;;  %v6992_v20 = vadd.f32 %v6991_v60, %v13077_v22  ;;  %7675 = vmatprep.mubr.bf16.mxu0 %v14483_v57  ;;  %v11305_v47 = vld [vmem:[#allocation5 + $0x1768] ss:$16 sps:$4 sm:$0xff]   ;;  %v11310_v33 = vld [vmem:[#allocation5 + $0x154c] ss:$16 sps:$4 sm:$0xff]  }
 0x348   :  { %7788 = vmatprep.mubr.bf16.mxu1 %v14484_v18  ;;  %v6993_v46 = vpop.f32.mrf.mxu0  ;;  %v11313_v22 = vld [vmem:[#allocation5 + $0x174c] ss:$16 sps:$4 sm:$0xff]  }
 0x349   :  { %v7106_v14 = vpop.f32.mrf.mxu1  ;;  %v13205_v52 = vadd.f32 %v7104_v6, %v6992_v20  ;;  %v6994_v3 = vadd.f32 %v6993_v46, %v13080_v30  ;;  %7832 = vmatpush2.bf16.msra.mxu0 %v11296_v0  ;;  %v14485_v6 = vld [vmem:[#allocation169_spill] sm:$0xff]  ;;  %v14486_v20 = vld [vmem:[#allocation170_spill] sm:$0xff] }
 0x34a   :  { %7945 = vmatpush2.bf16.msra.mxu1 %v11299_v62  ;;  %v6995_v63 = vpop.f32.mrf.mxu0  ;;  %7833 = vmatprep.subr.bf16.mxu0 %v11304_v58  ;;  %v11308_v62 = vld [vmem:[#allocation5 + $0x1548] ss:$16 sps:$4 sm:$0xff]  }
 0x34b   :  { %v7108_v17 = vpop.f32.mrf.mxu1  ;;  %7946 = vmatprep.subr.bf16.mxu1 %v11307_v51  ;;  %v13208_v34 = vadd.f32 %v7106_v14, %v6994_v3  ;;  %v6996_v60 = vadd.f32 %v6995_v63, %v13085_v7  ;;  %v11311_v58 = vld [vmem:[#allocation5 + $0x1748] ss:$16 sps:$4 sm:$0xff]   ;;  %v11316_v14 = vld [vmem:[#allocation5 + $0x152c] ss:$16 sps:$4 sm:$0xff]  }
 0x34c   :  { %v6999_v57 = vpop.f32.mrf.mxu0  ;;  %7676 = vmatmul.mubr.bf16.gmra.mxu0 %v14485_v6  ;;  %v11319_v7 = vld [vmem:[#allocation5 + $0x172c] ss:$16 sps:$4 sm:$0xff]   ;;  %v14487_v6 = vld [vmem:[#allocation171_spill] sm:$0xff] }
 0x34d   :  { %v7112_v18 = vpop.f32.mrf.mxu1  ;;  %7789 = vmatmul.mubr.bf16.gmra.mxu1 %v14486_v20  ;;  %v13213_v30 = vadd.f32 %v7108_v17, %v6996_v60  ;;  %v7000_v0 = vadd.f32 %v6999_v57, %v13088_v15  ;;  %7834 = vmatpush2.bf16.msra.mxu0 %v11302_v28  ;;  %v14488_v17 = vld [vmem:[#allocation172_spill] sm:$0xff] }
 0x34e   :  { %7947 = vmatpush2.bf16.msra.mxu1 %v11305_v47  ;;  %v7001_v51 = vpop.f32.mrf.mxu0  ;;  %7835 = vmatprep.subr.bf16.mxu0 %v11310_v33  ;;  %v11314_v33 = vld [vmem:[#allocation5 + $0x1528] ss:$16 sps:$4 sm:$0xff]  }
 0x34f   :  { %v7114_v46 = vpop.f32.mrf.mxu1  ;;  %7948 = vmatprep.subr.bf16.mxu1 %v11313_v22  ;;  %v13216_v3 = vadd.f32 %v7112_v18, %v7000_v0  ;;  %v7002_v63 = vadd.f32 %v7001_v51, %v13093_v61  ;;  %7685 = vmatprep.mubr.bf16.mxu0 %v14487_v6  ;;  %v11317_v22 = vld [vmem:[#allocation5 + $0x1728] ss:$16 sps:$4 sm:$0xff]   ;;  %v11322_v18 = vld [vmem:[#allocation5 + $0x150c] ss:$16 sps:$4 sm:$0xff]  }
 0x350   :  { %7798 = vmatprep.mubr.bf16.mxu1 %v14488_v17  ;;  %v7003_v60 = vpop.f32.mrf.mxu0  ;;  %v11325_v61 = vld [vmem:[#allocation5 + $0x170c] ss:$16 sps:$4 sm:$0xff]  }
 0x351   :  { %v7116_v15 = vpop.f32.mrf.mxu1  ;;  %v13221_v28 = vadd.f32 %v7114_v46, %v7002_v63  ;;  %v7004_v47 = vadd.f32 %v7003_v60, %v13096_v16  ;;  %7836 = vmatpush2.bf16.msra.mxu0 %v11308_v62  ;;  %v14489_v46 = vld [vmem:[#allocation173_spill] sm:$0xff]  ;;  %v14490_v63 = vld [vmem:[#allocation174_spill] sm:$0xff] }
 0x352   :  { %7949 = vmatpush2.bf16.msra.mxu1 %v11311_v58  ;;  %v7005_v57 = vpop.f32.mrf.mxu0  ;;  %7837 = vmatprep.subr.bf16.mxu0 %v11316_v14  ;;  %v11320_v58 = vld [vmem:[#allocation5 + $0x1508] ss:$16 sps:$4 sm:$0xff]  }
 0x353   :  { %v7118_v20 = vpop.f32.mrf.mxu1  ;;  %7950 = vmatprep.subr.bf16.mxu1 %v11319_v7  ;;  %v13224_v0 = vadd.f32 %v7116_v15, %v7004_v47  ;;  %v7006_v51 = vadd.f32 %v7005_v57, %v13101_v31  ;;  %v11323_v14 = vld [vmem:[#allocation5 + $0x1708] ss:$16 sps:$4 sm:$0xff]   ;;  %v14491_v57 = vld [vmem:[#allocation175_spill] sm:$0xff] }
 0x354   :  { %v7009_v6 = vpop.f32.mrf.mxu0  ;;  %7686 = vmatmul.mubr.bf16.gmra.mxu0 %v14489_v46  ;;  %v11328_v15 = vld [vmem:[#allocation8 + $0x74] ss:$8 sps:$4 sm:$0xff]   ;;  %v14492_v46 = vld [vmem:[#allocation176_spill] sm:$0xff] }
 0x355   :  { %v7122_v17 = vpop.f32.mrf.mxu1  ;;  %7799 = vmatmul.mubr.bf16.gmra.mxu1 %v14490_v63  ;;  %v13229_v16 = vadd.f32 %v7118_v20, %v7006_v51  ;;  %v7010_v62 = vadd.f32 %v7009_v6, %v13104_v13  ;;  %7838 = vmatpush2.bf16.msra.mxu0 %v11314_v33  ;;  %v11331_v6 = vld [vmem:[#allocation8 + $0x64] ss:$8 sps:$4 sm:$0xff]  }
 0x356   :  { %7951 = vmatpush2.bf16.msra.mxu1 %v11317_v22  ;;  %v7011_v7 = vpop.f32.mrf.mxu0  ;;  %7839 = vmatprep.subr.bf16.mxu0 %v11322_v18  ;;  %v11326_v22 = vld [vmem:[#allocation8 + $0x70] ss:$8 sps:$4 sm:$0xff]  }
 0x357   :  { %v7124_v60 = vpop.f32.mrf.mxu1  ;;  %7952 = vmatprep.subr.bf16.mxu1 %v11325_v61  ;;  %v13232_v31 = vadd.f32 %v7122_v17, %v7010_v62  ;;  %v7012_v47 = vadd.f32 %v7011_v7, %v13109_v4  ;;  %7841 = vmatprep.mubr.bf16.mxu0 %v14491_v57  ;;  %v14493_v7 = vld [vmem:[#allocation177_spill] sm:$0xff]  ;;  %v14494_v57 = vld [vmem:[#allocation178_spill] sm:$0xff] }
 0x358   :  { %7954 = vmatprep.mubr.bf16.mxu1 %v14492_v46  ;;  %v7013_v20 = vpop.f32.mrf.mxu0  ;;  %v14496_v46 = vld [vmem:[#allocation180_spill] sm:$0xff] }
 0x359   :  { %v7126_v51 = vpop.f32.mrf.mxu1  ;;  %v13237_v13 = vadd.f32 %v7124_v60, %v7012_v47  ;;  %v7014_v33 = vadd.f32 %v7013_v20, %v13112_v42  ;;  %7840 = vmatpush2.bf16.msra.mxu0 %v11320_v58  ;;  %v11329_v58 = vld [vmem:[#allocation8 + $0x60] ss:$8 sps:$4 sm:$0xff]  }
 0x35a   :  { %7953 = vmatpush2.bf16.msra.mxu1 %v11323_v14  ;;  %v7015_v18 = vpop.f32.mrf.mxu0  ;;  %8527 = vmatprep.subr.bf16.mxu0 %v11328_v15  ;;  %v14495_v14 = vld [vmem:[#allocation179_spill] sm:$0xff] }
 0x35b   :  { %v7128_v61 = vpop.f32.mrf.mxu1  ;;  %v13240_v17 = vadd.f32 %v7126_v51, %v7014_v33  ;;  %v7016_v4 = vadd.f32 %v7015_v18, %v13117_v44  ;;  %v11334_v44 = vld [vmem:[#allocation8 + $0x54] ss:$8 sps:$4 sm:$0xff]  }
 0x35c   :  { %v7165_v63 = vpop.f32.mrf.mxu0  ;;  %7842 = vmatmul.mubr.bf16.vlgmr.msra.gmra.mxu0 %v14493_v7  ;;  %v11337_v7 = vld [vmem:[#allocation8 + $0x44] ss:$8 sps:$4 sm:$0xff]  }
 0x35d   :  { %v7278_v62 = vpop.f32.mrf.mxu1  ;;  %7955 = vmatmul.mubr.bf16.vlgmr.msra.gmra.mxu1 %v14494_v57  ;;  %v13245_v60 = vadd.f32 %v7128_v61, %v7016_v4  ;;  %v7166_v42 = vadd.f32 %v7165_v63, %v13120_v12  ;;  %8528 = vmatpush1.bf16.msra.mxu0 %v11326_v22  ;;  %v11332_v22 = vld [vmem:[#allocation8 + $0x50] ss:$8 sps:$4 sm:$0xff]  }
 0x35e   :  { %7851 = vmatprep.mubr.bf16.mxu0 %v14495_v14  ;;  %v7167_v15 = vpop.f32.mrf.mxu0  ;;  %8529 = vmatprep.subr.bf16.mxu0 %v11331_v6  ;;  %v14497_v14 = vld [vmem:[#allocation181_spill] sm:$0xff] }
 0x35f   :  { %v7280_v47 = vpop.f32.mrf.mxu1  ;;  %7964 = vmatprep.mubr.bf16.mxu1 %v14496_v46  ;;  %v13250_v20 = vadd.f32 %v7278_v62, %v7166_v42  ;;  %v7168_v51 = vadd.f32 %v7167_v15, %v13125_v54  ;;  %v14498_v54 = vld [vmem:[#allocation182_spill] sm:$0xff] }
 0x360   :  { %v7169_v33 = vpop.f32.mrf.mxu0 }
 0x361   :  { %v7282_v18 = vpop.f32.mrf.mxu1  ;;  %v13253_v61 = vadd.f32 %v7280_v47, %v7168_v51  ;;  %v7170_v12 = vadd.f32 %v7169_v33, %v13128_v1  ;;  %8530 = vmatpush1.bf16.msra.mxu0 %v11329_v58  ;;  %v11335_v58 = vld [vmem:[#allocation8 + $0x40] ss:$8 sps:$4 sm:$0xff]  }
 0x362   :  { %v7171_v4 = vpop.f32.mrf.mxu0  ;;  %8531 = vmatprep.subr.bf16.mxu0 %v11334_v44  ;;  %v14499_v47 = vld [vmem:[#allocation183_spill] sm:$0xff]  ;;  %v14500_v51 = vld [vmem:[#allocation184_spill] sm:$0xff] }
 0x363   :  { %v7284_v63 = vpop.f32.mrf.mxu1  ;;  %v13256_v6 = vadd.f32 %v7282_v18, %v7170_v12  ;;  %v7172_v57 = vadd.f32 %v7171_v4, %v13133_v36  ;;  %v11340_v36 = vld [vmem:[#allocation8 + $0x34] ss:$8 sps:$4 sm:$0xff]  }
 0x364   :  { %v7175_v62 = vpop.f32.mrf.mxu0  ;;  %7852 = vmatmul.mubr.bf16.gmra.mxu0 %v14497_v14  ;;  %v11343_v14 = vld [vmem:[#allocation8 + $0x24] ss:$8 sps:$4 sm:$0xff]  }
 0x365   :  { %v7288_v42 = vpop.f32.mrf.mxu1  ;;  %7965 = vmatmul.mubr.bf16.gmra.mxu1 %v14498_v54  ;;  %v13261_v15 = vadd.f32 %v7284_v63, %v7172_v57  ;;  %v7176_v1 = vadd.f32 %v7175_v62, %v13136_v53  ;;  %8532 = vmatpush1.bf16.msra.mxu0 %v11332_v22  ;;  %v11338_v22 = vld [vmem:[#allocation8 + $0x30] ss:$8 sps:$4 sm:$0xff]  }
 0x366   :  { %7861 = vmatprep.mubr.bf16.mxu0 %v14499_v47  ;;  %v7177_v46 = vpop.f32.mrf.mxu0  ;;  %8533 = vmatprep.subr.bf16.mxu0 %v11337_v7 }
 0x367   :  { %v7290_v44 = vpop.f32.mrf.mxu1  ;;  %7974 = vmatprep.mubr.bf16.mxu1 %v14500_v51  ;;  %v13266_v33 = vadd.f32 %v7288_v42, %v7176_v1  ;;  %v7178_v18 = vadd.f32 %v7177_v46, %v13141_v35  ;;  %v11376_v42 = vld [vmem:[#allocation8 + $0x174] ss:$8 sps:$4 sm:$0xff]   ;;  %v14501_v35 = vld [vmem:[#allocation185_spill] sm:$0xff] }
 0x368   :  { %v7179_v12 = vpop.f32.mrf.mxu0  ;;  %v14502_v46 = vld [vmem:[#allocation186_spill] sm:$0xff]  ;;  %8640 = vmatprep.subr.bf16.mxu1 %v11376_v42 }
 0x369   :  { %v7292_v4 = vpop.f32.mrf.mxu1  ;;  %v13269_v63 = vadd.f32 %v7290_v44, %v7178_v18  ;;  %v7180_v53 = vadd.f32 %v7179_v12, %v13144_v37  ;;  %8534 = vmatpush1.bf16.msra.mxu0 %v11335_v58  ;;  %v11374_v44 = vld [vmem:[#allocation8 + $0x170] ss:$8 sps:$4 sm:$0xff]   ;;  %v11341_v58 = vld [vmem:[#allocation8 + $0x20] ss:$8 sps:$4 sm:$0xff]  }
 0x36a   :  { %v7181_v57 = vpop.f32.mrf.mxu0  ;;  %8535 = vmatprep.subr.bf16.mxu0 %v11340_v36  ;;  %v14503_v36 = vld [vmem:[#allocation187_spill] sm:$0xff]  ;;  %8641 = vmatpush1.bf16.msra.mxu1 %v11374_v44  ;;  %v14506_v44 = vld [vmem:[#allocation190_spill] sm:$0xff] }
 0x36b   :  { %v7294_v62 = vpop.f32.mrf.mxu1  ;;  %v13272_v7 = vadd.f32 %v7292_v4, %v7180_v53  ;;  %v7182_v54 = vadd.f32 %v7181_v57, %v13149_v56  ;;  %v14504_v56 = vld [vmem:[#allocation188_spill] sm:$0xff]  ;;  %v11346_v4 = vld [vmem:[#allocation8 + $0x14] ss:$8 sps:$4 sm:$0xff]  }
 0x36c   :  { %v7185_v1 = vpop.f32.mrf.mxu0  ;;  %7862 = vmatmul.mubr.bf16.gmra.mxu0 %v14501_v35  ;;  %v11379_v53 = vld [vmem:[#allocation8 + $0x164] ss:$8 sps:$4 sm:$0xff]  }
 0x36d   :  { %v7298_v47 = vpop.f32.mrf.mxu1  ;;  %7975 = vmatmul.mubr.bf16.gmra.mxu1 %v14502_v46  ;;  %v13277_v51 = vadd.f32 %v7294_v62, %v7182_v54  ;;  %v7186_v37 = vadd.f32 %v7185_v1, %v13152_v32  ;;  %8536 = vmatpush1.bf16.msra.mxu0 %v11338_v22  ;;  %v11344_v1 = vld [vmem:[#allocation8 + $0x10] ss:$8 sps:$4 sm:$0xff]  }
 0x36e   :  { %7871 = vmatprep.mubr.bf16.mxu0 %v14503_v36  ;;  %v7187_v18 = vpop.f32.mrf.mxu0  ;;  %8537 = vmatprep.subr.bf16.mxu0 %v11343_v14  ;;  %v11349_v36 = vld [vmem:[#allocation8 + $0x4] ss:$8 sps:$4 sm:$0xff]  }
 0x36f   :  { %v7300_v12 = vpop.f32.mrf.mxu1  ;;  %7984 = vmatprep.mubr.bf16.mxu1 %v14504_v56  ;;  %v13282_v57 = vadd.f32 %v7298_v47, %v7186_v37  ;;  %v7188_v35 = vadd.f32 %v7187_v18, %v13157_v25  ;;  %8642 = vmatprep.subr.bf16.mxu1 %v11379_v53  ;;  %v11377_v25 = vld [vmem:[#allocation8 + $0x160] ss:$8 sps:$4 sm:$0xff]   ;;  %v14505_v18 = vld [vmem:[#allocation189_spill] sm:$0xff] }
 0x370   :  { %v7189_v62 = vpop.f32.mrf.mxu0  ;;  %v11347_v53 = vld [vmem:[#allocation8] ss:$8 sps:$4 sm:$0xff]   ;;  %8643 = vmatpush1.bf16.msra.mxu1 %v11377_v25 }
 0x371   :  { %v7302_v54 = vpop.f32.mrf.mxu1  ;;  %v13285_v32 = vadd.f32 %v7300_v12, %v7188_v35  ;;  %v7190_v22 = vadd.f32 %v7189_v62, %v13160_v50  ;;  %8538 = vmatpush1.bf16.msra.mxu0 %v11341_v58  ;;  %v11382_v12 = vld [vmem:[#allocation8 + $0x154] ss:$8 sps:$4 sm:$0xff]  }
 0x372   :  { %v7191_v14 = vpop.f32.mrf.mxu0  ;;  %8539 = vmatprep.subr.bf16.mxu0 %v11346_v4  ;;  %v14507_v4 = vld [vmem:[#allocation191_spill] sm:$0xff]  ;;  %8644 = vmatprep.subr.bf16.mxu1 %v11382_v12  ;;  %v14510_v12 = vld [vmem:[#allocation194_spill] sm:$0xff] }
 0x373   :  { %v7304_v46 = vpop.f32.mrf.mxu1  ;;  %v13288_v56 = vadd.f32 %v7302_v54, %v7190_v22  ;;  %v7192_v47 = vadd.f32 %v7191_v14, %v13165_v11  ;;  %v14508_v11 = vld [vmem:[#allocation192_spill] sm:$0xff]  ;;  %v11352_v54 = vld [vmem:[#allocation8 + $0xf4] ss:$8 sps:$4 sm:$0xff]  }
 0x374   :  { %v7195_v42 = vpop.f32.mrf.mxu0  ;;  %7872 = vmatmul.mubr.bf16.gmra.mxu0 %v14505_v18  ;;  %v11380_v18 = vld [vmem:[#allocation8 + $0x150] ss:$8 sps:$4 sm:$0xff]  }
 0x375   :  { %v7308_v37 = vpop.f32.mrf.mxu1  ;;  %7985 = vmatmul.mubr.bf16.gmra.mxu1 %v14506_v44  ;;  %v13293_v50 = vadd.f32 %v7304_v46, %v7192_v47  ;;  %v7196_v58 = vadd.f32 %v7195_v42, %v13168_v26  ;;  %8540 = vmatpush1.bf16.msra.mxu0 %v11344_v1  ;;  %v11350_v42 = vld [vmem:[#allocation8 + $0xf0] ss:$8 sps:$4 sm:$0xff]  }
 0x376   :  { %7881 = vmatprep.mubr.bf16.mxu0 %v14507_v4  ;;  %v7197_v35 = vpop.f32.mrf.mxu0  ;;  %8541 = vmatprep.subr.bf16.mxu0 %v11349_v36  ;;  %v11355_v4 = vld [vmem:[#allocation8 + $0xe4] ss:$8 sps:$4 sm:$0xff]  }
 0x377   :  { %v7310_v62 = vpop.f32.mrf.mxu1  ;;  %7994 = vmatprep.mubr.bf16.mxu1 %v14508_v11  ;;  %v13298_v22 = vadd.f32 %v7308_v37, %v7196_v58  ;;  %v7198_v14 = vadd.f32 %v7197_v35, %v13173_v49  ;;  %8645 = vmatpush1.bf16.msra.mxu1 %v11380_v18  ;;  %v11385_v49 = vld [vmem:[#allocation8 + $0x144] ss:$8 sps:$4 sm:$0xff]  }
 0x378   :  { %v7199_v46 = vpop.f32.mrf.mxu0  ;;  %v14509_v35 = vld [vmem:[#allocation193_spill] sm:$0xff]  ;;  %v14512_v18 = vld [vmem:[#allocation196_spill] sm:$0xff]  ;;  %8646 = vmatprep.subr.bf16.mxu1 %v11385_v49 }
 0x379   :  { %v7312_v47 = vpop.f32.mrf.mxu1  ;;  %v13301_v26 = vadd.f32 %v7310_v62, %v7198_v14  ;;  %v7200_v1 = vadd.f32 %v7199_v46, %v13176_v41  ;;  %8542 = vmatpush1.bf16.msra.mxu0 %v11347_v53  ;;  %v11383_v62 = vld [vmem:[#allocation8 + $0x140] ss:$8 sps:$4 sm:$0xff]   ;;  %v11388_v46 = vld [vmem:[#allocation8 + $0x134] ss:$8 sps:$4 sm:$0xff]   ;;  %v11386_v49 = vld [vmem:[#allocation8 + $0x130] ss:$8 sps:$4 sm:$0xff]  }
 0x37a   :  { %v7201_v44 = vpop.f32.mrf.mxu0  ;;  %8543 = vmatprep.subr.bf16.mxu0 %v11352_v54  ;;  %v11353_v54 = vld [vmem:[#allocation8 + $0xe0] ss:$8 sps:$4 sm:$0xff]  }
 0x37b   :  { %v7314_v36 = vpop.f32.mrf.mxu1  ;;  %v13304_v11 = vadd.f32 %v7312_v47, %v7200_v1  ;;  %v7202_v37 = vadd.f32 %v7201_v44, %v13181_v8  ;;  %v14511_v14 = vld [vmem:[#allocation195_spill] sm:$0xff]  ;;  %8647 = vmatpush1.bf16.msra.mxu1 %v11383_v62 }
 0x37c   :  { %v7205_v25 = vpop.f32.mrf.mxu0  ;;  %7882 = vmatmul.mubr.bf16.gmra.mxu0 %v14509_v35  ;;  %v11358_v1 = vld [vmem:[#allocation8 + $0xd4] ss:$8 sps:$4 sm:$0xff]   ;;  %8648 = vmatprep.subr.bf16.mxu1 %v11388_v46  ;;  %v11359_v46 = vld [vmem:[#allocation8 + $0xc0] ss:$8 sps:$4 sm:$0xff]  }
 0x37d   :  { %v7318_v58 = vpop.f32.mrf.mxu1  ;;  %7995 = vmatmul.mubr.bf16.gmra.mxu1 %v14510_v12  ;;  %v13309_v41 = vadd.f32 %v7314_v36, %v7202_v37  ;;  %v7206_v53 = vadd.f32 %v7205_v25, %v13184_v10  ;;  %8544 = vmatpush2.bf16.msra.mxu0 %v11350_v42  ;;  %v11356_v25 = vld [vmem:[#allocation8 + $0xd0] ss:$8 sps:$4 sm:$0xff]  }
 0x37e   :  { %7891 = vmatprep.mubr.bf16.mxu0 %v14511_v14  ;;  %v7207_v47 = vpop.f32.mrf.mxu0  ;;  %8545 = vmatprep.subr.bf16.mxu0 %v11355_v4  ;;  %v11361_v14 = vld [vmem:[#allocation8 + $0xc4] ss:$8 sps:$4 sm:$0xff]  }
 0x37f   :  { %v7320_v8 = vpop.f32.mrf.mxu1  ;;  %8004 = vmatprep.mubr.bf16.mxu1 %v14512_v18  ;;  %v13314_v44 = vadd.f32 %v7318_v58, %v7206_v53  ;;  %v7208_v35 = vadd.f32 %v7207_v47, %v13189_v9  ;;  %v14513_v47 = vld [vmem:[#allocation197_spill] sm:$0xff]  ;;  %v14515_v18 = vld [vmem:[#allocation199_spill] sm:$0xff]  ;;  %8649 = vmatpush1.bf16.msra.mxu1 %v11386_v49 }
 0x380   :  { %v7209_v36 = vpop.f32.mrf.mxu0  ;;  %v11394_v49 = vld [vmem:[#allocation8 + $0x114] ss:$8 sps:$4 sm:$0xff]  }
 0x381   :  { %v7322_v37 = vpop.f32.mrf.mxu1  ;;  %v13317_v10 = vadd.f32 %v7320_v8, %v7208_v35  ;;  %v7210_v42 = vadd.f32 %v7209_v36, %v13192_v55  ;;  %8546 = vmatpush2.bf16.msra.mxu0 %v11353_v54  ;;  %v14514_v8 = vld [vmem:[#allocation198_spill] sm:$0xff]  ;;  %v11391_v55 = vld [vmem:[#allocation8 + $0x124] ss:$8 sps:$4 sm:$0xff]  }
 0x382   :  { %v7211_v12 = vpop.f32.mrf.mxu0  ;;  %8547 = vmatprep.subr.bf16.mxu0 %v11358_v1  ;;  %v14516_v36 = vld [vmem:[#allocation200_spill] sm:$0xff]  ;;  %8650 = vmatprep.subr.bf16.mxu1 %v11391_v55 }
 0x383   :  { %v13320_v4 = vpop.f32.mrf.mxu1  ;;  %v13322_v58 = vadd.f32 %v7322_v37, %v7210_v42  ;;  %v13325_v9 = vadd.f32 %v7211_v12, %v13197_v21  ;;  %v11364_v21 = vld [vmem:[#allocation8 + $0xb4] ss:$8 sps:$4 sm:$0xff]   ;;  %v11389_v12 = vld [vmem:[#allocation8 + $0x120] ss:$8 sps:$4 sm:$0xff]  }
 0x384   :  { %v7215_v53 = vpop.f32.mrf.mxu0  ;;  %7892 = vmatmul.mubr.bf16.gmra.mxu0 %v14513_v47  ;;  %8651 = vmatpush1.bf16.msra.mxu1 %v11389_v12 }
 0x385   :  { %v7328_v62 = vpop.f32.mrf.mxu1  ;;  %8005 = vmatmul.mubr.bf16.gmra.mxu1 %v14514_v8  ;;  %v7216_v54 = vadd.f32 %v7215_v53, %v13200_v5  ;;  %8548 = vmatpush2.bf16.msra.mxu0 %v11356_v25  ;;  %v11362_v53 = vld [vmem:[#allocation8 + $0xb0] ss:$8 sps:$4 sm:$0xff]  }
 0x386   :  { %7901 = vmatprep.mubr.bf16.mxu0 %v14515_v18  ;;  %v7217_v1 = vpop.f32.mrf.mxu0  ;;  %8549 = vmatprep.subr.bf16.mxu0 %v11361_v14 }
 0x387   :  { %v7330_v35 = vpop.f32.mrf.mxu1  ;;  %8014 = vmatprep.mubr.bf16.mxu1 %v14516_v36  ;;  %v13332_v37 = vadd.f32 %v7328_v62, %v7216_v54  ;;  %v7218_v42 = vadd.f32 %v7217_v1, %v13205_v52  ;;  %v11367_v36 = vld [vmem:[#allocation8 + $0xa4] ss:$8 sps:$4 sm:$0xff]   ;;  %v11365_v1 = vld [vmem:[#allocation8 + $0xa0] ss:$8 sps:$4 sm:$0xff]   ;;  %8652 = vmatprep.subr.bf16.mxu1 %v11394_v49  ;;  %v11400_v49 = vld [vmem:[#allocation8 + $0x1f4] ss:$8 sps:$4 sm:$0xff]  }
 0x388   :  { %v7219_v47 = vpop.f32.mrf.mxu0 }
 0x389   :  { %v7332_v8 = vpop.f32.mrf.mxu1  ;;  %v13335_v5 = vadd.f32 %v7330_v35, %v7218_v42  ;;  %v7220_v25 = vadd.f32 %v7219_v47, %v13208_v34  ;;  %8550 = vmatpush2.bf16.msra.mxu0 %v11359_v46  ;;  %v11392_v34 = vld [vmem:[#allocation8 + $0x110] ss:$8 sps:$4 sm:$0xff]   ;;  %v11397_v35 = vld [vmem:[#allocation8 + $0x104] ss:$8 sps:$4 sm:$0xff]  }
 0x38a   :  { %v7221_v18 = vpop.f32.mrf.mxu0  ;;  %8551 = vmatprep.subr.bf16.mxu0 %v11364_v21  ;;  %8653 = vmatpush1.bf16.msra.mxu1 %v11392_v34  ;;  %v11371_v34 = vld [vmem:[#allocation8 + $0x80] ss:$8 sps:$4 sm:$0xff]  }
 0x38b   :  { %v13338_v14 = vpop.f32.mrf.mxu1  ;;  %v13340_v62 = vadd.f32 %v7332_v8, %v7220_v25  ;;  %v13343_v52 = vadd.f32 %v7221_v18, %v13213_v30  ;;  %v11370_v30 = vld [vmem:[#allocation8 + $0x94] ss:$8 sps:$4 sm:$0xff]   ;;  %8654 = vmatprep.subr.bf16.mxu1 %v11397_v35  ;;  %v11395_v18 = vld [vmem:[#allocation8 + $0x100] ss:$8 sps:$4 sm:$0xff]   ;;  %v11398_v35 = vld [vmem:[#allocation8 + $0x1f0] ss:$8 sps:$4 sm:$0xff]  }
 0x38c   :  { %14517 = vst [vmem:[#allocation29_spill] sm:$0xff] %v13338_v14  ;;  %v7225_v54 = vpop.f32.mrf.mxu0  ;;  %7902 = vmatmul.mubr.bf16.gmra.mxu0 %v12579_v19 }
 0x38d   :  { %14518 = vst [vmem:[#allocation30_spill] sm:$0xff] %v13343_v52  ;;  %v7338_v55 = vpop.f32.mrf.mxu1  ;;  %8015 = vmatmul.mubr.bf16.gmra.mxu1 %v12581_v43  ;;  %v7226_v46 = vadd.f32 %v7225_v54, %v13216_v3  ;;  %8552 = vmatpush2.bf16.msra.mxu0 %v11362_v53 }
 0x38e   :  { %7911 = vmatprep.mubr.bf16.mxu0 %v12589_v38  ;;  %v7227_v21 = vpop.f32.mrf.mxu0  ;;  %8553 = vmatprep.subr.bf16.mxu0 %v11367_v36  ;;  %v11368_v38 = vld [vmem:[#allocation8 + $0x90] ss:$8 sps:$4 sm:$0xff]  }
 0x38f   :  { %v7340_v42 = vpop.f32.mrf.mxu1  ;;  %8024 = vmatprep.mubr.bf16.mxu1 %v12591_v59  ;;  %v13350_v12 = vadd.f32 %v7338_v55, %v7226_v46  ;;  %v7228_v19 = vadd.f32 %v7227_v21, %v13221_v28  ;;  %v11373_v59 = vld [vmem:[#allocation8 + $0x84] ss:$8 sps:$4 sm:$0xff]   ;;  %8655 = vmatpush1.bf16.msra.mxu1 %v11395_v18 }
 0x390   :  { %v7229_v43 = vpop.f32.mrf.mxu0  ;;  %8656 = vmatprep.subr.bf16.mxu1 %v11400_v49  ;;  %v11404_v49 = vld [vmem:[#allocation8 + $0x1d0] ss:$8 sps:$4 sm:$0xff]  }
 0x391   :  { %v7342_v47 = vpop.f32.mrf.mxu1  ;;  %v13353_v3 = vadd.f32 %v7340_v42, %v7228_v19  ;;  %v7230_v8 = vadd.f32 %v7229_v43, %v13224_v0  ;;  %8554 = vmatpush2.bf16.msra.mxu0 %v11365_v1  ;;  %v11403_v42 = vld [vmem:[#allocation8 + $0x1e4] ss:$8 sps:$4 sm:$0xff]   ;;  %v11401_v43 = vld [vmem:[#allocation8 + $0x1e0] ss:$8 sps:$4 sm:$0xff]  }
 0x392   :  { %v7231_v25 = vpop.f32.mrf.mxu0  ;;  %8555 = vmatprep.subr.bf16.mxu0 %v11370_v30 }
 0x393   :  { %v13356_v53 = vpop.f32.mrf.mxu1  ;;  %v13358_v36 = vadd.f32 %v7342_v47, %v7230_v8  ;;  %v13361_v28 = vadd.f32 %v7231_v25, %v13229_v16  ;;  %8657 = vmatpush2.bf16.msra.mxu1 %v11398_v35 }
 0x394   :  { %14519 = vst [vmem:[#allocation31_spill] sm:$0xff] %v13356_v53  ;;  %v7235_v54 = vpop.f32.mrf.mxu0  ;;  %7912 = vmatmul.mubr.bf16.gmra.mxu0 %v12603_v40  ;;  %8658 = vmatprep.subr.bf16.mxu1 %v11403_v42 }
 0x395   :  { %14520 = vst [vmem:[#allocation32_spill] sm:$0xff] %v13361_v28  ;;  %v7348_v55 = vpop.f32.mrf.mxu1  ;;  %8025 = vmatmul.mubr.bf16.gmra.mxu1 %v12605_v29  ;;  %v7236_v0 = vadd.f32 %v7235_v54, %v13232_v31  ;;  %8556 = vmatpush2.bf16.msra.mxu0 %v11368_v38 }
 0x396   :  { %8559 = vmatprep.mubr.bf16.mxu0 %v12904_v27  ;;  %v7237_v46 = vpop.f32.mrf.mxu0  ;;  %8557 = vmatprep.subr.bf16.mxu0 %v11373_v59 }
 0x397   :  { %v7350_v1 = vpop.f32.mrf.mxu1  ;;  %v13367_v16 = vadd.f32 %v7348_v55, %v7236_v0  ;;  %v7238_v21 = vadd.f32 %v7237_v46, %v13237_v13  ;;  %v11406_v13 = vld [vmem:[#allocation8 + $0x1d4] ss:$8 sps:$4 sm:$0xff]   ;;  %8659 = vmatpush2.bf16.msra.mxu1 %v11401_v43 }
 0x398   :  { %v7239_v40 = vpop.f32.mrf.mxu0  ;;  %8660 = vmatprep.subr.bf16.mxu1 %v11406_v13 }
 0x399   :  { %v7352_v30 = vpop.f32.mrf.mxu1  ;;  %v13370_v29 = vadd.f32 %v7350_v1, %v7238_v21  ;;  %v7240_v31 = vadd.f32 %v7239_v40, %v13240_v17  ;;  %8558 = vmatpush2.bf16.msra.mxu0 %v11371_v34 }
 0x39a   :  { %v7241_v27 = vpop.f32.mrf.mxu0 }
 0x39b   :  { %v13373_v19 = vpop.f32.mrf.mxu1  ;;  %v13375_v47 = vadd.f32 %v7352_v30, %v7240_v31  ;;  %v13378_v8 = vadd.f32 %v7241_v27, %v13245_v60  ;;  %v11409_v60 = vld [vmem:[#allocation8 + $0x1c4] ss:$8 sps:$4 sm:$0xff]   ;;  %8661 = vmatpush2.bf16.msra.mxu1 %v11404_v49  ;;  %v11410_v27 = vld [vmem:[#allocation8 + $0x1b0] ss:$8 sps:$4 sm:$0xff]  }
 0x39c   :  { %14521 = vst [vmem:[#allocation33_spill] sm:$0xff] %v13373_v19  ;;  %v7391_v38 = vpop.f32.mrf.mxu0  ;;  %8560 = vmatmul.mubr.bf16.vlgmr.msra.gmra.mxu0 %v12898_v23  ;;  %8662 = vmatprep.subr.bf16.mxu1 %v11409_v60 }
 0x39d   :  { %14522 = vst [vmem:[#allocation34_spill] sm:$0xff] %v13378_v8  ;;  %v7504_v25 = vpop.f32.mrf.mxu1  ;;  %v7392_v59 = vadd.f32 %v7391_v38, %v13250_v20  ;;  %8569 = vmatprep.mubr.bf16.mxu0 %v12916_v2  ;;  %v11407_v2 = vld [vmem:[#allocation8 + $0x1c0] ss:$8 sps:$4 sm:$0xff]  }
 0x39e   :  { %v7393_v17 = vpop.f32.mrf.mxu0 }
 0x39f   :  { %v7506_v18 = vpop.f32.mrf.mxu1  ;;  %v13383_v54 = vadd.f32 %v7504_v25, %v7392_v59  ;;  %v7394_v55 = vadd.f32 %v7393_v17, %v13253_v61  ;;  %v11412_v61 = vld [vmem:[#allocation8 + $0x1b4] ss:$8 sps:$4 sm:$0xff]   ;;  %8663 = vmatpush2.bf16.msra.mxu1 %v11407_v2 }
 0x3a0   :  { %v7395_v0 = vpop.f32.mrf.mxu0  ;;  %8664 = vmatprep.subr.bf16.mxu1 %v11412_v61 }
 0x3a1   :  { %v7508_v34 = vpop.f32.mrf.mxu1  ;;  %v13386_v46 = vadd.f32 %v7506_v18, %v7394_v55  ;;  %v7396_v23 = vadd.f32 %v7395_v0, %v13256_v6 }
 0x3a2   :  { %v7397_v1 = vpop.f32.mrf.mxu0 }
 0x3a3   :  { %v13389_v20 = vpop.f32.mrf.mxu1  ;;  %v13391_v35 = vadd.f32 %v7508_v34, %v7396_v23  ;;  %v13394_v21 = vadd.f32 %v7397_v1, %v13261_v15  ;;  %v11415_v15 = vld [vmem:[#allocation8 + $0x1a4] ss:$8 sps:$4 sm:$0xff]   ;;  %8665 = vmatpush2.bf16.msra.mxu1 %v11410_v27  ;;  %v11416_v23 = vld [vmem:[#allocation8 + $0x190] ss:$8 sps:$4 sm:$0xff]  }
 0x3a4   :  { %v7401_v42 = vpop.f32.mrf.mxu0  ;;  %8570 = vmatmul.mubr.bf16.gmra.mxu0 %v12910_v24  ;;  %8666 = vmatprep.subr.bf16.mxu1 %v11415_v15 }
 0x3a5   :  { %v7514_v40 = vpop.f32.mrf.mxu1  ;;  %v7402_v30 = vadd.f32 %v7401_v42, %v13266_v33  ;;  %8579 = vmatprep.mubr.bf16.mxu0 %v12928_v48  ;;  %v11413_v48 = vld [vmem:[#allocation8 + $0x1a0] ss:$8 sps:$4 sm:$0xff]  }
 0x3a6   :  { %v7403_v6 = vpop.f32.mrf.mxu0 }
 0x3a7   :  { %v7516_v31 = vpop.f32.mrf.mxu1  ;;  %v13399_v43 = vadd.f32 %v7514_v40, %v7402_v30  ;;  %v7404_v13 = vadd.f32 %v7403_v6, %v13269_v63  ;;  %v11418_v63 = vld [vmem:[#allocation8 + $0x194] ss:$8 sps:$4 sm:$0xff]   ;;  %8667 = vmatpush2.bf16.msra.mxu1 %v11413_v48 }
 0x3a8   :  { %v7405_v38 = vpop.f32.mrf.mxu0  ;;  %8668 = vmatprep.subr.bf16.mxu1 %v11418_v63 }
 0x3a9   :  { %v7518_v25 = vpop.f32.mrf.mxu1  ;;  %v13402_v59 = vadd.f32 %v7516_v31, %v7404_v13  ;;  %v7406_v24 = vadd.f32 %v7405_v38, %v13272_v7  ;;  %v14523_v13 = vld [vmem:[#allocation20_spill] sm:$0xff]  ;;  %v14524_v38 = vld [vmem:[#allocation22_spill] sm:$0xff] }
 0x3aa   :  { %v7407_v17 = vpop.f32.mrf.mxu0 }
 0x3ab   :  { %v13405_v33 = vpop.f32.mrf.mxu1  ;;  %v13407_v18 = vadd.f32 %v7518_v25, %v7406_v24  ;;  %v13410_v49 = vadd.f32 %v7407_v17, %v13277_v51  ;;  %v11421_v51 = vld [vmem:[#allocation8 + $0x184] ss:$8 sps:$4 sm:$0xff]   ;;  %8669 = vmatpush2.bf16.msra.mxu1 %v11416_v23 }
 0x3ac   :  { %v7411_v55 = vpop.f32.mrf.mxu0  ;;  %8580 = vmatmul.mubr.bf16.gmra.mxu0 %v12922_v39  ;;  %8670 = vmatprep.subr.bf16.mxu1 %v11421_v51  ;;  %v14526_v51 = vld [vmem:[#allocation24_spill] sm:$0xff] }
 0x3ad   :  { %v7524_v60 = vpop.f32.mrf.mxu1  ;;  %v7412_v0 = vadd.f32 %v7411_v55, %v13282_v57  ;;  %8589 = vmatprep.mubr.bf16.mxu0 %v12940_v45  ;;  %v11419_v45 = vld [vmem:[#allocation8 + $0x180] ss:$8 sps:$4 sm:$0xff]  }
 0x3ae   :  { %v7413_v7 = vpop.f32.mrf.mxu0 }
 0x3af   :  { %v7526_v34 = vpop.f32.mrf.mxu1  ;;  %v13415_v1 = vadd.f32 %v7524_v60, %v7412_v0  ;;  %v7414_v2 = vadd.f32 %v7413_v7, %v13285_v32  ;;  %8671 = vmatpush2.bf16.msra.mxu1 %v11419_v45 }
 0x3b0   :  { %v7415_v61 = vpop.f32.mrf.mxu0 }
 0x3b1   :  { %v7528_v42 = vpop.f32.mrf.mxu1  ;;  %v13418_v40 = vadd.f32 %v7526_v34, %v7414_v2  ;;  %v7416_v39 = vadd.f32 %v7415_v61, %v13288_v56  ;;  %v14525_v2 = vld [vmem:[#allocation21_spill] sm:$0xff] }
 0x3b2   :  { %v7417_v30 = vpop.f32.mrf.mxu0 }
 0x3b3   :  { %v13421_v57 = vpop.f32.mrf.mxu1  ;;  %v13423_v6 = vadd.f32 %v7528_v42, %v7416_v39  ;;  %v13426_v31 = vadd.f32 %v7417_v30, %v13293_v50 }
 0x3b4   :  { %v7421_v32 = vpop.f32.mrf.mxu0  ;;  %8590 = vmatmul.mubr.bf16.gmra.mxu0 %v14523_v13 }
 0x3b5   :  { %v7534_v27 = vpop.f32.mrf.mxu1  ;;  %v7422_v15 = vadd.f32 %v7421_v32, %v13298_v22  ;;  %8599 = vmatprep.mubr.bf16.mxu0 %v14524_v38 }
 0x3b6   :  { %v7423_v56 = vpop.f32.mrf.mxu0 }
 0x3b7   :  { %v7536_v25 = vpop.f32.mrf.mxu1  ;;  %v13431_v24 = vadd.f32 %v7534_v27, %v7422_v15  ;;  %v7424_v17 = vadd.f32 %v7423_v56, %v13301_v26  ;;  %v14527_v56 = vld [vmem:[#allocation23_spill] sm:$0xff] }
 0x3b8   :  { %v7425_v48 = vpop.f32.mrf.mxu0 }
 0x3b9   :  { %v7538_v63 = vpop.f32.mrf.mxu1  ;;  %v13434_v50 = vadd.f32 %v7536_v25, %v7424_v17  ;;  %v7426_v55 = vadd.f32 %v7425_v48, %v13304_v11  ;;  %v14528_v17 = vld [vmem:[#allocation26_spill] sm:$0xff] }
 0x3ba   :  { %v7427_v60 = vpop.f32.mrf.mxu0 }
 0x3bb   :  { %v13437_v0 = vpop.f32.mrf.mxu1  ;;  %v13439_v7 = vadd.f32 %v7538_v63, %v7426_v55  ;;  %v13442_v22 = vadd.f32 %v7427_v60, %v13309_v41 }
 0x3bc   :  { %v7431_v34 = vpop.f32.mrf.mxu0  ;;  %8600 = vmatmul.mubr.bf16.gmra.mxu0 %v14525_v2 }
 0x3bd   :  { %v7544_v23 = vpop.f32.mrf.mxu1  ;;  %v7432_v26 = vadd.f32 %v7431_v34, %v13314_v44  ;;  %8609 = vmatprep.mubr.bf16.mxu0 %v14526_v51 }
 0x3be   :  { %v7433_v61 = vpop.f32.mrf.mxu0 }
 0x3bf   :  { %v7546_v42 = vpop.f32.mrf.mxu1  ;;  %v13447_v39 = vadd.f32 %v7544_v23, %v7432_v26  ;;  %v7434_v11 = vadd.f32 %v7433_v61, %v13317_v10 }
 0x3c0   :  { %v7435_v30 = vpop.f32.mrf.mxu0 }
 0x3c1   :  { %v7548_v45 = vpop.f32.mrf.mxu1  ;;  %v13450_v32 = vadd.f32 %v7546_v42, %v7434_v11  ;;  %v7436_v41 = vadd.f32 %v7435_v30, %v13322_v58  ;;  %v14532_v42 = vld [vmem:[#allocation25_spill] sm:$0xff]  ;;  %v14533_v30 = vld [vmem:[#allocation28_spill] sm:$0xff] }
 0x3c2   :  { %v13453_v27 = vpop.f32.mrf.mxu0 }
 0x3c3   :  { %v13455_v13 = vpop.f32.mrf.mxu1  ;;  %v13457_v15 = vadd.f32 %v7548_v45, %v7436_v41 }
 0x3c4   :  { %v7441_v44 = vpop.f32.mrf.mxu0  ;;  %8610 = vmatmul.mubr.bf16.gmra.mxu0 %v14527_v56 }
 0x3c5   :  { %v7554_v38 = vpop.f32.mrf.mxu1  ;;  %v7442_v25 = vadd.f32 %v7441_v44, %v13332_v37  ;;  %8619 = vmatprep.mubr.bf16.mxu0 %v14528_v17 }
 0x3c6   :  { %v7443_v10 = vpop.f32.mrf.mxu0 }
 0x3c7   :  { %v7556_v48 = vpop.f32.mrf.mxu1  ;;  %v13462_v63 = vadd.f32 %v7554_v38, %v7442_v25  ;;  %v7444_v58 = vadd.f32 %v7443_v10, %v13335_v5 }
 0x3c8   :  { %v7445_v55 = vpop.f32.mrf.mxu0 }
 0x3c9   :  { %v7558_v60 = vpop.f32.mrf.mxu1  ;;  %v13465_v34 = vadd.f32 %v7556_v48, %v7444_v58  ;;  %v7446_v23 = vadd.f32 %v7445_v55, %v13340_v62  ;;  %v14537_v55 = vld [vmem:[#allocation27_spill] sm:$0xff] }
 0x3ca   :  { %v13468_v2 = vpop.f32.mrf.mxu0 }
 0x3cb   :  { %14529 = vst [vmem:[#allocation35_spill] sm:$0xff] %v13468_v2  ;;  %v13470_v26 = vpop.f32.mrf.mxu1  ;;  %v13472_v51 = vadd.f32 %v7558_v60, %v7446_v23 }
 0x3cc   :  { %14530 = vst [vmem:[#allocation36_spill] sm:$0xff] %v13470_v26  ;;  %v7451_v37 = vpop.f32.mrf.mxu0  ;;  %8620 = vmatmul.mubr.bf16.gmra.mxu0 %v14532_v42 }
 0x3cd   :  { %14531 = vst [vmem:[#allocation37_spill] sm:$0xff] %v13472_v51  ;;  %v7564_v61 = vpop.f32.mrf.mxu1  ;;  %v7452_v11 = vadd.f32 %v7451_v37, %v13350_v12  ;;  %8629 = vmatprep.mubr.bf16.mxu0 %v14533_v30 }
 0x3ce   :  { %v7453_v5 = vpop.f32.mrf.mxu0 }
 0x3cf   :  { %v7566_v45 = vpop.f32.mrf.mxu1  ;;  %v13477_v41 = vadd.f32 %v7564_v61, %v7452_v11  ;;  %v7454_v62 = vadd.f32 %v7453_v5, %v13353_v3 }
 0x3d0   :  { %v7455_v44 = vpop.f32.mrf.mxu0 }
 0x3d1   :  { %v7568_v38 = vpop.f32.mrf.mxu1  ;;  %v13480_v56 = vadd.f32 %v7566_v45, %v7454_v62  ;;  %v7456_v25 = vadd.f32 %v7455_v44, %v13358_v36 }
 0x3d2   :  { %v13483_v17 = vpop.f32.mrf.mxu0 }
 0x3d3   :  { %14534 = vst [vmem:[#allocation38_spill] sm:$0xff] %v13483_v17  ;;  %v13485_v10 = vpop.f32.mrf.mxu1  ;;  %v13487_v48 = vadd.f32 %v7568_v38, %v7456_v25 }
 0x3d4   :  { %14535 = vst [vmem:[#allocation39_spill] sm:$0xff] %v13485_v10  ;;  %v7461_v12 = vpop.f32.mrf.mxu0  ;;  %8630 = vmatmul.mubr.bf16.gmra.mxu0 %v14537_v55 }
 0x3d5   :  { %14536 = vst [vmem:[#allocation40_spill] sm:$0xff] %v13487_v48  ;;  %v7574_v58 = vpop.f32.mrf.mxu1  ;;  %v7462_v60 = vadd.f32 %v7461_v12, %v13367_v16 }
 0x3d6   :  { %v7463_v23 = vpop.f32.mrf.mxu0 }
 0x3d7   :  { %v7576_v3 = vpop.f32.mrf.mxu1  ;;  %v13491_v37 = vadd.f32 %v7574_v58, %v7462_v60  ;;  %v7464_v61 = vadd.f32 %v7463_v23, %v13370_v29 }
 0x3d8   :  { %v7465_v42 = vpop.f32.mrf.mxu0 }
 0x3d9   :  { %v7578_v36 = vpop.f32.mrf.mxu1  ;;  %v13494_v11 = vadd.f32 %v7576_v3, %v7464_v61  ;;  %v7466_v30 = vadd.f32 %v7465_v42, %v13375_v47 }
 0x3da   :  { %v13497_v5 = vpop.f32.mrf.mxu0 }
 0x3db   :  { %14538 = vst [vmem:[#allocation41_spill] sm:$0xff] %v13497_v5  ;;  %v13499_v45 = vpop.f32.mrf.mxu1  ;;  %v13501_v62 = vadd.f32 %v7578_v36, %v7466_v30 }
 0x3dc   :  { %14539 = vst [vmem:[#allocation42_spill] sm:$0xff] %v13499_v45  ;;  %v7617_v44 = vpop.f32.mrf.mxu0 }
 0x3dd   :  { %14540 = vst [vmem:[#allocation43_spill] sm:$0xff] %v13501_v62  ;;  %v7730_v16 = vpop.f32.mrf.mxu1  ;;  %v7618_v38 = vadd.f32 %v7617_v44, %v13383_v54 }
 0x3de   :  { %v7619_v25 = vpop.f32.mrf.mxu0 }
 0x3df   :  { %v7732_v12 = vpop.f32.mrf.mxu1  ;;  %v13504_v58 = vadd.f32 %v7730_v16, %v7618_v38  ;;  %v7620_v29 = vadd.f32 %v7619_v25, %v13386_v46 }
 0x3e0   :  { %v13507_v55 = vpop.f32.mrf.mxu0 }
 0x3e1   :  { %v13509_v60 = vpop.f32.mrf.mxu1  ;;  %v13511_v47 = vadd.f32 %v7732_v12, %v7620_v29 }
 0x3e2   :  { %v13513_v23 = vpop.f32.mrf.mxu0 }
 0x3e3   :  { %v13515_v3 = vpop.f32.mrf.mxu1 }
 0x3e4   :  { %v7627_v61 = vpop.f32.mrf.mxu0 }
 0x3e5   :  { %v7740_v42 = vpop.f32.mrf.mxu1  ;;  %v7628_v54 = vadd.f32 %v7627_v61, %v13399_v43 }
 0x3e6   :  { %v7629_v36 = vpop.f32.mrf.mxu0 }
 0x3e7   :  { %v7742_v30 = vpop.f32.mrf.mxu1  ;;  %v13518_v44 = vadd.f32 %v7740_v42, %v7628_v54  ;;  %v7630_v46 = vadd.f32 %v7629_v36, %v13402_v59 }
 0x3e8   :  { %v13521_v16 = vpop.f32.mrf.mxu0 }
 0x3e9   :  { %v13523_v38 = vpop.f32.mrf.mxu1  ;;  %v13525_v25 = vadd.f32 %v7742_v30, %v7630_v46 }
 0x3ea   :  { %v13527_v12 = vpop.f32.mrf.mxu0 }
 0x3eb   :  { %v13529_v29 = vpop.f32.mrf.mxu1 }
 0x3ec   :  { %v7637_v62 = vpop.f32.mrf.mxu0 }
 0x3ed   :  { %v7750_v45 = vpop.f32.mrf.mxu1  ;;  %v7638_v43 = vadd.f32 %v7637_v62, %v13415_v1 }
 0x3ee   :  { %v7639_v61 = vpop.f32.mrf.mxu0 }
 0x3ef   :  { %v7752_v5 = vpop.f32.mrf.mxu1  ;;  %v13532_v42 = vadd.f32 %v7750_v45, %v7638_v43  ;;  %v7640_v59 = vadd.f32 %v7639_v61, %v13418_v40 }
 0x3f0   :  { %v13535_v54 = vpop.f32.mrf.mxu0 }
 0x3f1   :  { %v13537_v36 = vpop.f32.mrf.mxu1  ;;  %v13539_v30 = vadd.f32 %v7752_v5, %v7640_v59 }
 0x3f2   :  { %v13541_v46 = vpop.f32.mrf.mxu0 }
 0x3f3   :  { %v13543_v19 = vpop.f32.mrf.mxu1 }
 0x3f4   :  { %v7647_v8 = vpop.f32.mrf.mxu0 }
 0x3f5   :  { %v7760_v48 = vpop.f32.mrf.mxu1  ;;  %v7648_v1 = vadd.f32 %v7647_v8, %v13431_v24 }
 0x3f6   :  { %v7649_v62 = vpop.f32.mrf.mxu0 }
 0x3f7   :  { %v7762_v10 = vpop.f32.mrf.mxu1  ;;  %v13546_v45 = vadd.f32 %v7760_v48, %v7648_v1  ;;  %v7650_v40 = vadd.f32 %v7649_v62, %v13434_v50 }
 0x3f8   :  { %v13549_v43 = vpop.f32.mrf.mxu0 }
 0x3f9   :  { %v13551_v61 = vpop.f32.mrf.mxu1  ;;  %v13553_v5 = vadd.f32 %v7762_v10, %v7650_v40 }
 0x3fa   :  { %v13555_v59 = vpop.f32.mrf.mxu0 }
 0x3fb   :  { %v13557_v17 = vpop.f32.mrf.mxu1 }
 0x3fc   :  { %v7657_v53 = vpop.f32.mrf.mxu0 }
 0x3fd   :  { %v7770_v28 = vpop.f32.mrf.mxu1  ;;  %v7658_v8 = vadd.f32 %v7657_v53, %v13447_v39 }
 0x3fe   :  { %v7659_v24 = vpop.f32.mrf.mxu0 }
 0x3ff   :  { %v7772_v51 = vpop.f32.mrf.mxu1  ;;  %v13560_v48 = vadd.f32 %v7770_v28, %v7658_v8  ;;  %v7660_v50 = vadd.f32 %v7659_v24, %v13450_v32 }
 0x400   :  { %v13563_v1 = vpop.f32.mrf.mxu0 }
 0x401   :  { %14541 = vst [vmem:[#allocation44_spill] sm:$0xff] %v13560_v48  ;;  %v13565_v62 = vpop.f32.mrf.mxu1  ;;  %v13567_v10 = vadd.f32 %v7772_v51, %v7660_v50 }
 0x402   :  { %14542 = vst [vmem:[#allocation45_spill] sm:$0xff] %v13565_v62  ;;  %v13569_v40 = vpop.f32.mrf.mxu0 }
 0x403   :  { %14543 = vst [vmem:[#allocation46_spill] sm:$0xff] %v13567_v10  ;;  %v13571_v26 = vpop.f32.mrf.mxu1 }
 0x404   :  { %14544 = vst [vmem:[#allocation47_spill] sm:$0xff] %v13571_v26  ;;  %v7667_v2 = vpop.f32.mrf.mxu0 }
 0x405   :  { %v7780_v14 = vpop.f32.mrf.mxu1  ;;  %v7668_v53 = vadd.f32 %v7667_v2, %v13462_v63 }
 0x406   :  { %v7669_v39 = vpop.f32.mrf.mxu0 }
 0x407   :  { %v7782_v52 = vpop.f32.mrf.mxu1  ;;  %v13574_v28 = vadd.f32 %v7780_v14, %v7668_v53  ;;  %v7670_v32 = vadd.f32 %v7669_v39, %v13465_v34 }
 0x408   :  { %v13577_v8 = vpop.f32.mrf.mxu0 }
 0x409   :  { %14545 = vst [vmem:[#allocation48_spill] sm:$0xff] %v13574_v28  ;;  %v13579_v24 = vpop.f32.mrf.mxu1  ;;  %v13581_v51 = vadd.f32 %v7782_v52, %v7670_v32 }
 0x40a   :  { %14546 = vst [vmem:[#allocation49_spill] sm:$0xff] %v13579_v24  ;;  %v13583_v50 = vpop.f32.mrf.mxu0 }
 0x40b   :  { %14547 = vst [vmem:[#allocation50_spill] sm:$0xff] %v13581_v51  ;;  %v13585_v10 = vpop.f32.mrf.mxu1 }
 0x40c   :  { %14548 = vst [vmem:[#allocation51_spill] sm:$0xff] %v13585_v10  ;;  %v7677_v26 = vpop.f32.mrf.mxu0 }
 0x40d   :  { %v7790_v62 = vpop.f32.mrf.mxu1  ;;  %v7678_v63 = vadd.f32 %v7677_v26, %v13477_v41 }
 0x40e   :  { %v7679_v2 = vpop.f32.mrf.mxu0 }
 0x40f   :  { %v7792_v48 = vpop.f32.mrf.mxu1  ;;  %v13588_v14 = vadd.f32 %v7790_v62, %v7678_v63  ;;  %v7680_v34 = vadd.f32 %v7679_v2, %v13480_v56 }
 0x410   :  { %v13591_v53 = vpop.f32.mrf.mxu0 }
 0x411   :  { %v13593_v39 = vpop.f32.mrf.mxu1  ;;  %v13595_v52 = vadd.f32 %v7792_v48, %v7680_v34 }
 0x412   :  { %14549 = vst [vmem:[#allocation52_spill] sm:$0xff] %v13593_v39  ;;  %v13597_v32 = vpop.f32.mrf.mxu0 }
 0x413   :  { %14550 = vst [vmem:[#allocation53_spill] sm:$0xff] %v13595_v52  ;;  %v13599_v51 = vpop.f32.mrf.mxu1 }
 0x414   :  { %14551 = vst [vmem:[#allocation54_spill] sm:$0xff] %v13599_v51  ;;  %v7687_v10 = vpop.f32.mrf.mxu0  ;;  %v7511_v51 = vadd.f32 %v13389_v20, %v13394_v21  ;;  %v13626_v20 = vld [vmem:[#allocation11 + $0x30] sm:$0xff]  }
 0x415   :  { %v7800_v24 = vpop.f32.mrf.mxu1  ;;  %v7688_v26 = vadd.f32 %v7687_v10, %v13491_v37  ;;  %v7622_v37 = vadd.f32 %v13507_v55, %v13391_v35  ;;  %v11422_v10 = vld [vmem:[#allocation11 + $0x78] sm:$0xff]   ;;  %v13631_v55 = vld [vmem:[#allocation11 + $0x68] sm:$0xff]  }
 0x416   :  { %v7689_v41 = vpop.f32.mrf.mxu0  ;;  %10078 = vmatprep.subr.bf16.mxu0 %v11422_v10  ;;  %10142 = vmatprep.subr.bf16.mxu1 %v11422_v10 }
 0x417   :  { %v7802_v28 = vpop.f32.mrf.mxu1  ;;  %v13602_v62 = vadd.f32 %v7800_v24, %v7688_v26  ;;  %v7690_v56 = vadd.f32 %v7689_v41, %v13494_v11  ;;  %v13619_v24 = vld [vmem:[#allocation11 + $0x38] sm:$0xff]   ;;  %v13621_v11 = vld [vmem:[#allocation11 + $0x70] sm:$0xff]   ;;  %v7735_v35 = vadd.f32 %v13509_v60, %v7622_v37 }
 0x418   :  { %v13605_v63 = vpop.f32.mrf.mxu0  ;;  %10079 = vmatpush3.bf16.msra.mxu0 %v13619_v24 }
 0x419   :  { %14552 = vst [vmem:[#allocation55_spill] sm:$0xff] %v13602_v62  ;;  %14553 = vst [vmem:[#allocation56_spill] sm:$0xff] %v13605_v63  ;;  %v13607_v2 = vpop.f32.mrf.mxu1  ;;  %v13609_v48 = vadd.f32 %v7802_v28, %v7690_v56  ;;  %v7624_v28 = vadd.f32 %v13513_v23, %v7511_v51  ;;  %10080 = vmatprep.subr.bf16.mxu0 %v13621_v11  ;;  %v7632_v62 = vadd.f32 %v13521_v16, %v13407_v18 }
 0x41a   :  { %14554 = vst [vmem:[#allocation57_spill] sm:$0xff] %v13607_v2  ;;  %v13611_v34 = vpop.f32.mrf.mxu0 }
 0x41b   :  { %14555 = vst [vmem:[#allocation58_spill] sm:$0xff] %v13609_v48  ;;  %14556 = vst [vmem:[#allocation59_spill] sm:$0xff] %v13611_v34  ;;  %v13613_v52 = vpop.f32.mrf.mxu1 }
 0x41c   :  { %14557 = vst [vmem:[#allocation60_spill] sm:$0xff] %v13613_v52  ;;  %v7843_v26 = vpop.f32.mrf.mxu0  ;;  %10081 = vmatpush3.bf16.msra.mxu0 %v13626_v20 }
 0x41d   :  { %v7956_v41 = vpop.f32.mrf.mxu1  ;;  %v7844_v56 = vadd.f32 %v7843_v26, %v13504_v58  ;;  %v7737_v58 = vadd.f32 %v13515_v3, %v7624_v28  ;;  %v7521_v26 = vadd.f32 %v13405_v33, %v13410_v49  ;;  %10082 = vmatprep.subr.bf16.mxu0 %v13631_v55  ;;  %v13642_v3 = vld [vmem:[#allocation11 + $0x60] sm:$0xff]  }
 0x41e   :  { %v7845_v52 = vpop.f32.mrf.mxu0 }
 0x41f   :  { %v7958_v48 = vpop.f32.mrf.mxu1  ;;  %v7846_v21 = vadd.f32 %v7845_v52, %v13511_v47  ;;  %v7957_v51 = vadd.f32 %v7956_v41, %v7844_v56  ;;  %v13639_v47 = vld [vmem:[#allocation11 + $0x28] sm:$0xff]   ;;  %v7745_v56 = vadd.f32 %v13523_v38, %v7632_v62 }
 0x420   :  { %v7847_v2 = vpop.f32.mrf.mxu0  ;;  %10083 = vmatpush3.bf16.msra.mxu0 %v13639_v47 }
 0x421   :  { %v7960_v23 = vpop.f32.mrf.mxu1  ;;  %v7848_v10 = vadd.f32 %v7847_v2, %v7735_v35  ;;  %v7959_v52 = vadd.f32 %v7958_v48, %v7846_v21  ;;  %v7634_v2 = vadd.f32 %v13527_v12, %v7521_v26  ;;  %v8037_v49 = vmax.f32 %v7957_v51, 0.0  ;;  %v13648_v48 = vld [vmem:[#allocation11 + $0x20] sm:$0xff]   ;;  %10084 = vmatprep.subr.bf16.mxu0 %v13642_v3 }
 0x422   :  { %v7849_v34 = vpop.f32.mrf.mxu0  ;;  %v7531_v26 = vadd.f32 %v13421_v57, %v13426_v31 }
 0x423   :  { %v7962_v60 = vpop.f32.mrf.mxu1  ;;  %v7961_v37 = vadd.f32 %v7960_v23, %v7848_v10  ;;  %v7850_v63 = vadd.f32 %v7849_v34, %v7737_v58  ;;  %v8038_v34 = vmax.f32 %v7959_v52, 0.0  ;;  %v13652_v58 = vld [vmem:[#allocation11 + $0x58] sm:$0xff]  }
 0x424   :  { %v7853_v41 = vpop.f32.mrf.mxu0  ;;  %10085 = vmatpush3.bf16.msra.mxu0 %v13648_v48 }
 0x425   :  { %v7966_v33 = vpop.f32.mrf.mxu1  ;;  %v8041_v28 = vmax.f32 %v7961_v37, 0.0  ;;  %v7963_v18 = vadd.f32 %v7962_v60, %v7850_v63  ;;  %v7854_v16 = vadd.f32 %v7853_v41, %v13518_v44  ;;  %v7747_v44 = vadd.f32 %v13529_v29, %v7634_v2  ;;  %10086 = vmatprep.subr.bf16.mxu0 %v13652_v58 }
 0x426   :  { %v7855_v35 = vpop.f32.mrf.mxu0  ;;  %v7642_v60 = vadd.f32 %v13535_v54, %v13423_v6  ;;  %v7644_v29 = vadd.f32 %v13541_v46, %v7531_v26 }
 0x427   :  { %v7968_v39 = vpop.f32.mrf.mxu1  ;;  %v8101_v21 = vpack.c.bf16 %v8041_v28, %v8037_v49  ;;  %v8042_v23 = vmax.f32 %v7963_v18, 0.0  ;;  %v7856_v12 = vadd.f32 %v7855_v35, %v13525_v25  ;;  %v7967_v62 = vadd.f32 %v7966_v33, %v7854_v16  ;;  %v13660_v25 = vld [vmem:[#allocation11 + $0x18] sm:$0xff]  }
 0x428   :  { %v7857_v63 = vpop.f32.mrf.mxu0  ;;  %v7755_v18 = vadd.f32 %v13537_v36, %v7642_v60  ;;  %10087 = vmatpush3.bf16.msra.mxu0 %v13660_v25  ;;  %v7541_v36 = vadd.f32 %v13437_v0, %v13442_v22 }
 0x429   :  { %v7970_v51 = vpop.f32.mrf.mxu1  ;;  %v8102_v38 = vpack.c.bf16 %v8042_v23, %v8038_v34  ;;  %v7858_v10 = vadd.f32 %v7857_v63, %v7745_v56  ;;  %v7969_v41 = vadd.f32 %v7968_v39, %v7856_v12  ;;  %v8045_v57 = vmax.f32 %v7967_v62, 0.0 }
 0x42a   :  { %v7859_v52 = vpop.f32.mrf.mxu0  ;;  %v7757_v12 = vadd.f32 %v13543_v19, %v7644_v29  ;;  %v7325_v19 = vadd.f32 %v13320_v4, %v13325_v9 }
 0x42b   :  { %v7972_v37 = vpop.f32.mrf.mxu1  ;;  %v7971_v49 = vadd.f32 %v7970_v51, %v7858_v10  ;;  %v7860_v28 = vadd.f32 %v7859_v52, %v7747_v44  ;;  %8672 = vmatprep.mubr.bf16.mxu1 %v8102_v38  ;;  %v8046_v56 = vmax.f32 %v7969_v41, 0.0  ;;  %v7654_v10 = vadd.f32 %v13555_v59, %v7541_v36 }
 0x42c   :  { %v7863_v2 = vpop.f32.mrf.mxu0  ;;  %8673 = vmatmul.mubr.bf16.vlgmr.msra.gmra.mxu1 %v8101_v21 }
 0x42d   :  { %v7976_v33 = vpop.f32.mrf.mxu1  ;;  %v8049_v31 = vmax.f32 %v7971_v49, 0.0  ;;  %v7973_v6 = vadd.f32 %v7972_v37, %v7860_v28  ;;  %v7864_v54 = vadd.f32 %v7863_v2, %v13532_v42  ;;  %10150 = vmatpush3.bf16.msra.mxu1 %v13619_v24  ;;  %v7767_v29 = vadd.f32 %v13557_v17, %v7654_v10  ;;  %v14559_v17 = vld [vmem:[#allocation29_spill] sm:$0xff] }
 0x42e   :  { %v7865_v39 = vpop.f32.mrf.mxu0  ;;  %10143 = vmatprep.subr.bf16.mxu1 %v13621_v11  ;;  %v7652_v11 = vadd.f32 %v13549_v43, %v13439_v7  ;;  %v7438_v43 = vadd.f32 %v13453_v27, %v7325_v19  ;;  %v14565_v19 = vld [vmem:[#allocation36_spill] sm:$0xff]  ;;  %v14566_v10 = vld [vmem:[#allocation37_spill] sm:$0xff] }
 0x42f   :  { %v7978_v16 = vpop.f32.mrf.mxu1  ;;  %v8105_v46 = vpack.c.bf16 %v8049_v31, %v8045_v57  ;;  %v8050_v35 = vmax.f32 %v7973_v6, 0.0  ;;  %v7866_v34 = vadd.f32 %v7865_v39, %v13539_v30  ;;  %v7977_v63 = vadd.f32 %v7976_v33, %v7864_v54  ;;  %v14558_v6 = vld [vmem:[#allocation30_spill] sm:$0xff] }
 0x430   :  { %v7867_v21 = vpop.f32.mrf.mxu0  ;;  %v7551_v27 = vadd.f32 %v13455_v13, %v7438_v43  ;;  %v7335_v54 = vadd.f32 %v14559_v17, %v14558_v6  ;;  %v14567_v43 = vld [vmem:[#allocation32_spill] sm:$0xff]  ;;  %v14573_v17 = vld [vmem:[#allocation51_spill] sm:$0xff] }
 0x431   :  { %v7980_v23 = vpop.f32.mrf.mxu1  ;;  %v8106_v42 = vpack.c.bf16 %v8050_v35, %v8046_v56  ;;  %v7868_v24 = vadd.f32 %v7867_v21, %v7755_v18  ;;  %10151 = vmatpush3.bf16.msra.mxu1 %v13626_v20  ;;  %v7979_v30 = vadd.f32 %v7978_v16, %v7866_v34  ;;  %v8053_v0 = vmax.f32 %v7977_v63, 0.0  ;;  %v14562_v35 = vld [vmem:[#allocation45_spill] sm:$0xff] }
 0x432   :  { %v7869_v51 = vpop.f32.mrf.mxu0  ;;  %10144 = vmatprep.subr.bf16.mxu1 %v13631_v55  ;;  %v7765_v55 = vadd.f32 %v13551_v61, %v7652_v11  ;;  %v7662_v61 = vadd.f32 %v13563_v1, %v13457_v15  ;;  %v7664_v18 = vadd.f32 %v13569_v40, %v7551_v27  ;;  %v14560_v15 = vld [vmem:[#allocation44_spill] sm:$0xff]  ;;  %v14563_v40 = vld [vmem:[#allocation46_spill] sm:$0xff] }
 0x433   :  { %v7982_v44 = vpop.f32.mrf.mxu1  ;;  %v7981_v38 = vadd.f32 %v7980_v23, %v7868_v24  ;;  %v7870_v62 = vadd.f32 %v7869_v51, %v7757_v12  ;;  %8682 = vmatprep.mubr.bf16.mxu1 %v8106_v42  ;;  %v8054_v4 = vmax.f32 %v7979_v30, 0.0  ;;  %v14564_v51 = vld [vmem:[#allocation47_spill] sm:$0xff] }
 0x434   :  { %v7873_v20 = vpop.f32.mrf.mxu0  ;;  %8683 = vmatmul.mubr.bf16.gmra.mxu1 %v8105_v46  ;;  %v7775_v34 = vadd.f32 %v14562_v35, %v7662_v61 }
 0x435   :  { %v7986_v26 = vpop.f32.mrf.mxu1  ;;  %v8057_v22 = vmax.f32 %v7981_v38, 0.0  ;;  %v7983_v60 = vadd.f32 %v7982_v44, %v7870_v62  ;;  %v7874_v7 = vadd.f32 %v7873_v20, %v13546_v45  ;;  %10152 = vmatpush3.bf16.msra.mxu1 %v13639_v47  ;;  %v7777_v44 = vadd.f32 %v14564_v51, %v7664_v18 }
 0x436   :  { %v7875_v52 = vpop.f32.mrf.mxu0  ;;  %10145 = vmatprep.subr.bf16.mxu1 %v13642_v3  ;;  %v7672_v20 = vadd.f32 %v13577_v8, %v14566_v10  ;;  %v14570_v8 = vld [vmem:[#allocation38_spill] sm:$0xff] }
 0x437   :  { %v7988_v37 = vpop.f32.mrf.mxu1  ;;  %v8109_v9 = vpack.c.bf16 %v8057_v22, %v8053_v0  ;;  %v8058_v59 = vmax.f32 %v7983_v60, 0.0  ;;  %v7876_v41 = vadd.f32 %v7875_v52, %v13553_v5  ;;  %v7987_v2 = vadd.f32 %v7986_v26, %v7874_v7 }
 0x438   :  { %v7877_v49 = vpop.f32.mrf.mxu0 }
 0x439   :  { %v7990_v28 = vpop.f32.mrf.mxu1  ;;  %v8110_v45 = vpack.c.bf16 %v8058_v59, %v8054_v4  ;;  %v7878_v47 = vadd.f32 %v7877_v49, %v7765_v55  ;;  %10153 = vmatpush3.bf16.msra.mxu1 %v13648_v48  ;;  %v7989_v57 = vadd.f32 %v7988_v37, %v7876_v41  ;;  %v8061_v13 = vmax.f32 %v7987_v2, 0.0  ;;  %v14568_v55 = vld [vmem:[#allocation31_spill] sm:$0xff]  ;;  %v14571_v2 = vld [vmem:[#allocation49_spill] sm:$0xff] }
 0x43a   :  { %v7879_v3 = vpop.f32.mrf.mxu0  ;;  %10146 = vmatprep.subr.bf16.mxu1 %v13652_v58  ;;  %v14561_v58 = vld [vmem:[#allocation35_spill] sm:$0xff]  ;;  %v7345_v52 = vadd.f32 %v14568_v55, %v14567_v43 }
 0x43b   :  { %v7992_v33 = vpop.f32.mrf.mxu1  ;;  %v7991_v5 = vadd.f32 %v7990_v28, %v7878_v47  ;;  %v7880_v31 = vadd.f32 %v7879_v3, %v7767_v29  ;;  %8692 = vmatprep.mubr.bf16.mxu1 %v8110_v45  ;;  %v7448_v46 = vadd.f32 %v14561_v58, %v7335_v54  ;;  %v8062_v12 = vmax.f32 %v7989_v57, 0.0  ;;  %v14569_v28 = vld [vmem:[#allocation48_spill] sm:$0xff] }
 0x43c   :  { %v7883_v39 = vpop.f32.mrf.mxu0  ;;  %8693 = vmatmul.mubr.bf16.gmra.mxu1 %v8109_v9  ;;  %v7458_v45 = vadd.f32 %v14570_v8, %v7345_v52  ;;  %v7785_v47 = vadd.f32 %v14571_v2, %v7672_v20 }
 0x43d   :  { %v7996_v48 = vpop.f32.mrf.mxu1  ;;  %v8065_v16 = vmax.f32 %v7991_v5, 0.0  ;;  %v7993_v56 = vadd.f32 %v7992_v33, %v7880_v31  ;;  %v7884_v1 = vadd.f32 %v7883_v39, %v14560_v15  ;;  %10154 = vmatpush3.bf16.msra.mxu1 %v13660_v25  ;;  %v7561_v25 = vadd.f32 %v14565_v19, %v7448_v46  ;;  %v14572_v5 = vld [vmem:[#allocation50_spill] sm:$0xff] }
 0x43e   :  { %v7885_v21 = vpop.f32.mrf.mxu0 }
 0x43f   :  { %v7998_v23 = vpop.f32.mrf.mxu1  ;;  %v8113_v42 = vpack.c.bf16 %v8065_v16, %v8061_v13  ;;  %v8066_v63 = vmax.f32 %v7993_v56, 0.0  ;;  %v7886_v24 = vadd.f32 %v7885_v21, %v14563_v40  ;;  %v7997_v38 = vadd.f32 %v7996_v48, %v7884_v1  ;;  %v14574_v13 = vld [vmem:[#allocation39_spill] sm:$0xff]  ;;  %v14575_v56 = vld [vmem:[#allocation40_spill] sm:$0xff]  ;;  %v14576_v21 = vld [vmem:[#allocation34_spill] sm:$0xff] }
 0x440   :  { %v7887_v36 = vpop.f32.mrf.mxu0  ;;  %v7674_v37 = vadd.f32 %v13583_v50, %v7561_v25  ;;  %v7571_v16 = vadd.f32 %v14574_v13, %v7458_v45  ;;  %v7682_v15 = vadd.f32 %v13591_v53, %v14575_v56  ;;  %v14578_v53 = vld [vmem:[#allocation41_spill] sm:$0xff]  ;;  %v14585_v45 = vld [vmem:[#allocation59_spill] sm:$0xff] }
 0x441   :  { %v8000_v11 = vpop.f32.mrf.mxu1  ;;  %v8114_v30 = vpack.c.bf16 %v8066_v63, %v8062_v12  ;;  %v7888_v62 = vadd.f32 %v7887_v36, %v7775_v34  ;;  %v7999_v22 = vadd.f32 %v7998_v23, %v7886_v24  ;;  %v8069_v59 = vmax.f32 %v7997_v38, 0.0  ;;  %v14577_v23 = vld [vmem:[#allocation33_spill] sm:$0xff] }
 0x442   :  { %v7889_v26 = vpop.f32.mrf.mxu0  ;;  %v7787_v54 = vadd.f32 %v14573_v17, %v7674_v37  ;;  %v7355_v12 = vadd.f32 %v14577_v23, %v14576_v21  ;;  %v14582_v37 = vld [vmem:[#allocation42_spill] sm:$0xff] }
 0x443   :  { %v8002_v0 = vpop.f32.mrf.mxu1  ;;  %v8001_v60 = vadd.f32 %v8000_v11, %v7888_v62  ;;  %v7890_v7 = vadd.f32 %v7889_v26, %v7777_v44  ;;  %8702 = vmatprep.mubr.bf16.mxu1 %v8114_v30  ;;  %v8070_v3 = vmax.f32 %v7999_v22, 0.0  ;;  %v14579_v30 = vld [vmem:[#allocation52_spill] sm:$0xff]  ;;  %v14580_v26 = vld [vmem:[#allocation53_spill] sm:$0xff] }
 0x444   :  { %v7893_v4 = vpop.f32.mrf.mxu0  ;;  %8703 = vmatmul.mubr.bf16.gmra.mxu1 %v8113_v42  ;;  %v7684_v42 = vadd.f32 %v13597_v32, %v7571_v16  ;;  %v7468_v44 = vadd.f32 %v14578_v53, %v7355_v12  ;;  %v7795_v38 = vadd.f32 %v14579_v30, %v7682_v15  ;;  %v14589_v15 = vld [vmem:[#allocation60_spill] sm:$0xff]  ;;  %v11433_v30 = vld [vmem:[#allocation11 + $0x10] sm:$0xff]  }
 0x445   :  { %v8006_v9 = vpop.f32.mrf.mxu1  ;;  %v8073_v41 = vmax.f32 %v8001_v60, 0.0  ;;  %v8003_v49 = vadd.f32 %v8002_v0, %v7890_v7  ;;  %v7894_v29 = vadd.f32 %v7893_v4, %v14569_v28  ;;  %v14581_v60 = vld [vmem:[#allocation54_spill] sm:$0xff]  ;;  %v14583_v4 = vld [vmem:[#allocation43_spill] sm:$0xff] }
 0x446   :  { %v7895_v27 = vpop.f32.mrf.mxu0  ;;  %v7797_v7 = vadd.f32 %v14581_v60, %v7684_v42 }
 0x447   :  { %v8008_v61 = vpop.f32.mrf.mxu1  ;;  %v8117_v33 = vpack.c.bf16 %v8073_v41, %v8069_v59  ;;  %v8074_v57 = vmax.f32 %v8003_v49, 0.0  ;;  %v7896_v31 = vadd.f32 %v7895_v27, %v14572_v5  ;;  %v8007_v39 = vadd.f32 %v8006_v9, %v7894_v29  ;;  %v14584_v9 = vld [vmem:[#allocation56_spill] sm:$0xff] }
 0x448   :  { %v7897_v50 = vpop.f32.mrf.mxu0  ;;  %v7692_v59 = vadd.f32 %v14584_v9, %v14583_v4 }
 0x449   :  { %v8010_v6 = vpop.f32.mrf.mxu1  ;;  %v8118_v18 = vpack.c.bf16 %v8074_v57, %v8070_v3  ;;  %v7898_v48 = vadd.f32 %v7897_v50, %v7785_v47  ;;  %v8009_v46 = vadd.f32 %v8008_v61, %v7896_v31  ;;  %v8077_v24 = vmax.f32 %v8007_v39, 0.0  ;;  %v14586_v57 = vld [vmem:[#allocation55_spill] sm:$0xff]  ;;  %v14587_v31 = vld [vmem:[#allocation57_spill] sm:$0xff] }
 0x44a   :  { %v7899_v1 = vpop.f32.mrf.mxu0  ;;  %v7805_v50 = vadd.f32 %v14587_v31, %v7692_v59 }
 0x44b   :  { %v8012_v58 = vpop.f32.mrf.mxu1  ;;  %v8011_v35 = vadd.f32 %v8010_v6, %v7898_v48  ;;  %v7900_v34 = vadd.f32 %v7899_v1, %v7787_v54  ;;  %8712 = vmatprep.mubr.bf16.mxu1 %v8118_v18  ;;  %v8078_v25 = vmax.f32 %v8009_v46, 0.0  ;;  %v14588_v48 = vld [vmem:[#allocation58_spill] sm:$0xff] }
 0x44c   :  { %v7903_v63 = vpop.f32.mrf.mxu0  ;;  %8713 = vmatmul.mubr.bf16.gmra.mxu1 %v8117_v33 }
 0x44d   :  { %v8016_v40 = vpop.f32.mrf.mxu1  ;;  %v8081_v36 = vmax.f32 %v8011_v35, 0.0  ;;  %v8013_v11 = vadd.f32 %v8012_v58, %v7900_v34  ;;  %v7904_v51 = vadd.f32 %v7903_v63, %v13588_v14  ;;  %v7581_v14 = vadd.f32 %v14582_v37, %v7468_v44  ;;  %v11432_v44 = vld [vmem:[#allocation11 + $0x50] sm:$0xff]  }
 0x44e   :  { %v7905_v62 = vpop.f32.mrf.mxu0  ;;  %10088 = vmatprep.subr.bf16.mxu0 %v11432_v44  ;;  %10147 = vmatprep.subr.bf16.mxu1 %v11432_v44 }
 0x44f   :  { %v8018_v19 = vpop.f32.mrf.mxu1  ;;  %v8121_v10 = vpack.c.bf16 %v8081_v36, %v8077_v24  ;;  %v8082_v20 = vmax.f32 %v8013_v11, 0.0  ;;  %v7906_v0 = vadd.f32 %v7905_v62, %v14580_v26  ;;  %v8017_v55 = vadd.f32 %v8016_v40, %v7904_v51  ;;  %10089 = vmatpush3.bf16.msra.mxu0 %v11433_v30  ;;  %10155 = vmatpush3.bf16.msra.mxu1 %v11433_v30  ;;  %v11435_v62 = vld [vmem:[#allocation11 + $0x8] sm:$0xff]  }
 0x450   :  { %v7907_v32 = vpop.f32.mrf.mxu0  ;;  %v7694_v2 = vadd.f32 %v14585_v45, %v7581_v14 }
 0x451   :  { %v8020_v22 = vpop.f32.mrf.mxu1  ;;  %v8122_v43 = vpack.c.bf16 %v8082_v20, %v8078_v25  ;;  %v7908_v52 = vadd.f32 %v7907_v32, %v7795_v38  ;;  %v8019_v28 = vadd.f32 %v8018_v19, %v7906_v0  ;;  %v8085_v61 = vmax.f32 %v8017_v55, 0.0  ;;  %v11434_v38 = vld [vmem:[#allocation11 + $0x48] sm:$0xff]   ;;  %v11436_v19 = vld [vmem:[#allocation11 + $0x40] sm:$0xff]  }
 0x452   :  { %v7909_v41 = vpop.f32.mrf.mxu0  ;;  %v7807_v1 = vadd.f32 %v14589_v15, %v7694_v2  ;;  %10090 = vmatprep.subr.bf16.mxu0 %v11434_v38  ;;  %10148 = vmatprep.subr.bf16.mxu1 %v11434_v38  ;;  %v11437_v25 = vld [vmem:[#allocation11] sm:$0xff]  }
 0x453   :  { %v8022_v49 = vpop.f32.mrf.mxu1  ;;  %v8021_v29 = vadd.f32 %v8020_v22, %v7908_v52  ;;  %v7910_v8 = vadd.f32 %v7909_v41, %v7797_v7  ;;  %8722 = vmatprep.mubr.bf16.mxu1 %v8122_v43  ;;  %v8086_v54 = vmax.f32 %v8019_v28, 0.0  ;;  %10091 = vmatpush3.bf16.msra.mxu0 %v11435_v62  ;;  %v8195_v41 = vld [vmem:[#allocation10] sm:$0x3]  ;;  %v14590_v28 = vld [vmem:[#allocation110_spill] sm:$0xff] }
 0x454   :  { %v7913_v47 = vpop.f32.mrf.mxu0  ;;  %8723 = vmatmul.mubr.bf16.gmra.mxu1 %v8121_v10  ;;  %10092 = vmatprep.subr.bf16.mxu0 %v11436_v19  ;;  %v14592_v45 = vsub.s32 0, %v14590_v28 }
 0x455   :  { %v8026_v27 = vpop.f32.mrf.mxu1  ;;  %v8089_v3 = vmax.f32 %v8021_v29, 0.0  ;;  %v8023_v33 = vadd.f32 %v8022_v49, %v7910_v8  ;;  %v7914_v5 = vadd.f32 %v7913_v47, %v14586_v57  ;;  %10156 = vmatpush3.bf16.msra.mxu1 %v11435_v62  ;;  %v14591_v29 = vsub.s32 1, %v14590_v28 }
 0x456   :  { %v7915_v6 = vpop.f32.mrf.mxu0  ;;  %10149 = vmatprep.subr.bf16.mxu1 %v11436_v19  ;;  %v13747_v2 = vrot.slane %v8195_v41, %v14592_v45 }
 0x457   :  { %v8028_v17 = vpop.f32.mrf.mxu1  ;;  %v8125_v18 = vpack.c.bf16 %v8089_v3, %v8085_v61  ;;  %v8090_v39 = vmax.f32 %v8023_v33, 0.0  ;;  %v7916_v13 = vadd.f32 %v7915_v6, %v14588_v48  ;;  %v8027_v46 = vadd.f32 %v8026_v27, %v7914_v5  ;;  %10093 = vmatpush3.bf16.msra.mxu0 %v11437_v25 }
 0x458   :  { %v7917_v16 = vpop.f32.mrf.mxu0  ;;  %v13743_v8 = vrot.slane %v8195_v41, %v14591_v29 }
 0x459   :  { %v8030_v56 = vpop.f32.mrf.mxu1  ;;  %v8126_v58 = vpack.c.bf16 %v8090_v39, %v8086_v54  ;;  %v7918_v35 = vadd.f32 %v7917_v16, %v7805_v50  ;;  %v8029_v21 = vadd.f32 %v8028_v17, %v7916_v13  ;;  %v8093_v63 = vmax.f32 %v8027_v46, 0.0  ;;  %10157 = vmatpush3.bf16.msra.mxu1 %v11437_v25 }
 0x45a   :  { %v7919_v34 = vpop.f32.mrf.mxu0 }
 0x45b   :  { %v8031_v23 = vadd.f32 %v8030_v56, %v7918_v35  ;;  %v7920_v12 = vadd.f32 %v7919_v34, %v7807_v1  ;;  %8732 = vmatprep.mubr.bf16.mxu1 %v8126_v58  ;;  %v8032_v42 = vpop.f32.mrf.mxu1  ;;  %v8094_v36 = vmax.f32 %v8029_v21, 0.0 }
 0x45c   :  { %8733 = vmatmul.mubr.bf16.gmra.mxu1 %v8125_v18  ;;  %v8561_v10 = vpop.f32.mrf.mxu0 }
 0x45d   :  { %v8097_v40 = vmax.f32 %v8031_v23, 0.0  ;;  %v8033_v24 = vadd.f32 %v8032_v42, %v7920_v12  ;;  %v8562_v57 = vadd.f32 %v8561_v10, %v13747_v2 }
 0x45e   :  { %v8563_v20 = vpop.f32.mrf.mxu0 }
 0x45f   :  { %v8129_v11 = vpack.c.bf16 %v8097_v40, %v8093_v63  ;;  %v8098_v51 = vmax.f32 %v8033_v24, 0.0  ;;  %v8564_v3 = vadd.f32 %v8563_v20, %v13743_v8 }
 0x460   :  { %v8565_v26 = vpop.f32.mrf.mxu0 }
 0x461   :  { %v8130_v53 = vpack.c.bf16 %v8098_v51, %v8094_v36  ;;  %v8566_v33 = vadd.f32 %v8565_v26, %v13747_v2 }
 0x462   :  { %v8567_v0 = vpop.f32.mrf.mxu0 }
 0x463   :  { %8742 = vmatprep.mubr.bf16.mxu1 %v8130_v53  ;;  %v8568_v31 = vadd.f32 %v8567_v0, %v13743_v8 }
 0x464   :  { %8743 = vmatmul.mubr.bf16.gmra.mxu1 %v8129_v11  ;;  %v8571_v32 = vpop.f32.mrf.mxu0 }
 0x465   :  { %v8572_v21 = vadd.f32 %v8571_v32, %v13747_v2 }
 0x466   :  { %v8573_v22 = vpop.f32.mrf.mxu0 }
 0x467   :  { %v8574_v46 = vadd.f32 %v8573_v22, %v13743_v8 }
 0x468   :  { %v8575_v60 = vpop.f32.mrf.mxu0 }
 0x469   :  { %v8576_v35 = vadd.f32 %v8575_v60, %v13747_v2 }
 0x46a   :  { %v8577_v7 = vpop.f32.mrf.mxu0 }
 0x46b   :  { %v8578_v42 = vadd.f32 %v8577_v7, %v13743_v8 }
 0x46c   :  { %v8581_v43 = vpop.f32.mrf.mxu0 }
 0x46d   :  { %v8582_v0 = vadd.f32 %v8581_v43, %v13747_v2 }
 0x46e   :  { %v8583_v55 = vpop.f32.mrf.mxu0 }
 0x46f   :  { %v8584_v10 = vadd.f32 %v8583_v55, %v13743_v8 }
 0x470   :  { %v8585_v52 = vpop.f32.mrf.mxu0 }
 0x471   :  { %v8586_v20 = vadd.f32 %v8585_v52, %v13747_v2 }
 0x472   :  { %v8587_v37 = vpop.f32.mrf.mxu0 }
 0x473   :  { %v8588_v60 = vadd.f32 %v8587_v37, %v13743_v8 }
 0x474   :  { %v13731_v14 = vpop.f32.mrf.mxu0 }
 0x476   :  { %v13733_v4 = vpop.f32.mrf.mxu0 }
 0x477   :  { %v8594_v43 = vadd.f32 %v13733_v4, %v13743_v8 }
 0x478   :  { %v13735_v9 = vpop.f32.mrf.mxu0 }
 0x479   :  { %v8596_v37 = vadd.f32 %v13735_v9, %v13747_v2 }
 0x47a   :  { %v13737_v59 = vpop.f32.mrf.mxu0 }
 0x47c   :  { %v13739_v49 = vpop.f32.mrf.mxu0 }
 0x47e   :  { %v13749_v27 = vpop.f32.mrf.mxu0 }
 0x480   :  { %v13755_v17 = vpop.f32.mrf.mxu0 }
 0x482   :  { %v13757_v15 = vpop.f32.mrf.mxu0 }
 0x484   :  { %v13763_v24 = vpop.f32.mrf.mxu0 }
 0x486   :  { %v13765_v62 = vpop.f32.mrf.mxu0 }
 0x488   :  { %v8615_v28 = vpop.f32.mrf.mxu0 }
 0x48a   :  { %v8617_v52 = vpop.f32.mrf.mxu0 }
 0x4ec   :  { %v8674_v47 = vpop.f32.mrf.mxu1 }
 0x4ed   :  { %v8675_v54 = vadd.f32 %v8674_v47, %v8562_v57 }
 0x4ee   :  { %v8676_v61 = vpop.f32.mrf.mxu1 }
 0x4ef   :  { %v8677_v50 = vadd.f32 %v8676_v61, %v8564_v3  ;;  %v8753_v1 = vmax.f32 %v8675_v54, 0.0 }
 0x4f0   :  { %v8678_v5 = vpop.f32.mrf.mxu1 }
 0x4f1   :  { %v8679_v6 = vadd.f32 %v8678_v5, %v8566_v33  ;;  %v8754_v16 = vmax.f32 %v8677_v50, 0.0  ;;  %v8592_v50 = vadd.f32 %v13731_v14, %v13747_v2 }
 0x4f2   :  { %v8680_v18 = vpop.f32.mrf.mxu1 }
 0x4f3   :  { %v8681_v39 = vadd.f32 %v8680_v18, %v8568_v31  ;;  %v8755_v48 = vmax.f32 %v8679_v6, 0.0  ;;  %v8598_v18 = vadd.f32 %v13737_v59, %v13743_v8  ;;  %v8606_v59 = vadd.f32 %v13755_v17, %v13747_v2 }
 0x4f4   :  { %v8684_v13 = vpop.f32.mrf.mxu1 }
 0x4f5   :  { %v8756_v56 = vmax.f32 %v8681_v39, 0.0  ;;  %v8785_v23 = vpack.c.bf16 %v8755_v48, %v8753_v1  ;;  %v8685_v36 = vadd.f32 %v8684_v13, %v8572_v21  ;;  %v8621_v13 = vpop.f32.mrf.mxu0  ;;  %v8604_v21 = vadd.f32 %v13749_v27, %v13743_v8 }
 0x4f6   :  { %v8686_v58 = vpop.f32.mrf.mxu1 }
 0x4f7   :  { %v8786_v34 = vpack.c.bf16 %v8756_v56, %v8754_v16  ;;  %v8687_v63 = vadd.f32 %v8686_v58, %v8574_v46  ;;  %v8757_v19 = vmax.f32 %v8685_v36, 0.0 }
 0x4f8   :  { %v8688_v12 = vpop.f32.mrf.mxu1 }
 0x4f9   :  { %v8689_v40 = vadd.f32 %v8688_v12, %v8576_v35  ;;  %8968 = vmatprep.mubr.bf16.mxu0 %v8786_v34  ;;  %v8758_v30 = vmax.f32 %v8687_v63, 0.0  ;;  %v8623_v35 = vpop.f32.mrf.mxu0  ;;  %v8602_v12 = vadd.f32 %v13739_v49, %v13747_v2 }
 0x4fa   :  { %v8690_v11 = vpop.f32.mrf.mxu1  ;;  %8969 = vmatmul.mubr.bf16.vlgmr.msra.gmra.mxu0 %v8785_v23 }
 0x4fb   :  { %v8691_v51 = vadd.f32 %v8690_v11, %v8578_v42  ;;  %v8759_v53 = vmax.f32 %v8689_v40, 0.0  ;;  %v8608_v40 = vadd.f32 %v13757_v15, %v13743_v8  ;;  %v8616_v15 = vadd.f32 %v8615_v28, %v13747_v2 }
 0x4fc   :  { %v8694_v44 = vpop.f32.mrf.mxu1 }
 0x4fd   :  { %v8760_v38 = vmax.f32 %v8691_v51, 0.0  ;;  %v8787_v32 = vpack.c.bf16 %v8759_v53, %v8757_v19  ;;  %v8695_v29 = vadd.f32 %v8694_v44, %v8582_v0  ;;  %v8625_v51 = vpop.f32.mrf.mxu0  ;;  %v8612_v0 = vadd.f32 %v13763_v24, %v13747_v2 }
 0x4fe   :  { %v8696_v25 = vpop.f32.mrf.mxu1  ;;  %v8624_v24 = vadd.f32 %v8623_v35, %v13743_v8 }
 0x4ff   :  { %v8788_v26 = vpack.c.bf16 %v8760_v38, %v8758_v30  ;;  %v8697_v7 = vadd.f32 %v8696_v25, %v8584_v10  ;;  %v8761_v57 = vmax.f32 %v8695_v29, 0.0  ;;  %v8627_v25 = vpop.f32.mrf.mxu0 }
 0x500   :  { %v8698_v22 = vpop.f32.mrf.mxu1 }
 0x501   :  { %v8699_v41 = vadd.f32 %v8698_v22, %v8586_v20  ;;  %8976 = vmatprep.mubr.bf16.mxu0 %v8788_v26  ;;  %v8762_v55 = vmax.f32 %v8697_v7, 0.0  ;;  %v8614_v20 = vadd.f32 %v13765_v62, %v13743_v8  ;;  %v8631_v29 = vpop.f32.mrf.mxu0 }
 0x502   :  { %v8700_v45 = vpop.f32.mrf.mxu1  ;;  %8977 = vmatmul.mubr.bf16.gmra.mxu0 %v8787_v32 }
 0x503   :  { %v8701_v47 = vadd.f32 %v8700_v45, %v8588_v60  ;;  %v8763_v61 = vmax.f32 %v8699_v41, 0.0  ;;  %v8618_v60 = vadd.f32 %v8617_v52, %v13743_v8 }
 0x504   :  { %v8704_v3 = vpop.f32.mrf.mxu1 }
 0x505   :  { %v8764_v33 = vmax.f32 %v8701_v47, 0.0  ;;  %v8789_v6 = vpack.c.bf16 %v8763_v61, %v8761_v57  ;;  %v8705_v16 = vadd.f32 %v8704_v3, %v8592_v50 }
 0x506   :  { %v8706_v5 = vpop.f32.mrf.mxu1 }
 0x507   :  { %v8790_v31 = vpack.c.bf16 %v8764_v33, %v8762_v55  ;;  %v8707_v39 = vadd.f32 %v8706_v5, %v8594_v43  ;;  %v8765_v34 = vmax.f32 %v8705_v16, 0.0  ;;  %v8633_v33 = vpop.f32.mrf.mxu0  ;;  %v8626_v43 = vadd.f32 %v8625_v51, %v13747_v2 }
 0x508   :  { %v8708_v54 = vpop.f32.mrf.mxu1 }
 0x509   :  { %v8709_v48 = vadd.f32 %v8708_v54, %v8596_v37  ;;  %8984 = vmatprep.mubr.bf16.mxu0 %v8790_v31  ;;  %v8766_v9 = vmax.f32 %v8707_v39, 0.0  ;;  %v8622_v37 = vadd.f32 %v8621_v13, %v13747_v2  ;;  %v8635_v39 = vpop.f32.mrf.mxu0  ;;  %v8634_v13 = vadd.f32 %v8633_v33, %v13743_v8 }
 0x50a   :  { %v8710_v56 = vpop.f32.mrf.mxu1  ;;  %8985 = vmatmul.mubr.bf16.gmra.mxu0 %v8789_v6  ;;  %v8628_v6 = vadd.f32 %v8627_v25, %v13743_v8  ;;  %v13801_v25 = vld [vmem:[#allocation13] ss:$0 sm:$0xff] }
 0x50b   :  { %v8711_v4 = vadd.f32 %v8710_v56, %v8598_v18  ;;  %v8767_v1 = vmax.f32 %v8709_v48, 0.0 }
 0x50c   :  { %v8714_v58 = vpop.f32.mrf.mxu1 }
 0x50d   :  { %v8768_v46 = vmax.f32 %v8711_v4, 0.0  ;;  %v8791_v42 = vpack.c.bf16 %v8767_v1, %v8765_v34  ;;  %v8715_v53 = vadd.f32 %v8714_v58, %v8602_v12 }
 0x50e   :  { %v8716_v14 = vpop.f32.mrf.mxu1 }
 0x50f   :  { %v8792_v23 = vpack.c.bf16 %v8768_v46, %v8766_v9  ;;  %v8717_v36 = vadd.f32 %v8716_v14, %v8604_v21  ;;  %v8769_v10 = vmax.f32 %v8715_v53, 0.0  ;;  %v8637_v46 = vpop.f32.mrf.mxu0  ;;  %v8636_v14 = vadd.f32 %v8635_v39, %v13747_v2 }
 0x510   :  { %v8718_v63 = vpop.f32.mrf.mxu1 }
 0x511   :  { %v8719_v11 = vadd.f32 %v8718_v63, %v8606_v59  ;;  %8992 = vmatprep.mubr.bf16.mxu0 %v8792_v23  ;;  %v8770_v17 = vmax.f32 %v8717_v36, 0.0  ;;  %v8632_v59 = vadd.f32 %v8631_v29, %v13747_v2 }
 0x512   :  { %v8720_v44 = vpop.f32.mrf.mxu1  ;;  %8993 = vmatmul.mubr.bf16.gmra.mxu0 %v8791_v42  ;;  %v8638_v42 = vadd.f32 %v8637_v46, %v13743_v8 }
 0x513   :  { %v8721_v27 = vadd.f32 %v8720_v44, %v8608_v40  ;;  %v8771_v30 = vmax.f32 %v8719_v11, 0.0 }
 0x514   :  { %v8724_v38 = vpop.f32.mrf.mxu1 }
 0x515   :  { %v8772_v19 = vmax.f32 %v8721_v27, 0.0  ;;  %v8793_v32 = vpack.c.bf16 %v8771_v30, %v8769_v10  ;;  %v8725_v45 = vadd.f32 %v8724_v38, %v8612_v0 }
 0x516   :  { %v8726_v49 = vpop.f32.mrf.mxu1 }
 0x517   :  { %v8794_v26 = vpack.c.bf16 %v8772_v19, %v8770_v17  ;;  %v8727_v7 = vadd.f32 %v8726_v49, %v8614_v20  ;;  %v8773_v57 = vmax.f32 %v8725_v45, 0.0 }
 0x518   :  { %v8728_v22 = vpop.f32.mrf.mxu1 }
 0x519   :  { %v8729_v41 = vadd.f32 %v8728_v22, %v8616_v15  ;;  %9000 = vmatprep.mubr.bf16.mxu1 %v8794_v26  ;;  %v8774_v55 = vmax.f32 %v8727_v7, 0.0 }
 0x51a   :  { %v8730_v47 = vpop.f32.mrf.mxu1  ;;  %9001 = vmatmul.mubr.bf16.vlgmr.msra.gmra.mxu1 %v8793_v32 }
 0x51b   :  { %v8731_v61 = vadd.f32 %v8730_v47, %v8618_v60  ;;  %v8775_v3 = vmax.f32 %v8729_v41, 0.0 }
 0x51c   :  { %v8734_v62 = vpop.f32.mrf.mxu1 }
 0x51d   :  { %v8776_v28 = vmax.f32 %v8731_v61, 0.0  ;;  %v8795_v31 = vpack.c.bf16 %v8775_v3, %v8773_v57  ;;  %v8735_v48 = vadd.f32 %v8734_v62, %v8622_v37 }
 0x51e   :  { %v8736_v5 = vpop.f32.mrf.mxu1 }
 0x51f   :  { %v8796_v52 = vpack.c.bf16 %v8776_v28, %v8774_v55  ;;  %v8737_v54 = vadd.f32 %v8736_v5, %v8624_v24  ;;  %v8777_v35 = vmax.f32 %v8735_v48, 0.0 }
 0x520   :  { %v8738_v50 = vpop.f32.mrf.mxu1 }
 0x521   :  { %v8739_v18 = vadd.f32 %v8738_v50, %v8626_v43  ;;  %9008 = vmatprep.mubr.bf16.mxu1 %v8796_v52  ;;  %v8778_v58 = vmax.f32 %v8737_v54, 0.0 }
 0x522   :  { %v8740_v16 = vpop.f32.mrf.mxu1  ;;  %9009 = vmatmul.mubr.bf16.gmra.mxu1 %v8795_v31 }
 0x523   :  { %v8741_v56 = vadd.f32 %v8740_v16, %v8628_v6  ;;  %v8779_v4 = vmax.f32 %v8739_v18, 0.0 }
 0x524   :  { %v8744_v1 = vpop.f32.mrf.mxu1 }
 0x525   :  { %v8780_v9 = vmax.f32 %v8741_v56, 0.0  ;;  %v8797_v23 = vpack.c.bf16 %v8779_v4, %v8777_v35  ;;  %v8745_v36 = vadd.f32 %v8744_v1, %v8632_v59 }
 0x526   :  { %v8746_v34 = vpop.f32.mrf.mxu1 }
 0x527   :  { %v8798_v21 = vpack.c.bf16 %v8780_v9, %v8778_v58  ;;  %v8747_v63 = vadd.f32 %v8746_v34, %v8634_v13  ;;  %v8781_v30 = vmax.f32 %v8745_v36, 0.0 }
 0x528   :  { %v8748_v12 = vpop.f32.mrf.mxu1 }
 0x529   :  { %v8749_v40 = vadd.f32 %v8748_v12, %v8636_v14  ;;  %9016 = vmatprep.mubr.bf16.mxu1 %v8798_v21  ;;  %v8782_v44 = vmax.f32 %v8747_v63, 0.0 }
 0x52a   :  { %v8750_v11 = vpop.f32.mrf.mxu1  ;;  %9017 = vmatmul.mubr.bf16.gmra.mxu1 %v8797_v23 }
 0x52b   :  { %v8751_v51 = vadd.f32 %v8750_v11, %v8638_v42  ;;  %v8783_v53 = vmax.f32 %v8749_v40, 0.0 }
 0x52d   :  { %v8784_v27 = vmax.f32 %v8751_v51, 0.0  ;;  %v8799_v17 = vpack.c.bf16 %v8783_v53, %v8781_v30 }
 0x52f   :  { %v8800_v38 = vpack.c.bf16 %v8784_v27, %v8782_v44 }
 0x531   :  { %9024 = vmatprep.mubr.bf16.mxu1 %v8800_v38 }
 0x532   :  { %9025 = vmatmul.mubr.bf16.gmra.mxu1 %v8799_v17 }
 0x5ba   :  { %v10094_v2 = vpop.f32.mrf.mxu0 }
 0x5bc   :  { %v10095_v19 = vpop.f32.mrf.mxu0 }
 0x5bd   :  { %v10096_v8 = vadd.f32 %v10095_v19, %v10094_v2 }
 0x5be   :  { %v10097_v10 = vpop.f32.mrf.mxu0 }
 0x5bf   :  { %v13804_v49 = vadd.f32 %v10096_v8, %v13801_v25 }
 0x5c0   :  { %v10098_v20 = vpop.f32.mrf.mxu0 }
 0x5c1   :  { %v10099_v15 = vadd.f32 %v10098_v20, %v10097_v10  ;;  %9033 = vmax.xlane.f32.xlu0 %v13804_v49 }
 0x5c2   :  { %v10100_v26 = vpop.f32.mrf.mxu0 }
 0x5c3   :  { %v13808_v0 = vadd.f32 %v10099_v15, %v13801_v25 }
 0x5c4   :  { %v10101_v32 = vpop.f32.mrf.mxu0 }
 0x5c5   :  { %v10102_v22 = vadd.f32 %v10101_v32, %v10100_v26  ;;  %9035 = vmax.xlane.f32.xlu0 %v13808_v0 }
 0x5c6   :  { %v10103_v60 = vpop.f32.mrf.mxu0 }
 0x5c7   :  { %v13812_v7 = vadd.f32 %v10102_v22, %v13801_v25 }
 0x5c8   :  { %v10104_v41 = vpop.f32.mrf.mxu0 }
 0x5c9   :  { %v10105_v29 = vadd.f32 %v10104_v41, %v10103_v60  ;;  %9037 = vmax.xlane.f32.xlu1 %v13812_v7 }
 0x5ca   :  { %v10106_v45 = vpop.f32.mrf.mxu0 }
 0x5cb   :  { %v13816_v47 = vadd.f32 %v10105_v29, %v13801_v25 }
 0x5cc   :  { %v10107_v61 = vpop.f32.mrf.mxu0 }
 0x5cd   :  { %v10108_v3 = vadd.f32 %v10107_v61, %v10106_v45  ;;  %9039 = vmax.xlane.f32.xlu1 %v13816_v47 }
 0x5ce   :  { %v10109_v62 = vpop.f32.mrf.mxu0 }
 0x5cf   :  { %v13820_v55 = vadd.f32 %v10108_v3, %v13801_v25 }
 0x5d0   :  { %v10110_v28 = vpop.f32.mrf.mxu0 }
 0x5d1   :  { %v10111_v33 = vadd.f32 %v10110_v28, %v10109_v62  ;;  %9041 = vmax.xlane.f32.xlu0 %v13820_v55 }
 0x5d2   :  { %v10112_v57 = vpop.f32.mrf.mxu0 }
 0x5d3   :  { %v13824_v5 = vadd.f32 %v10111_v33, %v13801_v25 }
 0x5d4   :  { %v10113_v24 = vpop.f32.mrf.mxu0 }
 0x5d5   :  { %v10114_v43 = vadd.f32 %v10113_v24, %v10112_v57  ;;  %9043 = vmax.xlane.f32.xlu1 %v13824_v5 }
 0x5d6   :  { %v10115_v52 = vpop.f32.mrf.mxu0 }
 0x5d7   :  { %v13828_v37 = vadd.f32 %v10114_v43, %v13801_v25 }
 0x5d8   :  { %v10116_v31 = vpop.f32.mrf.mxu0 }
 0x5d9   :  { %v10117_v50 = vadd.f32 %v10116_v31, %v10115_v52  ;;  %9045 = vmax.xlane.f32.xlu0 %v13828_v37 }
 0x5da   :  { %v10118_v6 = vpop.f32.mrf.mxu1 }
 0x5db   :  { %v13832_v54 = vadd.f32 %v10117_v50, %v13801_v25 }
 0x5dc   :  { %v10119_v18 = vpop.f32.mrf.mxu1 }
 0x5dd   :  { %v10120_v39 = vadd.f32 %v10119_v18, %v10118_v6  ;;  %9047 = vmax.xlane.f32.xlu1 %v13832_v54 }
 0x5de   :  { %v10121_v48 = vpop.f32.mrf.mxu1 }
 0x5df   :  { %v13836_v16 = vadd.f32 %v10120_v39, %v13801_v25 }
 0x5e0   :  { %v10122_v56 = vpop.f32.mrf.mxu1 }
 0x5e1   :  { %v10123_v4 = vadd.f32 %v10122_v56, %v10121_v48  ;;  %9049 = vmax.xlane.f32.xlu0 %v13836_v16 }
 0x5e2   :  { %v10124_v1 = vpop.f32.mrf.mxu1 }
 0x5e3   :  { %v13840_v58 = vadd.f32 %v10123_v4, %v13801_v25 }
 0x5e4   :  { %v10125_v9 = vpop.f32.mrf.mxu1 }
 0x5e5   :  { %v10126_v46 = vadd.f32 %v10125_v9, %v10124_v1  ;;  %9051 = vmax.xlane.f32.xlu1 %v13840_v58 }
 0x5e6   :  { %v10127_v35 = vpop.f32.mrf.mxu1 }
 0x5e7   :  { %v13844_v34 = vadd.f32 %v10126_v46, %v13801_v25 }
 0x5e8   :  { %v10128_v13 = vpop.f32.mrf.mxu1 }
 0x5e9   :  { %v10129_v14 = vadd.f32 %v10128_v13, %v10127_v35  ;;  %9053 = vmax.xlane.f32.xlu0 %v13844_v34 }
 0x5ea   :  { %v10130_v21 = vpop.f32.mrf.mxu1 }
 0x5eb   :  { %v13848_v59 = vadd.f32 %v10129_v14, %v13801_v25 }
 0x5ec   :  { %v10131_v23 = vpop.f32.mrf.mxu1 }
 0x5ed   :  { %v10132_v12 = vadd.f32 %v10131_v23, %v10130_v21  ;;  %9055 = vmax.xlane.f32.xlu1 %v13848_v59 }
 0x5ee   :  { %v10133_v42 = vpop.f32.mrf.mxu1 }
 0x5ef   :  { %v13852_v63 = vadd.f32 %v10132_v12, %v13801_v25 }
 0x5f0   :  { %v10134_v40 = vpop.f32.mrf.mxu1 }
 0x5f1   :  { %v10135_v36 = vadd.f32 %v10134_v40, %v10133_v42  ;;  %9057 = vmax.xlane.f32.xlu0 %v13852_v63 }
 0x5f2   :  { %v10136_v11 = vpop.f32.mrf.mxu1 }
 0x5f3   :  { %v13856_v51 = vadd.f32 %v10135_v36, %v13801_v25 }
 0x5f4   :  { %v10137_v53 = vpop.f32.mrf.mxu1 }
 0x5f5   :  { %v10138_v44 = vadd.f32 %v10137_v53, %v10136_v11  ;;  %9059 = vmax.xlane.f32.xlu1 %v13856_v51 }
 0x5f6   :  { %v10139_v27 = vpop.f32.mrf.mxu1 }
 0x5f7   :  { %v13860_v30 = vadd.f32 %v10138_v44, %v13801_v25 }
 0x5f8   :  { %v10140_v38 = vpop.f32.mrf.mxu1 }
 0x5f9   :  { %v10141_v17 = vadd.f32 %v10140_v38, %v10139_v27  ;;  %9061 = vmax.xlane.f32.xlu0 %v13860_v30 }
 0x5fb   :  { %v13864_v2 = vadd.f32 %v10141_v17, %v13801_v25 }
 0x5fd   :  { %9063 = vmax.xlane.f32.xlu1 %v13864_v2 }
 0x64a   :  { %v9034_v19 = vpop.xlane.xlu0 %9033 }
 0x64b   :  { %v13868_v8 = vsub.f32 %v13804_v49, %v9034_v19 }
 0x64d   :  { %v9081_v10 = vmul.f32 1.442695, %v13868_v8 }
 0x64e   :  { %v9036_v20 = vpop.xlane.xlu0 %9035 }
 0x64f   :  { %11438 = vpow2.f32 %v9081_v10  ;;  %v13872_v15 = vsub.f32 %v13808_v0, %v9036_v20 }
 0x651   :  { %v9083_v26 = vmul.f32 1.442695, %v13872_v15 }
 0x652   :  { %v9038_v32 = vpop.xlane.xlu1 %9037 }
 0x653   :  { %11440 = vpow2.f32 %v9083_v26  ;;  %v13876_v25 = vsub.f32 %v13812_v7, %v9038_v32 }
 0x655   :  { %v9085_v22 = vmul.f32 1.442695, %v13876_v25 }
 0x656   :  { %v9040_v60 = vpop.xlane.xlu1 %9039 }
 0x657   :  { %11442 = vpow2.f32 %v9085_v22  ;;  %v13880_v49 = vsub.f32 %v13816_v47, %v9040_v60 }
 0x659   :  { %v9087_v41 = vmul.f32 1.442695, %v13880_v49 }
 0x65a   :  { %v9042_v29 = vpop.xlane.xlu0 %9041 }
 0x65b   :  { %11444 = vpow2.f32 %v9087_v41  ;;  %v13884_v0 = vsub.f32 %v13820_v55, %v9042_v29 }
 0x65c   :  { %v11439_v45 = vpop.eup %11438 }
 0x65d   :  { %v9089_v61 = vmul.f32 1.442695, %v13884_v0  ;;  %9113 = vadd.xlane.f32.xlu0 %v11439_v45 }
 0x65e   :  { %v9044_v7 = vpop.xlane.xlu1 %9043 }
 0x65f   :  { %11446 = vpow2.f32 %v9089_v61  ;;  %v13888_v3 = vsub.f32 %v13824_v5, %v9044_v7 }
 0x660   :  { %v11441_v62 = vpop.eup %11440 }
 0x661   :  { %v9091_v47 = vmul.f32 1.442695, %v13888_v3  ;;  %9115 = vadd.xlane.f32.xlu1 %v11441_v62 }
 0x662   :  { %v9046_v28 = vpop.xlane.xlu0 %9045 }
 0x663   :  { %11448 = vpow2.f32 %v9091_v47  ;;  %v13892_v33 = vsub.f32 %v13828_v37, %v9046_v28 }
 0x664   :  { %v11443_v55 = vpop.eup %11442 }
 0x665   :  { %v9093_v57 = vmul.f32 1.442695, %v13892_v33  ;;  %9117 = vadd.xlane.f32.xlu0 %v11443_v55 }
 0x666   :  { %v9048_v24 = vpop.xlane.xlu1 %9047 }
 0x667   :  { %11450 = vpow2.f32 %v9093_v57  ;;  %v13896_v43 = vsub.f32 %v13832_v54, %v9048_v24 }
 0x668   :  { %v11445_v5 = vpop.eup %11444 }
 0x669   :  { %v9095_v52 = vmul.f32 1.442695, %v13896_v43  ;;  %9119 = vadd.xlane.f32.xlu1 %v11445_v5 }
 0x66a   :  { %v9050_v31 = vpop.xlane.xlu0 %9049 }
 0x66b   :  { %11452 = vpow2.f32 %v9095_v52  ;;  %v13900_v50 = vsub.f32 %v13836_v16, %v9050_v31 }
 0x66c   :  { %v11447_v37 = vpop.eup %11446 }
 0x66d   :  { %v9097_v6 = vmul.f32 1.442695, %v13900_v50  ;;  %9121 = vadd.xlane.f32.xlu0 %v11447_v37 }
 0x66e   :  { %v9052_v18 = vpop.xlane.xlu1 %9051 }
 0x66f   :  { %11454 = vpow2.f32 %v9097_v6  ;;  %v13904_v39 = vsub.f32 %v13840_v58, %v9052_v18 }
 0x670   :  { %v11449_v54 = vpop.eup %11448 }
 0x671   :  { %v9099_v48 = vmul.f32 1.442695, %v13904_v39  ;;  %9123 = vadd.xlane.f32.xlu1 %v11449_v54 }
 0x672   :  { %v9054_v56 = vpop.xlane.xlu0 %9053 }
 0x673   :  { %11456 = vpow2.f32 %v9099_v48  ;;  %v13908_v4 = vsub.f32 %v13844_v34, %v9054_v56 }
 0x674   :  { %v11451_v16 = vpop.eup %11450 }
 0x675   :  { %v9101_v1 = vmul.f32 1.442695, %v13908_v4  ;;  %9125 = vadd.xlane.f32.xlu0 %v11451_v16 }
 0x676   :  { %v9056_v9 = vpop.xlane.xlu1 %9055 }
 0x677   :  { %11458 = vpow2.f32 %v9101_v1  ;;  %v13912_v46 = vsub.f32 %v13848_v59, %v9056_v9 }
 0x678   :  { %v11453_v58 = vpop.eup %11452 }
 0x679   :  { %v9103_v35 = vmul.f32 1.442695, %v13912_v46  ;;  %9127 = vadd.xlane.f32.xlu1 %v11453_v58 }
 0x67a   :  { %v9058_v13 = vpop.xlane.xlu0 %9057 }
 0x67b   :  { %11460 = vpow2.f32 %v9103_v35  ;;  %v13916_v14 = vsub.f32 %v13852_v63, %v9058_v13 }
 0x67c   :  { %v11455_v34 = vpop.eup %11454 }
 0x67d   :  { %v9105_v21 = vmul.f32 1.442695, %v13916_v14  ;;  %9129 = vadd.xlane.f32.xlu0 %v11455_v34 }
 0x67e   :  { %v9060_v23 = vpop.xlane.xlu1 %9059 }
 0x67f   :  { %11462 = vpow2.f32 %v9105_v21  ;;  %v13920_v12 = vsub.f32 %v13856_v51, %v9060_v23 }
 0x680   :  { %v11457_v59 = vpop.eup %11456 }
 0x681   :  { %v9107_v42 = vmul.f32 1.442695, %v13920_v12  ;;  %9131 = vadd.xlane.f32.xlu1 %v11457_v59 }
 0x682   :  { %v9062_v40 = vpop.xlane.xlu0 %9061 }
 0x683   :  { %11464 = vpow2.f32 %v9107_v42  ;;  %v13924_v36 = vsub.f32 %v13860_v30, %v9062_v40 }
 0x684   :  { %v11459_v63 = vpop.eup %11458 }
 0x685   :  { %v9109_v11 = vmul.f32 1.442695, %v13924_v36  ;;  %9133 = vadd.xlane.f32.xlu0 %v11459_v63 }
 0x686   :  { %v9064_v53 = vpop.xlane.xlu1 %9063 }
 0x687   :  { %11466 = vpow2.f32 %v9109_v11  ;;  %v13928_v44 = vsub.f32 %v13864_v2, %v9064_v53 }
 0x688   :  { %v11461_v51 = vpop.eup %11460 }
 0x689   :  { %v9111_v27 = vmul.f32 1.442695, %v13928_v44  ;;  %9135 = vadd.xlane.f32.xlu1 %v11461_v51 }
 0x68b   :  { %11468 = vpow2.f32 %v9111_v27 }
 0x68c   :  { %v11463_v38 = vpop.eup %11462 }
 0x68d   :  { %9137 = vadd.xlane.f32.xlu0 %v11463_v38 }
 0x690   :  { %v11465_v17 = vpop.eup %11464 }
 0x691   :  { %9139 = vadd.xlane.f32.xlu1 %v11465_v17 }
 0x694   :  { %v11467_v30 = vpop.eup %11466 }
 0x695   :  { %9141 = vadd.xlane.f32.xlu0 %v11467_v30 }
 0x698   :  { %v11469_v19 = vpop.eup %11468 }
 0x699   :  { %9143 = vadd.xlane.f32.xlu1 %v11469_v19 }
 0x6e6   :  { %v9114_v10 = vpop.xlane.xlu0 %9113 }
 0x6e7   :  { %11470 = vlog2.f32 %v9114_v10 }
 0x6ea   :  { %v9116_v20 = vpop.xlane.xlu1 %9115 }
 0x6eb   :  { %11472 = vlog2.f32 %v9116_v20 }
 0x6ee   :  { %v9118_v26 = vpop.xlane.xlu0 %9117 }
 0x6ef   :  { %11474 = vlog2.f32 %v9118_v26 }
 0x6f2   :  { %v9120_v2 = vpop.xlane.xlu1 %9119 }
 0x6f3   :  { %11476 = vlog2.f32 %v9120_v2 }
 0x6f4   :  { %v11471_v32 = vpop.eup %11470 }
 0x6f5   :  { %v9146_v22 = vmul.f32 0.6931472, %v11471_v32 }
 0x6f6   :  { %v9122_v60 = vpop.xlane.xlu0 %9121 }
 0x6f7   :  { %v9177_v41 = vsub.f32 %v13868_v8, %v9146_v22  ;;  %11478 = vlog2.f32 %v9122_v60 }
 0x6f8   :  { %v11473_v29 = vpop.eup %11472 }
 0x6f9   :  { %9193 = vst [vmem:[#allocation14] sm:$0xff] %v9177_v41  ;;  %v9148_v45 = vmul.f32 0.6931472, %v11473_v29 }
 0x6fa   :  { %v9124_v61 = vpop.xlane.xlu1 %9123 }
 0x6fb   :  { %v9178_v7 = vsub.f32 %v13872_v15, %v9148_v45  ;;  %11480 = vlog2.f32 %v9124_v61 }
 0x6fc   :  { %v11475_v62 = vpop.eup %11474 }
 0x6fd   :  { %9194 = vst [vmem:[#allocation14 + $0x8] sm:$0xff] %v9178_v7  ;;  %v9150_v47 = vmul.f32 0.6931472, %v11475_v62 }
 0x6fe   :  { %v9126_v28 = vpop.xlane.xlu0 %9125 }
 0x6ff   :  { %v9179_v55 = vsub.f32 %v13876_v25, %v9150_v47  ;;  %11482 = vlog2.f32 %v9126_v28 }
 0x700   :  { %v11477_v57 = vpop.eup %11476 }
 0x701   :  { %9195 = vst [vmem:[#allocation14 + $0x10] sm:$0xff] %v9179_v55  ;;  %v9152_v24 = vmul.f32 0.6931472, %v11477_v57 }
 0x702   :  { %v9128_v5 = vpop.xlane.xlu1 %9127 }
 0x703   :  { %v9180_v8 = vsub.f32 %v13880_v49, %v9152_v24  ;;  %11484 = vlog2.f32 %v9128_v5 }
 0x704   :  { %v11479_v52 = vpop.eup %11478 }
 0x705   :  { %9196 = vst [vmem:[#allocation14 + $0x18] sm:$0xff] %v9180_v8  ;;  %v9154_v31 = vmul.f32 0.6931472, %v11479_v52 }
 0x706   :  { %v9130_v37 = vpop.xlane.xlu0 %9129 }
 0x707   :  { %v9181_v15 = vsub.f32 %v13884_v0, %v9154_v31  ;;  %11486 = vlog2.f32 %v9130_v37 }
 0x708   :  { %v11481_v6 = vpop.eup %11480 }
 0x709   :  { %9197 = vst [vmem:[#allocation14 + $0x20] sm:$0xff] %v9181_v15  ;;  %v9156_v18 = vmul.f32 0.6931472, %v11481_v6 }
 0x70a   :  { %v9132_v54 = vpop.xlane.xlu1 %9131 }
 0x70b   :  { %v9182_v25 = vsub.f32 %v13888_v3, %v9156_v18  ;;  %11488 = vlog2.f32 %v9132_v54 }
 0x70c   :  { %v11483_v48 = vpop.eup %11482 }
 0x70d   :  { %9198 = vst [vmem:[#allocation14 + $0x28] sm:$0xff] %v9182_v25  ;;  %v9158_v56 = vmul.f32 0.6931472, %v11483_v48 }
 0x70e   :  { %v9134_v16 = vpop.xlane.xlu0 %9133 }
 0x70f   :  { %v9183_v49 = vsub.f32 %v13892_v33, %v9158_v56  ;;  %11490 = vlog2.f32 %v9134_v16 }
 0x710   :  { %v11485_v1 = vpop.eup %11484 }
 0x711   :  { %9199 = vst [vmem:[#allocation14 + $0x30] sm:$0xff] %v9183_v49  ;;  %v9160_v9 = vmul.f32 0.6931472, %v11485_v1 }
 0x712   :  { %v9136_v58 = vpop.xlane.xlu1 %9135 }
 0x713   :  { %v9184_v0 = vsub.f32 %v13896_v43, %v9160_v9  ;;  %11492 = vlog2.f32 %v9136_v58 }
 0x714   :  { %v11487_v35 = vpop.eup %11486 }
 0x715   :  { %9200 = vst [vmem:[#allocation14 + $0x38] sm:$0xff] %v9184_v0  ;;  %v9162_v13 = vmul.f32 0.6931472, %v11487_v35 }
 0x716   :  { %v9138_v34 = vpop.xlane.xlu0 %9137 }
 0x717   :  { %v9185_v3 = vsub.f32 %v13900_v50, %v9162_v13  ;;  %11494 = vlog2.f32 %v9138_v34 }
 0x718   :  { %v11489_v21 = vpop.eup %11488 }
 0x719   :  { %9201 = vst [vmem:[#allocation14 + $0x40] sm:$0xff] %v9185_v3  ;;  %v9164_v23 = vmul.f32 0.6931472, %v11489_v21 }
 0x71a   :  { %v9140_v59 = vpop.xlane.xlu1 %9139 }
 0x71b   :  { %v9186_v33 = vsub.f32 %v13904_v39, %v9164_v23  ;;  %11496 = vlog2.f32 %v9140_v59 }
 0x71c   :  { %v11491_v42 = vpop.eup %11490 }
 0x71d   :  { %9202 = vst [vmem:[#allocation14 + $0x48] sm:$0xff] %v9186_v33  ;;  %v9166_v40 = vmul.f32 0.6931472, %v11491_v42 }
 0x71e   :  { %v9142_v63 = vpop.xlane.xlu0 %9141 }
 0x71f   :  { %v9187_v43 = vsub.f32 %v13908_v4, %v9166_v40  ;;  %11498 = vlog2.f32 %v9142_v63 }
 0x720   :  { %v11493_v11 = vpop.eup %11492 }
 0x721   :  { %9203 = vst [vmem:[#allocation14 + $0x50] sm:$0xff] %v9187_v43  ;;  %v9168_v53 = vmul.f32 0.6931472, %v11493_v11 }
 0x722   :  { %v9144_v51 = vpop.xlane.xlu1 %9143 }
 0x723   :  { %v9188_v50 = vsub.f32 %v13912_v46, %v9168_v53  ;;  %11500 = vlog2.f32 %v9144_v51 }
 0x724   :  { %v11495_v27 = vpop.eup %11494 }
 0x725   :  { %9204 = vst [vmem:[#allocation14 + $0x58] sm:$0xff] %v9188_v50  ;;  %v9170_v38 = vmul.f32 0.6931472, %v11495_v27 }
 0x727   :  { %v9189_v39 = vsub.f32 %v13916_v14, %v9170_v38 }
 0x728   :  { %v11497_v17 = vpop.eup %11496 }
 0x729   :  { %9205 = vst [vmem:[#allocation14 + $0x60] sm:$0xff] %v9189_v39  ;;  %v9172_v30 = vmul.f32 0.6931472, %v11497_v17 }
 0x72b   :  { %v9190_v19 = vsub.f32 %v13920_v12, %v9172_v30 }
 0x72c   :  { %v11499_v10 = vpop.eup %11498 }
 0x72d   :  { %9206 = vst [vmem:[#allocation14 + $0x68] sm:$0xff] %v9190_v19  ;;  %v9174_v4 = vmul.f32 0.6931472, %v11499_v10 }
 0x72f   :  { %v9191_v20 = vsub.f32 %v13924_v36, %v9174_v4 }
 0x730   :  { %v11501_v26 = vpop.eup %11500 }
 0x731   :  { %9207 = vst [vmem:[#allocation14 + $0x70] sm:$0xff] %v9191_v20  ;;  %v9176_v46 = vmul.f32 0.6931472, %v11501_v26 }
 0x733   :  { %v9192_v2 = vsub.f32 %v13928_v44, %v9176_v46 }
 0x735   :  { %9208 = vst [vmem:[#allocation14 + $0x78] sm:$0xff] %v9192_v2 }
 0x736   :  { %11654 = shalt.err (!%p11651_p11)
}
 0x737   :  { %9220 = dma.vmem_to_hbm [thread:$0]  %s9215_s6, 2048, %s13960_s7, [#allocation4], %s11677_s11, %s11677_s11, %s11678_s12  }
 0x738   :  { %11671 = dma.done.wait [#allocation4], 2048  }
 0x739   :  { %11672 = vsyncadd [#allocation4], 4294965248 }
 0x73a   :  { %9224 = vsyncpa [#allocation3], 1 }
 0x73b   :  { %9225 = vsyncpa [#allocation6], 1 }
 0x73c   :  { %9226 = vsyncpa [#allocation9], 1 }
 0x73d   :  { %9227 = vsyncpa [#allocation12], 1 }
 0x73e   :  { %9228 = vsyncpa [#allocation4], 1 }

</bundles_post_ra>
